<compile_context>
chip_gen: v7x
topology: tpu7x:2x2x1
jax: 0.10.0
libtpu: 0.0.40
codegen_flags: <defaults>
</compile_context>

<pallas_src>
import jax
import jax.numpy as jnp
import numpy as np
from jax.experimental import pallas as pl
from jax.experimental.pallas import tpu as pltpu

GROUPS = 32
EPS = 1e-6
_COMPUTE_DTYPE = jnp.float32
_MATMUL_DTYPE = jnp.float32   # bf16 for production throughput; f32 matches torch f32 ref

_VMEM_LIMIT_CACHE = [None]


def _vmem_limit_bytes():
    if _VMEM_LIMIT_CACHE[0] is None:
        try:
            cap = int(pltpu.get_tpu_info().vmem_capacity_bytes)
        except Exception:
            cap = 64 * 1024 * 1024
        _VMEM_LIMIT_CACHE[0] = min(cap * 3 // 4, 96 * 1024 * 1024)
    return _VMEM_LIMIT_CACHE[0]


def _pick_band(H, m_per_row, target_m):
    """Largest row-band TH dividing H that yields ~target_m output pixels per band."""
    want = max(1, min(H, -(-target_m // max(1, m_per_row))))
    for t in range(want, 0, -1):
        if H % t == 0:
            return t
    return 1


# ---------------------------------------------------------------------------
# Standalone GroupNorm statistics pass (only for the block input x; every later
# activation gets its stats fused into the conv kernel that produces it).
# ---------------------------------------------------------------------------
def _input_stats_kernel(x_ref, o_ref):
    @pl.when(pl.program_id(1) == 0)
    def _init():
        o_ref[...] = jnp.zeros_like(o_ref)

    x = x_ref[0].astype(jnp.float32)               # (TH, W, C)
    xf = x.reshape(-1, x.shape[-1])                # (TH*W, C)
    o_ref[0, 0:1, :] += jnp.sum(xf, axis=0, keepdims=True)
    o_ref[0, 1:2, :] += jnp.sum(xf * xf, axis=0, keepdims=True)


def input_stats(x, target_m=512):
    N, H, W, C = x.shape
    TH = _pick_band(H, W, target_m)
    nb = H // TH
    return pl.pallas_call(
        _input_stats_kernel,
        grid=(N, nb),
        in_specs=[pl.BlockSpec((1, TH, W, C), lambda n, b: (n, b, 0, 0))],
        out_specs=pl.BlockSpec((1, 2, C), lambda n, b: (n, 0, 0)),
        out_shape=jax.ShapeDtypeStruct((N, 2, C), jnp.float32),
        compiler_params=pltpu.CompilerParams(
            dimension_semantics=("parallel", "arbitrary"),
            vmem_limit_bytes=_vmem_limit_bytes()),
    )(x)


def _scale_shift_from_stats(stats, gamma, beta, hw_count):
    """Fold GroupNorm + affine into per-(n, channel) scale/shift: y = x*scale + shift."""
    N, _, C = stats.shape
    Cg = C // GROUPS
    cnt = float(hw_count * Cg)
    gsum = stats[:, 0, :].reshape(N, GROUPS, Cg).sum(-1)       # (N, G)
    gssq = stats[:, 1, :].reshape(N, GROUPS, Cg).sum(-1)       # (N, G)
    mean = gsum / cnt
    var = jnp.maximum(gssq / cnt - mean * mean, 0.0)           # clamp E[x^2]-E[x]^2 >= 0
    rstd = jax.lax.rsqrt(var + EPS)
    mean_c = jnp.repeat(mean, Cg, axis=1)                      # (N, C)
    rstd_c = jnp.repeat(rstd, Cg, axis=1)
    scale = gamma[None, :] * rstd_c
    shift = beta[None, :] - mean_c * scale
    return scale[:, None, :].astype(jnp.float32), shift[:, None, :].astype(jnp.float32)


# ---------------------------------------------------------------------------
# Fused conv kernel: [GN + SiLU] -> [nearest 2x] -> conv3x3 -> [+residual] -> stats
# ---------------------------------------------------------------------------
def _dup2(x, axis):
    """Duplicate every element along `axis` (nearest 2x replication)."""
    shp = list(x.shape)
    shp[axis] *= 2
    return jnp.stack([x, x], axis=axis + 1).reshape(shp)


def _upsample_window(winp, TL, W):
    """(TL+2, W+2, C) zero-padded low-res window -> (2TL+2, 2W+2, C) zero-padded
    hi-res window for nearest-exact 2x: halo / pad rows and cols appear exactly once,
    interior rows/cols are replicated twice."""
    rows = jnp.concatenate(
        [winp[0:1], _dup2(winp[1:TL + 1], 0), winp[TL + 1:TL + 2]], axis=0)
    return jnp.concatenate(
        [rows[:, 0:1], _dup2(rows[:, 1:W + 1], 1), rows[:, W + 1:W + 2]], axis=1)


def _make_conv_kernel(TH, W, Cin, Cout, apply_act, shortcut, upsample, emit_stats):
    TH_o, W_o = (2 * TH, 2 * W) if upsample else (TH, W)
    M = TH_o * W_o

    def kernel(*refs):
        it = iter(refs)
        top_ref, mid_ref, bot_ref = next(it), next(it), next(it)
        scale_ref = next(it) if apply_act else None
        shift_ref = next(it) if apply_act else None
        w_ref, b_ref = next(it), next(it)
        res_ref = next(it) if shortcut else None
        wsc_ref = next(it) if shortcut == "conv" else None
        bsc_ref = next(it) if shortcut == "conv" else None
        o_ref = next(it)
        st_ref = next(it) if emit_stats else None

        b = pl.program_id(1)
        nb = pl.num_programs(1)

        top = top_ref[0].astype(_COMPUTE_DTYPE)        # (1,  W, Cin) halo row above
        mid = mid_ref[0].astype(_COMPUTE_DTYPE)        # (TH, W, Cin) band rows
        bot = bot_ref[0].astype(_COMPUTE_DTYPE)        # (1,  W, Cin) halo row below

        if apply_act:                                  # GroupNorm as scale/shift + SiLU
            sc = scale_ref[0].astype(_COMPUTE_DTYPE)   # (1, Cin)
            sh = shift_ref[0].astype(_COMPUTE_DTYPE)

            def act(v):
                v = v * sc + sh
                return v * jax.nn.sigmoid(v)           # exp/recip on the EUP slot

            top, mid, bot = act(top), act(mid), act(bot)

        # The conv's zero padding applies AFTER norm/act: halo rows that fall outside
        # the image (first / last band) and the left/right columns must be zero.
        top = jnp.where(b > 0, top, jnp.zeros_like(top))
        bot = jnp.where(b < nb - 1, bot, jnp.zeros_like(bot))
        win = jnp.concatenate([top, mid, bot], axis=0)            # (TH+2, W, Cin)
        zc = jnp.zeros((TH + 2, 1, Cin), _COMPUTE_DTYPE)
        winp = jnp.concatenate([zc, win, zc], axis=1)             # (TH+2, W+2, Cin)

        if upsample:                                              # fused nearest-exact 2x
            winp = _upsample_window(winp, TH, W)                  # (2TH+2, 2W+2, Cin)

        winp = winp.astype(_MATMUL_DTYPE)                         # single cast for all taps

        # 3x3 conv with the dx taps folded into K: 3 matmuls (M, 3*Cin) @ (3*Cin, Cout).
        acc = jnp.zeros((M, Cout), jnp.float32)
        for dy in range(3):
            rb = winp[dy:dy + TH_o]                               # (TH_o, W_o+2, Cin)
            lhs = jnp.concatenate(
                [rb[:, 0:W_o], rb[:, 1:W_o + 1], rb[:, 2:W_o + 2]], axis=-1)
            acc = acc + jnp.dot(lhs.reshape(M, 3 * Cin), w_ref[dy],
                                preferred_element_type=jnp.float32)
        acc = acc + b_ref[...]

        if shortcut is not None:                                  # fused residual path
            res = res_ref[0].reshape(M, -1)                       # (M, Cres)
            if shortcut == "identity":
                acc = acc + res.astype(jnp.float32)
            else:
                acc = acc + jnp.dot(res.astype(_MATMUL_DTYPE), wsc_ref[...],
                                    preferred_element_type=jnp.float32)
                acc = acc + bsc_ref[...]

        # Dense, unpadded band store (full block write).
        o_ref[0] = acc.reshape(TH_o, W_o, Cout).astype(o_ref.dtype)

        if emit_stats:  # GroupNorm stats of THIS output, for the next stage's norm.
            @pl.when(b == 0)
            def _init():
                st_ref[...] = jnp.zeros_like(st_ref)
            st_ref[0, 0:1, :] += jnp.sum(acc, axis=0, keepdims=True)
            st_ref[0, 1:2, :] += jnp.sum(acc * acc, axis=0, keepdims=True)

    return kernel


def fused_conv3x3(x, w, bias, *, scale=None, shift=None, res=None, wsc=None, bsc=None,
                  upsample=False, emit_stats=True, out_dtype=None, target_m=512):
    """3x3 SAME conv over NHWC `x` with optional fused GroupNorm(scale/shift)+SiLU on
    the input, fused nearest-exact 2x upsample of the input, fused residual / 1x1
    shortcut on the output, and (optionally) per-(n, channel) sum / sum-of-squares of
    the output as a second result (GroupNorm stats for the next stage)."""
    N, H, W, Cin = x.shape
    Cout = w.shape[-1]
    out_dtype = x.dtype if out_dtype is None else out_dtype
    sf = 2 if upsample else 1
    TH = _pick_band(H, W * sf * sf, target_m)
    nb = H // TH
    TH_o, W_o, H_o = TH * sf, W * sf, H * sf
    apply_act = scale is not None
    shortcut = None if res is None else ("conv" if wsc is not None else "identity")
    kernel = _make_conv_kernel(TH, W, Cin, Cout, apply_act, shortcut, upsample, emit_stats)

    # Input band + 1-row halos above/below, fetched as three Blocked views of x so
    # VMEM holds O(band), not the full image.
    in_specs = [
        pl.BlockSpec((1, 1, W, Cin),
                     lambda n, b: (n, jnp.maximum(b * TH - 1, 0), 0, 0)),
        pl.BlockSpec((1, TH, W, Cin), lambda n, b: (n, b, 0, 0)),
        pl.BlockSpec((1, 1, W, Cin),
                     lambda n, b: (n, jnp.minimum((b + 1) * TH, H - 1), 0, 0)),
    ]
    args = [x, x, x]
    if apply_act:
        nc_spec = pl.BlockSpec((1, 1, Cin), lambda n, b: (n, 0, 0))
        in_specs += [nc_spec, nc_spec]
        args += [scale, shift]
    in_specs += [pl.BlockSpec((3, 3 * Cin, Cout), lambda n, b: (0, 0, 0)),
                 pl.BlockSpec((1, Cout), lambda n, b: (0, 0))]
    args += [w.reshape(3, 3 * Cin, Cout).astype(_MATMUL_DTYPE),
             bias.reshape(1, Cout).astype(jnp.float32)]
    if shortcut is not None:
        Cres = res.shape[-1]
        in_specs.append(pl.BlockSpec((1, TH, W, Cres), lambda n, b: (n, b, 0, 0)))
        args.append(res)
        if shortcut == "conv":
            in_specs += [pl.BlockSpec((Cres, Cout), lambda n, b: (0, 0)),
                         pl.BlockSpec((1, Cout), lambda n, b: (0, 0))]
            args += [wsc.astype(_MATMUL_DTYPE),
                     bsc.reshape(1, Cout).astype(jnp.float32)]

    out_specs = [pl.BlockSpec((1, TH_o, W_o, Cout), lambda n, b: (n, b, 0, 0))]
    out_shapes = [jax.ShapeDtypeStruct((N, H_o, W_o, Cout), out_dtype)]
    if emit_stats:
        out_specs.append(pl.BlockSpec((1, 2, Cout), lambda n, b: (n, 0, 0)))
        out_shapes.append(jax.ShapeDtypeStruct((N, 2, Cout), jnp.float32))

    outs = pl.pallas_call(
        kernel,
        grid=(N, nb),
        in_specs=in_specs,
        out_specs=out_specs,
        out_shape=out_shapes,
        compiler_params=pltpu.CompilerParams(
            # TODO(synk): on v7x with N=1, also split the band axis across the 2 cores
            # (needs per-core partial stats + a tiny combine) to use both TensorCores.
            dimension_semantics=("parallel", "arbitrary"),
            vmem_limit_bytes=_vmem_limit_bytes()),
    )(*args)
    if emit_stats:
        return outs[0], outs[1]
    return outs[0]


# ---------------------------------------------------------------------------
# UpBlock forward (fused Pallas pipeline)
# ---------------------------------------------------------------------------
def resnet_block_fwd(x, x_stats, p, target_m, emit_out_stats=True):
    N, H, W, _ = x.shape
    s1, t1 = _scale_shift_from_stats(x_stats, p["norm1_w"], p["norm1_b"], H * W)
    h, h_stats = fused_conv3x3(x, p["conv1_w"], p["conv1_b"], scale=s1, shift=t1,
                               emit_stats=True, target_m=target_m)
    s2, t2 = _scale_shift_from_stats(h_stats, p["norm2_w"], p["norm2_b"], H * W)
    wsc = p["shortcut_w"][0, 0] if "shortcut_w" in p else None
    bsc = p.get("shortcut_b")
    if emit_out_stats:
        out, out_stats = fused_conv3x3(h, p["conv2_w"], p["conv2_b"], scale=s2, shift=t2,
                                       res=x, wsc=wsc, bsc=bsc,
                                       emit_stats=True, target_m=target_m)
    else:
        out = fused_conv3x3(h, p["conv2_w"], p["conv2_b"], scale=s2, shift=t2,
                            res=x, wsc=wsc, bsc=bsc,
                            emit_stats=False, target_m=target_m)
        out_stats = None
    return out, out_stats


def up_block_fwd(x, params, target_m=512):
    stats = input_stats(x, target_m)
    h = x
    n_res = len(params["resnets"])
    for i, p in enumerate(params["resnets"]):
        h, stats = resnet_block_fwd(h, stats, p, target_m,
                                    emit_out_stats=(i < n_res - 1))
    ups = params.get("upsampler")
    if ups is not None:
        # Fused nearest-exact 2x + conv3x3: the 4x-size upsampled tensor is never
        # materialized in HBM; the kernel writes the final unpadded f32 output.
        h = fused_conv3x3(h, ups["conv_w"], ups["conv_b"], upsample=True,
                          emit_stats=False, out_dtype=jnp.float32, target_m=target_m)
    return h


# ---------------------------------------------------------------------------
# Pure-JAX f32 reference (sanity check)
# ---------------------------------------------------------------------------
def ref_gn_silu(x, gamma, beta):
    N, H, W, C = x.shape
    Cg = C // GROUPS
    xg = x.reshape(N, H, W, GROUPS, Cg)
    mean = xg.mean(axis=(1, 2, 4), keepdims=True)
    var = ((xg - mean) ** 2).mean(axis=(1, 2, 4), keepdims=True)
    y = ((xg - mean) * jax.lax.rsqrt(var + EPS)).reshape(N, H, W, C)
    y = y * gamma + beta
    return y * jax.nn.sigmoid(y)


def ref_conv(x, w, b):
    out = jax.lax.conv_general_dilated(
        x, w, (1, 1), "SAME", dimension_numbers=("NHWC", "HWIO", "NHWC"))
    return out + b


def ref_resnet(x, p):
    h = ref_gn_silu(x, p["norm1_w"], p["norm1_b"])
    h = ref_conv(h, p["conv1_w"], p["conv1_b"])
    h = ref_gn_silu(h, p["norm2_w"], p["norm2_b"])
    h = ref_conv(h, p["conv2_w"], p["conv2_b"])
    if "shortcut_w" in p:
        x = ref_conv(x, p["shortcut_w"], p["shortcut_b"])
    return x + h


def ref_up_block(x, params):
    h = x
    for p in params["resnets"]:
        h = ref_resnet(h, p)
    if params.get("upsampler") is not None:
        h = jnp.repeat(jnp.repeat(h, 2, axis=1), 2, axis=2)
        h = ref_conv(h, params["upsampler"]["conv_w"], params["upsampler"]["conv_b"])
    return h


# ---------------------------------------------------------------------------
# Deterministic synthetic parameters (shapes follow the torch module)
# ---------------------------------------------------------------------------
def init_resnet_params(key, size_in, size_out):
    ks = jax.random.split(key, 10)
    p = {
        "norm1_w": 1.0 + 0.1 * jax.random.normal(ks[0], (size_in,), jnp.float32),
        "norm1_b": 0.1 * jax.random.normal(ks[1], (size_in,), jnp.float32),
        "conv1_w": 0.05 * jax.random.normal(ks[2], (3, 3, size_in, size_out), jnp.float32),
        "conv1_b": 0.05 * jax.random.normal(ks[3], (size_out,), jnp.float32),
        "norm2_w": 1.0 + 0.1 * jax.random.normal(ks[4], (size_out,), jnp.float32),
        "norm2_b": 0.1 * jax.random.normal(ks[5], (size_out,), jnp.float32),
        "conv2_w": 0.05 * jax.random.normal(ks[6], (3, 3, size_out, size_out), jnp.float32),
        "conv2_b": 0.05 * jax.random.normal(ks[7], (size_out,), jnp.float32),
    }
    if size_in != size_out:
        p["shortcut_w"] = 0.05 * jax.random.normal(ks[8], (1, 1, size_in, size_out), jnp.float32)
        p["shortcut_b"] = 0.05 * jax.random.normal(ks[9], (size_out,), jnp.float32)
    return p


if __name__ == "__main__":
    key = jax.random.PRNGKey(0)
    k_x, k_p = jax.random.split(key)
    N, H, W = 2, 16, 8
    size_in, size_out = 32, 64          # multiples of 32 (GroupNorm groups)

    x = jax.random.normal(k_x, (N, H, W, size_in), jnp.float32)   # NHWC input

    kr1, kr2, kr3, ku = jax.random.split(k_p, 4)
    params = {
        "resnets": [
            init_resnet_params(kr1, size_in, size_out),
            init_resnet_params(kr2, size_out, size_out),
            init_resnet_params(kr3, size_out, size_out),
        ],
        "upsampler": {
            "conv_w": 0.05 * jax.random.normal(jax.random.fold_in(ku, 0),
                                               (3, 3, size_out, size_out), jnp.float32),
            "conv_b": 0.05 * jax.random.normal(jax.random.fold_in(ku, 1),
                                               (size_out,), jnp.float32),
        },
    }

    fwd = jax.jit(up_block_fwd, static_argnames=("target_m",))
    # target_m=64 forces several row bands per image at this toy size so the halo /
    # stats-accumulation paths are exercised; default is 512 for real SDXL shapes.
    out = jax.block_until_ready(fwd(x, params, target_m=64))
    assert out.shape == (N, 2 * H, 2 * W, size_out), out.shape

    ref = jax.block_until_ready(ref_up_block(x, params))
    np.testing.assert_allclose(np.asarray(out), np.asarray(ref), rtol=1e-3, atol=1e-3)

    print("KERNEL_OK")
</pallas_src>

<mosaic_0001>
module attributes {stable_mosaic.version = 11 : i64} {
  func.func @_input_stats_kernel(%arg0: i32, %arg1: i32, %arg2: memref<1x8x8x32xf32, #tpu.memory_space<vmem>>, %arg3: memref<1x2x32xf32, #tpu.memory_space<vmem>>) attributes {dimension_semantics = [#tpu.dimension_semantics<parallel>, #tpu.dimension_semantics<arbitrary>], iteration_bounds = array<i64: 2, 2>, scalar_prefetch = 0 : i64, scratch_operands = 0 : i64, tpu.core_type = #tpu.core_type<tc>, window_params = [{transform_indices = @transform_0, window_bounds = array<i64: 1, 8, 8, 32>}, {transform_indices = @transform_1, window_bounds = array<i64: 1, 2, 32>}]} {
    %c0_i32 = arith.constant 0 : i32
    %0 = arith.cmpi eq, %arg1, %c0_i32 : i32
    %1 = arith.extui %0 : i1 to i32
    %c0_i32_0 = arith.constant 0 : i32
    %2 = arith.cmpi ne, %1, %c0_i32_0 : i32
    scf.if %2 {
      %cst_16 = arith.constant 0.000000e+00 : f32
      %23 = vector.broadcast %cst_16 : f32 to vector<1x2x32xf32>
      %c0_17 = arith.constant 0 : index
      %c0_18 = arith.constant 0 : index
      %c0_19 = arith.constant 0 : index
      %24 = vector.load %arg3[%c0_17, %c0_18, %c0_19] : memref<1x2x32xf32, #tpu.memory_space<vmem>>, vector<1x2x32xf32>
      tpu.vector_store %arg3[%c0_17, %c0_18, %c0_19], %23 {strides = array<i32>} : memref<1x2x32xf32, #tpu.memory_space<vmem>>, vector<1x2x32xf32>,
    } else {
    }
    %c0 = arith.constant 0 : index
    %c0_1 = arith.constant 0 : index
    %c0_2 = arith.constant 0 : index
    %c0_3 = arith.constant 0 : index
    %3 = vector.load %arg2[%c0, %c0_1, %c0_2, %c0_3] : memref<1x8x8x32xf32, #tpu.memory_space<vmem>>, vector<1x8x8x32xf32>
    %4 = vector.shape_cast %3 : vector<1x8x8x32xf32> to vector<8x8x32xf32>
    %5 = vector.shape_cast %4 : vector<8x8x32xf32> to vector<64x32xf32>
    %c0_4 = arith.constant 0 : index
    %c0_5 = arith.constant 0 : index
    %c0_6 = arith.constant 0 : index
    %6 = vector.load %arg3[%c0_4, %c0_5, %c0_6] : memref<1x2x32xf32, #tpu.memory_space<vmem>>, vector<1x1x32xf32>
    %7 = vector.shape_cast %6 : vector<1x1x32xf32> to vector<1x32xf32>
    %cst = arith.constant dense<0.000000e+00> : vector<32xf32>
    %8 = vector.multi_reduction <add>, %5, %cst [0] : vector<64x32xf32> to vector<32xf32>
    %9 = vector.shape_cast %8 : vector<32xf32> to vector<1x32xf32>
    %10 = arith.addf %7, %9 : vector<1x32xf32>
    %c0_7 = arith.constant 0 : index
    %c0_8 = arith.constant 0 : index
    %c0_9 = arith.constant 0 : index
    %11 = vector.load %arg3[%c0_7, %c0_8, %c0_9] : memref<1x2x32xf32, #tpu.memory_space<vmem>>, vector<1x1x32xf32>
    %12 = vector.shape_cast %11 : vector<1x1x32xf32> to vector<1x32xf32>
    %13 = vector.shape_cast %10 : vector<1x32xf32> to vector<1x1x32xf32>
    tpu.vector_store %arg3[%c0_7, %c0_8, %c0_9], %13 {strides = array<i32>} : memref<1x2x32xf32, #tpu.memory_space<vmem>>, vector<1x1x32xf32>,
    %c0_10 = arith.constant 0 : index
    %c1 = arith.constant 1 : index
    %c0_11 = arith.constant 0 : index
    %14 = vector.load %arg3[%c0_10, %c1, %c0_11] : memref<1x2x32xf32, #tpu.memory_space<vmem>>, vector<1x1x32xf32>
    %15 = vector.shape_cast %14 : vector<1x1x32xf32> to vector<1x32xf32>
    %16 = arith.mulf %5, %5 : vector<64x32xf32>
    %cst_12 = arith.constant dense<0.000000e+00> : vector<32xf32>
    %17 = vector.multi_reduction <add>, %16, %cst_12 [0] : vector<64x32xf32> to vector<32xf32>
    %18 = vector.shape_cast %17 : vector<32xf32> to vector<1x32xf32>
    %19 = arith.addf %15, %18 : vector<1x32xf32>
    %c0_13 = arith.constant 0 : index
    %c1_14 = arith.constant 1 : index
    %c0_15 = arith.constant 0 : index
    %20 = vector.load %arg3[%c0_13, %c1_14, %c0_15] : memref<1x2x32xf32, #tpu.memory_space<vmem>>, vector<1x1x32xf32>
    %21 = vector.shape_cast %20 : vector<1x1x32xf32> to vector<1x32xf32>
    %22 = vector.shape_cast %19 : vector<1x32xf32> to vector<1x1x32xf32>
    tpu.vector_store %arg3[%c0_13, %c1_14, %c0_15], %22 {strides = array<i32>} : memref<1x2x32xf32, #tpu.memory_space<vmem>>, vector<1x1x32xf32>,
    return
  }
  func.func @transform_0(%arg0: i32, %arg1: i32) -> (i32, i32, i32, i32) {
    %c0_i32 = arith.constant 0 : i32
    %c0_i32_0 = arith.constant 0 : i32
    %c0_i32_1 = arith.constant 0 : i32
    return %arg0, %arg1, %c0_i32, %c0_i32_0 : i32, i32, i32, i32
  }
  func.func @transform_1(%arg0: i32, %arg1: i32) -> (i32, i32, i32) {
    %c0_i32 = arith.constant 0 : i32
    %c0_i32_0 = arith.constant 0 : i32
    %c0_i32_1 = arith.constant 0 : i32
    return %arg0, %c0_i32, %c0_i32_0 : i32, i32, i32
  }
}

module attributes {stable_mosaic.version = 11 : i64} {
  func.func @kernel(%arg0: i32, %arg1: i32, %arg2: memref<1x1x8x32xf32, #tpu.memory_space<vmem>>, %arg3: memref<1x8x8x32xf32, #tpu.memory_space<vmem>>, %arg4: memref<1x1x8x32xf32, #tpu.memory_space<vmem>>, %arg5: memref<1x1x32xf32, #tpu.memory_space<vmem>>, %arg6: memref<1x1x32xf32, #tpu.memory_space<vmem>>, %arg7: memref<3x96x64xf32, #tpu.memory_space<vmem>>, %arg8: memref<1x64xf32, #tpu.memory_space<vmem>>, %arg9: memref<1x8x8x64xf32, #tpu.memory_space<vmem>>, %arg10: memref<1x2x64xf32, #tpu.memory_space<vmem>>) attributes {dimension_semantics = [#tpu.dimension_semantics<parallel>, #tpu.dimension_semantics<arbitrary>], iteration_bounds = array<i64: 2, 2>, scalar_prefetch = 0 : i64, scratch_operands = 0 : i64, tpu.core_type = #tpu.core_type<tc>, window_params = [{transform_indices = @transform_0, window_bounds = array<i64: 1, 1, 8, 32>}, {transform_indices = @transform_1, window_bounds = array<i64: 1, 8, 8, 32>}, {transform_indices = @transform_2, window_bounds = array<i64: 1, 1, 8, 32>}, {transform_indices = @transform_3, window_bounds = array<i64: 1, 1, 32>}, {transform_indices = @transform_4, window_bounds = array<i64: 1, 1, 32>}, {pipeline_mode = #tpu.pipeline_mode<synchronous>, transform_indices = @transform_5, window_bounds = array<i64: 3, 96, 64>}, {pipeline_mode = #tpu.pipeline_mode<synchronous>, transform_indices = @transform_6, window_bounds = array<i64: 1, 64>}, {transform_indices = @transform_7, window_bounds = array<i64: 1, 8, 8, 64>}, {transform_indices = @transform_8, window_bounds = array<i64: 1, 2, 64>}]} {
    %c0 = arith.constant 0 : index
    %c0_0 = arith.constant 0 : index
    %c0_1 = arith.constant 0 : index
    %c0_2 = arith.constant 0 : index
    %0 = vector.load %arg2[%c0, %c0_0, %c0_1, %c0_2] : memref<1x1x8x32xf32, #tpu.memory_space<vmem>>, vector<1x1x8x32xf32>
    %1 = vector.shape_cast %0 : vector<1x1x8x32xf32> to vector<1x8x32xf32>
    %c0_3 = arith.constant 0 : index
    %c0_4 = arith.constant 0 : index
    %c0_5 = arith.constant 0 : index
    %c0_6 = arith.constant 0 : index
    %2 = vector.load %arg3[%c0_3, %c0_4, %c0_5, %c0_6] : memref<1x8x8x32xf32, #tpu.memory_space<vmem>>, vector<1x8x8x32xf32>
    %3 = vector.shape_cast %2 : vector<1x8x8x32xf32> to vector<8x8x32xf32>
    %c0_7 = arith.constant 0 : index
    %c0_8 = arith.constant 0 : index
    %c0_9 = arith.constant 0 : index
    %c0_10 = arith.constant 0 : index
    %4 = vector.load %arg4[%c0_7, %c0_8, %c0_9, %c0_10] : memref<1x1x8x32xf32, #tpu.memory_space<vmem>>, vector<1x1x8x32xf32>
    %5 = vector.shape_cast %4 : vector<1x1x8x32xf32> to vector<1x8x32xf32>
    %c0_11 = arith.constant 0 : index
    %c0_12 = arith.constant 0 : index
    %c0_13 = arith.constant 0 : index
    %6 = vector.load %arg5[%c0_11, %c0_12, %c0_13] : memref<1x1x32xf32, #tpu.memory_space<vmem>>, vector<1x1x32xf32>
    %7 = vector.shape_cast %6 : vector<1x1x32xf32> to vector<1x32xf32>
    %c0_14 = arith.constant 0 : index
    %c0_15 = arith.constant 0 : index
    %c0_16 = arith.constant 0 : index
    %8 = vector.load %arg6[%c0_14, %c0_15, %c0_16] : memref<1x1x32xf32, #tpu.memory_space<vmem>>, vector<1x1x32xf32>
    %9 = vector.shape_cast %8 : vector<1x1x32xf32> to vector<1x32xf32>
    %10 = vector.shape_cast %7 : vector<1x32xf32> to vector<1x1x32xf32>
    %11 = vector.broadcast %10 : vector<1x1x32xf32> to vector<1x8x32xf32>
    %12 = arith.mulf %1, %11 : vector<1x8x32xf32>
    %13 = vector.shape_cast %9 : vector<1x32xf32> to vector<1x1x32xf32>
    %14 = vector.broadcast %13 : vector<1x1x32xf32> to vector<1x8x32xf32>
    %15 = arith.addf %12, %14 : vector<1x8x32xf32>
    %16 = arith.negf %15 : vector<1x8x32xf32>
    %17 = math.exp %16 : vector<1x8x32xf32>
    %cst = arith.constant 1.000000e+00 : f32
    %18 = vector.broadcast %cst : f32 to vector<1x8x32xf32>
    %19 = arith.addf %18, %17 : vector<1x8x32xf32>
    %20 = arith.divf %18, %19 : vector<1x8x32xf32>
    %21 = arith.mulf %15, %20 : vector<1x8x32xf32>
    %22 = vector.shape_cast %7 : vector<1x32xf32> to vector<1x1x32xf32>
    %23 = vector.broadcast %22 : vector<1x1x32xf32> to vector<8x8x32xf32>
    %24 = arith.mulf %3, %23 : vector<8x8x32xf32>
    %25 = vector.shape_cast %9 : vector<1x32xf32> to vector<1x1x32xf32>
    %26 = vector.broadcast %25 : vector<1x1x32xf32> to vector<8x8x32xf32>
    %27 = arith.addf %24, %26 : vector<8x8x32xf32>
    %28 = arith.negf %27 : vector<8x8x32xf32>
    %29 = math.exp %28 : vector<8x8x32xf32>
    %cst_17 = arith.constant 1.000000e+00 : f32
    %30 = vector.broadcast %cst_17 : f32 to vector<8x8x32xf32>
    %31 = arith.addf %30, %29 : vector<8x8x32xf32>
    %32 = arith.divf %30, %31 : vector<8x8x32xf32>
    %33 = arith.mulf %27, %32 : vector<8x8x32xf32>
    %34 = vector.shape_cast %7 : vector<1x32xf32> to vector<1x1x32xf32>
    %35 = vector.broadcast %34 : vector<1x1x32xf32> to vector<1x8x32xf32>
    %36 = arith.mulf %5, %35 : vector<1x8x32xf32>
    %37 = vector.shape_cast %9 : vector<1x32xf32> to vector<1x1x32xf32>
    %38 = vector.broadcast %37 : vector<1x1x32xf32> to vector<1x8x32xf32>
    %39 = arith.addf %36, %38 : vector<1x8x32xf32>
    %40 = arith.negf %39 : vector<1x8x32xf32>
    %41 = math.exp %40 : vector<1x8x32xf32>
    %cst_18 = arith.constant 1.000000e+00 : f32
    %42 = vector.broadcast %cst_18 : f32 to vector<1x8x32xf32>
    %43 = arith.addf %42, %41 : vector<1x8x32xf32>
    %44 = arith.divf %42, %43 : vector<1x8x32xf32>
    %45 = arith.mulf %39, %44 : vector<1x8x32xf32>
    %c0_i32 = arith.constant 0 : i32
    %46 = arith.cmpi sgt, %arg1, %c0_i32 : i32
    %cst_19 = arith.constant 0.000000e+00 : f32
    %47 = vector.broadcast %cst_19 : f32 to vector<1x8x32xf32>
    %48 = arith.select %46, %21, %47 : vector<1x8x32xf32>
    %c1_i32 = arith.constant 1 : i32
    %49 = arith.cmpi slt, %arg1, %c1_i32 : i32
    %cst_20 = arith.constant 0.000000e+00 : f32
    %50 = vector.broadcast %cst_20 : f32 to vector<1x8x32xf32>
    %51 = arith.select %49, %45, %50 : vector<1x8x32xf32>
    %52 = tpu.concatenate %48, %33, %51 in 0 : vector<1x8x32xf32>, vector<8x8x32xf32>, vector<1x8x32xf32> -> vector<10x8x32xf32>
    %cst_21 = arith.constant 0.000000e+00 : f32
    %53 = vector.broadcast %cst_21 : f32 to vector<10x1x32xf32>
    %54 = tpu.concatenate %53, %52, %53 in 1 : vector<10x1x32xf32>, vector<10x8x32xf32>, vector<10x1x32xf32> -> vector<10x10x32xf32>
    %cst_22 = arith.constant 0.000000e+00 : f32
    %55 = vector.broadcast %cst_22 : f32 to vector<64x64xf32>
    %56 = vector.extract_strided_slice %54 {offsets = [0, 0, 0], sizes = [8, 10, 32], strides = [1, 1, 1]} : vector<10x10x32xf32> to vector<8x10x32xf32>
    %57 = vector.extract_strided_slice %56 {offsets = [0, 0, 0], sizes = [8, 8, 32], strides = [1, 1, 1]} : vector<8x10x32xf32> to vector<8x8x32xf32>
    %58 = vector.extract_strided_slice %56 {offsets = [0, 1, 0], sizes = [8, 8, 32], strides = [1, 1, 1]} : vector<8x10x32xf32> to vector<8x8x32xf32>
    %59 = vector.extract_strided_slice %56 {offsets = [0, 2, 0], sizes = [8, 8, 32], strides = [1, 1, 1]} : vector<8x10x32xf32> to vector<8x8x32xf32>
    %60 = tpu.concatenate %57, %58, %59 in 2 : vector<8x8x32xf32>, vector<8x8x32xf32>, vector<8x8x32xf32> -> vector<8x8x96xf32>
    %61 = vector.shape_cast %60 : vector<8x8x96xf32> to vector<64x96xf32>
    %c0_23 = arith.constant 0 : index
    %c0_24 = arith.constant 0 : index
    %c0_25 = arith.constant 0 : index
    %62 = vector.load %arg7[%c0_23, %c0_24, %c0_25] : memref<3x96x64xf32, #tpu.memory_space<vmem>>, vector<1x96x64xf32>
    %63 = vector.shape_cast %62 : vector<1x96x64xf32> to vector<96x64xf32>
    %cst_26 = arith.constant dense<0.000000e+00> : vector<64x64xf32>
    %64 = tpu.matmul %61, %63, %cst_26 {dimension_numbers = #tpu.dot_dimension_numbers<[1], [0], [0], [1], [0, 0, 1, 1], [], []>} : vector<64x96xf32>, vector<96x64xf32>, vector<64x64xf32> -> vector<64x64xf32>
    %65 = arith.addf %55, %64 : vector<64x64xf32>
    %66 = vector.extract_strided_slice %54 {offsets = [1, 0, 0], sizes = [8, 10, 32], strides = [1, 1, 1]} : vector<10x10x32xf32> to vector<8x10x32xf32>
    %67 = vector.extract_strided_slice %66 {offsets = [0, 0, 0], sizes = [8, 8, 32], strides = [1, 1, 1]} : vector<8x10x32xf32> to vector<8x8x32xf32>
    %68 = vector.extract_strided_slice %66 {offsets = [0, 1, 0], sizes = [8, 8, 32], strides = [1, 1, 1]} : vector<8x10x32xf32> to vector<8x8x32xf32>
    %69 = vector.extract_strided_slice %66 {offsets = [0, 2, 0], sizes = [8, 8, 32], strides = [1, 1, 1]} : vector<8x10x32xf32> to vector<8x8x32xf32>
    %70 = tpu.concatenate %67, %68, %69 in 2 : vector<8x8x32xf32>, vector<8x8x32xf32>, vector<8x8x32xf32> -> vector<8x8x96xf32>
    %71 = vector.shape_cast %70 : vector<8x8x96xf32> to vector<64x96xf32>
    %c1 = arith.constant 1 : index
    %c0_27 = arith.constant 0 : index
    %c0_28 = arith.constant 0 : index
    %72 = vector.load %arg7[%c1, %c0_27, %c0_28] : memref<3x96x64xf32, #tpu.memory_space<vmem>>, vector<1x96x64xf32>
    %73 = vector.shape_cast %72 : vector<1x96x64xf32> to vector<96x64xf32>
    %cst_29 = arith.constant dense<0.000000e+00> : vector<64x64xf32>
    %74 = tpu.matmul %71, %73, %cst_29 {dimension_numbers = #tpu.dot_dimension_numbers<[1], [0], [0], [1], [0, 0, 1, 1], [], []>} : vector<64x96xf32>, vector<96x64xf32>, vector<64x64xf32> -> vector<64x64xf32>
    %75 = arith.addf %65, %74 : vector<64x64xf32>
    %76 = vector.extract_strided_slice %54 {offsets = [2, 0, 0], sizes = [8, 10, 32], strides = [1, 1, 1]} : vector<10x10x32xf32> to vector<8x10x32xf32>
    %77 = vector.extract_strided_slice %76 {offsets = [0, 0, 0], sizes = [8, 8, 32], strides = [1, 1, 1]} : vector<8x10x32xf32> to vector<8x8x32xf32>
    %78 = vector.extract_strided_slice %76 {offsets = [0, 1, 0], sizes = [8, 8, 32], strides = [1, 1, 1]} : vector<8x10x32xf32> to vector<8x8x32xf32>
    %79 = vector.extract_strided_slice %76 {offsets = [0, 2, 0], sizes = [8, 8, 32], strides = [1, 1, 1]} : vector<8x10x32xf32> to vector<8x8x32xf32>
    %80 = tpu.concatenate %77, %78, %79 in 2 : vector<8x8x32xf32>, vector<8x8x32xf32>, vector<8x8x32xf32> -> vector<8x8x96xf32>
    %81 = vector.shape_cast %80 : vector<8x8x96xf32> to vector<64x96xf32>
    %c2 = arith.constant 2 : index
    %c0_30 = arith.constant 0 : index
    %c0_31 = arith.constant 0 : index
    %82 = vector.load %arg7[%c2, %c0_30, %c0_31] : memref<3x96x64xf32, #tpu.memory_space<vmem>>, vector<1x96x64xf32>
    %83 = vector.shape_cast %82 : vector<1x96x64xf32> to vector<96x64xf32>
    %cst_32 = arith.constant dense<0.000000e+00> : vector<64x64xf32>
    %84 = tpu.matmul %81, %83, %cst_32 {dimension_numbers = #tpu.dot_dimension_numbers<[1], [0], [0], [1], [0, 0, 1, 1], [], []>} : vector<64x96xf32>, vector<96x64xf32>, vector<64x64xf32> -> vector<64x64xf32>
    %85 = arith.addf %75, %84 : vector<64x64xf32>
    %c0_33 = arith.constant 0 : index
    %c0_34 = arith.constant 0 : index
    %86 = vector.load %arg8[%c0_33, %c0_34] : memref<1x64xf32, #tpu.memory_space<vmem>>, vector<1x64xf32>
    %87 = vector.broadcast %86 : vector<1x64xf32> to vector<64x64xf32>
    %88 = arith.addf %85, %87 : vector<64x64xf32>
    %89 = vector.shape_cast %88 : vector<64x64xf32> to vector<8x8x64xf32>
    %c0_35 = arith.constant 0 : index
    %c0_36 = arith.constant 0 : index
    %c0_37 = arith.constant 0 : index
    %c0_38 = arith.constant 0 : index
    %90 = vector.load %arg9[%c0_35, %c0_36, %c0_37, %c0_38] : memref<1x8x8x64xf32, #tpu.memory_space<vmem>>, vector<1x8x8x64xf32>
    %91 = vector.shape_cast %90 : vector<1x8x8x64xf32> to vector<8x8x64xf32>
    %92 = vector.shape_cast %89 : vector<8x8x64xf32> to vector<1x8x8x64xf32>
    tpu.vector_store %arg9[%c0_35, %c0_36, %c0_37, %c0_38], %92 {strides = array<i32>} : memref<1x8x8x64xf32, #tpu.memory_space<vmem>>, vector<1x8x8x64xf32>,
    %c0_i32_39 = arith.constant 0 : i32
    %93 = arith.cmpi eq, %arg1, %c0_i32_39 : i32
    %94 = arith.extui %93 : i1 to i32
    %c0_i32_40 = arith.constant 0 : i32
    %95 = arith.cmpi ne, %94, %c0_i32_40 : i32
    scf.if %95 {
      %cst_55 = arith.constant 0.000000e+00 : f32
      %113 = vector.broadcast %cst_55 : f32 to vector<1x2x64xf32>
      %c0_56 = arith.constant 0 : index
      %c0_57 = arith.constant 0 : index
      %c0_58 = arith.constant 0 : index
      %114 = vector.load %arg10[%c0_56, %c0_57, %c0_58] : memref<1x2x64xf32, #tpu.memory_space<vmem>>, vector<1x2x64xf32>
      tpu.vector_store %arg10[%c0_56, %c0_57, %c0_58], %113 {strides = array<i32>} : memref<1x2x64xf32, #tpu.memory_space<vmem>>, vector<1x2x64xf32>,
    } else {
    }
    %c0_41 = arith.constant 0 : index
    %c0_42 = arith.constant 0 : index
    %c0_43 = arith.constant 0 : index
    %96 = vector.load %arg10[%c0_41, %c0_42, %c0_43] : memref<1x2x64xf32, #tpu.memory_space<vmem>>, vector<1x1x64xf32>
    %97 = vector.shape_cast %96 : vector<1x1x64xf32> to vector<1x64xf32>
    %cst_44 = arith.constant dense<0.000000e+00> : vector<64xf32>
    %98 = vector.multi_reduction <add>, %88, %cst_44 [0] : vector<64x64xf32> to vector<64xf32>
    %99 = vector.shape_cast %98 : vector<64xf32> to vector<1x64xf32>
    %100 = arith.addf %97, %99 : vector<1x64xf32>
    %c0_45 = arith.constant 0 : index
    %c0_46 = arith.constant 0 : index
    %c0_47 = arith.constant 0 : index
    %101 = vector.load %arg10[%c0_45, %c0_46, %c0_47] : memref<1x2x64xf32, #tpu.memory_space<vmem>>, vector<1x1x64xf32>
    %102 = vector.shape_cast %101 : vector<1x1x64xf32> to vector<1x64xf32>
    %103 = vector.shape_cast %100 : vector<1x64xf32> to vector<1x1x64xf32>
    tpu.vector_store %arg10[%c0_45, %c0_46, %c0_47], %103 {strides = array<i32>} : memref<1x2x64xf32, #tpu.memory_space<vmem>>, vector<1x1x64xf32>,
    %c0_48 = arith.constant 0 : index
    %c1_49 = arith.constant 1 : index
    %c0_50 = arith.constant 0 : index
    %104 = vector.load %arg10[%c0_48, %c1_49, %c0_50] : memref<1x2x64xf32, #tpu.memory_space<vmem>>, vector<1x1x64xf32>
    %105 = vector.shape_cast %104 : vector<1x1x64xf32> to vector<1x64xf32>
    %106 = arith.mulf %88, %88 : vector<64x64xf32>
    %cst_51 = arith.constant dense<0.000000e+00> : vector<64xf32>
    %107 = vector.multi_reduction <add>, %106, %cst_51 [0] : vector<64x64xf32> to vector<64xf32>
    %108 = vector.shape_cast %107 : vector<64xf32> to vector<1x64xf32>
    %109 = arith.addf %105, %108 : vector<1x64xf32>
    %c0_52 = arith.constant 0 : index
    %c1_53 = arith.constant 1 : index
    %c0_54 = arith.constant 0 : index
    %110 = vector.load %arg10[%c0_52, %c1_53, %c0_54] : memref<1x2x64xf32, #tpu.memory_space<vmem>>, vector<1x1x64xf32>
    %111 = vector.shape_cast %110 : vector<1x1x64xf32> to vector<1x64xf32>
    %112 = vector.shape_cast %109 : vector<1x64xf32> to vector<1x1x64xf32>
    tpu.vector_store %arg10[%c0_52, %c1_53, %c0_54], %112 {strides = array<i32>} : memref<1x2x64xf32, #tpu.memory_space<vmem>>, vector<1x1x64xf32>,
    return
  }
  func.func @transform_0(%arg0: i32, %arg1: i32) -> (i32, i32, i32, i32) {
    %c8_i32 = arith.constant 8 : i32
    %0 = arith.muli %arg1, %c8_i32 : i32
    %c1_i32 = arith.constant 1 : i32
    %1 = arith.subi %0, %c1_i32 : i32
    %c0_i32 = arith.constant 0 : i32
    %2 = arith.maxsi %1, %c0_i32 : i32
    %c0_i32_0 = arith.constant 0 : i32
    %c0_i32_1 = arith.constant 0 : i32
    %c0_i32_2 = arith.constant 0 : i32
    return %arg0, %2, %c0_i32_0, %c0_i32_1 : i32, i32, i32, i32
  }
  func.func @transform_1(%arg0: i32, %arg1: i32) -> (i32, i32, i32, i32) {
    %c0_i32 = arith.constant 0 : i32
    %c0_i32_0 = arith.constant 0 : i32
    %c0_i32_1 = arith.constant 0 : i32
    return %arg0, %arg1, %c0_i32, %c0_i32_0 : i32, i32, i32, i32
  }
  func.func @transform_2(%arg0: i32, %arg1: i32) -> (i32, i32, i32, i32) {
    %c1_i32 = arith.constant 1 : i32
    %0 = arith.addi %arg1, %c1_i32 : i32
    %c8_i32 = arith.constant 8 : i32
    %1 = arith.muli %0, %c8_i32 : i32
    %c15_i32 = arith.constant 15 : i32
    %2 = arith.minsi %1, %c15_i32 : i32
    %c0_i32 = arith.constant 0 : i32
    %c0_i32_0 = arith.constant 0 : i32
    %c0_i32_1 = arith.constant 0 : i32
    return %arg0, %2, %c0_i32, %c0_i32_0 : i32, i32, i32, i32
  }
  func.func @transform_3(%arg0: i32, %arg1: i32) -> (i32, i32, i32) {
    %c0_i32 = arith.constant 0 : i32
    %c0_i32_0 = arith.constant 0 : i32
    %c0_i32_1 = arith.constant 0 : i32
    return %arg0, %c0_i32, %c0_i32_0 : i32, i32, i32
  }
  func.func @transform_4(%arg0: i32, %arg1: i32) -> (i32, i32, i32) {
    %c0_i32 = arith.constant 0 : i32
    %c0_i32_0 = arith.constant 0 : i32
    %c0_i32_1 = arith.constant 0 : i32
    return %arg0, %c0_i32, %c0_i32_0 : i32, i32, i32
  }
  func.func @transform_5(%arg0: i32, %arg1: i32) -> (i32, i32, i32) {
    %c0_i32 = arith.constant 0 : i32
    %c0_i32_0 = arith.constant 0 : i32
    %c0_i32_1 = arith.constant 0 : i32
    %c0_i32_2 = arith.constant 0 : i32
    return %c0_i32, %c0_i32_0, %c0_i32_1 : i32, i32, i32
  }
  func.func @transform_6(%arg0: i32, %arg1: i32) -> (i32, i32) {
    %c0_i32 = arith.constant 0 : i32
    %c0_i32_0 = arith.constant 0 : i32
    %c0_i32_1 = arith.constant 0 : i32
    return %c0_i32, %c0_i32_0 : i32, i32
  }
  func.func @transform_7(%arg0: i32, %arg1: i32) -> (i32, i32, i32, i32) {
    %c0_i32 = arith.constant 0 : i32
    %c0_i32_0 = arith.constant 0 : i32
    %c0_i32_1 = arith.constant 0 : i32
    return %arg0, %arg1, %c0_i32, %c0_i32_0 : i32, i32, i32, i32
  }
  func.func @transform_8(%arg0: i32, %arg1: i32) -> (i32, i32, i32) {
    %c0_i32 = arith.constant 0 : i32
    %c0_i32_0 = arith.constant 0 : i32
    %c0_i32_1 = arith.constant 0 : i32
    return %arg0, %c0_i32, %c0_i32_0 : i32, i32, i32
  }
}

module attributes {stable_mosaic.version = 11 : i64} {
  func.func @kernel(%arg0: i32, %arg1: i32, %arg2: memref<1x1x8x64xf32, #tpu.memory_space<vmem>>, %arg3: memref<1x8x8x64xf32, #tpu.memory_space<vmem>>, %arg4: memref<1x1x8x64xf32, #tpu.memory_space<vmem>>, %arg5: memref<1x1x64xf32, #tpu.memory_space<vmem>>, %arg6: memref<1x1x64xf32, #tpu.memory_space<vmem>>, %arg7: memref<3x192x64xf32, #tpu.memory_space<vmem>>, %arg8: memref<1x64xf32, #tpu.memory_space<vmem>>, %arg9: memref<1x8x8x64xf32, #tpu.memory_space<vmem>>, %arg10: memref<1x2x64xf32, #tpu.memory_space<vmem>>) attributes {dimension_semantics = [#tpu.dimension_semantics<parallel>, #tpu.dimension_semantics<arbitrary>], iteration_bounds = array<i64: 2, 2>, scalar_prefetch = 0 : i64, scratch_operands = 0 : i64, tpu.core_type = #tpu.core_type<tc>, window_params = [{transform_indices = @transform_0, window_bounds = array<i64: 1, 1, 8, 64>}, {transform_indices = @transform_1, window_bounds = array<i64: 1, 8, 8, 64>}, {transform_indices = @transform_2, window_bounds = array<i64: 1, 1, 8, 64>}, {transform_indices = @transform_3, window_bounds = array<i64: 1, 1, 64>}, {transform_indices = @transform_4, window_bounds = array<i64: 1, 1, 64>}, {pipeline_mode = #tpu.pipeline_mode<synchronous>, transform_indices = @transform_5, window_bounds = array<i64: 3, 192, 64>}, {pipeline_mode = #tpu.pipeline_mode<synchronous>, transform_indices = @transform_6, window_bounds = array<i64: 1, 64>}, {transform_indices = @transform_7, window_bounds = array<i64: 1, 8, 8, 64>}, {transform_indices = @transform_8, window_bounds = array<i64: 1, 2, 64>}]} {
    %c0 = arith.constant 0 : index
    %c0_0 = arith.constant 0 : index
    %c0_1 = arith.constant 0 : index
    %c0_2 = arith.constant 0 : index
    %0 = vector.load %arg2[%c0, %c0_0, %c0_1, %c0_2] : memref<1x1x8x64xf32, #tpu.memory_space<vmem>>, vector<1x1x8x64xf32>
    %1 = vector.shape_cast %0 : vector<1x1x8x64xf32> to vector<1x8x64xf32>
    %c0_3 = arith.constant 0 : index
    %c0_4 = arith.constant 0 : index
    %c0_5 = arith.constant 0 : index
    %c0_6 = arith.constant 0 : index
    %2 = vector.load %arg3[%c0_3, %c0_4, %c0_5, %c0_6] : memref<1x8x8x64xf32, #tpu.memory_space<vmem>>, vector<1x8x8x64xf32>
    %3 = vector.shape_cast %2 : vector<1x8x8x64xf32> to vector<8x8x64xf32>
    %c0_7 = arith.constant 0 : index
    %c0_8 = arith.constant 0 : index
    %c0_9 = arith.constant 0 : index
    %c0_10 = arith.constant 0 : index
    %4 = vector.load %arg4[%c0_7, %c0_8, %c0_9, %c0_10] : memref<1x1x8x64xf32, #tpu.memory_space<vmem>>, vector<1x1x8x64xf32>
    %5 = vector.shape_cast %4 : vector<1x1x8x64xf32> to vector<1x8x64xf32>
    %c0_11 = arith.constant 0 : index
    %c0_12 = arith.constant 0 : index
    %c0_13 = arith.constant 0 : index
    %6 = vector.load %arg5[%c0_11, %c0_12, %c0_13] : memref<1x1x64xf32, #tpu.memory_space<vmem>>, vector<1x1x64xf32>
    %7 = vector.shape_cast %6 : vector<1x1x64xf32> to vector<1x64xf32>
    %c0_14 = arith.constant 0 : index
    %c0_15 = arith.constant 0 : index
    %c0_16 = arith.constant 0 : index
    %8 = vector.load %arg6[%c0_14, %c0_15, %c0_16] : memref<1x1x64xf32, #tpu.memory_space<vmem>>, vector<1x1x64xf32>
    %9 = vector.shape_cast %8 : vector<1x1x64xf32> to vector<1x64xf32>
    %10 = vector.shape_cast %7 : vector<1x64xf32> to vector<1x1x64xf32>
    %11 = vector.broadcast %10 : vector<1x1x64xf32> to vector<1x8x64xf32>
    %12 = arith.mulf %1, %11 : vector<1x8x64xf32>
    %13 = vector.shape_cast %9 : vector<1x64xf32> to vector<1x1x64xf32>
    %14 = vector.broadcast %13 : vector<1x1x64xf32> to vector<1x8x64xf32>
    %15 = arith.addf %12, %14 : vector<1x8x64xf32>
    %16 = arith.negf %15 : vector<1x8x64xf32>
    %17 = math.exp %16 : vector<1x8x64xf32>
    %cst = arith.constant 1.000000e+00 : f32
    %18 = vector.broadcast %cst : f32 to vector<1x8x64xf32>
    %19 = arith.addf %18, %17 : vector<1x8x64xf32>
    %20 = arith.divf %18, %19 : vector<1x8x64xf32>
    %21 = arith.mulf %15, %20 : vector<1x8x64xf32>
    %22 = vector.shape_cast %7 : vector<1x64xf32> to vector<1x1x64xf32>
    %23 = vector.broadcast %22 : vector<1x1x64xf32> to vector<8x8x64xf32>
    %24 = arith.mulf %3, %23 : vector<8x8x64xf32>
    %25 = vector.shape_cast %9 : vector<1x64xf32> to vector<1x1x64xf32>
    %26 = vector.broadcast %25 : vector<1x1x64xf32> to vector<8x8x64xf32>
    %27 = arith.addf %24, %26 : vector<8x8x64xf32>
    %28 = arith.negf %27 : vector<8x8x64xf32>
    %29 = math.exp %28 : vector<8x8x64xf32>
    %cst_17 = arith.constant 1.000000e+00 : f32
    %30 = vector.broadcast %cst_17 : f32 to vector<8x8x64xf32>
    %31 = arith.addf %30, %29 : vector<8x8x64xf32>
    %32 = arith.divf %30, %31 : vector<8x8x64xf32>
    %33 = arith.mulf %27, %32 : vector<8x8x64xf32>
    %34 = vector.shape_cast %7 : vector<1x64xf32> to vector<1x1x64xf32>
    %35 = vector.broadcast %34 : vector<1x1x64xf32> to vector<1x8x64xf32>
    %36 = arith.mulf %5, %35 : vector<1x8x64xf32>
    %37 = vector.shape_cast %9 : vector<1x64xf32> to vector<1x1x64xf32>
    %38 = vector.broadcast %37 : vector<1x1x64xf32> to vector<1x8x64xf32>
    %39 = arith.addf %36, %38 : vector<1x8x64xf32>
    %40 = arith.negf %39 : vector<1x8x64xf32>
    %41 = math.exp %40 : vector<1x8x64xf32>
    %cst_18 = arith.constant 1.000000e+00 : f32
    %42 = vector.broadcast %cst_18 : f32 to vector<1x8x64xf32>
    %43 = arith.addf %42, %41 : vector<1x8x64xf32>
    %44 = arith.divf %42, %43 : vector<1x8x64xf32>
    %45 = arith.mulf %39, %44 : vector<1x8x64xf32>
    %c0_i32 = arith.constant 0 : i32
    %46 = arith.cmpi sgt, %arg1, %c0_i32 : i32
    %cst_19 = arith.constant 0.000000e+00 : f32
    %47 = vector.broadcast %cst_19 : f32 to vector<1x8x64xf32>
    %48 = arith.select %46, %21, %47 : vector<1x8x64xf32>
    %c1_i32 = arith.constant 1 : i32
    %49 = arith.cmpi slt, %arg1, %c1_i32 : i32
    %cst_20 = arith.constant 0.000000e+00 : f32
    %50 = vector.broadcast %cst_20 : f32 to vector<1x8x64xf32>
    %51 = arith.select %49, %45, %50 : vector<1x8x64xf32>
    %52 = tpu.concatenate %48, %33, %51 in 0 : vector<1x8x64xf32>, vector<8x8x64xf32>, vector<1x8x64xf32> -> vector<10x8x64xf32>
    %cst_21 = arith.constant 0.000000e+00 : f32
    %53 = vector.broadcast %cst_21 : f32 to vector<10x1x64xf32>
    %54 = tpu.concatenate %53, %52, %53 in 1 : vector<10x1x64xf32>, vector<10x8x64xf32>, vector<10x1x64xf32> -> vector<10x10x64xf32>
    %cst_22 = arith.constant 0.000000e+00 : f32
    %55 = vector.broadcast %cst_22 : f32 to vector<64x64xf32>
    %56 = vector.extract_strided_slice %54 {offsets = [0, 0, 0], sizes = [8, 10, 64], strides = [1, 1, 1]} : vector<10x10x64xf32> to vector<8x10x64xf32>
    %57 = vector.extract_strided_slice %56 {offsets = [0, 0, 0], sizes = [8, 8, 64], strides = [1, 1, 1]} : vector<8x10x64xf32> to vector<8x8x64xf32>
    %58 = vector.extract_strided_slice %56 {offsets = [0, 1, 0], sizes = [8, 8, 64], strides = [1, 1, 1]} : vector<8x10x64xf32> to vector<8x8x64xf32>
    %59 = vector.extract_strided_slice %56 {offsets = [0, 2, 0], sizes = [8, 8, 64], strides = [1, 1, 1]} : vector<8x10x64xf32> to vector<8x8x64xf32>
    %60 = tpu.concatenate %57, %58, %59 in 2 : vector<8x8x64xf32>, vector<8x8x64xf32>, vector<8x8x64xf32> -> vector<8x8x192xf32>
    %61 = vector.shape_cast %60 : vector<8x8x192xf32> to vector<64x192xf32>
    %c0_23 = arith.constant 0 : index
    %c0_24 = arith.constant 0 : index
    %c0_25 = arith.constant 0 : index
    %62 = vector.load %arg7[%c0_23, %c0_24, %c0_25] : memref<3x192x64xf32, #tpu.memory_space<vmem>>, vector<1x192x64xf32>
    %63 = vector.shape_cast %62 : vector<1x192x64xf32> to vector<192x64xf32>
    %cst_26 = arith.constant dense<0.000000e+00> : vector<64x64xf32>
    %64 = tpu.matmul %61, %63, %cst_26 {dimension_numbers = #tpu.dot_dimension_numbers<[1], [0], [0], [1], [0, 0, 1, 1], [], []>} : vector<64x192xf32>, vector<192x64xf32>, vector<64x64xf32> -> vector<64x64xf32>
    %65 = arith.addf %55, %64 : vector<64x64xf32>
    %66 = vector.extract_strided_slice %54 {offsets = [1, 0, 0], sizes = [8, 10, 64], strides = [1, 1, 1]} : vector<10x10x64xf32> to vector<8x10x64xf32>
    %67 = vector.extract_strided_slice %66 {offsets = [0, 0, 0], sizes = [8, 8, 64], strides = [1, 1, 1]} : vector<8x10x64xf32> to vector<8x8x64xf32>
    %68 = vector.extract_strided_slice %66 {offsets = [0, 1, 0], sizes = [8, 8, 64], strides = [1, 1, 1]} : vector<8x10x64xf32> to vector<8x8x64xf32>
    %69 = vector.extract_strided_slice %66 {offsets = [0, 2, 0], sizes = [8, 8, 64], strides = [1, 1, 1]} : vector<8x10x64xf32> to vector<8x8x64xf32>
    %70 = tpu.concatenate %67, %68, %69 in 2 : vector<8x8x64xf32>, vector<8x8x64xf32>, vector<8x8x64xf32> -> vector<8x8x192xf32>
    %71 = vector.shape_cast %70 : vector<8x8x192xf32> to vector<64x192xf32>
    %c1 = arith.constant 1 : index
    %c0_27 = arith.constant 0 : index
    %c0_28 = arith.constant 0 : index
    %72 = vector.load %arg7[%c1, %c0_27, %c0_28] : memref<3x192x64xf32, #tpu.memory_space<vmem>>, vector<1x192x64xf32>
    %73 = vector.shape_cast %72 : vector<1x192x64xf32> to vector<192x64xf32>
    %cst_29 = arith.constant dense<0.000000e+00> : vector<64x64xf32>
    %74 = tpu.matmul %71, %73, %cst_29 {dimension_numbers = #tpu.dot_dimension_numbers<[1], [0], [0], [1], [0, 0, 1, 1], [], []>} : vector<64x192xf32>, vector<192x64xf32>, vector<64x64xf32> -> vector<64x64xf32>
    %75 = arith.addf %65, %74 : vector<64x64xf32>
    %76 = vector.extract_strided_slice %54 {offsets = [2, 0, 0], sizes = [8, 10, 64], strides = [1, 1, 1]} : vector<10x10x64xf32> to vector<8x10x64xf32>
    %77 = vector.extract_strided_slice %76 {offsets = [0, 0, 0], sizes = [8, 8, 64], strides = [1, 1, 1]} : vector<8x10x64xf32> to vector<8x8x64xf32>
    %78 = vector.extract_strided_slice %76 {offsets = [0, 1, 0], sizes = [8, 8, 64], strides = [1, 1, 1]} : vector<8x10x64xf32> to vector<8x8x64xf32>
    %79 = vector.extract_strided_slice %76 {offsets = [0, 2, 0], sizes = [8, 8, 64], strides = [1, 1, 1]} : vector<8x10x64xf32> to vector<8x8x64xf32>
    %80 = tpu.concatenate %77, %78, %79 in 2 : vector<8x8x64xf32>, vector<8x8x64xf32>, vector<8x8x64xf32> -> vector<8x8x192xf32>
    %81 = vector.shape_cast %80 : vector<8x8x192xf32> to vector<64x192xf32>
    %c2 = arith.constant 2 : index
    %c0_30 = arith.constant 0 : index
    %c0_31 = arith.constant 0 : index
    %82 = vector.load %arg7[%c2, %c0_30, %c0_31] : memref<3x192x64xf32, #tpu.memory_space<vmem>>, vector<1x192x64xf32>
    %83 = vector.shape_cast %82 : vector<1x192x64xf32> to vector<192x64xf32>
    %cst_32 = arith.constant dense<0.000000e+00> : vector<64x64xf32>
    %84 = tpu.matmul %81, %83, %cst_32 {dimension_numbers = #tpu.dot_dimension_numbers<[1], [0], [0], [1], [0, 0, 1, 1], [], []>} : vector<64x192xf32>, vector<192x64xf32>, vector<64x64xf32> -> vector<64x64xf32>
    %85 = arith.addf %75, %84 : vector<64x64xf32>
    %c0_33 = arith.constant 0 : index
    %c0_34 = arith.constant 0 : index
    %86 = vector.load %arg8[%c0_33, %c0_34] : memref<1x64xf32, #tpu.memory_space<vmem>>, vector<1x64xf32>
    %87 = vector.broadcast %86 : vector<1x64xf32> to vector<64x64xf32>
    %88 = arith.addf %85, %87 : vector<64x64xf32>
    %89 = vector.shape_cast %88 : vector<64x64xf32> to vector<8x8x64xf32>
    %c0_35 = arith.constant 0 : index
    %c0_36 = arith.constant 0 : index
    %c0_37 = arith.constant 0 : index
    %c0_38 = arith.constant 0 : index
    %90 = vector.load %arg9[%c0_35, %c0_36, %c0_37, %c0_38] : memref<1x8x8x64xf32, #tpu.memory_space<vmem>>, vector<1x8x8x64xf32>
    %91 = vector.shape_cast %90 : vector<1x8x8x64xf32> to vector<8x8x64xf32>
    %92 = vector.shape_cast %89 : vector<8x8x64xf32> to vector<1x8x8x64xf32>
    tpu.vector_store %arg9[%c0_35, %c0_36, %c0_37, %c0_38], %92 {strides = array<i32>} : memref<1x8x8x64xf32, #tpu.memory_space<vmem>>, vector<1x8x8x64xf32>,
    %c0_i32_39 = arith.constant 0 : i32
    %93 = arith.cmpi eq, %arg1, %c0_i32_39 : i32
    %94 = arith.extui %93 : i1 to i32
    %c0_i32_40 = arith.constant 0 : i32
    %95 = arith.cmpi ne, %94, %c0_i32_40 : i32
    scf.if %95 {
      %cst_55 = arith.constant 0.000000e+00 : f32
      %113 = vector.broadcast %cst_55 : f32 to vector<1x2x64xf32>
      %c0_56 = arith.constant 0 : index
      %c0_57 = arith.constant 0 : index
      %c0_58 = arith.constant 0 : index
      %114 = vector.load %arg10[%c0_56, %c0_57, %c0_58] : memref<1x2x64xf32, #tpu.memory_space<vmem>>, vector<1x2x64xf32>
      tpu.vector_store %arg10[%c0_56, %c0_57, %c0_58], %113 {strides = array<i32>} : memref<1x2x64xf32, #tpu.memory_space<vmem>>, vector<1x2x64xf32>,
    } else {
    }
    %c0_41 = arith.constant 0 : index
    %c0_42 = arith.constant 0 : index
    %c0_43 = arith.constant 0 : index
    %96 = vector.load %arg10[%c0_41, %c0_42, %c0_43] : memref<1x2x64xf32, #tpu.memory_space<vmem>>, vector<1x1x64xf32>
    %97 = vector.shape_cast %96 : vector<1x1x64xf32> to vector<1x64xf32>
    %cst_44 = arith.constant dense<0.000000e+00> : vector<64xf32>
    %98 = vector.multi_reduction <add>, %88, %cst_44 [0] : vector<64x64xf32> to vector<64xf32>
    %99 = vector.shape_cast %98 : vector<64xf32> to vector<1x64xf32>
    %100 = arith.addf %97, %99 : vector<1x64xf32>
    %c0_45 = arith.constant 0 : index
    %c0_46 = arith.constant 0 : index
    %c0_47 = arith.constant 0 : index
    %101 = vector.load %arg10[%c0_45, %c0_46, %c0_47] : memref<1x2x64xf32, #tpu.memory_space<vmem>>, vector<1x1x64xf32>
    %102 = vector.shape_cast %101 : vector<1x1x64xf32> to vector<1x64xf32>
    %103 = vector.shape_cast %100 : vector<1x64xf32> to vector<1x1x64xf32>
    tpu.vector_store %arg10[%c0_45, %c0_46, %c0_47], %103 {strides = array<i32>} : memref<1x2x64xf32, #tpu.memory_space<vmem>>, vector<1x1x64xf32>,
    %c0_48 = arith.constant 0 : index
    %c1_49 = arith.constant 1 : index
    %c0_50 = arith.constant 0 : index
    %104 = vector.load %arg10[%c0_48, %c1_49, %c0_50] : memref<1x2x64xf32, #tpu.memory_space<vmem>>, vector<1x1x64xf32>
    %105 = vector.shape_cast %104 : vector<1x1x64xf32> to vector<1x64xf32>
    %106 = arith.mulf %88, %88 : vector<64x64xf32>
    %cst_51 = arith.constant dense<0.000000e+00> : vector<64xf32>
    %107 = vector.multi_reduction <add>, %106, %cst_51 [0] : vector<64x64xf32> to vector<64xf32>
    %108 = vector.shape_cast %107 : vector<64xf32> to vector<1x64xf32>
    %109 = arith.addf %105, %108 : vector<1x64xf32>
    %c0_52 = arith.constant 0 : index
    %c1_53 = arith.constant 1 : index
    %c0_54 = arith.constant 0 : index
    %110 = vector.load %arg10[%c0_52, %c1_53, %c0_54] : memref<1x2x64xf32, #tpu.memory_space<vmem>>, vector<1x1x64xf32>
    %111 = vector.shape_cast %110 : vector<1x1x64xf32> to vector<1x64xf32>
    %112 = vector.shape_cast %109 : vector<1x64xf32> to vector<1x1x64xf32>
    tpu.vector_store %arg10[%c0_52, %c1_53, %c0_54], %112 {strides = array<i32>} : memref<1x2x64xf32, #tpu.memory_space<vmem>>, vector<1x1x64xf32>,
    return
  }
  func.func @transform_0(%arg0: i32, %arg1: i32) -> (i32, i32, i32, i32) {
    %c8_i32 = arith.constant 8 : i32
    %0 = arith.muli %arg1, %c8_i32 : i32
    %c1_i32 = arith.constant 1 : i32
    %1 = arith.subi %0, %c1_i32 : i32
    %c0_i32 = arith.constant 0 : i32
    %2 = arith.maxsi %1, %c0_i32 : i32
    %c0_i32_0 = arith.constant 0 : i32
    %c0_i32_1 = arith.constant 0 : i32
    %c0_i32_2 = arith.constant 0 : i32
    return %arg0, %2, %c0_i32_0, %c0_i32_1 : i32, i32, i32, i32
  }
  func.func @transform_1(%arg0: i32, %arg1: i32) -> (i32, i32, i32, i32) {
    %c0_i32 = arith.constant 0 : i32
    %c0_i32_0 = arith.constant 0 : i32
    %c0_i32_1 = arith.constant 0 : i32
    return %arg0, %arg1, %c0_i32, %c0_i32_0 : i32, i32, i32, i32
  }
  func.func @transform_2(%arg0: i32, %arg1: i32) -> (i32, i32, i32, i32) {
    %c1_i32 = arith.constant 1 : i32
    %0 = arith.addi %arg1, %c1_i32 : i32
    %c8_i32 = arith.constant 8 : i32
    %1 = arith.muli %0, %c8_i32 : i32
    %c15_i32 = arith.constant 15 : i32
    %2 = arith.minsi %1, %c15_i32 : i32
    %c0_i32 = arith.constant 0 : i32
    %c0_i32_0 = arith.constant 0 : i32
    %c0_i32_1 = arith.constant 0 : i32
    return %arg0, %2, %c0_i32, %c0_i32_0 : i32, i32, i32, i32
  }
  func.func @transform_3(%arg0: i32, %arg1: i32) -> (i32, i32, i32) {
    %c0_i32 = arith.constant 0 : i32
    %c0_i32_0 = arith.constant 0 : i32
    %c0_i32_1 = arith.constant 0 : i32
    return %arg0, %c0_i32, %c0_i32_0 : i32, i32, i32
  }
  func.func @transform_4(%arg0: i32, %arg1: i32) -> (i32, i32, i32) {
    %c0_i32 = arith.constant 0 : i32
    %c0_i32_0 = arith.constant 0 : i32
    %c0_i32_1 = arith.constant 0 : i32
    return %arg0, %c0_i32, %c0_i32_0 : i32, i32, i32
  }
  func.func @transform_5(%arg0: i32, %arg1: i32) -> (i32, i32, i32) {
    %c0_i32 = arith.constant 0 : i32
    %c0_i32_0 = arith.constant 0 : i32
    %c0_i32_1 = arith.constant 0 : i32
    %c0_i32_2 = arith.constant 0 : i32
    return %c0_i32, %c0_i32_0, %c0_i32_1 : i32, i32, i32
  }
  func.func @transform_6(%arg0: i32, %arg1: i32) -> (i32, i32) {
    %c0_i32 = arith.constant 0 : i32
    %c0_i32_0 = arith.constant 0 : i32
    %c0_i32_1 = arith.constant 0 : i32
    return %c0_i32, %c0_i32_0 : i32, i32
  }
  func.func @transform_7(%arg0: i32, %arg1: i32) -> (i32, i32, i32, i32) {
    %c0_i32 = arith.constant 0 : i32
    %c0_i32_0 = arith.constant 0 : i32
    %c0_i32_1 = arith.constant 0 : i32
    return %arg0, %arg1, %c0_i32, %c0_i32_0 : i32, i32, i32, i32
  }
  func.func @transform_8(%arg0: i32, %arg1: i32) -> (i32, i32, i32) {
    %c0_i32 = arith.constant 0 : i32
    %c0_i32_0 = arith.constant 0 : i32
    %c0_i32_1 = arith.constant 0 : i32
    return %arg0, %c0_i32, %c0_i32_0 : i32, i32, i32
  }
}

module attributes {stable_mosaic.version = 11 : i64} {
  func.func @kernel(%arg0: i32, %arg1: i32, %arg2: memref<1x1x8x64xf32, #tpu.memory_space<vmem>>, %arg3: memref<1x8x8x64xf32, #tpu.memory_space<vmem>>, %arg4: memref<1x1x8x64xf32, #tpu.memory_space<vmem>>, %arg5: memref<1x1x64xf32, #tpu.memory_space<vmem>>, %arg6: memref<1x1x64xf32, #tpu.memory_space<vmem>>, %arg7: memref<3x192x64xf32, #tpu.memory_space<vmem>>, %arg8: memref<1x64xf32, #tpu.memory_space<vmem>>, %arg9: memref<1x8x8x32xf32, #tpu.memory_space<vmem>>, %arg10: memref<32x64xf32, #tpu.memory_space<vmem>>, %arg11: memref<1x64xf32, #tpu.memory_space<vmem>>, %arg12: memref<1x8x8x64xf32, #tpu.memory_space<vmem>>, %arg13: memref<1x2x64xf32, #tpu.memory_space<vmem>>) attributes {dimension_semantics = [#tpu.dimension_semantics<parallel>, #tpu.dimension_semantics<arbitrary>], iteration_bounds = array<i64: 2, 2>, scalar_prefetch = 0 : i64, scratch_operands = 0 : i64, tpu.core_type = #tpu.core_type<tc>, window_params = [{transform_indices = @transform_0, window_bounds = array<i64: 1, 1, 8, 64>}, {transform_indices = @transform_1, window_bounds = array<i64: 1, 8, 8, 64>}, {transform_indices = @transform_2, window_bounds = array<i64: 1, 1, 8, 64>}, {transform_indices = @transform_3, window_bounds = array<i64: 1, 1, 64>}, {transform_indices = @transform_4, window_bounds = array<i64: 1, 1, 64>}, {pipeline_mode = #tpu.pipeline_mode<synchronous>, transform_indices = @transform_5, window_bounds = array<i64: 3, 192, 64>}, {pipeline_mode = #tpu.pipeline_mode<synchronous>, transform_indices = @transform_6, window_bounds = array<i64: 1, 64>}, {transform_indices = @transform_7, window_bounds = array<i64: 1, 8, 8, 32>}, {pipeline_mode = #tpu.pipeline_mode<synchronous>, transform_indices = @transform_8, window_bounds = array<i64: 32, 64>}, {pipeline_mode = #tpu.pipeline_mode<synchronous>, transform_indices = @transform_9, window_bounds = array<i64: 1, 64>}, {transform_indices = @transform_10, window_bounds = array<i64: 1, 8, 8, 64>}, {transform_indices = @transform_11, window_bounds = array<i64: 1, 2, 64>}]} {
    %c0 = arith.constant 0 : index
    %c0_0 = arith.constant 0 : index
    %c0_1 = arith.constant 0 : index
    %c0_2 = arith.constant 0 : index
    %0 = vector.load %arg2[%c0, %c0_0, %c0_1, %c0_2] : memref<1x1x8x64xf32, #tpu.memory_space<vmem>>, vector<1x1x8x64xf32>
    %1 = vector.shape_cast %0 : vector<1x1x8x64xf32> to vector<1x8x64xf32>
    %c0_3 = arith.constant 0 : index
    %c0_4 = arith.constant 0 : index
    %c0_5 = arith.constant 0 : index
    %c0_6 = arith.constant 0 : index
    %2 = vector.load %arg3[%c0_3, %c0_4, %c0_5, %c0_6] : memref<1x8x8x64xf32, #tpu.memory_space<vmem>>, vector<1x8x8x64xf32>
    %3 = vector.shape_cast %2 : vector<1x8x8x64xf32> to vector<8x8x64xf32>
    %c0_7 = arith.constant 0 : index
    %c0_8 = arith.constant 0 : index
    %c0_9 = arith.constant 0 : index
    %c0_10 = arith.constant 0 : index
    %4 = vector.load %arg4[%c0_7, %c0_8, %c0_9, %c0_10] : memref<1x1x8x64xf32, #tpu.memory_space<vmem>>, vector<1x1x8x64xf32>
    %5 = vector.shape_cast %4 : vector<1x1x8x64xf32> to vector<1x8x64xf32>
    %c0_11 = arith.constant 0 : index
    %c0_12 = arith.constant 0 : index
    %c0_13 = arith.constant 0 : index
    %6 = vector.load %arg5[%c0_11, %c0_12, %c0_13] : memref<1x1x64xf32, #tpu.memory_space<vmem>>, vector<1x1x64xf32>
    %7 = vector.shape_cast %6 : vector<1x1x64xf32> to vector<1x64xf32>
    %c0_14 = arith.constant 0 : index
    %c0_15 = arith.constant 0 : index
    %c0_16 = arith.constant 0 : index
    %8 = vector.load %arg6[%c0_14, %c0_15, %c0_16] : memref<1x1x64xf32, #tpu.memory_space<vmem>>, vector<1x1x64xf32>
    %9 = vector.shape_cast %8 : vector<1x1x64xf32> to vector<1x64xf32>
    %10 = vector.shape_cast %7 : vector<1x64xf32> to vector<1x1x64xf32>
    %11 = vector.broadcast %10 : vector<1x1x64xf32> to vector<1x8x64xf32>
    %12 = arith.mulf %1, %11 : vector<1x8x64xf32>
    %13 = vector.shape_cast %9 : vector<1x64xf32> to vector<1x1x64xf32>
    %14 = vector.broadcast %13 : vector<1x1x64xf32> to vector<1x8x64xf32>
    %15 = arith.addf %12, %14 : vector<1x8x64xf32>
    %16 = arith.negf %15 : vector<1x8x64xf32>
    %17 = math.exp %16 : vector<1x8x64xf32>
    %cst = arith.constant 1.000000e+00 : f32
    %18 = vector.broadcast %cst : f32 to vector<1x8x64xf32>
    %19 = arith.addf %18, %17 : vector<1x8x64xf32>
    %20 = arith.divf %18, %19 : vector<1x8x64xf32>
    %21 = arith.mulf %15, %20 : vector<1x8x64xf32>
    %22 = vector.shape_cast %7 : vector<1x64xf32> to vector<1x1x64xf32>
    %23 = vector.broadcast %22 : vector<1x1x64xf32> to vector<8x8x64xf32>
    %24 = arith.mulf %3, %23 : vector<8x8x64xf32>
    %25 = vector.shape_cast %9 : vector<1x64xf32> to vector<1x1x64xf32>
    %26 = vector.broadcast %25 : vector<1x1x64xf32> to vector<8x8x64xf32>
    %27 = arith.addf %24, %26 : vector<8x8x64xf32>
    %28 = arith.negf %27 : vector<8x8x64xf32>
    %29 = math.exp %28 : vector<8x8x64xf32>
    %cst_17 = arith.constant 1.000000e+00 : f32
    %30 = vector.broadcast %cst_17 : f32 to vector<8x8x64xf32>
    %31 = arith.addf %30, %29 : vector<8x8x64xf32>
    %32 = arith.divf %30, %31 : vector<8x8x64xf32>
    %33 = arith.mulf %27, %32 : vector<8x8x64xf32>
    %34 = vector.shape_cast %7 : vector<1x64xf32> to vector<1x1x64xf32>
    %35 = vector.broadcast %34 : vector<1x1x64xf32> to vector<1x8x64xf32>
    %36 = arith.mulf %5, %35 : vector<1x8x64xf32>
    %37 = vector.shape_cast %9 : vector<1x64xf32> to vector<1x1x64xf32>
    %38 = vector.broadcast %37 : vector<1x1x64xf32> to vector<1x8x64xf32>
    %39 = arith.addf %36, %38 : vector<1x8x64xf32>
    %40 = arith.negf %39 : vector<1x8x64xf32>
    %41 = math.exp %40 : vector<1x8x64xf32>
    %cst_18 = arith.constant 1.000000e+00 : f32
    %42 = vector.broadcast %cst_18 : f32 to vector<1x8x64xf32>
    %43 = arith.addf %42, %41 : vector<1x8x64xf32>
    %44 = arith.divf %42, %43 : vector<1x8x64xf32>
    %45 = arith.mulf %39, %44 : vector<1x8x64xf32>
    %c0_i32 = arith.constant 0 : i32
    %46 = arith.cmpi sgt, %arg1, %c0_i32 : i32
    %cst_19 = arith.constant 0.000000e+00 : f32
    %47 = vector.broadcast %cst_19 : f32 to vector<1x8x64xf32>
    %48 = arith.select %46, %21, %47 : vector<1x8x64xf32>
    %c1_i32 = arith.constant 1 : i32
    %49 = arith.cmpi slt, %arg1, %c1_i32 : i32
    %cst_20 = arith.constant 0.000000e+00 : f32
    %50 = vector.broadcast %cst_20 : f32 to vector<1x8x64xf32>
    %51 = arith.select %49, %45, %50 : vector<1x8x64xf32>
    %52 = tpu.concatenate %48, %33, %51 in 0 : vector<1x8x64xf32>, vector<8x8x64xf32>, vector<1x8x64xf32> -> vector<10x8x64xf32>
    %cst_21 = arith.constant 0.000000e+00 : f32
    %53 = vector.broadcast %cst_21 : f32 to vector<10x1x64xf32>
    %54 = tpu.concatenate %53, %52, %53 in 1 : vector<10x1x64xf32>, vector<10x8x64xf32>, vector<10x1x64xf32> -> vector<10x10x64xf32>
    %cst_22 = arith.constant 0.000000e+00 : f32
    %55 = vector.broadcast %cst_22 : f32 to vector<64x64xf32>
    %56 = vector.extract_strided_slice %54 {offsets = [0, 0, 0], sizes = [8, 10, 64], strides = [1, 1, 1]} : vector<10x10x64xf32> to vector<8x10x64xf32>
    %57 = vector.extract_strided_slice %56 {offsets = [0, 0, 0], sizes = [8, 8, 64], strides = [1, 1, 1]} : vector<8x10x64xf32> to vector<8x8x64xf32>
    %58 = vector.extract_strided_slice %56 {offsets = [0, 1, 0], sizes = [8, 8, 64], strides = [1, 1, 1]} : vector<8x10x64xf32> to vector<8x8x64xf32>
    %59 = vector.extract_strided_slice %56 {offsets = [0, 2, 0], sizes = [8, 8, 64], strides = [1, 1, 1]} : vector<8x10x64xf32> to vector<8x8x64xf32>
    %60 = tpu.concatenate %57, %58, %59 in 2 : vector<8x8x64xf32>, vector<8x8x64xf32>, vector<8x8x64xf32> -> vector<8x8x192xf32>
    %61 = vector.shape_cast %60 : vector<8x8x192xf32> to vector<64x192xf32>
    %c0_23 = arith.constant 0 : index
    %c0_24 = arith.constant 0 : index
    %c0_25 = arith.constant 0 : index
    %62 = vector.load %arg7[%c0_23, %c0_24, %c0_25] : memref<3x192x64xf32, #tpu.memory_space<vmem>>, vector<1x192x64xf32>
    %63 = vector.shape_cast %62 : vector<1x192x64xf32> to vector<192x64xf32>
    %cst_26 = arith.constant dense<0.000000e+00> : vector<64x64xf32>
    %64 = tpu.matmul %61, %63, %cst_26 {dimension_numbers = #tpu.dot_dimension_numbers<[1], [0], [0], [1], [0, 0, 1, 1], [], []>} : vector<64x192xf32>, vector<192x64xf32>, vector<64x64xf32> -> vector<64x64xf32>
    %65 = arith.addf %55, %64 : vector<64x64xf32>
    %66 = vector.extract_strided_slice %54 {offsets = [1, 0, 0], sizes = [8, 10, 64], strides = [1, 1, 1]} : vector<10x10x64xf32> to vector<8x10x64xf32>
    %67 = vector.extract_strided_slice %66 {offsets = [0, 0, 0], sizes = [8, 8, 64], strides = [1, 1, 1]} : vector<8x10x64xf32> to vector<8x8x64xf32>
    %68 = vector.extract_strided_slice %66 {offsets = [0, 1, 0], sizes = [8, 8, 64], strides = [1, 1, 1]} : vector<8x10x64xf32> to vector<8x8x64xf32>
    %69 = vector.extract_strided_slice %66 {offsets = [0, 2, 0], sizes = [8, 8, 64], strides = [1, 1, 1]} : vector<8x10x64xf32> to vector<8x8x64xf32>
    %70 = tpu.concatenate %67, %68, %69 in 2 : vector<8x8x64xf32>, vector<8x8x64xf32>, vector<8x8x64xf32> -> vector<8x8x192xf32>
    %71 = vector.shape_cast %70 : vector<8x8x192xf32> to vector<64x192xf32>
    %c1 = arith.constant 1 : index
    %c0_27 = arith.constant 0 : index
    %c0_28 = arith.constant 0 : index
    %72 = vector.load %arg7[%c1, %c0_27, %c0_28] : memref<3x192x64xf32, #tpu.memory_space<vmem>>, vector<1x192x64xf32>
    %73 = vector.shape_cast %72 : vector<1x192x64xf32> to vector<192x64xf32>
    %cst_29 = arith.constant dense<0.000000e+00> : vector<64x64xf32>
    %74 = tpu.matmul %71, %73, %cst_29 {dimension_numbers = #tpu.dot_dimension_numbers<[1], [0], [0], [1], [0, 0, 1, 1], [], []>} : vector<64x192xf32>, vector<192x64xf32>, vector<64x64xf32> -> vector<64x64xf32>
    %75 = arith.addf %65, %74 : vector<64x64xf32>
    %76 = vector.extract_strided_slice %54 {offsets = [2, 0, 0], sizes = [8, 10, 64], strides = [1, 1, 1]} : vector<10x10x64xf32> to vector<8x10x64xf32>
    %77 = vector.extract_strided_slice %76 {offsets = [0, 0, 0], sizes = [8, 8, 64], strides = [1, 1, 1]} : vector<8x10x64xf32> to vector<8x8x64xf32>
    %78 = vector.extract_strided_slice %76 {offsets = [0, 1, 0], sizes = [8, 8, 64], strides = [1, 1, 1]} : vector<8x10x64xf32> to vector<8x8x64xf32>
    %79 = vector.extract_strided_slice %76 {offsets = [0, 2, 0], sizes = [8, 8, 64], strides = [1, 1, 1]} : vector<8x10x64xf32> to vector<8x8x64xf32>
    %80 = tpu.concatenate %77, %78, %79 in 2 : vector<8x8x64xf32>, vector<8x8x64xf32>, vector<8x8x64xf32> -> vector<8x8x192xf32>
    %81 = vector.shape_cast %80 : vector<8x8x192xf32> to vector<64x192xf32>
    %c2 = arith.constant 2 : index
    %c0_30 = arith.constant 0 : index
    %c0_31 = arith.constant 0 : index
    %82 = vector.load %arg7[%c2, %c0_30, %c0_31] : memref<3x192x64xf32, #tpu.memory_space<vmem>>, vector<1x192x64xf32>
    %83 = vector.shape_cast %82 : vector<1x192x64xf32> to vector<192x64xf32>
    %cst_32 = arith.constant dense<0.000000e+00> : vector<64x64xf32>
    %84 = tpu.matmul %81, %83, %cst_32 {dimension_numbers = #tpu.dot_dimension_numbers<[1], [0], [0], [1], [0, 0, 1, 1], [], []>} : vector<64x192xf32>, vector<192x64xf32>, vector<64x64xf32> -> vector<64x64xf32>
    %85 = arith.addf %75, %84 : vector<64x64xf32>
    %c0_33 = arith.constant 0 : index
    %c0_34 = arith.constant 0 : index
    %86 = vector.load %arg8[%c0_33, %c0_34] : memref<1x64xf32, #tpu.memory_space<vmem>>, vector<1x64xf32>
    %87 = vector.broadcast %86 : vector<1x64xf32> to vector<64x64xf32>
    %88 = arith.addf %85, %87 : vector<64x64xf32>
    %c0_35 = arith.constant 0 : index
    %c0_36 = arith.constant 0 : index
    %c0_37 = arith.constant 0 : index
    %c0_38 = arith.constant 0 : index
    %89 = vector.load %arg9[%c0_35, %c0_36, %c0_37, %c0_38] : memref<1x8x8x32xf32, #tpu.memory_space<vmem>>, vector<1x8x8x32xf32>
    %90 = vector.shape_cast %89 : vector<1x8x8x32xf32> to vector<8x8x32xf32>
    %91 = vector.shape_cast %90 : vector<8x8x32xf32> to vector<64x32xf32>
    %c0_39 = arith.constant 0 : index
    %c0_40 = arith.constant 0 : index
    %92 = vector.load %arg10[%c0_39, %c0_40] : memref<32x64xf32, #tpu.memory_space<vmem>>, vector<32x64xf32>
    %cst_41 = arith.constant dense<0.000000e+00> : vector<64x64xf32>
    %93 = tpu.matmul %91, %92, %cst_41 {dimension_numbers = #tpu.dot_dimension_numbers<[1], [0], [0], [1], [0, 0, 1, 1], [], []>} : vector<64x32xf32>, vector<32x64xf32>, vector<64x64xf32> -> vector<64x64xf32>
    %94 = arith.addf %88, %93 : vector<64x64xf32>
    %c0_42 = arith.constant 0 : index
    %c0_43 = arith.constant 0 : index
    %95 = vector.load %arg11[%c0_42, %c0_43] : memref<1x64xf32, #tpu.memory_space<vmem>>, vector<1x64xf32>
    %96 = vector.broadcast %95 : vector<1x64xf32> to vector<64x64xf32>
    %97 = arith.addf %94, %96 : vector<64x64xf32>
    %98 = vector.shape_cast %97 : vector<64x64xf32> to vector<8x8x64xf32>
    %c0_44 = arith.constant 0 : index
    %c0_45 = arith.constant 0 : index
    %c0_46 = arith.constant 0 : index
    %c0_47 = arith.constant 0 : index
    %99 = vector.load %arg12[%c0_44, %c0_45, %c0_46, %c0_47] : memref<1x8x8x64xf32, #tpu.memory_space<vmem>>, vector<1x8x8x64xf32>
    %100 = vector.shape_cast %99 : vector<1x8x8x64xf32> to vector<8x8x64xf32>
    %101 = vector.shape_cast %98 : vector<8x8x64xf32> to vector<1x8x8x64xf32>
    tpu.vector_store %arg12[%c0_44, %c0_45, %c0_46, %c0_47], %101 {strides = array<i32>} : memref<1x8x8x64xf32, #tpu.memory_space<vmem>>, vector<1x8x8x64xf32>,
    %c0_i32_48 = arith.constant 0 : i32
    %102 = arith.cmpi eq, %arg1, %c0_i32_48 : i32
    %103 = arith.extui %102 : i1 to i32
    %c0_i32_49 = arith.constant 0 : i32
    %104 = arith.cmpi ne, %103, %c0_i32_49 : i32
    scf.if %104 {
      %cst_64 = arith.constant 0.000000e+00 : f32
      %122 = vector.broadcast %cst_64 : f32 to vector<1x2x64xf32>
      %c0_65 = arith.constant 0 : index
      %c0_66 = arith.constant 0 : index
      %c0_67 = arith.constant 0 : index
      %123 = vector.load %arg13[%c0_65, %c0_66, %c0_67] : memref<1x2x64xf32, #tpu.memory_space<vmem>>, vector<1x2x64xf32>
      tpu.vector_store %arg13[%c0_65, %c0_66, %c0_67], %122 {strides = array<i32>} : memref<1x2x64xf32, #tpu.memory_space<vmem>>, vector<1x2x64xf32>,
    } else {
    }
    %c0_50 = arith.constant 0 : index
    %c0_51 = arith.constant 0 : index
    %c0_52 = arith.constant 0 : index
    %105 = vector.load %arg13[%c0_50, %c0_51, %c0_52] : memref<1x2x64xf32, #tpu.memory_space<vmem>>, vector<1x1x64xf32>
    %106 = vector.shape_cast %105 : vector<1x1x64xf32> to vector<1x64xf32>
    %cst_53 = arith.constant dense<0.000000e+00> : vector<64xf32>
    %107 = vector.multi_reduction <add>, %97, %cst_53 [0] : vector<64x64xf32> to vector<64xf32>
    %108 = vector.shape_cast %107 : vector<64xf32> to vector<1x64xf32>
    %109 = arith.addf %106, %108 : vector<1x64xf32>
    %c0_54 = arith.constant 0 : index
    %c0_55 = arith.constant 0 : index
    %c0_56 = arith.constant 0 : index
    %110 = vector.load %arg13[%c0_54, %c0_55, %c0_56] : memref<1x2x64xf32, #tpu.memory_space<vmem>>, vector<1x1x64xf32>
    %111 = vector.shape_cast %110 : vector<1x1x64xf32> to vector<1x64xf32>
    %112 = vector.shape_cast %109 : vector<1x64xf32> to vector<1x1x64xf32>
    tpu.vector_store %arg13[%c0_54, %c0_55, %c0_56], %112 {strides = array<i32>} : memref<1x2x64xf32, #tpu.memory_space<vmem>>, vector<1x1x64xf32>,
    %c0_57 = arith.constant 0 : index
    %c1_58 = arith.constant 1 : index
    %c0_59 = arith.constant 0 : index
    %113 = vector.load %arg13[%c0_57, %c1_58, %c0_59] : memref<1x2x64xf32, #tpu.memory_space<vmem>>, vector<1x1x64xf32>
    %114 = vector.shape_cast %113 : vector<1x1x64xf32> to vector<1x64xf32>
    %115 = arith.mulf %97, %97 : vector<64x64xf32>
    %cst_60 = arith.constant dense<0.000000e+00> : vector<64xf32>
    %116 = vector.multi_reduction <add>, %115, %cst_60 [0] : vector<64x64xf32> to vector<64xf32>
    %117 = vector.shape_cast %116 : vector<64xf32> to vector<1x64xf32>
    %118 = arith.addf %114, %117 : vector<1x64xf32>
    %c0_61 = arith.constant 0 : index
    %c1_62 = arith.constant 1 : index
    %c0_63 = arith.constant 0 : index
    %119 = vector.load %arg13[%c0_61, %c1_62, %c0_63] : memref<1x2x64xf32, #tpu.memory_space<vmem>>, vector<1x1x64xf32>
    %120 = vector.shape_cast %119 : vector<1x1x64xf32> to vector<1x64xf32>
    %121 = vector.shape_cast %118 : vector<1x64xf32> to vector<1x1x64xf32>
    tpu.vector_store %arg13[%c0_61, %c1_62, %c0_63], %121 {strides = array<i32>} : memref<1x2x64xf32, #tpu.memory_space<vmem>>, vector<1x1x64xf32>,
    return
  }
  func.func @transform_0(%arg0: i32, %arg1: i32) -> (i32, i32, i32, i32) {
    %c8_i32 = arith.constant 8 : i32
    %0 = arith.muli %arg1, %c8_i32 : i32
    %c1_i32 = arith.constant 1 : i32
    %1 = arith.subi %0, %c1_i32 : i32
    %c0_i32 = arith.constant 0 : i32
    %2 = arith.maxsi %1, %c0_i32 : i32
    %c0_i32_0 = arith.constant 0 : i32
    %c0_i32_1 = arith.constant 0 : i32
    %c0_i32_2 = arith.constant 0 : i32
    return %arg0, %2, %c0_i32_0, %c0_i32_1 : i32, i32, i32, i32
  }
  func.func @transform_1(%arg0: i32, %arg1: i32) -> (i32, i32, i32, i32) {
    %c0_i32 = arith.constant 0 : i32
    %c0_i32_0 = arith.constant 0 : i32
    %c0_i32_1 = arith.constant 0 : i32
    return %arg0, %arg1, %c0_i32, %c0_i32_0 : i32, i32, i32, i32
  }
  func.func @transform_2(%arg0: i32, %arg1: i32) -> (i32, i32, i32, i32) {
    %c1_i32 = arith.constant 1 : i32
    %0 = arith.addi %arg1, %c1_i32 : i32
    %c8_i32 = arith.constant 8 : i32
    %1 = arith.muli %0, %c8_i32 : i32
    %c15_i32 = arith.constant 15 : i32
    %2 = arith.minsi %1, %c15_i32 : i32
    %c0_i32 = arith.constant 0 : i32
    %c0_i32_0 = arith.constant 0 : i32
    %c0_i32_1 = arith.constant 0 : i32
    return %arg0, %2, %c0_i32, %c0_i32_0 : i32, i32, i32, i32
  }
  func.func @transform_3(%arg0: i32, %arg1: i32) -> (i32, i32, i32) {
    %c0_i32 = arith.constant 0 : i32
    %c0_i32_0 = arith.constant 0 : i32
    %c0_i32_1 = arith.constant 0 : i32
    return %arg0, %c0_i32, %c0_i32_0 : i32, i32, i32
  }
  func.func @transform_4(%arg0: i32, %arg1: i32) -> (i32, i32, i32) {
    %c0_i32 = arith.constant 0 : i32
    %c0_i32_0 = arith.constant 0 : i32
    %c0_i32_1 = arith.constant 0 : i32
    return %arg0, %c0_i32, %c0_i32_0 : i32, i32, i32
  }
  func.func @transform_5(%arg0: i32, %arg1: i32) -> (i32, i32, i32) {
    %c0_i32 = arith.constant 0 : i32
    %c0_i32_0 = arith.constant 0 : i32
    %c0_i32_1 = arith.constant 0 : i32
    %c0_i32_2 = arith.constant 0 : i32
    return %c0_i32, %c0_i32_0, %c0_i32_1 : i32, i32, i32
  }
  func.func @transform_6(%arg0: i32, %arg1: i32) -> (i32, i32) {
    %c0_i32 = arith.constant 0 : i32
    %c0_i32_0 = arith.constant 0 : i32
    %c0_i32_1 = arith.constant 0 : i32
    return %c0_i32, %c0_i32_0 : i32, i32
  }
  func.func @transform_7(%arg0: i32, %arg1: i32) -> (i32, i32, i32, i32) {
    %c0_i32 = arith.constant 0 : i32
    %c0_i32_0 = arith.constant 0 : i32
    %c0_i32_1 = arith.constant 0 : i32
    return %arg0, %arg1, %c0_i32, %c0_i32_0 : i32, i32, i32, i32
  }
  func.func @transform_8(%arg0: i32, %arg1: i32) -> (i32, i32) {
    %c0_i32 = arith.constant 0 : i32
    %c0_i32_0 = arith.constant 0 : i32
    %c0_i32_1 = arith.constant 0 : i32
    return %c0_i32, %c0_i32_0 : i32, i32
  }
  func.func @transform_9(%arg0: i32, %arg1: i32) -> (i32, i32) {
    %c0_i32 = arith.constant 0 : i32
    %c0_i32_0 = arith.constant 0 : i32
    %c0_i32_1 = arith.constant 0 : i32
    return %c0_i32, %c0_i32_0 : i32, i32
  }
  func.func @transform_10(%arg0: i32, %arg1: i32) -> (i32, i32, i32, i32) {
    %c0_i32 = arith.constant 0 : i32
    %c0_i32_0 = arith.constant 0 : i32
    %c0_i32_1 = arith.constant 0 : i32
    return %arg0, %arg1, %c0_i32, %c0_i32_0 : i32, i32, i32, i32
  }
  func.func @transform_11(%arg0: i32, %arg1: i32) -> (i32, i32, i32) {
    %c0_i32 = arith.constant 0 : i32
    %c0_i32_0 = arith.constant 0 : i32
    %c0_i32_1 = arith.constant 0 : i32
    return %arg0, %c0_i32, %c0_i32_0 : i32, i32, i32
  }
}

module attributes {stable_mosaic.version = 11 : i64} {
  func.func @kernel(%arg0: i32, %arg1: i32, %arg2: memref<1x1x8x64xf32, #tpu.memory_space<vmem>>, %arg3: memref<1x8x8x64xf32, #tpu.memory_space<vmem>>, %arg4: memref<1x1x8x64xf32, #tpu.memory_space<vmem>>, %arg5: memref<1x1x64xf32, #tpu.memory_space<vmem>>, %arg6: memref<1x1x64xf32, #tpu.memory_space<vmem>>, %arg7: memref<3x192x64xf32, #tpu.memory_space<vmem>>, %arg8: memref<1x64xf32, #tpu.memory_space<vmem>>, %arg9: memref<1x8x8x64xf32, #tpu.memory_space<vmem>>, %arg10: memref<1x8x8x64xf32, #tpu.memory_space<vmem>>, %arg11: memref<1x2x64xf32, #tpu.memory_space<vmem>>) attributes {dimension_semantics = [#tpu.dimension_semantics<parallel>, #tpu.dimension_semantics<arbitrary>], iteration_bounds = array<i64: 2, 2>, scalar_prefetch = 0 : i64, scratch_operands = 0 : i64, tpu.core_type = #tpu.core_type<tc>, window_params = [{transform_indices = @transform_0, window_bounds = array<i64: 1, 1, 8, 64>}, {transform_indices = @transform_1, window_bounds = array<i64: 1, 8, 8, 64>}, {transform_indices = @transform_2, window_bounds = array<i64: 1, 1, 8, 64>}, {transform_indices = @transform_3, window_bounds = array<i64: 1, 1, 64>}, {transform_indices = @transform_4, window_bounds = array<i64: 1, 1, 64>}, {pipeline_mode = #tpu.pipeline_mode<synchronous>, transform_indices = @transform_5, window_bounds = array<i64: 3, 192, 64>}, {pipeline_mode = #tpu.pipeline_mode<synchronous>, transform_indices = @transform_6, window_bounds = array<i64: 1, 64>}, {transform_indices = @transform_7, window_bounds = array<i64: 1, 8, 8, 64>}, {transform_indices = @transform_8, window_bounds = array<i64: 1, 8, 8, 64>}, {transform_indices = @transform_9, window_bounds = array<i64: 1, 2, 64>}]} {
    %c0 = arith.constant 0 : index
    %c0_0 = arith.constant 0 : index
    %c0_1 = arith.constant 0 : index
    %c0_2 = arith.constant 0 : index
    %0 = vector.load %arg2[%c0, %c0_0, %c0_1, %c0_2] : memref<1x1x8x64xf32, #tpu.memory_space<vmem>>, vector<1x1x8x64xf32>
    %1 = vector.shape_cast %0 : vector<1x1x8x64xf32> to vector<1x8x64xf32>
    %c0_3 = arith.constant 0 : index
    %c0_4 = arith.constant 0 : index
    %c0_5 = arith.constant 0 : index
    %c0_6 = arith.constant 0 : index
    %2 = vector.load %arg3[%c0_3, %c0_4, %c0_5, %c0_6] : memref<1x8x8x64xf32, #tpu.memory_space<vmem>>, vector<1x8x8x64xf32>
    %3 = vector.shape_cast %2 : vector<1x8x8x64xf32> to vector<8x8x64xf32>
    %c0_7 = arith.constant 0 : index
    %c0_8 = arith.constant 0 : index
    %c0_9 = arith.constant 0 : index
    %c0_10 = arith.constant 0 : index
    %4 = vector.load %arg4[%c0_7, %c0_8, %c0_9, %c0_10] : memref<1x1x8x64xf32, #tpu.memory_space<vmem>>, vector<1x1x8x64xf32>
    %5 = vector.shape_cast %4 : vector<1x1x8x64xf32> to vector<1x8x64xf32>
    %c0_11 = arith.constant 0 : index
    %c0_12 = arith.constant 0 : index
    %c0_13 = arith.constant 0 : index
    %6 = vector.load %arg5[%c0_11, %c0_12, %c0_13] : memref<1x1x64xf32, #tpu.memory_space<vmem>>, vector<1x1x64xf32>
    %7 = vector.shape_cast %6 : vector<1x1x64xf32> to vector<1x64xf32>
    %c0_14 = arith.constant 0 : index
    %c0_15 = arith.constant 0 : index
    %c0_16 = arith.constant 0 : index
    %8 = vector.load %arg6[%c0_14, %c0_15, %c0_16] : memref<1x1x64xf32, #tpu.memory_space<vmem>>, vector<1x1x64xf32>
    %9 = vector.shape_cast %8 : vector<1x1x64xf32> to vector<1x64xf32>
    %10 = vector.shape_cast %7 : vector<1x64xf32> to vector<1x1x64xf32>
    %11 = vector.broadcast %10 : vector<1x1x64xf32> to vector<1x8x64xf32>
    %12 = arith.mulf %1, %11 : vector<1x8x64xf32>
    %13 = vector.shape_cast %9 : vector<1x64xf32> to vector<1x1x64xf32>
    %14 = vector.broadcast %13 : vector<1x1x64xf32> to vector<1x8x64xf32>
    %15 = arith.addf %12, %14 : vector<1x8x64xf32>
    %16 = arith.negf %15 : vector<1x8x64xf32>
    %17 = math.exp %16 : vector<1x8x64xf32>
    %cst = arith.constant 1.000000e+00 : f32
    %18 = vector.broadcast %cst : f32 to vector<1x8x64xf32>
    %19 = arith.addf %18, %17 : vector<1x8x64xf32>
    %20 = arith.divf %18, %19 : vector<1x8x64xf32>
    %21 = arith.mulf %15, %20 : vector<1x8x64xf32>
    %22 = vector.shape_cast %7 : vector<1x64xf32> to vector<1x1x64xf32>
    %23 = vector.broadcast %22 : vector<1x1x64xf32> to vector<8x8x64xf32>
    %24 = arith.mulf %3, %23 : vector<8x8x64xf32>
    %25 = vector.shape_cast %9 : vector<1x64xf32> to vector<1x1x64xf32>
    %26 = vector.broadcast %25 : vector<1x1x64xf32> to vector<8x8x64xf32>
    %27 = arith.addf %24, %26 : vector<8x8x64xf32>
    %28 = arith.negf %27 : vector<8x8x64xf32>
    %29 = math.exp %28 : vector<8x8x64xf32>
    %cst_17 = arith.constant 1.000000e+00 : f32
    %30 = vector.broadcast %cst_17 : f32 to vector<8x8x64xf32>
    %31 = arith.addf %30, %29 : vector<8x8x64xf32>
    %32 = arith.divf %30, %31 : vector<8x8x64xf32>
    %33 = arith.mulf %27, %32 : vector<8x8x64xf32>
    %34 = vector.shape_cast %7 : vector<1x64xf32> to vector<1x1x64xf32>
    %35 = vector.broadcast %34 : vector<1x1x64xf32> to vector<1x8x64xf32>
    %36 = arith.mulf %5, %35 : vector<1x8x64xf32>
    %37 = vector.shape_cast %9 : vector<1x64xf32> to vector<1x1x64xf32>
    %38 = vector.broadcast %37 : vector<1x1x64xf32> to vector<1x8x64xf32>
    %39 = arith.addf %36, %38 : vector<1x8x64xf32>
    %40 = arith.negf %39 : vector<1x8x64xf32>
    %41 = math.exp %40 : vector<1x8x64xf32>
    %cst_18 = arith.constant 1.000000e+00 : f32
    %42 = vector.broadcast %cst_18 : f32 to vector<1x8x64xf32>
    %43 = arith.addf %42, %41 : vector<1x8x64xf32>
    %44 = arith.divf %42, %43 : vector<1x8x64xf32>
    %45 = arith.mulf %39, %44 : vector<1x8x64xf32>
    %c0_i32 = arith.constant 0 : i32
    %46 = arith.cmpi sgt, %arg1, %c0_i32 : i32
    %cst_19 = arith.constant 0.000000e+00 : f32
    %47 = vector.broadcast %cst_19 : f32 to vector<1x8x64xf32>
    %48 = arith.select %46, %21, %47 : vector<1x8x64xf32>
    %c1_i32 = arith.constant 1 : i32
    %49 = arith.cmpi slt, %arg1, %c1_i32 : i32
    %cst_20 = arith.constant 0.000000e+00 : f32
    %50 = vector.broadcast %cst_20 : f32 to vector<1x8x64xf32>
    %51 = arith.select %49, %45, %50 : vector<1x8x64xf32>
    %52 = tpu.concatenate %48, %33, %51 in 0 : vector<1x8x64xf32>, vector<8x8x64xf32>, vector<1x8x64xf32> -> vector<10x8x64xf32>
    %cst_21 = arith.constant 0.000000e+00 : f32
    %53 = vector.broadcast %cst_21 : f32 to vector<10x1x64xf32>
    %54 = tpu.concatenate %53, %52, %53 in 1 : vector<10x1x64xf32>, vector<10x8x64xf32>, vector<10x1x64xf32> -> vector<10x10x64xf32>
    %cst_22 = arith.constant 0.000000e+00 : f32
    %55 = vector.broadcast %cst_22 : f32 to vector<64x64xf32>
    %56 = vector.extract_strided_slice %54 {offsets = [0, 0, 0], sizes = [8, 10, 64], strides = [1, 1, 1]} : vector<10x10x64xf32> to vector<8x10x64xf32>
    %57 = vector.extract_strided_slice %56 {offsets = [0, 0, 0], sizes = [8, 8, 64], strides = [1, 1, 1]} : vector<8x10x64xf32> to vector<8x8x64xf32>
    %58 = vector.extract_strided_slice %56 {offsets = [0, 1, 0], sizes = [8, 8, 64], strides = [1, 1, 1]} : vector<8x10x64xf32> to vector<8x8x64xf32>
    %59 = vector.extract_strided_slice %56 {offsets = [0, 2, 0], sizes = [8, 8, 64], strides = [1, 1, 1]} : vector<8x10x64xf32> to vector<8x8x64xf32>
    %60 = tpu.concatenate %57, %58, %59 in 2 : vector<8x8x64xf32>, vector<8x8x64xf32>, vector<8x8x64xf32> -> vector<8x8x192xf32>
    %61 = vector.shape_cast %60 : vector<8x8x192xf32> to vector<64x192xf32>
    %c0_23 = arith.constant 0 : index
    %c0_24 = arith.constant 0 : index
    %c0_25 = arith.constant 0 : index
    %62 = vector.load %arg7[%c0_23, %c0_24, %c0_25] : memref<3x192x64xf32, #tpu.memory_space<vmem>>, vector<1x192x64xf32>
    %63 = vector.shape_cast %62 : vector<1x192x64xf32> to vector<192x64xf32>
    %cst_26 = arith.constant dense<0.000000e+00> : vector<64x64xf32>
    %64 = tpu.matmul %61, %63, %cst_26 {dimension_numbers = #tpu.dot_dimension_numbers<[1], [0], [0], [1], [0, 0, 1, 1], [], []>} : vector<64x192xf32>, vector<192x64xf32>, vector<64x64xf32> -> vector<64x64xf32>
    %65 = arith.addf %55, %64 : vector<64x64xf32>
    %66 = vector.extract_strided_slice %54 {offsets = [1, 0, 0], sizes = [8, 10, 64], strides = [1, 1, 1]} : vector<10x10x64xf32> to vector<8x10x64xf32>
    %67 = vector.extract_strided_slice %66 {offsets = [0, 0, 0], sizes = [8, 8, 64], strides = [1, 1, 1]} : vector<8x10x64xf32> to vector<8x8x64xf32>
    %68 = vector.extract_strided_slice %66 {offsets = [0, 1, 0], sizes = [8, 8, 64], strides = [1, 1, 1]} : vector<8x10x64xf32> to vector<8x8x64xf32>
    %69 = vector.extract_strided_slice %66 {offsets = [0, 2, 0], sizes = [8, 8, 64], strides = [1, 1, 1]} : vector<8x10x64xf32> to vector<8x8x64xf32>
    %70 = tpu.concatenate %67, %68, %69 in 2 : vector<8x8x64xf32>, vector<8x8x64xf32>, vector<8x8x64xf32> -> vector<8x8x192xf32>
    %71 = vector.shape_cast %70 : vector<8x8x192xf32> to vector<64x192xf32>
    %c1 = arith.constant 1 : index
    %c0_27 = arith.constant 0 : index
    %c0_28 = arith.constant 0 : index
    %72 = vector.load %arg7[%c1, %c0_27, %c0_28] : memref<3x192x64xf32, #tpu.memory_space<vmem>>, vector<1x192x64xf32>
    %73 = vector.shape_cast %72 : vector<1x192x64xf32> to vector<192x64xf32>
    %cst_29 = arith.constant dense<0.000000e+00> : vector<64x64xf32>
    %74 = tpu.matmul %71, %73, %cst_29 {dimension_numbers = #tpu.dot_dimension_numbers<[1], [0], [0], [1], [0, 0, 1, 1], [], []>} : vector<64x192xf32>, vector<192x64xf32>, vector<64x64xf32> -> vector<64x64xf32>
    %75 = arith.addf %65, %74 : vector<64x64xf32>
    %76 = vector.extract_strided_slice %54 {offsets = [2, 0, 0], sizes = [8, 10, 64], strides = [1, 1, 1]} : vector<10x10x64xf32> to vector<8x10x64xf32>
    %77 = vector.extract_strided_slice %76 {offsets = [0, 0, 0], sizes = [8, 8, 64], strides = [1, 1, 1]} : vector<8x10x64xf32> to vector<8x8x64xf32>
    %78 = vector.extract_strided_slice %76 {offsets = [0, 1, 0], sizes = [8, 8, 64], strides = [1, 1, 1]} : vector<8x10x64xf32> to vector<8x8x64xf32>
    %79 = vector.extract_strided_slice %76 {offsets = [0, 2, 0], sizes = [8, 8, 64], strides = [1, 1, 1]} : vector<8x10x64xf32> to vector<8x8x64xf32>
    %80 = tpu.concatenate %77, %78, %79 in 2 : vector<8x8x64xf32>, vector<8x8x64xf32>, vector<8x8x64xf32> -> vector<8x8x192xf32>
    %81 = vector.shape_cast %80 : vector<8x8x192xf32> to vector<64x192xf32>
    %c2 = arith.constant 2 : index
    %c0_30 = arith.constant 0 : index
    %c0_31 = arith.constant 0 : index
    %82 = vector.load %arg7[%c2, %c0_30, %c0_31] : memref<3x192x64xf32, #tpu.memory_space<vmem>>, vector<1x192x64xf32>
    %83 = vector.shape_cast %82 : vector<1x192x64xf32> to vector<192x64xf32>
    %cst_32 = arith.constant dense<0.000000e+00> : vector<64x64xf32>
    %84 = tpu.matmul %81, %83, %cst_32 {dimension_numbers = #tpu.dot_dimension_numbers<[1], [0], [0], [1], [0, 0, 1, 1], [], []>} : vector<64x192xf32>, vector<192x64xf32>, vector<64x64xf32> -> vector<64x64xf32>
    %85 = arith.addf %75, %84 : vector<64x64xf32>
    %c0_33 = arith.constant 0 : index
    %c0_34 = arith.constant 0 : index
    %86 = vector.load %arg8[%c0_33, %c0_34] : memref<1x64xf32, #tpu.memory_space<vmem>>, vector<1x64xf32>
    %87 = vector.broadcast %86 : vector<1x64xf32> to vector<64x64xf32>
    %88 = arith.addf %85, %87 : vector<64x64xf32>
    %c0_35 = arith.constant 0 : index
    %c0_36 = arith.constant 0 : index
    %c0_37 = arith.constant 0 : index
    %c0_38 = arith.constant 0 : index
    %89 = vector.load %arg9[%c0_35, %c0_36, %c0_37, %c0_38] : memref<1x8x8x64xf32, #tpu.memory_space<vmem>>, vector<1x8x8x64xf32>
    %90 = vector.shape_cast %89 : vector<1x8x8x64xf32> to vector<8x8x64xf32>
    %91 = vector.shape_cast %90 : vector<8x8x64xf32> to vector<64x64xf32>
    %92 = arith.addf %88, %91 : vector<64x64xf32>
    %93 = vector.shape_cast %92 : vector<64x64xf32> to vector<8x8x64xf32>
    %c0_39 = arith.constant 0 : index
    %c0_40 = arith.constant 0 : index
    %c0_41 = arith.constant 0 : index
    %c0_42 = arith.constant 0 : index
    %94 = vector.load %arg10[%c0_39, %c0_40, %c0_41, %c0_42] : memref<1x8x8x64xf32, #tpu.memory_space<vmem>>, vector<1x8x8x64xf32>
    %95 = vector.shape_cast %94 : vector<1x8x8x64xf32> to vector<8x8x64xf32>
    %96 = vector.shape_cast %93 : vector<8x8x64xf32> to vector<1x8x8x64xf32>
    tpu.vector_store %arg10[%c0_39, %c0_40, %c0_41, %c0_42], %96 {strides = array<i32>} : memref<1x8x8x64xf32, #tpu.memory_space<vmem>>, vector<1x8x8x64xf32>,
    %c0_i32_43 = arith.constant 0 : i32
    %97 = arith.cmpi eq, %arg1, %c0_i32_43 : i32
    %98 = arith.extui %97 : i1 to i32
    %c0_i32_44 = arith.constant 0 : i32
    %99 = arith.cmpi ne, %98, %c0_i32_44 : i32
    scf.if %99 {
      %cst_59 = arith.constant 0.000000e+00 : f32
      %117 = vector.broadcast %cst_59 : f32 to vector<1x2x64xf32>
      %c0_60 = arith.constant 0 : index
      %c0_61 = arith.constant 0 : index
      %c0_62 = arith.constant 0 : index
      %118 = vector.load %arg11[%c0_60, %c0_61, %c0_62] : memref<1x2x64xf32, #tpu.memory_space<vmem>>, vector<1x2x64xf32>
      tpu.vector_store %arg11[%c0_60, %c0_61, %c0_62], %117 {strides = array<i32>} : memref<1x2x64xf32, #tpu.memory_space<vmem>>, vector<1x2x64xf32>,
    } else {
    }
    %c0_45 = arith.constant 0 : index
    %c0_46 = arith.constant 0 : index
    %c0_47 = arith.constant 0 : index
    %100 = vector.load %arg11[%c0_45, %c0_46, %c0_47] : memref<1x2x64xf32, #tpu.memory_space<vmem>>, vector<1x1x64xf32>
    %101 = vector.shape_cast %100 : vector<1x1x64xf32> to vector<1x64xf32>
    %cst_48 = arith.constant dense<0.000000e+00> : vector<64xf32>
    %102 = vector.multi_reduction <add>, %92, %cst_48 [0] : vector<64x64xf32> to vector<64xf32>
    %103 = vector.shape_cast %102 : vector<64xf32> to vector<1x64xf32>
    %104 = arith.addf %101, %103 : vector<1x64xf32>
    %c0_49 = arith.constant 0 : index
    %c0_50 = arith.constant 0 : index
    %c0_51 = arith.constant 0 : index
    %105 = vector.load %arg11[%c0_49, %c0_50, %c0_51] : memref<1x2x64xf32, #tpu.memory_space<vmem>>, vector<1x1x64xf32>
    %106 = vector.shape_cast %105 : vector<1x1x64xf32> to vector<1x64xf32>
    %107 = vector.shape_cast %104 : vector<1x64xf32> to vector<1x1x64xf32>
    tpu.vector_store %arg11[%c0_49, %c0_50, %c0_51], %107 {strides = array<i32>} : memref<1x2x64xf32, #tpu.memory_space<vmem>>, vector<1x1x64xf32>,
    %c0_52 = arith.constant 0 : index
    %c1_53 = arith.constant 1 : index
    %c0_54 = arith.constant 0 : index
    %108 = vector.load %arg11[%c0_52, %c1_53, %c0_54] : memref<1x2x64xf32, #tpu.memory_space<vmem>>, vector<1x1x64xf32>
    %109 = vector.shape_cast %108 : vector<1x1x64xf32> to vector<1x64xf32>
    %110 = arith.mulf %92, %92 : vector<64x64xf32>
    %cst_55 = arith.constant dense<0.000000e+00> : vector<64xf32>
    %111 = vector.multi_reduction <add>, %110, %cst_55 [0] : vector<64x64xf32> to vector<64xf32>
    %112 = vector.shape_cast %111 : vector<64xf32> to vector<1x64xf32>
    %113 = arith.addf %109, %112 : vector<1x64xf32>
    %c0_56 = arith.constant 0 : index
    %c1_57 = arith.constant 1 : index
    %c0_58 = arith.constant 0 : index
    %114 = vector.load %arg11[%c0_56, %c1_57, %c0_58] : memref<1x2x64xf32, #tpu.memory_space<vmem>>, vector<1x1x64xf32>
    %115 = vector.shape_cast %114 : vector<1x1x64xf32> to vector<1x64xf32>
    %116 = vector.shape_cast %113 : vector<1x64xf32> to vector<1x1x64xf32>
    tpu.vector_store %arg11[%c0_56, %c1_57, %c0_58], %116 {strides = array<i32>} : memref<1x2x64xf32, #tpu.memory_space<vmem>>, vector<1x1x64xf32>,
    return
  }
  func.func @transform_0(%arg0: i32, %arg1: i32) -> (i32, i32, i32, i32) {
    %c8_i32 = arith.constant 8 : i32
    %0 = arith.muli %arg1, %c8_i32 : i32
    %c1_i32 = arith.constant 1 : i32
    %1 = arith.subi %0, %c1_i32 : i32
    %c0_i32 = arith.constant 0 : i32
    %2 = arith.maxsi %1, %c0_i32 : i32
    %c0_i32_0 = arith.constant 0 : i32
    %c0_i32_1 = arith.constant 0 : i32
    %c0_i32_2 = arith.constant 0 : i32
    return %arg0, %2, %c0_i32_0, %c0_i32_1 : i32, i32, i32, i32
  }
  func.func @transform_1(%arg0: i32, %arg1: i32) -> (i32, i32, i32, i32) {
    %c0_i32 = arith.constant 0 : i32
    %c0_i32_0 = arith.constant 0 : i32
    %c0_i32_1 = arith.constant 0 : i32
    return %arg0, %arg1, %c0_i32, %c0_i32_0 : i32, i32, i32, i32
  }
  func.func @transform_2(%arg0: i32, %arg1: i32) -> (i32, i32, i32, i32) {
    %c1_i32 = arith.constant 1 : i32
    %0 = arith.addi %arg1, %c1_i32 : i32
    %c8_i32 = arith.constant 8 : i32
    %1 = arith.muli %0, %c8_i32 : i32
    %c15_i32 = arith.constant 15 : i32
    %2 = arith.minsi %1, %c15_i32 : i32
    %c0_i32 = arith.constant 0 : i32
    %c0_i32_0 = arith.constant 0 : i32
    %c0_i32_1 = arith.constant 0 : i32
    return %arg0, %2, %c0_i32, %c0_i32_0 : i32, i32, i32, i32
  }
  func.func @transform_3(%arg0: i32, %arg1: i32) -> (i32, i32, i32) {
    %c0_i32 = arith.constant 0 : i32
    %c0_i32_0 = arith.constant 0 : i32
    %c0_i32_1 = arith.constant 0 : i32
    return %arg0, %c0_i32, %c0_i32_0 : i32, i32, i32
  }
  func.func @transform_4(%arg0: i32, %arg1: i32) -> (i32, i32, i32) {
    %c0_i32 = arith.constant 0 : i32
    %c0_i32_0 = arith.constant 0 : i32
    %c0_i32_1 = arith.constant 0 : i32
    return %arg0, %c0_i32, %c0_i32_0 : i32, i32, i32
  }
  func.func @transform_5(%arg0: i32, %arg1: i32) -> (i32, i32, i32) {
    %c0_i32 = arith.constant 0 : i32
    %c0_i32_0 = arith.constant 0 : i32
    %c0_i32_1 = arith.constant 0 : i32
    %c0_i32_2 = arith.constant 0 : i32
    return %c0_i32, %c0_i32_0, %c0_i32_1 : i32, i32, i32
  }
  func.func @transform_6(%arg0: i32, %arg1: i32) -> (i32, i32) {
    %c0_i32 = arith.constant 0 : i32
    %c0_i32_0 = arith.constant 0 : i32
    %c0_i32_1 = arith.constant 0 : i32
    return %c0_i32, %c0_i32_0 : i32, i32
  }
  func.func @transform_7(%arg0: i32, %arg1: i32) -> (i32, i32, i32, i32) {
    %c0_i32 = arith.constant 0 : i32
    %c0_i32_0 = arith.constant 0 : i32
    %c0_i32_1 = arith.constant 0 : i32
    return %arg0, %arg1, %c0_i32, %c0_i32_0 : i32, i32, i32, i32
  }
  func.func @transform_8(%arg0: i32, %arg1: i32) -> (i32, i32, i32, i32) {
    %c0_i32 = arith.constant 0 : i32
    %c0_i32_0 = arith.constant 0 : i32
    %c0_i32_1 = arith.constant 0 : i32
    return %arg0, %arg1, %c0_i32, %c0_i32_0 : i32, i32, i32, i32
  }
  func.func @transform_9(%arg0: i32, %arg1: i32) -> (i32, i32, i32) {
    %c0_i32 = arith.constant 0 : i32
    %c0_i32_0 = arith.constant 0 : i32
    %c0_i32_1 = arith.constant 0 : i32
    return %arg0, %c0_i32, %c0_i32_0 : i32, i32, i32
  }
}

module attributes {stable_mosaic.version = 11 : i64} {
  func.func @kernel(%arg0: i32, %arg1: i32, %arg2: memref<1x1x8x64xf32, #tpu.memory_space<vmem>>, %arg3: memref<1x2x8x64xf32, #tpu.memory_space<vmem>>, %arg4: memref<1x1x8x64xf32, #tpu.memory_space<vmem>>, %arg5: memref<3x192x64xf32, #tpu.memory_space<vmem>>, %arg6: memref<1x64xf32, #tpu.memory_space<vmem>>, %arg7: memref<1x4x16x64xf32, #tpu.memory_space<vmem>>) attributes {dimension_semantics = [#tpu.dimension_semantics<parallel>, #tpu.dimension_semantics<arbitrary>], iteration_bounds = array<i64: 2, 8>, scalar_prefetch = 0 : i64, scratch_operands = 0 : i64, tpu.core_type = #tpu.core_type<tc>, window_params = [{transform_indices = @transform_0, window_bounds = array<i64: 1, 1, 8, 64>}, {transform_indices = @transform_1, window_bounds = array<i64: 1, 2, 8, 64>}, {transform_indices = @transform_2, window_bounds = array<i64: 1, 1, 8, 64>}, {pipeline_mode = #tpu.pipeline_mode<synchronous>, transform_indices = @transform_3, window_bounds = array<i64: 3, 192, 64>}, {pipeline_mode = #tpu.pipeline_mode<synchronous>, transform_indices = @transform_4, window_bounds = array<i64: 1, 64>}, {transform_indices = @transform_5, window_bounds = array<i64: 1, 4, 16, 64>}]} {
    %c0 = arith.constant 0 : index
    %c0_0 = arith.constant 0 : index
    %c0_1 = arith.constant 0 : index
    %c0_2 = arith.constant 0 : index
    %0 = vector.load %arg2[%c0, %c0_0, %c0_1, %c0_2] : memref<1x1x8x64xf32, #tpu.memory_space<vmem>>, vector<1x1x8x64xf32>
    %1 = vector.shape_cast %0 : vector<1x1x8x64xf32> to vector<1x8x64xf32>
    %c0_3 = arith.constant 0 : index
    %c0_4 = arith.constant 0 : index
    %c0_5 = arith.constant 0 : index
    %c0_6 = arith.constant 0 : index
    %2 = vector.load %arg3[%c0_3, %c0_4, %c0_5, %c0_6] : memref<1x2x8x64xf32, #tpu.memory_space<vmem>>, vector<1x2x8x64xf32>
    %3 = vector.shape_cast %2 : vector<1x2x8x64xf32> to vector<2x8x64xf32>
    %c0_7 = arith.constant 0 : index
    %c0_8 = arith.constant 0 : index
    %c0_9 = arith.constant 0 : index
    %c0_10 = arith.constant 0 : index
    %4 = vector.load %arg4[%c0_7, %c0_8, %c0_9, %c0_10] : memref<1x1x8x64xf32, #tpu.memory_space<vmem>>, vector<1x1x8x64xf32>
    %5 = vector.shape_cast %4 : vector<1x1x8x64xf32> to vector<1x8x64xf32>
    %c0_i32 = arith.constant 0 : i32
    %6 = arith.cmpi sgt, %arg1, %c0_i32 : i32
    %cst = arith.constant 0.000000e+00 : f32
    %7 = vector.broadcast %cst : f32 to vector<1x8x64xf32>
    %8 = arith.select %6, %1, %7 : vector<1x8x64xf32>
    %c7_i32 = arith.constant 7 : i32
    %9 = arith.cmpi slt, %arg1, %c7_i32 : i32
    %cst_11 = arith.constant 0.000000e+00 : f32
    %10 = vector.broadcast %cst_11 : f32 to vector<1x8x64xf32>
    %11 = arith.select %9, %5, %10 : vector<1x8x64xf32>
    %12 = tpu.concatenate %8, %3, %11 in 0 : vector<1x8x64xf32>, vector<2x8x64xf32>, vector<1x8x64xf32> -> vector<4x8x64xf32>
    %cst_12 = arith.constant 0.000000e+00 : f32
    %13 = vector.broadcast %cst_12 : f32 to vector<4x1x64xf32>
    %14 = tpu.concatenate %13, %12, %13 in 1 : vector<4x1x64xf32>, vector<4x8x64xf32>, vector<4x1x64xf32> -> vector<4x10x64xf32>
    %15 = vector.extract_strided_slice %14 {offsets = [0, 0, 0], sizes = [1, 10, 64], strides = [1, 1, 1]} : vector<4x10x64xf32> to vector<1x10x64xf32>
    %16 = vector.extract_strided_slice %14 {offsets = [1, 0, 0], sizes = [2, 10, 64], strides = [1, 1, 1]} : vector<4x10x64xf32> to vector<2x10x64xf32>
    %17 = vector.shape_cast %16 : vector<2x10x64xf32> to vector<2x1x10x64xf32>
    %18 = vector.shape_cast %16 : vector<2x10x64xf32> to vector<2x1x10x64xf32>
    %19 = tpu.concatenate %17, %18 in 1 : vector<2x1x10x64xf32>, vector<2x1x10x64xf32> -> vector<2x2x10x64xf32>
    %20 = vector.shape_cast %19 : vector<2x2x10x64xf32> to vector<4x10x64xf32>
    %21 = vector.extract_strided_slice %14 {offsets = [3, 0, 0], sizes = [1, 10, 64], strides = [1, 1, 1]} : vector<4x10x64xf32> to vector<1x10x64xf32>
    %22 = tpu.concatenate %15, %20, %21 in 0 : vector<1x10x64xf32>, vector<4x10x64xf32>, vector<1x10x64xf32> -> vector<6x10x64xf32>
    %23 = vector.extract_strided_slice %22 {offsets = [0, 0, 0], sizes = [6, 1, 64], strides = [1, 1, 1]} : vector<6x10x64xf32> to vector<6x1x64xf32>
    %24 = vector.extract_strided_slice %22 {offsets = [0, 1, 0], sizes = [6, 8, 64], strides = [1, 1, 1]} : vector<6x10x64xf32> to vector<6x8x64xf32>
    %25 = vector.shape_cast %24 : vector<6x8x64xf32> to vector<6x8x1x64xf32>
    %26 = vector.shape_cast %24 : vector<6x8x64xf32> to vector<6x8x1x64xf32>
    %27 = tpu.concatenate %25, %26 in 2 : vector<6x8x1x64xf32>, vector<6x8x1x64xf32> -> vector<6x8x2x64xf32>
    %28 = vector.shape_cast %27 : vector<6x8x2x64xf32> to vector<6x16x64xf32>
    %29 = vector.extract_strided_slice %22 {offsets = [0, 9, 0], sizes = [6, 1, 64], strides = [1, 1, 1]} : vector<6x10x64xf32> to vector<6x1x64xf32>
    %30 = tpu.concatenate %23, %28, %29 in 1 : vector<6x1x64xf32>, vector<6x16x64xf32>, vector<6x1x64xf32> -> vector<6x18x64xf32>
    %cst_13 = arith.constant 0.000000e+00 : f32
    %31 = vector.broadcast %cst_13 : f32 to vector<64x64xf32>
    %32 = vector.extract_strided_slice %30 {offsets = [0, 0, 0], sizes = [4, 18, 64], strides = [1, 1, 1]} : vector<6x18x64xf32> to vector<4x18x64xf32>
    %33 = vector.extract_strided_slice %32 {offsets = [0, 0, 0], sizes = [4, 16, 64], strides = [1, 1, 1]} : vector<4x18x64xf32> to vector<4x16x64xf32>
    %34 = vector.extract_strided_slice %32 {offsets = [0, 1, 0], sizes = [4, 16, 64], strides = [1, 1, 1]} : vector<4x18x64xf32> to vector<4x16x64xf32>
    %35 = vector.extract_strided_slice %32 {offsets = [0, 2, 0], sizes = [4, 16, 64], strides = [1, 1, 1]} : vector<4x18x64xf32> to vector<4x16x64xf32>
    %36 = tpu.concatenate %33, %34, %35 in 2 : vector<4x16x64xf32>, vector<4x16x64xf32>, vector<4x16x64xf32> -> vector<4x16x192xf32>
    %37 = vector.shape_cast %36 : vector<4x16x192xf32> to vector<64x192xf32>
    %c0_14 = arith.constant 0 : index
    %c0_15 = arith.constant 0 : index
    %c0_16 = arith.constant 0 : index
    %38 = vector.load %arg5[%c0_14, %c0_15, %c0_16] : memref<3x192x64xf32, #tpu.memory_space<vmem>>, vector<1x192x64xf32>
    %39 = vector.shape_cast %38 : vector<1x192x64xf32> to vector<192x64xf32>
    %cst_17 = arith.constant dense<0.000000e+00> : vector<64x64xf32>
    %40 = tpu.matmul %37, %39, %cst_17 {dimension_numbers = #tpu.dot_dimension_numbers<[1], [0], [0], [1], [0, 0, 1, 1], [], []>} : vector<64x192xf32>, vector<192x64xf32>, vector<64x64xf32> -> vector<64x64xf32>
    %41 = arith.addf %31, %40 : vector<64x64xf32>
    %42 = vector.extract_strided_slice %30 {offsets = [1, 0, 0], sizes = [4, 18, 64], strides = [1, 1, 1]} : vector<6x18x64xf32> to vector<4x18x64xf32>
    %43 = vector.extract_strided_slice %42 {offsets = [0, 0, 0], sizes = [4, 16, 64], strides = [1, 1, 1]} : vector<4x18x64xf32> to vector<4x16x64xf32>
    %44 = vector.extract_strided_slice %42 {offsets = [0, 1, 0], sizes = [4, 16, 64], strides = [1, 1, 1]} : vector<4x18x64xf32> to vector<4x16x64xf32>
    %45 = vector.extract_strided_slice %42 {offsets = [0, 2, 0], sizes = [4, 16, 64], strides = [1, 1, 1]} : vector<4x18x64xf32> to vector<4x16x64xf32>
    %46 = tpu.concatenate %43, %44, %45 in 2 : vector<4x16x64xf32>, vector<4x16x64xf32>, vector<4x16x64xf32> -> vector<4x16x192xf32>
    %47 = vector.shape_cast %46 : vector<4x16x192xf32> to vector<64x192xf32>
    %c1 = arith.constant 1 : index
    %c0_18 = arith.constant 0 : index
    %c0_19 = arith.constant 0 : index
    %48 = vector.load %arg5[%c1, %c0_18, %c0_19] : memref<3x192x64xf32, #tpu.memory_space<vmem>>, vector<1x192x64xf32>
    %49 = vector.shape_cast %48 : vector<1x192x64xf32> to vector<192x64xf32>
    %cst_20 = arith.constant dense<0.000000e+00> : vector<64x64xf32>
    %50 = tpu.matmul %47, %49, %cst_20 {dimension_numbers = #tpu.dot_dimension_numbers<[1], [0], [0], [1], [0, 0, 1, 1], [], []>} : vector<64x192xf32>, vector<192x64xf32>, vector<64x64xf32> -> vector<64x64xf32>
    %51 = arith.addf %41, %50 : vector<64x64xf32>
    %52 = vector.extract_strided_slice %30 {offsets = [2, 0, 0], sizes = [4, 18, 64], strides = [1, 1, 1]} : vector<6x18x64xf32> to vector<4x18x64xf32>
    %53 = vector.extract_strided_slice %52 {offsets = [0, 0, 0], sizes = [4, 16, 64], strides = [1, 1, 1]} : vector<4x18x64xf32> to vector<4x16x64xf32>
    %54 = vector.extract_strided_slice %52 {offsets = [0, 1, 0], sizes = [4, 16, 64], strides = [1, 1, 1]} : vector<4x18x64xf32> to vector<4x16x64xf32>
    %55 = vector.extract_strided_slice %52 {offsets = [0, 2, 0], sizes = [4, 16, 64], strides = [1, 1, 1]} : vector<4x18x64xf32> to vector<4x16x64xf32>
    %56 = tpu.concatenate %53, %54, %55 in 2 : vector<4x16x64xf32>, vector<4x16x64xf32>, vector<4x16x64xf32> -> vector<4x16x192xf32>
    %57 = vector.shape_cast %56 : vector<4x16x192xf32> to vector<64x192xf32>
    %c2 = arith.constant 2 : index
    %c0_21 = arith.constant 0 : index
    %c0_22 = arith.constant 0 : index
    %58 = vector.load %arg5[%c2, %c0_21, %c0_22] : memref<3x192x64xf32, #tpu.memory_space<vmem>>, vector<1x192x64xf32>
    %59 = vector.shape_cast %58 : vector<1x192x64xf32> to vector<192x64xf32>
    %cst_23 = arith.constant dense<0.000000e+00> : vector<64x64xf32>
    %60 = tpu.matmul %57, %59, %cst_23 {dimension_numbers = #tpu.dot_dimension_numbers<[1], [0], [0], [1], [0, 0, 1, 1], [], []>} : vector<64x192xf32>, vector<192x64xf32>, vector<64x64xf32> -> vector<64x64xf32>
    %61 = arith.addf %51, %60 : vector<64x64xf32>
    %c0_24 = arith.constant 0 : index
    %c0_25 = arith.constant 0 : index
    %62 = vector.load %arg6[%c0_24, %c0_25] : memref<1x64xf32, #tpu.memory_space<vmem>>, vector<1x64xf32>
    %63 = vector.broadcast %62 : vector<1x64xf32> to vector<64x64xf32>
    %64 = arith.addf %61, %63 : vector<64x64xf32>
    %65 = vector.shape_cast %64 : vector<64x64xf32> to vector<4x16x64xf32>
    %c0_26 = arith.constant 0 : index
    %c0_27 = arith.constant 0 : index
    %c0_28 = arith.constant 0 : index
    %c0_29 = arith.constant 0 : index
    %66 = vector.load %arg7[%c0_26, %c0_27, %c0_28, %c0_29] : memref<1x4x16x64xf32, #tpu.memory_space<vmem>>, vector<1x4x16x64xf32>
    %67 = vector.shape_cast %66 : vector<1x4x16x64xf32> to vector<4x16x64xf32>
    %68 = vector.shape_cast %65 : vector<4x16x64xf32> to vector<1x4x16x64xf32>
    tpu.vector_store %arg7[%c0_26, %c0_27, %c0_28, %c0_29], %68 {strides = array<i32>} : memref<1x4x16x64xf32, #tpu.memory_space<vmem>>, vector<1x4x16x64xf32>,
    return
  }
  func.func @transform_0(%arg0: i32, %arg1: i32) -> (i32, i32, i32, i32) {
    %c2_i32 = arith.constant 2 : i32
    %0 = arith.muli %arg1, %c2_i32 : i32
    %c1_i32 = arith.constant 1 : i32
    %1 = arith.subi %0, %c1_i32 : i32
    %c0_i32 = arith.constant 0 : i32
    %2 = arith.maxsi %1, %c0_i32 : i32
    %c0_i32_0 = arith.constant 0 : i32
    %c0_i32_1 = arith.constant 0 : i32
    %c0_i32_2 = arith.constant 0 : i32
    return %arg0, %2, %c0_i32_0, %c0_i32_1 : i32, i32, i32, i32
  }
  func.func @transform_1(%arg0: i32, %arg1: i32) -> (i32, i32, i32, i32) {
    %c0_i32 = arith.constant 0 : i32
    %c0_i32_0 = arith.constant 0 : i32
    %c0_i32_1 = arith.constant 0 : i32
    return %arg0, %arg1, %c0_i32, %c0_i32_0 : i32, i32, i32, i32
  }
  func.func @transform_2(%arg0: i32, %arg1: i32) -> (i32, i32, i32, i32) {
    %c1_i32 = arith.constant 1 : i32
    %0 = arith.addi %arg1, %c1_i32 : i32
    %c2_i32 = arith.constant 2 : i32
    %1 = arith.muli %0, %c2_i32 : i32
    %c15_i32 = arith.constant 15 : i32
    %2 = arith.minsi %1, %c15_i32 : i32
    %c0_i32 = arith.constant 0 : i32
    %c0_i32_0 = arith.constant 0 : i32
    %c0_i32_1 = arith.constant 0 : i32
    return %arg0, %2, %c0_i32, %c0_i32_0 : i32, i32, i32, i32
  }
  func.func @transform_3(%arg0: i32, %arg1: i32) -> (i32, i32, i32) {
    %c0_i32 = arith.constant 0 : i32
    %c0_i32_0 = arith.constant 0 : i32
    %c0_i32_1 = arith.constant 0 : i32
    %c0_i32_2 = arith.constant 0 : i32
    return %c0_i32, %c0_i32_0, %c0_i32_1 : i32, i32, i32
  }
  func.func @transform_4(%arg0: i32, %arg1: i32) -> (i32, i32) {
    %c0_i32 = arith.constant 0 : i32
    %c0_i32_0 = arith.constant 0 : i32
    %c0_i32_1 = arith.constant 0 : i32
    return %c0_i32, %c0_i32_0 : i32, i32
  }
  func.func @transform_5(%arg0: i32, %arg1: i32) -> (i32, i32, i32, i32) {
    %c0_i32 = arith.constant 0 : i32
    %c0_i32_0 = arith.constant 0 : i32
    %c0_i32_1 = arith.constant 0 : i32
    return %arg0, %arg1, %c0_i32, %c0_i32_0 : i32, i32, i32, i32
  }
}

module attributes {stable_mosaic.version = 11 : i64} {
  func.func @kernel(%arg0: i32, %arg1: i32, %arg2: memref<1x1x8x64xf32, #tpu.memory_space<vmem>>, %arg3: memref<1x8x8x64xf32, #tpu.memory_space<vmem>>, %arg4: memref<1x1x8x64xf32, #tpu.memory_space<vmem>>, %arg5: memref<1x1x64xf32, #tpu.memory_space<vmem>>, %arg6: memref<1x1x64xf32, #tpu.memory_space<vmem>>, %arg7: memref<3x192x64xf32, #tpu.memory_space<vmem>>, %arg8: memref<1x64xf32, #tpu.memory_space<vmem>>, %arg9: memref<1x8x8x64xf32, #tpu.memory_space<vmem>>, %arg10: memref<1x8x8x64xf32, #tpu.memory_space<vmem>>) attributes {dimension_semantics = [#tpu.dimension_semantics<parallel>, #tpu.dimension_semantics<arbitrary>], iteration_bounds = array<i64: 2, 2>, scalar_prefetch = 0 : i64, scratch_operands = 0 : i64, tpu.core_type = #tpu.core_type<tc>, window_params = [{transform_indices = @transform_0, window_bounds = array<i64: 1, 1, 8, 64>}, {transform_indices = @transform_1, window_bounds = array<i64: 1, 8, 8, 64>}, {transform_indices = @transform_2, window_bounds = array<i64: 1, 1, 8, 64>}, {transform_indices = @transform_3, window_bounds = array<i64: 1, 1, 64>}, {transform_indices = @transform_4, window_bounds = array<i64: 1, 1, 64>}, {pipeline_mode = #tpu.pipeline_mode<synchronous>, transform_indices = @transform_5, window_bounds = array<i64: 3, 192, 64>}, {pipeline_mode = #tpu.pipeline_mode<synchronous>, transform_indices = @transform_6, window_bounds = array<i64: 1, 64>}, {transform_indices = @transform_7, window_bounds = array<i64: 1, 8, 8, 64>}, {transform_indices = @transform_8, window_bounds = array<i64: 1, 8, 8, 64>}]} {
    %c0 = arith.constant 0 : index
    %c0_0 = arith.constant 0 : index
    %c0_1 = arith.constant 0 : index
    %c0_2 = arith.constant 0 : index
    %0 = vector.load %arg2[%c0, %c0_0, %c0_1, %c0_2] : memref<1x1x8x64xf32, #tpu.memory_space<vmem>>, vector<1x1x8x64xf32>
    %1 = vector.shape_cast %0 : vector<1x1x8x64xf32> to vector<1x8x64xf32>
    %c0_3 = arith.constant 0 : index
    %c0_4 = arith.constant 0 : index
    %c0_5 = arith.constant 0 : index
    %c0_6 = arith.constant 0 : index
    %2 = vector.load %arg3[%c0_3, %c0_4, %c0_5, %c0_6] : memref<1x8x8x64xf32, #tpu.memory_space<vmem>>, vector<1x8x8x64xf32>
    %3 = vector.shape_cast %2 : vector<1x8x8x64xf32> to vector<8x8x64xf32>
    %c0_7 = arith.constant 0 : index
    %c0_8 = arith.constant 0 : index
    %c0_9 = arith.constant 0 : index
    %c0_10 = arith.constant 0 : index
    %4 = vector.load %arg4[%c0_7, %c0_8, %c0_9, %c0_10] : memref<1x1x8x64xf32, #tpu.memory_space<vmem>>, vector<1x1x8x64xf32>
    %5 = vector.shape_cast %4 : vector<1x1x8x64xf32> to vector<1x8x64xf32>
    %c0_11 = arith.constant 0 : index
    %c0_12 = arith.constant 0 : index
    %c0_13 = arith.constant 0 : index
    %6 = vector.load %arg5[%c0_11, %c0_12, %c0_13] : memref<1x1x64xf32, #tpu.memory_space<vmem>>, vector<1x1x64xf32>
    %7 = vector.shape_cast %6 : vector<1x1x64xf32> to vector<1x64xf32>
    %c0_14 = arith.constant 0 : index
    %c0_15 = arith.constant 0 : index
    %c0_16 = arith.constant 0 : index
    %8 = vector.load %arg6[%c0_14, %c0_15, %c0_16] : memref<1x1x64xf32, #tpu.memory_space<vmem>>, vector<1x1x64xf32>
    %9 = vector.shape_cast %8 : vector<1x1x64xf32> to vector<1x64xf32>
    %10 = vector.shape_cast %7 : vector<1x64xf32> to vector<1x1x64xf32>
    %11 = vector.broadcast %10 : vector<1x1x64xf32> to vector<1x8x64xf32>
    %12 = arith.mulf %1, %11 : vector<1x8x64xf32>
    %13 = vector.shape_cast %9 : vector<1x64xf32> to vector<1x1x64xf32>
    %14 = vector.broadcast %13 : vector<1x1x64xf32> to vector<1x8x64xf32>
    %15 = arith.addf %12, %14 : vector<1x8x64xf32>
    %16 = arith.negf %15 : vector<1x8x64xf32>
    %17 = math.exp %16 : vector<1x8x64xf32>
    %cst = arith.constant 1.000000e+00 : f32
    %18 = vector.broadcast %cst : f32 to vector<1x8x64xf32>
    %19 = arith.addf %18, %17 : vector<1x8x64xf32>
    %20 = arith.divf %18, %19 : vector<1x8x64xf32>
    %21 = arith.mulf %15, %20 : vector<1x8x64xf32>
    %22 = vector.shape_cast %7 : vector<1x64xf32> to vector<1x1x64xf32>
    %23 = vector.broadcast %22 : vector<1x1x64xf32> to vector<8x8x64xf32>
    %24 = arith.mulf %3, %23 : vector<8x8x64xf32>
    %25 = vector.shape_cast %9 : vector<1x64xf32> to vector<1x1x64xf32>
    %26 = vector.broadcast %25 : vector<1x1x64xf32> to vector<8x8x64xf32>
    %27 = arith.addf %24, %26 : vector<8x8x64xf32>
    %28 = arith.negf %27 : vector<8x8x64xf32>
    %29 = math.exp %28 : vector<8x8x64xf32>
    %cst_17 = arith.constant 1.000000e+00 : f32
    %30 = vector.broadcast %cst_17 : f32 to vector<8x8x64xf32>
    %31 = arith.addf %30, %29 : vector<8x8x64xf32>
    %32 = arith.divf %30, %31 : vector<8x8x64xf32>
    %33 = arith.mulf %27, %32 : vector<8x8x64xf32>
    %34 = vector.shape_cast %7 : vector<1x64xf32> to vector<1x1x64xf32>
    %35 = vector.broadcast %34 : vector<1x1x64xf32> to vector<1x8x64xf32>
    %36 = arith.mulf %5, %35 : vector<1x8x64xf32>
    %37 = vector.shape_cast %9 : vector<1x64xf32> to vector<1x1x64xf32>
    %38 = vector.broadcast %37 : vector<1x1x64xf32> to vector<1x8x64xf32>
    %39 = arith.addf %36, %38 : vector<1x8x64xf32>
    %40 = arith.negf %39 : vector<1x8x64xf32>
    %41 = math.exp %40 : vector<1x8x64xf32>
    %cst_18 = arith.constant 1.000000e+00 : f32
    %42 = vector.broadcast %cst_18 : f32 to vector<1x8x64xf32>
    %43 = arith.addf %42, %41 : vector<1x8x64xf32>
    %44 = arith.divf %42, %43 : vector<1x8x64xf32>
    %45 = arith.mulf %39, %44 : vector<1x8x64xf32>
    %c0_i32 = arith.constant 0 : i32
    %46 = arith.cmpi sgt, %arg1, %c0_i32 : i32
    %cst_19 = arith.constant 0.000000e+00 : f32
    %47 = vector.broadcast %cst_19 : f32 to vector<1x8x64xf32>
    %48 = arith.select %46, %21, %47 : vector<1x8x64xf32>
    %c1_i32 = arith.constant 1 : i32
    %49 = arith.cmpi slt, %arg1, %c1_i32 : i32
    %cst_20 = arith.constant 0.000000e+00 : f32
    %50 = vector.broadcast %cst_20 : f32 to vector<1x8x64xf32>
    %51 = arith.select %49, %45, %50 : vector<1x8x64xf32>
    %52 = tpu.concatenate %48, %33, %51 in 0 : vector<1x8x64xf32>, vector<8x8x64xf32>, vector<1x8x64xf32> -> vector<10x8x64xf32>
    %cst_21 = arith.constant 0.000000e+00 : f32
    %53 = vector.broadcast %cst_21 : f32 to vector<10x1x64xf32>
    %54 = tpu.concatenate %53, %52, %53 in 1 : vector<10x1x64xf32>, vector<10x8x64xf32>, vector<10x1x64xf32> -> vector<10x10x64xf32>
    %cst_22 = arith.constant 0.000000e+00 : f32
    %55 = vector.broadcast %cst_22 : f32 to vector<64x64xf32>
    %56 = vector.extract_strided_slice %54 {offsets = [0, 0, 0], sizes = [8, 10, 64], strides = [1, 1, 1]} : vector<10x10x64xf32> to vector<8x10x64xf32>
    %57 = vector.extract_strided_slice %56 {offsets = [0, 0, 0], sizes = [8, 8, 64], strides = [1, 1, 1]} : vector<8x10x64xf32> to vector<8x8x64xf32>
    %58 = vector.extract_strided_slice %56 {offsets = [0, 1, 0], sizes = [8, 8, 64], strides = [1, 1, 1]} : vector<8x10x64xf32> to vector<8x8x64xf32>
    %59 = vector.extract_strided_slice %56 {offsets = [0, 2, 0], sizes = [8, 8, 64], strides = [1, 1, 1]} : vector<8x10x64xf32> to vector<8x8x64xf32>
    %60 = tpu.concatenate %57, %58, %59 in 2 : vector<8x8x64xf32>, vector<8x8x64xf32>, vector<8x8x64xf32> -> vector<8x8x192xf32>
    %61 = vector.shape_cast %60 : vector<8x8x192xf32> to vector<64x192xf32>
    %c0_23 = arith.constant 0 : index
    %c0_24 = arith.constant 0 : index
    %c0_25 = arith.constant 0 : index
    %62 = vector.load %arg7[%c0_23, %c0_24, %c0_25] : memref<3x192x64xf32, #tpu.memory_space<vmem>>, vector<1x192x64xf32>
    %63 = vector.shape_cast %62 : vector<1x192x64xf32> to vector<192x64xf32>
    %cst_26 = arith.constant dense<0.000000e+00> : vector<64x64xf32>
    %64 = tpu.matmul %61, %63, %cst_26 {dimension_numbers = #tpu.dot_dimension_numbers<[1], [0], [0], [1], [0, 0, 1, 1], [], []>} : vector<64x192xf32>, vector<192x64xf32>, vector<64x64xf32> -> vector<64x64xf32>
    %65 = arith.addf %55, %64 : vector<64x64xf32>
    %66 = vector.extract_strided_slice %54 {offsets = [1, 0, 0], sizes = [8, 10, 64], strides = [1, 1, 1]} : vector<10x10x64xf32> to vector<8x10x64xf32>
    %67 = vector.extract_strided_slice %66 {offsets = [0, 0, 0], sizes = [8, 8, 64], strides = [1, 1, 1]} : vector<8x10x64xf32> to vector<8x8x64xf32>
    %68 = vector.extract_strided_slice %66 {offsets = [0, 1, 0], sizes = [8, 8, 64], strides = [1, 1, 1]} : vector<8x10x64xf32> to vector<8x8x64xf32>
    %69 = vector.extract_strided_slice %66 {offsets = [0, 2, 0], sizes = [8, 8, 64], strides = [1, 1, 1]} : vector<8x10x64xf32> to vector<8x8x64xf32>
    %70 = tpu.concatenate %67, %68, %69 in 2 : vector<8x8x64xf32>, vector<8x8x64xf32>, vector<8x8x64xf32> -> vector<8x8x192xf32>
    %71 = vector.shape_cast %70 : vector<8x8x192xf32> to vector<64x192xf32>
    %c1 = arith.constant 1 : index
    %c0_27 = arith.constant 0 : index
    %c0_28 = arith.constant 0 : index
    %72 = vector.load %arg7[%c1, %c0_27, %c0_28] : memref<3x192x64xf32, #tpu.memory_space<vmem>>, vector<1x192x64xf32>
    %73 = vector.shape_cast %72 : vector<1x192x64xf32> to vector<192x64xf32>
    %cst_29 = arith.constant dense<0.000000e+00> : vector<64x64xf32>
    %74 = tpu.matmul %71, %73, %cst_29 {dimension_numbers = #tpu.dot_dimension_numbers<[1], [0], [0], [1], [0, 0, 1, 1], [], []>} : vector<64x192xf32>, vector<192x64xf32>, vector<64x64xf32> -> vector<64x64xf32>
    %75 = arith.addf %65, %74 : vector<64x64xf32>
    %76 = vector.extract_strided_slice %54 {offsets = [2, 0, 0], sizes = [8, 10, 64], strides = [1, 1, 1]} : vector<10x10x64xf32> to vector<8x10x64xf32>
    %77 = vector.extract_strided_slice %76 {offsets = [0, 0, 0], sizes = [8, 8, 64], strides = [1, 1, 1]} : vector<8x10x64xf32> to vector<8x8x64xf32>
    %78 = vector.extract_strided_slice %76 {offsets = [0, 1, 0], sizes = [8, 8, 64], strides = [1, 1, 1]} : vector<8x10x64xf32> to vector<8x8x64xf32>
    %79 = vector.extract_strided_slice %76 {offsets = [0, 2, 0], sizes = [8, 8, 64], strides = [1, 1, 1]} : vector<8x10x64xf32> to vector<8x8x64xf32>
    %80 = tpu.concatenate %77, %78, %79 in 2 : vector<8x8x64xf32>, vector<8x8x64xf32>, vector<8x8x64xf32> -> vector<8x8x192xf32>
    %81 = vector.shape_cast %80 : vector<8x8x192xf32> to vector<64x192xf32>
    %c2 = arith.constant 2 : index
    %c0_30 = arith.constant 0 : index
    %c0_31 = arith.constant 0 : index
    %82 = vector.load %arg7[%c2, %c0_30, %c0_31] : memref<3x192x64xf32, #tpu.memory_space<vmem>>, vector<1x192x64xf32>
    %83 = vector.shape_cast %82 : vector<1x192x64xf32> to vector<192x64xf32>
    %cst_32 = arith.constant dense<0.000000e+00> : vector<64x64xf32>
    %84 = tpu.matmul %81, %83, %cst_32 {dimension_numbers = #tpu.dot_dimension_numbers<[1], [0], [0], [1], [0, 0, 1, 1], [], []>} : vector<64x192xf32>, vector<192x64xf32>, vector<64x64xf32> -> vector<64x64xf32>
    %85 = arith.addf %75, %84 : vector<64x64xf32>
    %c0_33 = arith.constant 0 : index
    %c0_34 = arith.constant 0 : index
    %86 = vector.load %arg8[%c0_33, %c0_34] : memref<1x64xf32, #tpu.memory_space<vmem>>, vector<1x64xf32>
    %87 = vector.broadcast %86 : vector<1x64xf32> to vector<64x64xf32>
    %88 = arith.addf %85, %87 : vector<64x64xf32>
    %c0_35 = arith.constant 0 : index
    %c0_36 = arith.constant 0 : index
    %c0_37 = arith.constant 0 : index
    %c0_38 = arith.constant 0 : index
    %89 = vector.load %arg9[%c0_35, %c0_36, %c0_37, %c0_38] : memref<1x8x8x64xf32, #tpu.memory_space<vmem>>, vector<1x8x8x64xf32>
    %90 = vector.shape_cast %89 : vector<1x8x8x64xf32> to vector<8x8x64xf32>
    %91 = vector.shape_cast %90 : vector<8x8x64xf32> to vector<64x64xf32>
    %92 = arith.addf %88, %91 : vector<64x64xf32>
    %93 = vector.shape_cast %92 : vector<64x64xf32> to vector<8x8x64xf32>
    %c0_39 = arith.constant 0 : index
    %c0_40 = arith.constant 0 : index
    %c0_41 = arith.constant 0 : index
    %c0_42 = arith.constant 0 : index
    %94 = vector.load %arg10[%c0_39, %c0_40, %c0_41, %c0_42] : memref<1x8x8x64xf32, #tpu.memory_space<vmem>>, vector<1x8x8x64xf32>
    %95 = vector.shape_cast %94 : vector<1x8x8x64xf32> to vector<8x8x64xf32>
    %96 = vector.shape_cast %93 : vector<8x8x64xf32> to vector<1x8x8x64xf32>
    tpu.vector_store %arg10[%c0_39, %c0_40, %c0_41, %c0_42], %96 {strides = array<i32>} : memref<1x8x8x64xf32, #tpu.memory_space<vmem>>, vector<1x8x8x64xf32>,
    return
  }
  func.func @transform_0(%arg0: i32, %arg1: i32) -> (i32, i32, i32, i32) {
    %c8_i32 = arith.constant 8 : i32
    %0 = arith.muli %arg1, %c8_i32 : i32
    %c1_i32 = arith.constant 1 : i32
    %1 = arith.subi %0, %c1_i32 : i32
    %c0_i32 = arith.constant 0 : i32
    %2 = arith.maxsi %1, %c0_i32 : i32
    %c0_i32_0 = arith.constant 0 : i32
    %c0_i32_1 = arith.constant 0 : i32
    %c0_i32_2 = arith.constant 0 : i32
    return %arg0, %2, %c0_i32_0, %c0_i32_1 : i32, i32, i32, i32
  }
  func.func @transform_1(%arg0: i32, %arg1: i32) -> (i32, i32, i32, i32) {
    %c0_i32 = arith.constant 0 : i32
    %c0_i32_0 = arith.constant 0 : i32
    %c0_i32_1 = arith.constant 0 : i32
    return %arg0, %arg1, %c0_i32, %c0_i32_0 : i32, i32, i32, i32
  }
  func.func @transform_2(%arg0: i32, %arg1: i32) -> (i32, i32, i32, i32) {
    %c1_i32 = arith.constant 1 : i32
    %0 = arith.addi %arg1, %c1_i32 : i32
    %c8_i32 = arith.constant 8 : i32
    %1 = arith.muli %0, %c8_i32 : i32
    %c15_i32 = arith.constant 15 : i32
    %2 = arith.minsi %1, %c15_i32 : i32
    %c0_i32 = arith.constant 0 : i32
    %c0_i32_0 = arith.constant 0 : i32
    %c0_i32_1 = arith.constant 0 : i32
    return %arg0, %2, %c0_i32, %c0_i32_0 : i32, i32, i32, i32
  }
  func.func @transform_3(%arg0: i32, %arg1: i32) -> (i32, i32, i32) {
    %c0_i32 = arith.constant 0 : i32
    %c0_i32_0 = arith.constant 0 : i32
    %c0_i32_1 = arith.constant 0 : i32
    return %arg0, %c0_i32, %c0_i32_0 : i32, i32, i32
  }
  func.func @transform_4(%arg0: i32, %arg1: i32) -> (i32, i32, i32) {
    %c0_i32 = arith.constant 0 : i32
    %c0_i32_0 = arith.constant 0 : i32
    %c0_i32_1 = arith.constant 0 : i32
    return %arg0, %c0_i32, %c0_i32_0 : i32, i32, i32
  }
  func.func @transform_5(%arg0: i32, %arg1: i32) -> (i32, i32, i32) {
    %c0_i32 = arith.constant 0 : i32
    %c0_i32_0 = arith.constant 0 : i32
    %c0_i32_1 = arith.constant 0 : i32
    %c0_i32_2 = arith.constant 0 : i32
    return %c0_i32, %c0_i32_0, %c0_i32_1 : i32, i32, i32
  }
  func.func @transform_6(%arg0: i32, %arg1: i32) -> (i32, i32) {
    %c0_i32 = arith.constant 0 : i32
    %c0_i32_0 = arith.constant 0 : i32
    %c0_i32_1 = arith.constant 0 : i32
    return %c0_i32, %c0_i32_0 : i32, i32
  }
  func.func @transform_7(%arg0: i32, %arg1: i32) -> (i32, i32, i32, i32) {
    %c0_i32 = arith.constant 0 : i32
    %c0_i32_0 = arith.constant 0 : i32
    %c0_i32_1 = arith.constant 0 : i32
    return %arg0, %arg1, %c0_i32, %c0_i32_0 : i32, i32, i32, i32
  }
  func.func @transform_8(%arg0: i32, %arg1: i32) -> (i32, i32, i32, i32) {
    %c0_i32 = arith.constant 0 : i32
    %c0_i32_0 = arith.constant 0 : i32
    %c0_i32_1 = arith.constant 0 : i32
    return %arg0, %arg1, %c0_i32, %c0_i32_0 : i32, i32, i32, i32
  }
}

</mosaic_0001>

<bundles_post_ra>
// kernel: squeeze.15
= control target key start
LH: loop header
LB: loop body
LE: loop exit
PB: predicated region body
PF: predicated region fallthrough
CT: control target
= control target key end

     0   :  { %s354_s8 = smov 122   ;;  %s355_s9 = smov 124   ;;  %vm7_vm0 = vcmask 15360   ;;  %s653_s0 = inlined_call_operand.vmem [shape: f32[2,64], index: 0, kind: input, shape index: {}]   ;;  %s654_s1 = inlined_call_operand.vmem [shape: f32[2,32,2], index: 1, kind: output, shape index: {}]  }
   0x1   :  { %v4_v0 = vld [vmem:[%s653_s0] sm:$0x3]  ;;  %s353_s0 = smov 126   ;;  %s356_s10 = smov 120  }
   0x2   :  { %5 = vst [vmem:[#allocation0] sm:$0x3] %v4_v0  ;;  %s357_s11 = smov 118   ;;  %s358_s12 = smov 116  }
   0x3   :  { %s359_s13 = smov 114   ;;  %s360_s14 = smov 112  }
   0x4   :  { %s361_s15 = smov 110   ;;  %s362_s16 = smov 108  }
   0x5   :  { %s363_s17 = smov 106   ;;  %s364_s18 = smov 104  }
   0x6   :  { %s365_s19 = smov 102   ;;  %s366_s20 = smov 100  }
   0x7   :  { %s367_s21 = smov 98   ;;  %s368_s22 = smov 96  }
   0x8   :  { %s369_s23 = smov 94   ;;  %s370_s24 = smov 92  }
   0x9   :  { %v11_v1 = vld [vmem:[#allocation0] sm:$0x3]   ;;  %s371_s25 = smov 90   ;;  %s372_s26 = smov 88  }
   0xa   :  { %v27_v2 = vld [vmem:[#allocation0] sm:$0x3]   ;;  %12 = vrot.lane.b32.xlu0 %v11_v1, %s353_s0  ;;  %s373_s27 = smov 86   ;;  %s374_s28 = smov 84  }
   0xb   :  { %28 = vrot.lane.b32.xlu1 %v27_v2, %s354_s8  ;;  %v19_v3 = vld [vmem:[#allocation0] sm:$0x3]   ;;  %s375_s29 = smov 82   ;;  %s376_s30 = smov 80  }
   0xc   :  { %v35_v4 = vld [vmem:[#allocation0] sm:$0x3]   ;;  %s377_s6 = smov 78   ;;  %s378_s7 = smov 76  }
   0xd   :  { %v43_v5 = vld [vmem:[#allocation0] sm:$0x3]   ;;  %s379_s0 = smov 74   ;;  %s380_s8 = smov 72  }
   0xe   :  { %20 = vrot.lane.b32.xlu0 %v19_v3, %s355_s9  ;;  %v51_v6 = vld [vmem:[#allocation0] sm:$0x3]   ;;  %s381_s9 = smov 70  }
   0xf   :  { %36 = vrot.lane.b32.xlu1 %v35_v4, %s356_s10  ;;  %v59_v7 = vld [vmem:[#allocation0] sm:$0x3]   ;;  %s382_s10 = smov 68  }
  0x10   :  { %v67_v8 = vld [vmem:[#allocation0] sm:$0x3]  }
  0x11   :  { %v75_v9 = vld [vmem:[#allocation0] sm:$0x3]  }
  0x12   :  { %44 = vrot.lane.b32.xlu0 %v43_v5, %s357_s11  ;;  %v83_v10 = vld [vmem:[#allocation0] sm:$0x3]   ;;  %s383_s11 = smov 66  }
  0x13   :  { %52 = vrot.lane.b32.xlu1 %v51_v6, %s358_s12  ;;  %v91_v11 = vld [vmem:[#allocation0] sm:$0x3]  }
  0x14   :  { %v99_v12 = vld [vmem:[#allocation0] sm:$0x3]  }
  0x15   :  { %v107_v13 = vld [vmem:[#allocation0] sm:$0x3]  }
  0x16   :  { %60 = vrot.lane.b32.xlu0 %v59_v7, %s359_s13  ;;  %v115_v14 = vld [vmem:[#allocation0] sm:$0x3]  }
  0x17   :  { %68 = vrot.lane.b32.xlu1 %v67_v8, %s360_s14  ;;  %v123_v15 = vld [vmem:[#allocation0] sm:$0x3]  }
  0x18   :  { %v131_v16 = vld [vmem:[#allocation0] sm:$0x3]  }
  0x19   :  { %v139_v17 = vld [vmem:[#allocation0] sm:$0x3]  }
  0x1a   :  { %76 = vrot.lane.b32.xlu0 %v75_v9, %s361_s15  ;;  %v147_v18 = vld [vmem:[#allocation0] sm:$0x3]  }
  0x1b   :  { %84 = vrot.lane.b32.xlu1 %v83_v10, %s362_s16  ;;  %v155_v19 = vld [vmem:[#allocation0] sm:$0x3]  }
  0x1c   :  { %v163_v20 = vld [vmem:[#allocation0] sm:$0x3]  }
  0x1d   :  { %v171_v21 = vld [vmem:[#allocation0] sm:$0x3]  }
  0x1e   :  { %92 = vrot.lane.b32.xlu0 %v91_v11, %s363_s17  ;;  %v179_v22 = vld [vmem:[#allocation0] sm:$0x3]  }
  0x1f   :  { %100 = vrot.lane.b32.xlu1 %v99_v12, %s364_s18  ;;  %v187_v23 = vld [vmem:[#allocation0] sm:$0x3]  }
  0x20   :  { %v195_v24 = vld [vmem:[#allocation0] sm:$0x3]  }
  0x21   :  { %v203_v25 = vld [vmem:[#allocation0] sm:$0x3]  }
  0x22   :  { %108 = vrot.lane.b32.xlu0 %v107_v13, %s365_s19  ;;  %v211_v26 = vld [vmem:[#allocation0] sm:$0x3]  }
  0x23   :  { %116 = vrot.lane.b32.xlu1 %v115_v14, %s366_s20  ;;  %v6_v27 = vld [vmem:[#allocation0] sm:$0x3]  }
  0x24   :  { %8 = vst.msk [vmem:[%s654_s1] sm:$0x1] %vm7_vm0, %v6_v27   ;;  %259 = vst.msk [vmem:[%s654_s1 + $0x1f] sm:$0x2] %vm7_vm0, %v6_v27   ;;  %v219_v28 = vld [vmem:[#allocation0] sm:$0x3]  }
  0x25   :  { %v227_v29 = vld [vmem:[#allocation0] sm:$0x3]  }
  0x26   :  { %124 = vrot.lane.b32.xlu0 %v123_v15, %s367_s21  ;;  %v235_v30 = vld [vmem:[#allocation0] sm:$0x3]  }
  0x27   :  { %132 = vrot.lane.b32.xlu1 %v131_v16, %s368_s22  ;;  %v243_v31 = vld [vmem:[#allocation0] sm:$0x3]  }
  0x28   :  { %v251_v32 = vld [vmem:[#allocation0] sm:$0x3]  }
  0x2a   :  { %140 = vrot.lane.b32.xlu0 %v139_v17, %s369_s23 }
  0x2b   :  { %148 = vrot.lane.b32.xlu1 %v147_v18, %s370_s24 }
  0x2e   :  { %156 = vrot.lane.b32.xlu0 %v155_v19, %s371_s25 }
  0x2f   :  { %164 = vrot.lane.b32.xlu1 %v163_v20, %s372_s26 }
  0x32   :  { %172 = vrot.lane.b32.xlu0 %v171_v21, %s373_s27 }
  0x33   :  { %180 = vrot.lane.b32.xlu1 %v179_v22, %s374_s28 }
  0x36   :  { %188 = vrot.lane.b32.xlu0 %v187_v23, %s375_s29 }
  0x37   :  { %196 = vrot.lane.b32.xlu1 %v195_v24, %s376_s30 }
  0x3a   :  { %204 = vrot.lane.b32.xlu0 %v203_v25, %s377_s6 }
  0x3b   :  { %212 = vrot.lane.b32.xlu1 %v211_v26, %s378_s7 }
  0x3e   :  { %220 = vrot.lane.b32.xlu0 %v219_v28, %s379_s0 }
  0x3f   :  { %228 = vrot.lane.b32.xlu1 %v227_v29, %s380_s8 }
  0x42   :  { %236 = vrot.lane.b32.xlu0 %v235_v30, %s381_s9 }
  0x43   :  { %244 = vrot.lane.b32.xlu1 %v243_v31, %s382_s10 }
  0x46   :  { %252 = vrot.lane.b32.xlu0 %v251_v32, %s383_s11 }
  0x7c   :  { %v13_v33 = vpop.permute.xlu0 %12  }
  0x7d   :  { %v29_v34 = vpop.permute.xlu1 %28   ;;  %260 = vst.msk [vmem:[%s654_s1 + $0x1] sm:$0x1] %vm7_vm0, %v13_v33   ;;  %261 = vst.msk [vmem:[%s654_s1 + $0x20] sm:$0x2] %vm7_vm0, %v13_v33  }
  0x7e   :  { %264 = vst.msk [vmem:[%s654_s1 + $0x3] sm:$0x1] %vm7_vm0, %v29_v34   ;;  %265 = vst.msk [vmem:[%s654_s1 + $0x22] sm:$0x2] %vm7_vm0, %v29_v34  }
  0x80   :  { %v21_v35 = vpop.permute.xlu0 %20  }
  0x81   :  { %v37_v36 = vpop.permute.xlu1 %36   ;;  %262 = vst.msk [vmem:[%s654_s1 + $0x2] sm:$0x1] %vm7_vm0, %v21_v35   ;;  %263 = vst.msk [vmem:[%s654_s1 + $0x21] sm:$0x2] %vm7_vm0, %v21_v35  }
  0x82   :  { %266 = vst.msk [vmem:[%s654_s1 + $0x4] sm:$0x1] %vm7_vm0, %v37_v36   ;;  %267 = vst.msk [vmem:[%s654_s1 + $0x23] sm:$0x2] %vm7_vm0, %v37_v36  }
  0x84   :  { %v45_v37 = vpop.permute.xlu0 %44  }
  0x85   :  { %v53_v38 = vpop.permute.xlu1 %52   ;;  %268 = vst.msk [vmem:[%s654_s1 + $0x5] sm:$0x1] %vm7_vm0, %v45_v37   ;;  %269 = vst.msk [vmem:[%s654_s1 + $0x24] sm:$0x2] %vm7_vm0, %v45_v37  }
  0x86   :  { %270 = vst.msk [vmem:[%s654_s1 + $0x6] sm:$0x1] %vm7_vm0, %v53_v38   ;;  %271 = vst.msk [vmem:[%s654_s1 + $0x25] sm:$0x2] %vm7_vm0, %v53_v38  }
  0x88   :  { %v61_v39 = vpop.permute.xlu0 %60  }
  0x89   :  { %v69_v40 = vpop.permute.xlu1 %68   ;;  %272 = vst.msk [vmem:[%s654_s1 + $0x7] sm:$0x1] %vm7_vm0, %v61_v39   ;;  %273 = vst.msk [vmem:[%s654_s1 + $0x26] sm:$0x2] %vm7_vm0, %v61_v39  }
  0x8a   :  { %274 = vst.msk [vmem:[%s654_s1 + $0x8] sm:$0x1] %vm7_vm0, %v69_v40   ;;  %275 = vst.msk [vmem:[%s654_s1 + $0x27] sm:$0x2] %vm7_vm0, %v69_v40  }
  0x8c   :  { %v77_v41 = vpop.permute.xlu0 %76  }
  0x8d   :  { %v85_v42 = vpop.permute.xlu1 %84   ;;  %276 = vst.msk [vmem:[%s654_s1 + $0x9] sm:$0x1] %vm7_vm0, %v77_v41   ;;  %277 = vst.msk [vmem:[%s654_s1 + $0x28] sm:$0x2] %vm7_vm0, %v77_v41  }
  0x8e   :  { %278 = vst.msk [vmem:[%s654_s1 + $0xa] sm:$0x1] %vm7_vm0, %v85_v42   ;;  %279 = vst.msk [vmem:[%s654_s1 + $0x29] sm:$0x2] %vm7_vm0, %v85_v42  }
  0x90   :  { %v93_v43 = vpop.permute.xlu0 %92  }
  0x91   :  { %v101_v44 = vpop.permute.xlu1 %100   ;;  %280 = vst.msk [vmem:[%s654_s1 + $0xb] sm:$0x1] %vm7_vm0, %v93_v43   ;;  %281 = vst.msk [vmem:[%s654_s1 + $0x2a] sm:$0x2] %vm7_vm0, %v93_v43  }
  0x92   :  { %282 = vst.msk [vmem:[%s654_s1 + $0xc] sm:$0x1] %vm7_vm0, %v101_v44   ;;  %283 = vst.msk [vmem:[%s654_s1 + $0x2b] sm:$0x2] %vm7_vm0, %v101_v44  }
  0x94   :  { %v109_v45 = vpop.permute.xlu0 %108  }
  0x95   :  { %v117_v46 = vpop.permute.xlu1 %116   ;;  %284 = vst.msk [vmem:[%s654_s1 + $0xd] sm:$0x1] %vm7_vm0, %v109_v45   ;;  %285 = vst.msk [vmem:[%s654_s1 + $0x2c] sm:$0x2] %vm7_vm0, %v109_v45  }
  0x96   :  { %286 = vst.msk [vmem:[%s654_s1 + $0xe] sm:$0x1] %vm7_vm0, %v117_v46   ;;  %287 = vst.msk [vmem:[%s654_s1 + $0x2d] sm:$0x2] %vm7_vm0, %v117_v46  }
  0x98   :  { %v125_v47 = vpop.permute.xlu0 %124  }
  0x99   :  { %v133_v48 = vpop.permute.xlu1 %132   ;;  %288 = vst.msk [vmem:[%s654_s1 + $0xf] sm:$0x1] %vm7_vm0, %v125_v47   ;;  %289 = vst.msk [vmem:[%s654_s1 + $0x2e] sm:$0x2] %vm7_vm0, %v125_v47  }
  0x9a   :  { %290 = vst.msk [vmem:[%s654_s1 + $0x10] sm:$0x1] %vm7_vm0, %v133_v48   ;;  %291 = vst.msk [vmem:[%s654_s1 + $0x2f] sm:$0x2] %vm7_vm0, %v133_v48  }
  0x9c   :  { %v141_v49 = vpop.permute.xlu0 %140  }
  0x9d   :  { %v149_v50 = vpop.permute.xlu1 %148   ;;  %292 = vst.msk [vmem:[%s654_s1 + $0x11] sm:$0x1] %vm7_vm0, %v141_v49   ;;  %293 = vst.msk [vmem:[%s654_s1 + $0x30] sm:$0x2] %vm7_vm0, %v141_v49  }
  0x9e   :  { %294 = vst.msk [vmem:[%s654_s1 + $0x12] sm:$0x1] %vm7_vm0, %v149_v50   ;;  %295 = vst.msk [vmem:[%s654_s1 + $0x31] sm:$0x2] %vm7_vm0, %v149_v50  }
  0xa0   :  { %v157_v51 = vpop.permute.xlu0 %156  }
  0xa1   :  { %v165_v52 = vpop.permute.xlu1 %164   ;;  %296 = vst.msk [vmem:[%s654_s1 + $0x13] sm:$0x1] %vm7_vm0, %v157_v51   ;;  %297 = vst.msk [vmem:[%s654_s1 + $0x32] sm:$0x2] %vm7_vm0, %v157_v51  }
  0xa2   :  { %298 = vst.msk [vmem:[%s654_s1 + $0x14] sm:$0x1] %vm7_vm0, %v165_v52   ;;  %299 = vst.msk [vmem:[%s654_s1 + $0x33] sm:$0x2] %vm7_vm0, %v165_v52  }
  0xa4   :  { %v173_v53 = vpop.permute.xlu0 %172  }
  0xa5   :  { %v181_v54 = vpop.permute.xlu1 %180   ;;  %300 = vst.msk [vmem:[%s654_s1 + $0x15] sm:$0x1] %vm7_vm0, %v173_v53   ;;  %301 = vst.msk [vmem:[%s654_s1 + $0x34] sm:$0x2] %vm7_vm0, %v173_v53  }
  0xa6   :  { %302 = vst.msk [vmem:[%s654_s1 + $0x16] sm:$0x1] %vm7_vm0, %v181_v54   ;;  %303 = vst.msk [vmem:[%s654_s1 + $0x35] sm:$0x2] %vm7_vm0, %v181_v54  }
  0xa8   :  { %v189_v55 = vpop.permute.xlu0 %188  }
  0xa9   :  { %v197_v56 = vpop.permute.xlu1 %196   ;;  %304 = vst.msk [vmem:[%s654_s1 + $0x17] sm:$0x1] %vm7_vm0, %v189_v55   ;;  %305 = vst.msk [vmem:[%s654_s1 + $0x36] sm:$0x2] %vm7_vm0, %v189_v55  }
  0xaa   :  { %306 = vst.msk [vmem:[%s654_s1 + $0x18] sm:$0x1] %vm7_vm0, %v197_v56   ;;  %307 = vst.msk [vmem:[%s654_s1 + $0x37] sm:$0x2] %vm7_vm0, %v197_v56  }
  0xac   :  { %v205_v57 = vpop.permute.xlu0 %204  }
  0xad   :  { %v213_v58 = vpop.permute.xlu1 %212   ;;  %308 = vst.msk [vmem:[%s654_s1 + $0x19] sm:$0x1] %vm7_vm0, %v205_v57   ;;  %309 = vst.msk [vmem:[%s654_s1 + $0x38] sm:$0x2] %vm7_vm0, %v205_v57  }
  0xae   :  { %310 = vst.msk [vmem:[%s654_s1 + $0x1a] sm:$0x1] %vm7_vm0, %v213_v58   ;;  %311 = vst.msk [vmem:[%s654_s1 + $0x39] sm:$0x2] %vm7_vm0, %v213_v58  }
  0xb0   :  { %v221_v59 = vpop.permute.xlu0 %220  }
  0xb1   :  { %v229_v60 = vpop.permute.xlu1 %228   ;;  %312 = vst.msk [vmem:[%s654_s1 + $0x1b] sm:$0x1] %vm7_vm0, %v221_v59   ;;  %313 = vst.msk [vmem:[%s654_s1 + $0x3a] sm:$0x2] %vm7_vm0, %v221_v59  }
  0xb2   :  { %314 = vst.msk [vmem:[%s654_s1 + $0x1c] sm:$0x1] %vm7_vm0, %v229_v60   ;;  %315 = vst.msk [vmem:[%s654_s1 + $0x3b] sm:$0x2] %vm7_vm0, %v229_v60  }
  0xb4   :  { %v237_v61 = vpop.permute.xlu0 %236  }
  0xb5   :  { %v245_v62 = vpop.permute.xlu1 %244   ;;  %316 = vst.msk [vmem:[%s654_s1 + $0x1d] sm:$0x1] %vm7_vm0, %v237_v61   ;;  %317 = vst.msk [vmem:[%s654_s1 + $0x3c] sm:$0x2] %vm7_vm0, %v237_v61  }
  0xb6   :  { %318 = vst.msk [vmem:[%s654_s1 + $0x1e] sm:$0x1] %vm7_vm0, %v245_v62   ;;  %319 = vst.msk [vmem:[%s654_s1 + $0x3d] sm:$0x2] %vm7_vm0, %v245_v62  }
  0xb8   :  { %v253_v63 = vpop.permute.xlu0 %252  }
  0xb9   :  { %320 = vst.msk [vmem:[%s654_s1 + $0x1f] sm:$0x1] %vm7_vm0, %v253_v63   ;;  %321 = vst.msk [vmem:[%s654_s1 + $0x3e] sm:$0x2] %vm7_vm0, %v253_v63  }

// kernel: up_block_fwd.8
= control target key start
LH: loop header
LB: loop body
LE: loop exit
PB: predicated region body
PF: predicated region fallthrough
CT: control target
= control target key end

     0   :  { %6 = vsyncpa [#allocation3], 0  ;;  %s688_s0 = inlined_call_operand.hbm [shape: f32[2,16,8,32], index: 0, kind: input, shape index: {}]   ;;  %s689_s1 = inlined_call_operand.vmem [shape: f32[2,2,32], index: 1, kind: output, shape index: {}]  }
   0x1   :  { %8 = vsyncpa [#allocation3 + $0x1], 0  ;;  %s503_s6 = smov 0   ;;  %s505_s7 = smov 0  }
   0x2   :  { %s507_s8 = smov 0   ;;  %s509_s9 = smov 0  }
   0x3   :  { %s511_s10 = smov 0   ;;  %s513_s11 = smov 0  }
   0x4   :  { %s515_s12 = smov 0   ;;  %s517_s13 = smov 0  }
   0x5 LB: > { %s303_s14 = sadd.s32 4294967295, %s487_s13   ;;  %s23_s15 = sadd.s32 1, %s479_s11  ;;  %s487_s13 = sphi %s517_s13, %s14_s13   ;;  %s483_s12 = sphi %s515_s12, %s700_s12   ;;  %s479_s11 = sphi %s513_s11, %s699_s11   ;;  %s475_s10 = sphi %s511_s10, %s698_s10   ;;  %s471_s9 = sphi %s509_s9, %s697_s9   ;;  %s467_s8 = sphi %s507_s8, %s696_s8   ;;  %s463_s7 = sphi %s505_s7, %s695_s7   ;;  %s459_s6 = sphi %s503_s6, %s694_s6  }
   0x6   : > { %p24_p0 = scmp.ge.s32.totalorder %s23_s15, 2  ;;  %s26_s16 = sadd.s32 1, %s483_s12 }
   0x7   : > { %s35_s17 = sadd.s32 1, %s467_s8  ;;  %p42_p1 = scmp.ne.s32.totalorder %s467_s8, %s463_s7 }
   0x8   : > { %s702_s15 = smov (%p24_p0, %s23_s15), 0  ;;  %s704_s16 = smov (!%p24_p0, %s26_s16), %s483_s12 }
   0x9   : > { %s31_s18 = ssub.s32 %s479_s11, %s702_s15  ;;  %p43_p2 = scmp.eq.s32.totalorder %s487_s13, 0 }
   0xa   : > { %p28_p3 = scmp.ge.s32.totalorder %s704_s16, 2  ;;  %p48_p4 = scmp.ne.s32.totalorder %s463_s7, %s459_s6 }
   0xb   : > { %p554_p5 = por %p43_p2, %p42_p1  ;;  %p49_p6 = scmp.eq.s32.totalorder %s303_s14, 0 }
   0xc   : > { %s706_s16 = smov (%p28_p3, %s704_s16), 0  ;;  %p323_p8 = scmp.lt.s32.totalorder %s487_s13, 4 }
   0xd   : > { %p560_p7 = por %p49_p6, %p48_p4  ;;  %s30_s21 = ssub.s32 %s483_s12, %s706_s16 }
   0xe   : > { %s32_s22 = sor.u32 %s31_s18, %s30_s21  ;;  %s98_s23 = sand.u32 1, %s467_s8  }
   0xf   : > { %p33_p9 = scmp.eq.s32.totalorder %s32_s22, 0  ;;  %s307_s24 = sshll.u32 %s98_s23, 6 }
  0x10   : > { %s308_s25 = sshll.u32 %s479_s11, 3  ;;  %s309_s27 = sshll.u32 %s483_s12, 4 }
  0x11   : > { %s570_s26 = scalar_select %p33_p9, %s467_s8, %s35_s17  }
  0x12   : > { %s108_s28 = sadd.s32 %s309_s27, %s308_s25  ;;  %s102_s29 = scalar_lea.vmem [#allocation2], %s307_s24 }
  0x13   : > { %s111_s30 = sshll.u32 %s102_s29, 4  ;;  %s310_s2 = sshll.u32 %s108_s28, 7  ;;  %s573_s30 = int_to_ptr.vmem [resolvable:$true] %s111_s30 }
  0x14   : > { %s578_s5 = scalar_lea.hbm %s688_s0, %s310_s2  ;;  %p584_p10 = pnand %p323_p8, %p554_p5 }
  0x15   : > { %s589_s14 = scalar_lea.sflag [#allocation3], %s98_s23  ;;  %s391_s17 = scalar_lea.hbm %s578_s5, 1024 }
  0x16   : > { %p392_p12 = scmp.ne.s32.totalorder %s578_s5, %s391_s17  ;;  %p393_p13 = pneg %p584_p10 }
  0x17   : > { %s396_s21 = scalar_lea.hbm %s688_s0, 4096  ;;  %p397_p2 = scmp.lt.u32.totalorder %s578_s5, %s688_s0 }
  0x18   : > { %p394_p0 = pnand %p393_p13, %p392_p12  ;;  %p398_p3 = scmp.lt.u32.totalorder %s396_s21, %s391_s17 }
  0x19   : > { %p400_p5 = scmp.lt.u32.totalorder %s391_s17, %s578_s5 }
  0x1a   : > { %p395_p1 = pneg %p394_p0  ;;  %p399_p4 = por %p398_p3, %p397_p2 }
  0x1c   : > { %p401_p6 = por %p400_p5, %p399_p4 }
  0x1e   : > { %p402_p8 = pnand %p401_p6, %p395_p1 }
  0x20   : > { %405 = shalt.err (!%p402_p8)
}
  0x21   : > { %s406_s23 = scalar_lea.vmem %s573_s30, 1024  ;;  %s489_s25 = smov [#allocation2]  }
  0x22   : > { %p407_p9 = scmp.ne.s32.totalorder %s573_s30, %s406_s23  ;;  %s411_s27 = sshll.u32 %s489_s25, 4  ;;  %s412_s27 = int_to_ptr.vmem [resolvable:$false] %s411_s27 }
  0x23   : > { %s413_s28 = scalar_lea.vmem %s412_s27, 2048  ;;  %p414_p11 = scmp.lt.s32.totalorder %s573_s30, %s412_s27 }
  0x24   : > { %p409_p12 = pnand %p407_p9, %p393_p13  ;;  %p415_p2 = scmp.lt.s32.totalorder %s413_s28, %s406_s23 }
  0x26   : > { %p410_p0 = pneg %p409_p12  ;;  %p416_p3 = por %p415_p2, %p414_p11 }
  0x28   : > { %p417_p4 = pnand %p416_p3, %p410_p0 }
  0x2a   : > { %420 = shalt.err (!%p417_p4)
}
  0x2b   : > { %s490_s29 = smov 128   ;;  %s491_s2 = smov 8  }
  0x2c   : > { %322 = dma.hbm_to_vmem [thread:$0]  (!%p584_p10), %s578_s5, 1024, %s573_s30, %s589_s14, %s490_s29, %s490_s29, %s491_s2  }
  0x2d   : > { %p119_p13 = scmp.lt.s32.totalorder %s487_s13, 5  ;;  %p693_p1 = scmp.ge.s32.totalorder %s487_s13, 1 }
  0x2f   : > { %p120_p5 = pnand %p693_p1, %p119_p13 }
  0x30   : > { %s125_s3 = sand.u32 (!%p120_p5), 1, %s463_s7  }
  0x31   : > { %123 = sbr.rel (%p120_p5) target bundleno = 100 (0x64), region = 24  ;;  %s312_s4 = sshll.u32 (!%p120_p5), %s125_s3, 6 }
  0x32   : > { %s126_s17 = scalar_lea.sflag (!%p120_p5), [#allocation3], %s125_s3  ;;  %s621_s18 = scalar_lea.vmem (!%p120_p5), [#allocation2], %s312_s4 }
  0x38   : > { %454 = dma.done.wait (%p560_p7), %s126_s17, 1024  }
  0x39   : > { %456 = vsyncadd (%p560_p7), %s126_s17, 4294966272  ;;  %p148_p11 = scmp.lt.s32.totalorder %s475_s10, 1  ;;  %p314_p10 = scmp.ne.s32.totalorder %s471_s9, 0 }
  0x3a   : > { %vm156_vm0 = vcmask (!%p314_p10), 254976   ;;  %v492_v0 = vmov (!%p314_p10), 0.0  }
  0x3b   : > { %s708_s10 = smov (!%p148_p11, %s475_s10), 1  ;;  %155 = sbr.rel (%p314_p10) target bundleno = 66 (0x42), region = 32 }
  0x3c   : > { %s313_s30 = sshll.u32 %s708_s10, 1 }
  0x3d   : > { %s632_s14 = scalar_lea.vmem %s689_s1, %s313_s30 }
  0x3e   : > { %157 = vst.msk [vmem:[%s632_s14] sm:$0x3] (!%p314_p10), %vm156_vm0, %v492_v0 }
  0x42 PF: > { %v158_v1 = vld [vmem:[%s621_s18] sm:$0xff]  ;;  %v159_v2 = vld [vmem:[%s621_s18 + $0x8] sm:$0xff]  ;;  %v160_v3 = vld [vmem:[%s621_s18 + $0x10] sm:$0xff]  ;;  %vm167_vm1 = vcmask 261120   ;;  %vm190_vm2 = vcmask 253952  }
  0x43   : > { %v161_v4 = vld [vmem:[%s621_s18 + $0x18] sm:$0xff]  ;;  %v168_v5 = vsel %vm167_vm1, %v158_v1, 0.0  ;;  %v169_v6 = vsel %vm167_vm1, %v159_v2, 0.0  ;;  %v171_v7 = vsel %vm167_vm1, %v160_v3, 0.0  ;;  %v193_v8 = vmul.f32 %v158_v1, %v158_v1  ;;  %v162_v9 = vld [vmem:[%s621_s18 + $0x20] sm:$0xff]  ;;  %v163_v14 = vld [vmem:[%s621_s18 + $0x28] sm:$0xff] }
  0x44   : > { %v170_v10 = vadd.f32 %v169_v6, %v168_v5  ;;  %v194_v11 = vmul.f32 %v159_v2, %v159_v2  ;;  %v173_v12 = vsel %vm167_vm1, %v161_v4, 0.0  ;;  %v195_v13 = vmul.f32 %v160_v3, %v160_v3  ;;  %v164_v21 = vld [vmem:[%s621_s18 + $0x30] sm:$0xff]  ;;  %v165_v28 = vld [vmem:[%s621_s18 + $0x38] sm:$0xff] }
  0x45   : > { %v196_v16 = vmul.f32 %v161_v4, %v161_v4  ;;  %v175_v17 = vsel %vm167_vm1, %v162_v9, 0.0  ;;  %v197_v18 = vmul.f32 %v162_v9, %v162_v9  ;;  %v201_v19 = vsel %vm167_vm1, %v193_v8, 0.0  ;;  %v166_v55 = vld [vmem:[%s632_s14] sm:$0x1]  ;;  %v192_v60 = vld [vmem:[%s632_s14 + $0x1] sm:$0x1] }
  0x46   : > { %v172_v15 = vadd.f32 %v171_v7, %v170_v10  ;;  %v202_v20 = vsel %vm167_vm1, %v194_v11, 0.0  ;;  %v204_v24 = vsel %vm167_vm1, %v195_v13, 0.0  ;;  %v177_v25 = vsel %vm167_vm1, %v163_v14, 0.0 }
  0x47   : > { %v203_v23 = vadd.f32 %v202_v20, %v201_v19  ;;  %v198_v26 = vmul.f32 %v163_v14, %v163_v14  ;;  %v206_v27 = vsel %vm167_vm1, %v196_v16, 0.0  ;;  %v179_v31 = vsel %vm167_vm1, %v164_v21, 0.0 }
  0x48   : > { %v174_v22 = vadd.f32 %v173_v12, %v172_v15  ;;  %v199_v32 = vmul.f32 %v164_v21, %v164_v21  ;;  %v208_v33 = vsel %vm167_vm1, %v197_v18, 0.0  ;;  %v181_v36 = vsel %vm167_vm1, %v165_v28, 0.0 }
  0x49   : > { %v205_v30 = vadd.f32 %v204_v24, %v203_v23  ;;  %v200_v37 = vmul.f32 %v165_v28, %v165_v28  ;;  %v210_v38 = vsel %vm167_vm1, %v198_v26, 0.0 }
  0x4a   : > { %v176_v29 = vadd.f32 %v175_v17, %v174_v22  ;;  %v212_v41 = vsel %vm167_vm1, %v199_v32, 0.0 }
  0x4b   : > { %v207_v35 = vadd.f32 %v206_v27, %v205_v30  ;;  %v214_v44 = vsel %vm167_vm1, %v200_v37, 0.0 }
  0x4c   : > { %v178_v34 = vadd.f32 %v177_v25, %v176_v29 }
  0x4d   : > { %v209_v40 = vadd.f32 %v208_v33, %v207_v35 }
  0x4e   : > { %v180_v39 = vadd.f32 %v179_v31, %v178_v34 }
  0x4f   : > { %v211_v43 = vadd.f32 %v210_v38, %v209_v40 }
  0x50   : > { %v182_v42 = vadd.f32 %v181_v36, %v180_v39 }
  0x51   : > { %v213_v46 = vadd.f32 %v212_v41, %v211_v43 }
  0x52   : > { %v183_v45 = vrot.slane %v182_v42, 4 }
  0x53   : > { %v215_v48 = vadd.f32 %v214_v44, %v213_v46 }
  0x54   : > { %v184_v47 = vadd.f32 %v183_v45, %v182_v42 }
  0x55   : > { %v216_v50 = vrot.slane %v215_v48, 4 }
  0x56   : > { %v185_v49 = vrot.slane %v184_v47, 2 }
  0x57   : > { %v217_v52 = vadd.f32 %v216_v50, %v215_v48 }
  0x58   : > { %v186_v51 = vadd.f32 %v185_v49, %v184_v47 }
  0x59   : > { %v218_v54 = vrot.slane %v217_v52, 2 }
  0x5a   : > { %v187_v53 = vrot.slane %v186_v51, 1 }
  0x5b   : > { %v219_v57 = vadd.f32 %v218_v54, %v217_v52 }
  0x5c   : > { %v188_v56 = vadd.f32 %v187_v53, %v186_v51 }
  0x5d   : > { %v220_v59 = vrot.slane %v219_v57, 1 }
  0x5e   : > { %v189_v58 = vadd.f32 %v188_v56, %v166_v55 }
  0x5f   : > { %v221_v61 = vadd.f32 %v220_v59, %v219_v57 }
  0x60   : > { %191 = vst.msk [vmem:[%s632_s14] sm:$0x1] %vm190_vm2, %v189_v58 }
  0x61   : > { %v222_v62 = vadd.f32 %v221_v61, %v192_v60 }
  0x63   : > { %223 = vst.msk [vmem:[%s632_s14 + $0x1] sm:$0x1] %vm190_vm2, %v222_v62 }
  0x64 PF: > { %s14_s13 = sadd.s32 1, %s487_s13   ;;  %s694_s6 = smov %s463_s7 }
  0x65   : > { %p11_p7 = scmp.ge.s32.totalorder %s14_s13, 6   ;;  %s695_s7 = smov %s467_s8 }
  0x66   : > { %s696_s8 = smov %s570_s26  ;;  %s697_s9 = smov %s479_s11 }
  0x67   : > { %s698_s10 = smov %s483_s12  ;;  %s699_s11 = smov %s702_s15 }
  0x68   : > { %s700_s12 = smov %s706_s16  ;;  %13 = sbr.rel (!%p11_p7) target bundleno = 5 (0x5), region = 68 }
  0x6f   :  { %243 = vsyncpa [#allocation3], 1 }
  0x70   :  { %245 = vsyncpa [#allocation3 + $0x1], 1 }

// kernel: up_block_fwd.9
= control target key start
LH: loop header
LB: loop body
LE: loop exit
PB: predicated region body
PF: predicated region fallthrough
CT: control target
= control target key end

     0   :  { %s2521_s0 = inlined_call_operand.vmem [shape: f32[2,16,8,32], index: 0, kind: input, shape index: {}, may-alias: {0,1,2}]   ;;  %s2522_s1 = inlined_call_operand.vmem [shape: f32[2,16,8,32], index: 1, kind: input, shape index: {}, may-alias: {0,1,2}]   ;;  %s2523_s2 = inlined_call_operand.vmem [shape: f32[2,16,8,32], index: 2, kind: input, shape index: {}, may-alias: {0,1,2}]   ;;  %s2524_s3 = inlined_call_operand.vmem [shape: f32[2,1,32], index: 3, kind: input, shape index: {}]   ;;  %s2525_s4 = inlined_call_operand.vmem [shape: f32[2,1,32], index: 4, kind: input, shape index: {}]   ;;  %s2526_s5 = inlined_call_operand.hbm [shape: f32[3,96,64], index: 5, kind: input, shape index: {}]   ;;  %s2527_s6 = inlined_call_operand.vmem [shape: f32[1,64], index: 6, kind: input, shape index: {}]   ;;  %s2528_s7 = inlined_call_operand.vmem [shape: f32[2,16,8,64], index: 7, kind: output, shape index: {0}]   ;;  %s2529_s8 = inlined_call_operand.vmem [shape: f32[2,2,64], index: 8, kind: output, shape index: {1}]  }
   0x1   :  { %2533 = sst [smem:[#allocation7_spill]] %s2526_s5 }
   0x2   :  { %14 = vsyncpa [#allocation3], 0  ;;  %s2091_s27 = smov 0   ;;  %s2093_s28 = smov 0  }
   0x3   :  { %s2095_s29 = smov 0   ;;  %s2097_s30 = smov 0  }
   0x4   :  { %s2099_s9 = smov 0  }
   0x5 LB: > { %s1521_s10 = sadd.s32 4294967295, %s2038_s9   ;;  %s29_s11 = sadd.s32 1, %s2030_s29  ;;  %s2038_s9 = sphi %s2099_s9, %s20_s9   ;;  %s2034_s30 = sphi %s2097_s30, %s2550_s30   ;;  %s2030_s29 = sphi %s2095_s29, %s2549_s29   ;;  %s2026_s28 = sphi %s2093_s28, %s2548_s28   ;;  %s2022_s27 = sphi %s2091_s27, %s2547_s27  }
   0x6   : > { %p30_p0 = scmp.ge.s32.totalorder %s29_s11, 2  ;;  %s32_s12 = sadd.s32 1, %s2034_s30 }
   0x7   : > { %p1529_p1 = scmp.ge.s32.totalorder %s2038_s9, 1  ;;  %p285_p2 = scmp.lt.s32.totalorder %s2038_s9, 5 }
   0x8   : > { %s2552_s11 = smov (%p30_p0, %s29_s11), 0  ;;  %s2554_s12 = smov (!%p30_p0, %s32_s12), %s2034_s30 }
   0x9   : > { %2534 = sst [smem:[#allocation5_spill]] %s2552_s11  ;;  %p2124_p3 = pnand %p1529_p1, %p285_p2 }
   0xa   : > { %p34_p4 = scmp.ge.s32.totalorder %s2554_s12, 2  ;;  %p2128_p5 = scmp.eq.s32.totalorder %s1521_s10, 0 }
   0xb   : > { %s2535_s13 = scalar_select %p2124_p3, 1, 0 }
   0xc   : > { %s2536_s14 = scalar_select %p2128_p5, 1, 0 }
   0xd   : > { %p1876_p6 = pneg %p2124_p3  ;;  %s2556_s12 = smov (%p34_p4, %s2554_s12), 0 }
   0xe   : > { %2537 = sst [smem:[#allocation6_spill]] %s2556_s12  ;;  %s2040_s15 = smov [#allocation2]  }
   0xf   : > { %s297_s16 = sshll.u32 %s2040_s15, 4  ;;  %p2138_p7 = pnand %p2128_p5, %p1876_p6  ;;  %s298_s16 = int_to_ptr.vmem [resolvable:$true] %s297_s16 }
  0x10   : > { %s2539_s5 = sld [smem:[#allocation7_spill]] }
  0x11   : > { %p1970_p9 = pneg %p2138_p7 }
  0x16   : > { %s1968_s20 = scalar_lea.hbm %s2539_s5, 4608 }
  0x17   : > { %p1969_p8 = scmp.ne.s32.totalorder %s2539_s5, %s1968_s20  ;;  %p1975_p12 = scmp.lt.u32.totalorder %s1968_s20, %s2539_s5 }
  0x19   : > { %p1971_p10 = pnand %p1970_p9, %p1969_p8 }
  0x1b   : > { %p1972_p11 = pneg %p1971_p10 }
  0x1d   : > { %p1977_p13 = pnand %p1975_p12, %p1972_p11 }
  0x1f   : > { %1980 = shalt.err (!%p1977_p13)
}
  0x20   : > { %s1981_s25 = scalar_lea.vmem %s298_s16, 4608  ;;  %p1989_p4 = scmp.lt.s32.totalorder %s298_s16, %s298_s16 }
  0x21   : > { %p1982_p0 = scmp.ne.s32.totalorder %s298_s16, %s1981_s25  ;;  %p1990_p6 = scmp.lt.s32.totalorder %s1981_s25, %s1981_s25 }
  0x23   : > { %p1984_p1 = pnand %p1982_p0, %p1970_p9  ;;  %p1991_p5 = por %p1990_p6, %p1989_p4 }
  0x25   : > { %p1985_p2 = pneg %p1984_p1 }
  0x27   : > { %p1992_p3 = pnand %p1991_p5, %p1985_p2 }
  0x29   : > { %1995 = shalt.err (!%p1992_p3)
}
  0x2a   : > { %s2041_s26 = smov 128   ;;  %s2042_s10 = smov 8  }
  0x2b   : > { %1879 = dma.hbm_to_vmem [thread:$0]  (!%p2138_p7), %s2539_s5, 4608, %s298_s16, [#allocation3], %s2041_s26, %s2041_s26, %s2042_s10  }
  0x2c   : > { %p2540_p8 = scmp.ne.s32.totalorder %s2535_s13, 0 }
  0x2d   : > { %p2541_p10 = scmp.ne.s32.totalorder (!%p2540_p8), %s2536_s14, 0 }
  0x2e   : > { %379 = sbr.rel (%p2540_p8) target bundleno = 511 (0x1ff), region = 48 }
  0x35   : > { %2017 = dma.done.wait (%p2541_p10), [#allocation3], 4608  }
  0x36   : > { %2019 = vsyncadd (%p2541_p10), [#allocation3], 4294962688  ;;  %s2165_s19 = sshll.u32 %s2022_s27, 3  ;;  %p459_p3 = scmp.lt.s32.totalorder %s2026_s28, 1  ;;  %v853_v20 = vld [vmem:[#allocation2 + $0x60] sm:$0xff]  ;;  %v854_v24 = vld [vmem:[#allocation2 + $0x68] sm:$0xff] }
  0x37   : > { %p474_p5 = scmp.lt.s32.totalorder %s2165_s19, 15  ;;  %v855_v25 = vld [vmem:[#allocation2 + $0x70] sm:$0xff]  ;;  %v856_v26 = vld [vmem:[#allocation2 + $0x78] sm:$0xff]  ;;  %v824_v32 = vld [vmem:[#allocation2] sm:$0xff]  ;;  %v1772_v37 = vpack.c.bf16 %v854_v24, %v853_v20  ;;  %p631_p12 = scmp.gt.s32.totalorder %s2022_s27, 0  ;;  %vm671_vm0 = vcmask 1040384  }
  0x38   : > { %s2558_s28 = smov (!%p459_p3, %s2026_s28), 1  ;;  %v825_v33 = vld [vmem:[#allocation2 + $0x8] sm:$0xff]  ;;  %v1776_v38 = vpack.c.bf16 %v856_v26, %v855_v25  ;;  %v826_v39 = vld [vmem:[#allocation2 + $0x10] sm:$0xff]  ;;  %v827_v40 = vld [vmem:[#allocation2 + $0x18] sm:$0xff]  ;;  %vm708_vm1 = vcmask 1046528   ;;  %vm757_vm2 = vcmask 1045504  }
  0x39   : > { %s475_s16 = scalar_select %p474_p5, %s2165_s19, 15  ;;  %v857_v42 = vld [vmem:[#allocation2 + $0x80] sm:$0xff]  ;;  %v858_v43 = vld [vmem:[#allocation2 + $0x88] sm:$0xff]  ;;  %v1796_v44 = vpack.c.bf16 %v825_v33, %v824_v32  ;;  %1773 = vmatprep.subr.bf16.mxu1 %v1772_v37  ;;  %v1800_v45 = vpack.c.bf16 %v827_v40, %v826_v39  ;;  %v859_v53 = vld [vmem:[#allocation2 + $0x90] sm:$0xff]  ;;  %vm806_vm5 = vcmask 261120   ;;  %vm815_vm6 = vcmask 523264  }
  0x3a   : > { %s2171_s13 = sshll.u32 %s2558_s28, 4  ;;  %s499_s14 = scalar_lea.vmem %s2524_s3, %s2558_s28  ;;  %v828_v46 = vld [vmem:[#allocation2 + $0x20] sm:$0xff]  ;;  %v829_v47 = vld [vmem:[#allocation2 + $0x28] sm:$0xff]  ;;  %1775 = vmatpush3.bf16.msra.mxu1 %v1772_v37  ;;  %v1780_v51 = vpack.c.bf16 %v858_v43, %v857_v42  ;;  %v860_v54 = vld [vmem:[#allocation2 + $0x98] sm:$0xff]  ;;  %vm865_vm7 = vcmask 785408  }
  0x3b   : > { %s477_s21 = sadd.s32 %s2171_s13, %s475_s16  ;;  %s502_s24 = scalar_lea.vmem %s2525_s4, %s2558_s28  ;;  %v2191_v0 = vld [vmem:[%s499_s14] ss:$0 sm:$0xff]  ;;  %1797 = vmatprep.subr.bf16.mxu0 %v1796_v44  ;;  %1777 = vmatprep.subr.bf16.mxu1 %v1776_v38  ;;  %v1804_v55 = vpack.c.bf16 %v829_v47, %v828_v46  ;;  %v1784_v58 = vpack.c.bf16 %v860_v54, %v859_v53  ;;  %v862_v61 = vld [vmem:[#allocation2 + $0xa8] sm:$0xff]  ;;  %v830_v20 = vld [vmem:[#allocation2 + $0x30] sm:$0xff] }
  0x3c   : > { %s2180_s25 = sshll.u32 %s477_s21, 3  ;;  %s1555_s26 = sshll.u32 %s2558_s28, 1  ;;  %v2193_v1 = vld [vmem:[%s502_s24] ss:$0 sm:$0xff]  ;;  %1799 = vmatpush3.bf16.msra.mxu0 %v1796_v44  ;;  %v831_v26 = vld [vmem:[#allocation2 + $0x38] sm:$0xff] }
  0x3d   : > { %s479_s18 = scalar_lea.vmem %s2522_s1, %s2180_s25  ;;  %s2189_s11 = scalar_lea.vmem %s2529_s8, %s1555_s26  ;;  %1801 = vmatprep.subr.bf16.mxu0 %v1800_v45  ;;  %v861_v60 = vld [vmem:[#allocation2 + $0xa0] sm:$0xff] }
  0x3e   : > { %v519_v2 = vld [vmem:[%s479_s18 + $0x8] sm:$0xff]  ;;  %v518_v3 = vld [vmem:[%s479_s18] sm:$0xff]  ;;  %v521_v4 = vld [vmem:[%s479_s18 + $0x18] sm:$0xff]  ;;  %s2196_s16 = sadd.s32 4294967295, %s2165_s19  ;;  %s1603_s28 = sadd.s32 8, %s2165_s19  ;;  %1779 = vmatpush3.bf16.msra.mxu1 %v1776_v38 }
  0x3f   : > { %v551_v5 = vmul.f32 %v2191_v0, %v519_v2  ;;  %v550_v6 = vmul.f32 %v2191_v0, %v518_v3  ;;  %v553_v7 = vmul.f32 %v2191_v0, %v521_v4  ;;  %v520_v8 = vld [vmem:[%s479_s18 + $0x10] sm:$0xff]  ;;  %p457_p7 = scmp.gt.s32.totalorder %s2196_s16, 0  ;;  %v523_v9 = vld [vmem:[%s479_s18 + $0x28] sm:$0xff]  ;;  %v522_v10 = vld [vmem:[%s479_s18 + $0x20] sm:$0xff]  ;;  %p1536_p9 = scmp.lt.s32.totalorder %s2196_s16, 15  ;;  %1781 = vmatprep.subr.bf16.mxu1 %v1780_v51 }
  0x40   : > { %v552_v11 = vmul.f32 %v2191_v0, %v520_v8  ;;  %v555_v12 = vmul.f32 %v2191_v0, %v523_v9  ;;  %v554_v13 = vmul.f32 %v2191_v0, %v522_v10  ;;  %v524_v14 = vld [vmem:[%s479_s18 + $0x30] sm:$0xff]  ;;  %v525_v15 = vld [vmem:[%s479_s18 + $0x38] sm:$0xff]  ;;  %p2240_p11 = scmp.lt.s32.totalorder %s1603_s28, 15  ;;  %1803 = vmatpush3.bf16.msra.mxu0 %v1800_v45  ;;  %v832_v33 = vld [vmem:[#allocation2 + $0x40] sm:$0xff]  ;;  %s2043_s15 = smov 32  }
  0x41   : > { %v2207_v16 = vadd.f32 %v2193_v1, %v551_v5  ;;  %v2210_v17 = vadd.f32 %v2193_v1, %v550_v6  ;;  %v2213_v18 = vadd.f32 %v2193_v1, %v553_v7  ;;  %s458_s5 = scalar_select %p457_p7, %s2196_s16, 0  ;;  %v556_v19 = vmul.f32 %v2191_v0, %v524_v14  ;;  %1805 = vmatprep.subr.bf16.mxu0 %v1804_v55 }
  0x42   : > { %v2218_v21 = vadd.f32 %v2193_v1, %v552_v11  ;;  %v2221_v22 = vadd.f32 %v2193_v1, %v555_v12  ;;  %v2224_v23 = vadd.f32 %v2193_v1, %v554_v13  ;;  %v557_v30 = vmul.f32 %v2191_v0, %v525_v15  ;;  %s2562_s28 = smov (!%p2240_p11, %s1603_s28), 15  ;;  %1783 = vmatpush3.bf16.msra.mxu1 %v1780_v51  ;;  %v863_v15 = vld [vmem:[#allocation2 + $0xb0] sm:$0xff]  ;;  %s2044_s18 = smov 64  }
  0x43   : > { %v1560_v27 = vmul.f32 -1.442695, %v2207_v16  ;;  %v1559_v28 = vmul.f32 -1.442695, %v2210_v17  ;;  %v1562_v29 = vmul.f32 -1.442695, %v2213_v18  ;;  %v2236_v35 = vadd.f32 %v2193_v1, %v556_v19  ;;  %1785 = vmatprep.subr.bf16.mxu1 %v1784_v58 }
  0x44   : > { %v1561_v31 = vmul.f32 -1.442695, %v2218_v21  ;;  %s2560_s5 = smov (!%p1536_p9, %s458_s5), 15  ;;  %v1564_v34 = vmul.f32 -1.442695, %v2221_v22  ;;  %v2247_v41 = vadd.f32 %v2193_v1, %v557_v30  ;;  %s2564_s28 = smov (!%p2240_p11, %s2562_s28), 15  ;;  %v1788_v6 = vpack.c.bf16 %v862_v61, %v861_v60  ;;  %1807 = vmatpush3.bf16.msra.mxu0 %v1804_v55 }
  0x45   : > { %1928 = vpow2.f32 %v1560_v27  ;;  %s464_s17 = sadd.s32 %s2560_s5, %s2171_s13  ;;  %v1563_v36 = vmul.f32 -1.442695, %v2224_v23  ;;  %v1565_v50 = vmul.f32 -1.442695, %v2236_v35  ;;  %s490_s19 = sadd.s32 %s2171_s13, %s2564_s28  ;;  %v864_v19 = vld [vmem:[#allocation2 + $0xb8] sm:$0xff] }
  0x46   : > { %1930 = vpow2.f32 %v1559_v28  ;;  %s1542_s20 = sshll.u32 %s464_s17, 3  ;;  %v1566_v52 = vmul.f32 -1.442695, %v2247_v41  ;;  %s1551_s23 = sshll.u32 %s490_s19, 3  ;;  %1787 = vmatpush3.bf16.msra.mxu1 %v1784_v58  ;;  %v1792_v25 = vpack.c.bf16 %v864_v19, %v863_v15  ;;  %v1808_v28 = vpack.c.bf16 %v831_v26, %v830_v20 }
  0x47   : > { %1932 = vpow2.f32 %v1562_v29  ;;  %s466_s22 = scalar_lea.vmem %s2521_s0, %s1542_s20  ;;  %s492_s26 = scalar_lea.vmem %s2523_s2, %s1551_s23  ;;  %1789 = vmatprep.subr.bf16.mxu1 %v1788_v6 }
  0x48   : > { %1934 = vpow2.f32 %v1561_v31  ;;  %v517_v48 = vld [vmem:[%s466_s22] sm:$0xff]  ;;  %s2273_s10 = scalar_select %p631_p12, 1, 0  ;;  %1809 = vmatprep.subr.bf16.mxu0 %v1808_v28 }
  0x49   : > { %1936 = vpow2.f32 %v1564_v34  ;;  %v535_v49 = vmul.f32 %v2191_v0, %v517_v48  ;;  %v526_v11 = vld [vmem:[%s492_s26] sm:$0xff]  ;;  %v833_v34 = vld [vmem:[#allocation2 + $0x48] sm:$0xff]  ;;  %1811 = vmatpush3.bf16.msra.mxu0 %v1808_v28  ;;  %p636_p13 = scmp.lt.s32.totalorder %s2022_s27, 1  ;;  %s511_s20 = scalar_lea.vmem %s2528_s7, %s2180_s25 }
  0x4a   : > { %1938 = vpow2.f32 %v1563_v36  ;;  %v622_v14 = vmul.f32 %v2191_v0, %v526_v11  ;;  %1791 = vmatpush3.bf16.msra.mxu1 %v1788_v6  ;;  %v1812_v38 = vpack.c.bf16 %v833_v34, %v832_v33  ;;  %v633_v45 = vstv %s2273_s10  ;;  %p1593_p0 = scmp.ne.s32.totalorder %s2022_s27, 0 }
  0x4b   : > { %v2262_v56 = vadd.f32 %v2193_v1, %v535_v49  ;;  %1940 = vpow2.f32 %v1565_v50  ;;  %1793 = vmatprep.subr.bf16.mxu1 %v1792_v25  ;;  %vm2308_vm3 = vcmp.eq.s32.totalorder %v633_v45, 1  ;;  %v834_v45 = vld [vmem:[#allocation2 + $0x50] sm:$0xff]  ;;  %s637_s16 = scalar_select %p636_p13, 1, 0 }
  0x4c   : > { %1942 = vpow2.f32 %v1566_v52  ;;  %v2276_v0 = vadd.f32 %v2193_v1, %v622_v14  ;;  %1813 = vmatprep.subr.bf16.mxu0 %v1812_v38  ;;  %vm1275_vm8 = vcmask (!%p1593_p0), 517120  }
  0x4d   : > { %v1558_v57 = vmul.f32 -1.442695, %v2262_v56  ;;  %1815 = vmatpush3.bf16.msra.mxu0 %v1812_v38 }
  0x4e   : > { %1795 = vmatpush3.bf16.msra.mxu1 %v1792_v25 }
  0x4f   : > { %v1929_v59 = vpop.eup %1928  ;;  %1944 = vpow2.f32 %v1558_v57 }
  0x50   : > { %v1931_v62 = vpop.eup %1930  ;;  %v591_v63 = vadd.f32 1.0, %v1929_v59 }
  0x51   : > { %v1933_v2 = vpop.eup %1932  ;;  %v590_v3 = vadd.f32 1.0, %v1931_v62 }
  0x52   : > { %v1935_v4 = vpop.eup %1934  ;;  %1946 = vrcp.f32 %v591_v63  ;;  %v593_v5 = vadd.f32 1.0, %v1933_v2 }
  0x53   : > { %v1937_v7 = vpop.eup %1936  ;;  %1948 = vrcp.f32 %v590_v3  ;;  %v592_v8 = vadd.f32 1.0, %v1935_v4 }
  0x54   : > { %v1939_v9 = vpop.eup %1938  ;;  %1950 = vrcp.f32 %v593_v5  ;;  %v595_v10 = vadd.f32 1.0, %v1937_v7 }
  0x55   : > { %1952 = vrcp.f32 %v592_v8  ;;  %v594_v12 = vadd.f32 1.0, %v1939_v9  ;;  %v1941_v13 = vpop.eup %1940 }
  0x56   : > { %1954 = vrcp.f32 %v595_v10  ;;  %v1943_v24 = vpop.eup %1942  ;;  %v596_v30 = vadd.f32 1.0, %v1941_v13 }
  0x57   : > { %1956 = vrcp.f32 %v594_v12  ;;  %v597_v32 = vadd.f32 1.0, %v1943_v24 }
  0x59   : > { %v1945_v27 = vpop.eup %1944 }
  0x5a   : > { %v546_v29 = vadd.f32 1.0, %v1945_v27 }
  0x5c   : > { %v1947_v31 = vpop.eup %1946  ;;  %1958 = vrcp.f32 %v546_v29 }
  0x5d   : > { %v1949_v36 = vpop.eup %1948  ;;  %v615_v37 = vmul.f32 %v1947_v31, %v2207_v16  ;;  %1960 = vrcp.f32 %v596_v30  ;;  %v1567_v16 = vmul.f32 -1.442695, %v2276_v0 }
  0x5e   : > { %v1951_v39 = vpop.eup %1950  ;;  %v614_v40 = vmul.f32 %v1949_v36, %v2210_v17  ;;  %1962 = vrcp.f32 %v597_v32 }
  0x5f   : > { %v1953_v42 = vpop.eup %1952  ;;  %v653_v43 = vrot.slane %v615_v37, 7  ;;  %v617_v1 = vmul.f32 %v1951_v39, %v2213_v18  ;;  %1964 = vpow2.f32 %v1567_v16  ;;  %v835_v16 = vld [vmem:[#allocation2 + $0x58] sm:$0xff] }
  0x60   : > { %v652_v44 = vrot.slane %v614_v40, 7  ;;  %v616_v17 = vmul.f32 %v1953_v42, %v2218_v21  ;;  %v1955_v49 = vpop.eup %1954 }
  0x61   : > { %v2284_v46 = vsel %vm671_vm0, 0.0, %v653_v43  ;;  %v684_v47 = vsel %vm671_vm0, %v653_v43, 0.0  ;;  %v655_v48 = vrot.slane %v617_v1, 7  ;;  %v1957_v61 = vpop.eup %1956  ;;  %v619_v2 = vmul.f32 %v1955_v49, %v2221_v22  ;;  %v1121_v49 = vld [vmem:[#allocation2 + $0xc8] sm:$0xff] }
  0x62   : > { %v715_v50 = vrot.slane %v2284_v46, 1  ;;  %v716_v18 = vrot.slane %v684_v47, 1  ;;  %v2290_v51 = vsel %vm671_vm0, 0.0, %v652_v44  ;;  %v683_v52 = vsel %vm671_vm0, %v652_v44, 0.0 }
  0x63   : > { %v712_v53 = vrot.slane %v2290_v51, 1  ;;  %v713_v54 = vrot.slane %v683_v52, 1  ;;  %v764_v55 = vrot.slane %v2284_v46, 2  ;;  %v765_v57 = vrot.slane %v684_v47, 2 }
  0x64   : > { %v717_v58 = vsel %vm708_vm1, %v715_v50, %v716_v18  ;;  %v761_v21 = vrot.slane %v2290_v51, 2  ;;  %v762_v59 = vrot.slane %v683_v52, 2  ;;  %v2298_v60 = vsel %vm671_vm0, 0.0, %v655_v48 }
  0x65   : > { %737 = vrot.lane.b32.xlu1 %v717_v58, %s2043_s15  ;;  %v714_v62 = vsel %vm708_vm1, %v712_v53, %v713_v54  ;;  %v686_v63 = vsel %vm671_vm0, %v655_v48, 0.0  ;;  %v766_v3 = vsel %vm757_vm2, %v764_v55, %v765_v57  ;;  %v721_v4 = vrot.slane %v2298_v60, 1 }
  0x66   : > { %735 = vrot.lane.b32.xlu0 %v714_v62, %s2043_s15  ;;  %v722_v5 = vrot.slane %v686_v63, 1  ;;  %v654_v6 = vrot.slane %v616_v17, 7  ;;  %v1959_v7 = vpop.eup %1958  ;;  %v763_v8 = vsel %vm757_vm2, %v761_v21, %v762_v59  ;;  %v618_v12 = vmul.f32 %v1957_v61, %v2224_v23  ;;  %v1120_v17 = vld [vmem:[#allocation2 + $0xc0] sm:$0xff] }
  0x67   : > { %v549_v11 = vmul.f32 %v1959_v7, %v2262_v56  ;;  %v1961_v13 = vpop.eup %1960  ;;  %v657_v19 = vrot.slane %v619_v2, 7  ;;  %v770_v23 = vrot.slane %v2298_v60, 2  ;;  %v771_v27 = vrot.slane %v686_v63, 2 }
  0x68   : > { %v2313_v10 = vsel %vm671_vm0, 0.0, %v654_v6  ;;  %v685_v22 = vsel %vm671_vm0, %v654_v6, 0.0  ;;  %v1963_v20 = vpop.eup %1962  ;;  %v723_v24 = vsel %vm708_vm1, %v721_v4, %v722_v5  ;;  %v656_v29 = vrot.slane %v618_v12, 7 }
  0x69   : > { %786 = vrot.lane.b32.xlu1 %v766_v3, %s2044_s18  ;;  %v718_v14 = vrot.slane %v2313_v10, 1  ;;  %v719_v15 = vrot.slane %v685_v22, 1  ;;  %v635_v25 = vsel %vm2308_vm3, %v549_v11, 0.0  ;;  %v767_v28 = vrot.slane %v2313_v10, 2 }
  0x6a   : > { %784 = vrot.lane.b32.xlu0 %v763_v8, %s2044_s18  ;;  %v651_v26 = vrot.slane %v635_v25, 7  ;;  %v620_v30 = vmul.f32 %v1961_v13, %v2236_v35  ;;  %v768_v33 = vrot.slane %v685_v22, 2  ;;  %v2334_v34 = vsel %vm671_vm0, 0.0, %v657_v19  ;;  %v1965_v35 = vpop.eup %1964 }
  0x6b   : > { %v720_v56 = vsel %vm708_vm1, %v718_v14, %v719_v15  ;;  %v688_v40 = vsel %vm671_vm0, %v657_v19, 0.0  ;;  %v2341_v42 = vsel %vm671_vm0, 0.0, %v656_v29  ;;  %v687_v44 = vsel %vm671_vm0, %v656_v29, 0.0 }
  0x6c   : > { %v2330_v31 = vsel %vm671_vm0, 0.0, %v651_v26  ;;  %v682_v32 = vsel %vm671_vm0, %v651_v26, 0.0  ;;  %v772_v47 = vsel %vm757_vm2, %v770_v23, %v771_v27  ;;  %v727_v48 = vrot.slane %v2334_v34, 1 }
  0x6d   : > { %741 = vrot.lane.b32.xlu1 %v723_v24, %s2043_s15  ;;  %v758_v36 = vrot.slane %v2330_v31, 2  ;;  %v759_v37 = vrot.slane %v682_v32, 2  ;;  %v709_v38 = vrot.slane %v2330_v31, 1  ;;  %v710_v39 = vrot.slane %v682_v32, 1 }
  0x6e   : > { %739 = vrot.lane.b32.xlu0 %v720_v56, %s2043_s15  ;;  %v769_v50 = vsel %vm757_vm2, %v767_v28, %v768_v33  ;;  %v728_v18 = vrot.slane %v688_v40, 1  ;;  %v724_v52 = vrot.slane %v2341_v42, 1  ;;  %v658_v53 = vrot.slane %v620_v30, 7 }
  0x6f   : > { %v760_v43 = vsel %vm757_vm2, %v758_v36, %v759_v37  ;;  %v711_v1 = vsel %vm708_vm1, %v709_v38, %v710_v39  ;;  %v725_v54 = vrot.slane %v687_v44, 1  ;;  %v621_v55 = vmul.f32 %v1963_v20, %v2247_v41 }
  0x70   : > { %v627_v57 = vadd.f32 1.0, %v1965_v35  ;;  %v1816_v58 = vpack.c.bf16 %v835_v16, %v834_v45  ;;  %v2354_v21 = vpack.c.bf16 %v1121_v49, %v1120_v17  ;;  %v776_v59 = vrot.slane %v2334_v34, 2 }
  0x71   : > { %782 = vrot.lane.b32.xlu1 %v760_v43, %s2044_s18  ;;  %v729_v61 = vsel %vm708_vm1, %v727_v48, %v728_v18  ;;  %v777_v62 = vrot.slane %v688_v40, 2  ;;  %v773_v63 = vrot.slane %v2341_v42, 2  ;;  %v2362_v41 = vsel %vm671_vm0, 0.0, %v658_v53  ;;  %v1124_v18 = vld [vmem:[#allocation2 + $0xe0] sm:$0xff] }
  0x72   : > { %733 = vrot.lane.b32.xlu0 %v711_v1, %s2043_s15  ;;  %1966 = vrcp.f32 %v627_v57  ;;  %1817 = vmatprep.subr.bf16.mxu0 %v1816_v58  ;;  %v726_v2 = vsel %vm708_vm1, %v724_v52, %v725_v54  ;;  %v774_v3 = vrot.slane %v687_v44, 2  ;;  %v689_v4 = vsel %vm671_vm0, %v658_v53, 0.0  ;;  %v1122_v1 = vld [vmem:[#allocation2 + $0xd0] sm:$0xff]  ;;  %v1123_v44 = vld [vmem:[#allocation2 + $0xd8] sm:$0xff]  ;;  %v1125_v52 = vld [vmem:[#allocation2 + $0xe8] sm:$0xff] }
  0x73   : > { %1819 = vmatpush3.bf16.msra.mxu0 %v1816_v58  ;;  %v659_v5 = vrot.slane %v621_v55, 7  ;;  %1844 = vmatprep.subr.bf16.mxu1 %v2354_v21  ;;  %v778_v6 = vsel %vm757_vm2, %v776_v59, %v777_v62  ;;  %v730_v7 = vrot.slane %v2362_v41, 1  ;;  %v779_v8 = vrot.slane %v2362_v41, 2  ;;  %v1126_v57 = vld [vmem:[#allocation2 + $0xf0] sm:$0xff]  ;;  %v1127_v58 = vld [vmem:[#allocation2 + $0xf8] sm:$0xff] }
  0x74   : > { %1821 = vmatprep.subr.bf16.mxu0 %v2354_v21  ;;  %v780_v9 = vrot.slane %v689_v4, 2  ;;  %v775_v22 = vsel %vm757_vm2, %v773_v63, %v774_v3  ;;  %v731_v11 = vrot.slane %v689_v4, 1  ;;  %v638_v14 = vstv %s637_s16  ;;  %v1128_v3 = vld [vmem:[#allocation2 + $0x100] sm:$0xff]  ;;  %v1129_v4 = vld [vmem:[#allocation2 + $0x108] sm:$0xff] }
  0x75   : > { %790 = vrot.lane.b32.xlu1 %v772_v47, %s2044_s18  ;;  %v2377_v12 = vsel %vm671_vm0, 0.0, %v659_v5  ;;  %v690_v13 = vsel %vm671_vm0, %v659_v5, 0.0  ;;  %vm639_vm4 = vcmp.eq.s32.totalorder %v638_v14, 1 }
  0x76   : > { %788 = vrot.lane.b32.xlu0 %v769_v50, %s2044_s18  ;;  %v781_v15 = vsel %vm757_vm2, %v779_v8, %v780_v9  ;;  %v844_v19 = vrot.slane %v2377_v12, 2  ;;  %v845_v20 = vrot.slane %v690_v13, 2  ;;  %v732_v25 = vsel %vm708_vm1, %v730_v7, %v731_v11  ;;  %v1130_v8 = vld [vmem:[#allocation2 + $0x110] sm:$0xff] }
  0x77   : > { %v838_v56 = vrot.slane %v2377_v12, 1  ;;  %v839_v26 = vrot.slane %v690_v13, 1  ;;  %v1824_v50 = vpack.c.bf16 %v1123_v44, %v1122_v1  ;;  %v1836_v7 = vpack.c.bf16 %v1129_v4, %v1128_v3 }
  0x78   : > { %v846_v27 = vsel %vm757_vm2, %v844_v19, %v845_v20 }
  0x79   : > { %745 = vrot.lane.b32.xlu1 %v729_v61, %s2043_s15  ;;  %v840_v29 = vsel %vm708_vm1, %v838_v56, %v839_v26 }
  0x7a   : > { %743 = vrot.lane.b32.xlu0 %v726_v2, %s2043_s15  ;;  %v1832_v2 = vpack.c.bf16 %v1127_v58, %v1126_v57 }
  0x7c   : > { %v1967_v24 = vpop.eup %1966 }
  0x7d   : > { %794 = vrot.lane.b32.xlu1 %v778_v6, %s2044_s18  ;;  %v630_v23 = vmul.f32 %v1967_v24, %v2276_v0 }
  0x7e   : > { %792 = vrot.lane.b32.xlu0 %v775_v22, %s2044_s18 }
  0x7f   : > { %v640_v28 = vsel %vm639_vm4, %v630_v23, 0.0 }
  0x80   : > { %v660_v30 = vrot.slane %v640_v28, 7 }
  0x81   : > { %796 = vrot.lane.b32.xlu1 %v781_v15, %s2044_s18 }
  0x82   : > { %747 = vrot.lane.b32.xlu0 %v732_v25, %s2043_s15  ;;  %v2393_v32 = vsel %vm671_vm0, 0.0, %v660_v30  ;;  %v691_v33 = vsel %vm671_vm0, %v660_v30, 0.0 }
  0x83   : > { %v1105_v0 = vrot.slane %v2393_v32, 1  ;;  %v1106_v36 = vrot.slane %v691_v33, 1  ;;  %v1111_v37 = vrot.slane %v2393_v32, 2  ;;  %v1112_v38 = vrot.slane %v691_v33, 2 }
  0x85   : > { %847 = vrot.lane.b32.xlu1 %v846_v27, %s2044_s18  ;;  %v1107_v39 = vsel %vm708_vm1, %v1105_v0, %v1106_v36  ;;  %v1113_v35 = vsel %vm757_vm2, %v1111_v37, %v1112_v38 }
  0x86   : > { %841 = vrot.lane.b32.xlu0 %v840_v29, %s2043_s15 }
  0x89   : > { %1114 = vrot.lane.b32.xlu1 %v1113_v35, %s2044_s18 }
  0x8a   : > { %1108 = vrot.lane.b32.xlu0 %v1107_v39, %s2043_s15 }
  0xd7   : > { %v738_v40 = vpop.permute.xlu1 %737 }
  0xd8   : > { %v736_v43 = vpop.permute.xlu0 %735  ;;  %v809_v45 = vsel %vm806_vm5, %v2284_v46, %v738_v40 }
  0xd9   : > { %v808_v47 = vsel %vm806_vm5, %v2290_v51, %v736_v43  ;;  %v1828_v51 = vpack.c.bf16 %v1125_v52, %v1124_v18 }
  0xdb   : > { %v787_v16 = vpop.permute.xlu1 %786 }
  0xdc   : > { %v2408_v48 = vsel %vm815_vm6, %v809_v45, %v787_v16  ;;  %v785_v17 = vpop.permute.xlu0 %784 }
  0xdd   : > { %v817_v49 = vsel %vm815_vm6, %v808_v47, %v785_v17 }
  0xde   : > { %1688 = vmatprep.mubr.msk.f32.mxu1 %vm865_vm7, %v817_v49 }
  0xdf   : > { %1689 = vmatmul.mubr.msk.f32.vlgmr.msra.gmra.mrb[0].mxu1 %vm865_vm7, %v2408_v48  ;;  %v742_v46 = vpop.permute.xlu1 %741 }
  0xe0   : > { %v740_v53 = vpop.permute.xlu0 %739  ;;  %1850 = vmatpush3.bf16.msra.mxu1 %v2354_v21  ;;  %v811_v62 = vsel %vm806_vm5, %v2298_v60, %v742_v46 }
  0xe1   : > { %1845 = vmatprep.subr.bf16.mxu1 %v1824_v50  ;;  %v810_v5 = vsel %vm806_vm5, %v2313_v10, %v740_v53  ;;  %v1131_v10 = vld [vmem:[#allocation2 + $0x118] sm:$0xff] }
  0xe3   : > { %v783_v54 = vpop.permute.xlu1 %782 }
  0xe4   : > { %v734_v55 = vpop.permute.xlu0 %733  ;;  %1851 = vmatpush3.bf16.msra.mxu1 %v1824_v50 }
  0xe5   : > { %v807_v59 = vsel %vm806_vm5, %v2330_v31, %v734_v55  ;;  %1846 = vmatprep.subr.bf16.mxu1 %v1828_v51 }
  0xe6   : > { %v816_v61 = vsel %vm815_vm6, %v807_v59, %v783_v54 }
  0xe7   : > { %1724 = vmatprep.mubr.msk.f32.mxu0 %vm865_vm7, %v816_v61  ;;  %v791_v63 = vpop.permute.xlu1 %790 }
  0xe8   : > { %v2424_v6 = vsel %vm815_vm6, %v811_v62, %v791_v63  ;;  %1725 = vmatmul.mubr.msk.f32.vlgmr.msra.gmra.mrb[0].mxu0 %vm865_vm7, %v817_v49  ;;  %v789_v31 = vpop.permute.xlu0 %788  ;;  %1852 = vmatpush3.bf16.msra.mxu1 %v1828_v51 }
  0xe9   : > { %1823 = vmatpush3.bf16.msra.mxu0 %v2354_v21  ;;  %v819_v60 = vsel %vm815_vm6, %v810_v5, %v789_v31  ;;  %1727 = vmatprep.mubr.msk.f32.mxu0 %vm865_vm7, %v2408_v48  ;;  %v1840_v21 = vpack.c.bf16 %v1131_v10, %v1130_v8  ;;  %v2045_v8 = vmov (!%p1593_p0), 0.0  }
  0xea   : > { %1691 = vmatprep.mubr.msk.f32.mxu1 %vm865_vm7, %v819_v60  ;;  %1825 = vmatprep.subr.bf16.mxu0 %v1824_v50  ;;  %1276 = vst.msk [vmem:[%s2189_s11] sm:$0x3] (!%p1593_p0), %vm1275_vm8, %v2045_v8 }
  0xeb   : > { %1692 = vmatmul.mubr.msk.f32.gmra.mrb[2].mxu1 %vm865_vm7, %v2424_v6  ;;  %v746_v9 = vpop.permute.xlu1 %745  ;;  %1847 = vmatprep.subr.bf16.mxu1 %v1832_v2 }
  0xec   : > { %1728 = vmatmul.mubr.msk.f32.gmra.mrb[2].mxu0 %vm865_vm7, %v819_v60  ;;  %v744_v22 = vpop.permute.xlu0 %743  ;;  %1853 = vmatpush3.bf16.msra.mxu1 %v1832_v2  ;;  %v813_v11 = vsel %vm806_vm5, %v2334_v34, %v746_v9 }
  0xed   : > { %1827 = vmatpush3.bf16.msra.mxu0 %v1824_v50  ;;  %1730 = vmatprep.mubr.msk.f32.mxu0 %vm865_vm7, %v2424_v6  ;;  %v812_v14 = vsel %vm806_vm5, %v2341_v42, %v744_v22 }
  0xee   : > { %1829 = vmatprep.subr.bf16.mxu0 %v1828_v51  ;;  %1848 = vmatprep.subr.bf16.mxu1 %v1836_v7 }
  0xef   : > { %v795_v13 = vpop.permute.xlu1 %794 }
  0xf0   : > { %v822_v15 = vsel %vm815_vm6, %v813_v11, %v795_v13  ;;  %v793_v19 = vpop.permute.xlu0 %792  ;;  %1854 = vmatpush3.bf16.msra.mxu1 %v1836_v7 }
  0xf1   : > { %1831 = vmatpush3.bf16.msra.mxu0 %v1828_v51  ;;  %v821_v20 = vsel %vm815_vm6, %v812_v14, %v793_v19  ;;  %1849 = vmatprep.subr.bf16.mxu1 %v1840_v21 }
  0xf2   : > { %1694 = vmatprep.mubr.msk.f32.mxu1 %vm865_vm7, %v821_v20  ;;  %1731 = vmatmul.mubr.msk.f32.gmra.mrb[4].mxu0 %vm865_vm7, %v821_v20 }
  0xf3   : > { %1695 = vmatmul.mubr.msk.f32.gmra.mrb[4].mxu1 %vm865_vm7, %v822_v15  ;;  %1733 = vmatprep.mubr.msk.f32.mxu0 %vm865_vm7, %v822_v15  ;;  %v797_v34 = vpop.permute.xlu1 %796 }
  0xf4   : > { %1833 = vmatprep.subr.bf16.mxu0 %v1832_v2  ;;  %v748_v24 = vpop.permute.xlu0 %747  ;;  %1855 = vmatpush3.bf16.msra.mxu1 %v1840_v21 }
  0xf5   : > { %1835 = vmatpush3.bf16.msra.mxu0 %v1832_v2  ;;  %v814_v42 = vsel %vm806_vm5, %v2362_v41, %v748_v24 }
  0xf6   : > { %v823_v25 = vsel %vm815_vm6, %v814_v42, %v797_v34  ;;  %1837 = vmatprep.subr.bf16.mxu0 %v1836_v7 }
  0xf7   : > { %1697 = vmatprep.mubr.msk.f32.mxu1 %vm865_vm7, %v823_v25  ;;  %1734 = vmatmul.mubr.msk.f32.gmra.mrb[6].mxu0 %vm865_vm7, %v823_v25  ;;  %v848_v56 = vpop.permute.xlu1 %847 }
  0xf8   : > { %1760 = vmatprep.mubr.msk.f32.mxu0 %vm865_vm7, %v2408_v48  ;;  %v842_v26 = vpop.permute.xlu0 %841  ;;  %v1592_v48 = vld [vmem:[%s2527_s6] ss:$0 sm:$0xff] }
  0xf9   : > { %1839 = vmatpush3.bf16.msra.mxu0 %v1836_v7  ;;  %v850_v23 = vsel %vm806_vm5, %v2377_v12, %v842_v26 }
  0xfa   : > { %v851_v27 = vsel %vm815_vm6, %v850_v23, %v848_v56  ;;  %1841 = vmatprep.subr.bf16.mxu0 %v1840_v21 }
  0xfb   : > { %1698 = vmatmul.mubr.msk.f32.gmra.mrb[6].mxu1 %vm865_vm7, %v851_v27  ;;  %v1115_v29 = vpop.permute.xlu1 %1114 }
  0xfc   : > { %1766 = vmatprep.mubr.msk.f32.mxu1 %vm865_vm7, %v822_v15  ;;  %v1109_v41 = vpop.permute.xlu0 %1108 }
  0xfd   : > { %1843 = vmatpush3.bf16.msra.mxu0 %v1840_v21  ;;  %v1117_v28 = vsel %vm806_vm5, %v2393_v32, %v1109_v41 }
  0xfe   : > { %v1118_v12 = vsel %vm815_vm6, %v1117_v28, %v1115_v29 }
  0xff   : > { %1767 = vmatmul.mubr.msk.f32.vlgmr.msra.gmra.mrb[8].mxu1 %vm865_vm7, %v823_v25 }
 0x100   : > { %1761 = vmatmul.mubr.msk.f32.vlgmr.msra.gmra.mrb[0].mxu0 %vm865_vm7, %v819_v60  ;;  %1769 = vmatprep.mubr.msk.f32.mxu1 %vm865_vm7, %v851_v27 }
 0x101   : > { %1763 = vmatprep.mubr.msk.f32.mxu0 %vm865_vm7, %v2424_v6 }
 0x103   : > { %1770 = vmatmul.mubr.msk.f32.gmra.mrb[10].mxu1 %vm865_vm7, %v1118_v12 }
 0x104   : > { %1764 = vmatmul.mubr.msk.f32.gmra.mrb[2].mxu0 %vm865_vm7, %v821_v20 }
 0x1b2   : > { %v1690_v30 = vpop.f32.mrb[0].mxu1 }
 0x1b3   : > { %v956_v33 = vpop.f32.mrb[1].mxu1 }
 0x1be   : > { %v1693_v0 = vpop.f32.mrb[2].mxu1 }
 0x1bf   : > { %v966_v32 = vpop.f32.mrb[3].mxu1 }
 0x1c5   : > { %v1732_v36 = vpop.f32.mrb[4].mxu0 }
 0x1c6   : > { %v1696_v37 = vpop.f32.mrb[4].mxu1  ;;  %v1084_v38 = vpop.f32.mrb[5].mxu0 }
 0x1c7   : > { %v1090_v39 = vadd.f32 %v1732_v36, %v1696_v37  ;;  %v976_v35 = vpop.f32.mrb[5].mxu1 }
 0x1c8   : > { %v1085_v40 = vadd.f32 %v1084_v38, %v976_v35 }
 0x1ca   : > { %v1735_v43 = vpop.f32.mrb[6].mxu0 }
 0x1cb   : > { %v1094_v1 = vpop.f32.mrb[7].mxu0 }
 0x1ce   : > { %v1699_v44 = vpop.f32.mrb[6].mxu1 }
 0x1cf   : > { %v1100_v45 = vadd.f32 %v1735_v43, %v1699_v44  ;;  %v986_v16 = vpop.f32.mrb[7].mxu1 }
 0x1d0   : > { %v1095_v47 = vadd.f32 %v1094_v1, %v986_v16 }
 0x1d2   : > { %v1768_v17 = vpop.f32.mrb[8].mxu1 }
 0x1d3   : > { %v1762_v49 = vpop.f32.mrb[0].mxu0  ;;  %v1245_v50 = vadd.f32 %v1768_v17, %v1090_v39  ;;  %v1221_v18 = vpop.f32.mrb[9].mxu1 }
 0x1d4   : > { %v1856_v52 = vadd.f32 %v1762_v49, %v1690_v30  ;;  %v1201_v46 = vpop.f32.mrb[1].mxu0  ;;  %v1244_v53 = vadd.f32 %v1221_v18, %v1085_v40 }
 0x1d5   : > { %v1260_v51 = vadd.f32 %v1592_v48, %v1245_v50  ;;  %v1857_v54 = vadd.f32 %v1201_v46, %v956_v33 }
 0x1d6   : > { %v1256_v55 = vadd.f32 %v1856_v52, %v1592_v48  ;;  %v1259_v57 = vadd.f32 %v1592_v48, %v1244_v53  ;;  %v1771_v58 = vpop.f32.mrb[10].mxu1 }
 0x1d7   : > { %1268 = vst.msk [vmem:[%s511_s20 + $0x28] sm:$0xff] %vm815_vm6, %v1260_v51  ;;  %v1255_v59 = vadd.f32 %v1857_v54, %v1592_v48  ;;  %v1765_v61 = vpop.f32.mrb[2].mxu0  ;;  %v1247_v62 = vadd.f32 %v1771_v58, %v1100_v45  ;;  %v1231_v63 = vpop.f32.mrb[11].mxu1  ;;  %1274 = sbr.rel (%p1593_p0) target bundleno = 478 (0x1de), region = 56 }
 0x1d8   : > { %1264 = vst.msk [vmem:[%s511_s20 + $0x8] sm:$0xff] %vm815_vm6, %v1256_v55  ;;  %1267 = vst.msk [vmem:[%s511_s20 + $0x20] sm:$0xff] %vm815_vm6, %v1259_v57  ;;  %v1858_v2 = vadd.f32 %v1765_v61, %v1693_v0  ;;  %v1211_v3 = vpop.f32.mrb[3].mxu0  ;;  %v1246_v4 = vadd.f32 %v1231_v63, %v1095_v47 }
 0x1d9   : > { %1263 = vst.msk [vmem:[%s511_s20] sm:$0xff] %vm815_vm6, %v1255_v59  ;;  %v1262_v5 = vadd.f32 %v1592_v48, %v1247_v62  ;;  %v1859_v6 = vadd.f32 %v1211_v3, %v966_v32 }
 0x1da   : > { %v1258_v31 = vadd.f32 %v1858_v2, %v1592_v48  ;;  %v1261_v60 = vadd.f32 %v1592_v48, %v1246_v4 }
 0x1db   : > { %1270 = vst.msk [vmem:[%s511_s20 + $0x38] sm:$0xff] %vm815_vm6, %v1262_v5  ;;  %v1257_v7 = vadd.f32 %v1859_v6, %v1592_v48 }
 0x1dc   : > { %1266 = vst.msk [vmem:[%s511_s20 + $0x18] sm:$0xff] %vm815_vm6, %v1258_v31  ;;  %1269 = vst.msk [vmem:[%s511_s20 + $0x30] sm:$0xff] %vm815_vm6, %v1261_v60 }
 0x1dd   : > { %1265 = vst.msk [vmem:[%s511_s20 + $0x10] sm:$0xff] %vm815_vm6, %v1257_v7 }
 0x1de PF: > { %v1278_v10 = vsel %vm815_vm6, %v1255_v59, 0.0  ;;  %v1279_v9 = vsel %vm815_vm6, %v1256_v55, 0.0  ;;  %v1281_v22 = vsel %vm815_vm6, %v1257_v7, 0.0  ;;  %v1283_v11 = vsel %vm815_vm6, %v1258_v31, 0.0  ;;  %v1277_v53 = vld [vmem:[%s2189_s11] sm:$0x1] }
 0x1df   : > { %v1280_v21 = vadd.f32 %v1279_v9, %v1278_v10  ;;  %v1303_v13 = vmul.f32 %v1255_v59, %v1255_v59  ;;  %v1304_v14 = vmul.f32 %v1256_v55, %v1256_v55  ;;  %v1305_v19 = vmul.f32 %v1257_v7, %v1257_v7  ;;  %v1302_v59 = vld [vmem:[%s2189_s11 + $0x1] sm:$0x1] }
 0x1e0   : > { %v1306_v20 = vmul.f32 %v1258_v31, %v1258_v31  ;;  %v1285_v34 = vsel %vm815_vm6, %v1259_v57, 0.0  ;;  %v1307_v25 = vmul.f32 %v1259_v57, %v1259_v57  ;;  %v1287_v23 = vsel %vm815_vm6, %v1260_v51, 0.0 }
 0x1e1   : > { %v1282_v15 = vadd.f32 %v1281_v22, %v1280_v21  ;;  %v1311_v24 = vsel %vm815_vm6, %v1303_v13, 0.0  ;;  %v1312_v56 = vsel %vm815_vm6, %v1304_v14, 0.0  ;;  %v1314_v26 = vsel %vm815_vm6, %v1305_v19, 0.0 }
 0x1e2   : > { %v1313_v27 = vadd.f32 %v1312_v56, %v1311_v24  ;;  %v1308_v28 = vmul.f32 %v1260_v51, %v1260_v51  ;;  %v1316_v29 = vsel %vm815_vm6, %v1306_v20, 0.0  ;;  %v1289_v12 = vsel %vm815_vm6, %v1261_v60, 0.0 }
 0x1e3   : > { %v1284_v42 = vadd.f32 %v1283_v11, %v1282_v15  ;;  %v1309_v0 = vmul.f32 %v1261_v60, %v1261_v60  ;;  %v1318_v32 = vsel %vm815_vm6, %v1307_v25, 0.0  ;;  %v1291_v36 = vsel %vm815_vm6, %v1262_v5, 0.0 }
 0x1e4   : > { %v1315_v30 = vadd.f32 %v1314_v26, %v1313_v27  ;;  %v1310_v39 = vmul.f32 %v1262_v5, %v1262_v5  ;;  %v1320_v35 = vsel %vm815_vm6, %v1308_v28, 0.0  ;;  %vm1300_vm9 = vcmask 516096  }
 0x1e5   : > { %v1286_v41 = vadd.f32 %v1285_v34, %v1284_v42  ;;  %v1322_v1 = vsel %vm815_vm6, %v1309_v0, 0.0 }
 0x1e6   : > { %v1317_v37 = vadd.f32 %v1316_v29, %v1315_v30  ;;  %v1324_v16 = vsel %vm815_vm6, %v1310_v39, 0.0 }
 0x1e7   : > { %v1288_v33 = vadd.f32 %v1287_v23, %v1286_v41 }
 0x1e8   : > { %v1319_v40 = vadd.f32 %v1318_v32, %v1317_v37 }
 0x1e9   : > { %v1290_v38 = vadd.f32 %v1289_v12, %v1288_v33 }
 0x1ea   : > { %v1321_v44 = vadd.f32 %v1320_v35, %v1319_v40 }
 0x1eb   : > { %v1292_v43 = vadd.f32 %v1291_v36, %v1290_v38 }
 0x1ec   : > { %v1323_v47 = vadd.f32 %v1322_v1, %v1321_v44 }
 0x1ed   : > { %v1293_v45 = vrot.slane %v1292_v43, 4 }
 0x1ee   : > { %v1325_v17 = vadd.f32 %v1324_v16, %v1323_v47 }
 0x1ef   : > { %v1294_v48 = vadd.f32 %v1293_v45, %v1292_v43 }
 0x1f0   : > { %v1326_v50 = vrot.slane %v1325_v17, 4 }
 0x1f1   : > { %v1295_v49 = vrot.slane %v1294_v48, 2 }
 0x1f2   : > { %v1327_v52 = vadd.f32 %v1326_v50, %v1325_v17 }
 0x1f3   : > { %v1296_v18 = vadd.f32 %v1295_v49, %v1294_v48 }
 0x1f4   : > { %v1328_v51 = vrot.slane %v1327_v52, 2 }
 0x1f5   : > { %v1297_v46 = vrot.slane %v1296_v18, 1 }
 0x1f6   : > { %v1329_v55 = vadd.f32 %v1328_v51, %v1327_v52 }
 0x1f7   : > { %v1298_v54 = vadd.f32 %v1297_v46, %v1296_v18 }
 0x1f8   : > { %v1330_v58 = vrot.slane %v1329_v55, 1 }
 0x1f9   : > { %v1299_v57 = vadd.f32 %v1298_v54, %v1277_v53 }
 0x1fa   : > { %v1331_v61 = vadd.f32 %v1330_v58, %v1329_v55 }
 0x1fb   : > { %1301 = vst.msk [vmem:[%s2189_s11] sm:$0x1] %vm1300_vm9, %v1299_v57 }
 0x1fc   : > { %v1332_v62 = vadd.f32 %v1331_v61, %v1302_v59 }
 0x1fe   : > { %1333 = vst.msk [vmem:[%s2189_s11 + $0x1] sm:$0x1] %vm1300_vm9, %v1332_v62 }
 0x1ff PF: > { %s20_s9 = sadd.s32 1, %s2038_s9   ;;  %s2545_s25 = sld [smem:[#allocation5_spill]] }
 0x200   : > { %p17_p1 = scmp.ge.s32.totalorder %s20_s9, 6   ;;  %s2546_s14 = sld [smem:[#allocation6_spill]] }
 0x201   : > { %s2547_s27 = smov %s2030_s29  ;;  %s2548_s28 = smov %s2034_s30 }
 0x202   :  { %19 = sbr.rel (!%p17_p1) target bundleno = 5 (0x5), region = 113 }
 0x205   : > { %s2549_s29 = smov %s2545_s25 }
 0x206   : > { %s2550_s30 = smov %s2546_s14 }
 0x209   :  { %1378 = vsyncpa [#allocation3], 1 }
 0x20a   :  { %1380 = vsyncpa [#allocation3 + $0x1], 1 }

// kernel: up_block_fwd.11
= control target key start
LH: loop header
LB: loop body
LE: loop exit
PB: predicated region body
PF: predicated region fallthrough
CT: control target
= control target key end

     0   :  { %s1915_s27 = smov 0   ;;  %s1917_s28 = smov 0   ;;  %s2647_s0 = inlined_call_operand.vmem [shape: f32[2,16,8,64], index: 0, kind: input, shape index: {}, may-alias: {0,1,2}]   ;;  %s2648_s1 = inlined_call_operand.vmem [shape: f32[2,16,8,64], index: 1, kind: input, shape index: {}, may-alias: {0,1,2}]   ;;  %s2649_s2 = inlined_call_operand.vmem [shape: f32[2,16,8,64], index: 2, kind: input, shape index: {}, may-alias: {0,1,2}]   ;;  %s2650_s3 = inlined_call_operand.vmem [shape: f32[2,1,64], index: 3, kind: input, shape index: {}]   ;;  %s2651_s4 = inlined_call_operand.vmem [shape: f32[2,1,64], index: 4, kind: input, shape index: {}]   ;;  %s2652_s5 = inlined_call_operand.vmem [shape: f32[3,192,64], index: 5, kind: input, shape index: {}]   ;;  %s2653_s6 = inlined_call_operand.vmem [shape: f32[1,64], index: 6, kind: input, shape index: {}]   ;;  %s2654_s7 = inlined_call_operand.vmem [shape: f32[2,16,8,64], index: 7, kind: output, shape index: {0}]   ;;  %s2655_s8 = inlined_call_operand.vmem [shape: f32[2,2,64], index: 8, kind: output, shape index: {1}]  }
   0x1   :  { %2656 = sst [smem:[#allocation2_spill]] %s2650_s3  ;;  %s1919_s29 = smov 0  }
   0x2   :  { %s1921_s30 = smov 0   ;;  %s1923_s9 = smov 0  }
   0x3 LB: > { %s28_s10 = sadd.s32 1, %s1857_s29  ;;  %s31_s11 = sadd.s32 1, %s1861_s30  ;;  %s1865_s9 = sphi %s1923_s9, %s19_s9   ;;  %s1861_s30 = sphi %s1921_s30, %s2664_s30   ;;  %s1857_s29 = sphi %s1919_s29, %s2663_s29   ;;  %s1853_s28 = sphi %s1917_s28, %s2662_s28   ;;  %s1849_s27 = sphi %s1915_s27, %s2661_s27  }
   0x4   : > { %p29_p0 = scmp.ge.s32.totalorder %s28_s10, 2  ;;  %p1488_p1 = scmp.ge.s32.totalorder %s1865_s9, 1 }
   0x5   : > { %p364_p2 = scmp.lt.s32.totalorder %s1865_s9, 5 }
   0x6   : > { %s2666_s10 = smov (%p29_p0, %s28_s10), 0  ;;  %s2668_s11 = smov (!%p29_p0, %s31_s11), %s1861_s30 }
   0x7   : > { %p365_p3 = pnand %p1488_p1, %p364_p2  ;;  %p33_p4 = scmp.ge.s32.totalorder %s2668_s11, 2 }
   0x8   : > { %s1950_s12 = sshll.u32 (!%p365_p3), %s1849_s27, 3  ;;  %p444_p5 = scmp.lt.s32.totalorder (!%p365_p3), %s1853_s28, 1  ;;  %v1523_v0 = vld [vmem:[%s2652_s5 + $0xc0] sm:$0xff] (!%p365_p3)  ;;  %v1867_v1 = vmov (!%p365_p3), 0.0|0.0   ;;  %v1524_v2 = vld [vmem:[%s2652_s5 + $0xc8] sm:$0xff] (!%p365_p3)  ;;  %v1525_v7 = vld [vmem:[%s2652_s5 + $0xd0] sm:$0xff] (!%p365_p3) }
   0x9   : > { %s2670_s11 = smov (%p33_p4, %s2668_s11), 0  ;;  %368 = sbr.rel (%p365_p3) target bundleno = 494 (0x1ee), region = 48 }
   0xa   : > { %s1957_s15 = sadd.s32 (!%p365_p3), 4294967295, %s1950_s12  ;;  %p459_p6 = scmp.lt.s32.totalorder (!%p365_p3), %s1950_s12, 15  ;;  %1607 = vmatprep.subr.bf16.mxu0 (!%p365_p3), %v1867_v1  ;;  %1643 = vmatprep.subr.bf16.mxu1 (!%p365_p3), %v1867_v1  ;;  %v776_v3 = vld [vmem:[%s2652_s5] sm:$0xff] (!%p365_p3)  ;;  %v777_v4 = vld [vmem:[%s2652_s5 + $0x8] sm:$0xff] (!%p365_p3)  ;;  %v1608_v5 = vpack.c.bf16 (!%p365_p3), %v1524_v2, %v1523_v0  ;;  %v1526_v8 = vld [vmem:[%s2652_s5 + $0xd8] sm:$0xff] (!%p365_p3)  ;;  %vm656_vm1 = vcmask (!%p365_p3), 1040384  }
   0xb   : > { %p442_p7 = scmp.gt.s32.totalorder (!%p365_p3), %s1957_s15, 0  ;;  %p1491_p8 = scmp.lt.s32.totalorder (!%p365_p3), %s1957_s15, 15  ;;  %v1644_v6 = vpack.c.bf16 (!%p365_p3), %v777_v4, %v776_v3  ;;  %v778_v9 = vld [vmem:[%s2652_s5 + $0x10] sm:$0xff] (!%p365_p3)  ;;  %v779_v10 = vld [vmem:[%s2652_s5 + $0x18] sm:$0xff] (!%p365_p3)  ;;  %v1611_v11 = vpack.c.bf16 (!%p365_p3), %v1526_v8, %v1525_v7  ;;  %v1527_v13 = vld [vmem:[%s2652_s5 + $0xe0] sm:$0xff] (!%p365_p3)  ;;  %vm693_vm2 = vcmask (!%p365_p3), 1046528  }
   0xc   : > { %1609 = vmatpush1.bf16.msra.mxu0 (!%p365_p3), %v1608_v5  ;;  %v1647_v12 = vpack.c.bf16 (!%p365_p3), %v779_v10, %v778_v9  ;;  %s2657_s3 = sld [smem:[#allocation2_spill]] (!%p365_p3)  ;;  %v1528_v14 = vld [vmem:[%s2652_s5 + $0xe8] sm:$0xff] (!%p365_p3)  ;;  %v780_v15 = vld [vmem:[%s2652_s5 + $0x20] sm:$0xff] (!%p365_p3)  ;;  %v1529_v17 = vld [vmem:[%s2652_s5 + $0xf0] sm:$0xff] (!%p365_p3)  ;;  %p616_p10 = scmp.gt.s32.totalorder (!%p365_p3), %s1849_s27, 0  ;;  %vm742_vm3 = vcmask (!%p365_p3), 1045504  }
   0xd   : > { %1645 = vmatpush1.bf16.msra.mxu1 (!%p365_p3), %v1644_v6  ;;  %1610 = vmatprep.subr.bf16.mxu0 (!%p365_p3), %v1867_v1  ;;  %v781_v16 = vld [vmem:[%s2652_s5 + $0x28] sm:$0xff] (!%p365_p3)  ;;  %v1614_v18 = vpack.c.bf16 (!%p365_p3), %v1528_v14, %v1527_v13  ;;  %v1530_v20 = vld [vmem:[%s2652_s5 + $0xf8] sm:$0xff] (!%p365_p3)  ;;  %v782_v21 = vld [vmem:[%s2652_s5 + $0x30] sm:$0xff] (!%p365_p3)  ;;  %vm767_vm4 = vcmask (!%p365_p3), 523264   ;;  %p621_p11 = scmp.lt.s32.totalorder (!%p365_p3), %s1849_s27, 1  ;;  %p1596_p12 = scmp.ne.s32.totalorder (!%p365_p3), %s1849_s27, 0 }
   0xe   : > { %1646 = vmatprep.subr.bf16.mxu1 (!%p365_p3), %v1867_v1  ;;  %v1650_v19 = vpack.c.bf16 (!%p365_p3), %v781_v16, %v780_v15  ;;  %v783_v22 = vld [vmem:[%s2652_s5 + $0x38] sm:$0xff] (!%p365_p3)  ;;  %v2042_v24 = vld [vmem:[%s2652_s5 + $0x100] sm:$0xff] (!%p365_p3)  ;;  %v2047_v25 = vld [vmem:[%s2652_s5 + $0x108] sm:$0xff] (!%p365_p3)  ;;  %v1617_v28 = vpack.c.bf16 (!%p365_p3), %v1530_v20, %v1529_v17 }
   0xf   : > { %v784_v29 = vld [vmem:[%s2652_s5 + $0x40] sm:$0xff] (!%p365_p3)  ;;  %v785_v30 = vld [vmem:[%s2652_s5 + $0x48] sm:$0xff] (!%p365_p3)  ;;  %v1653_v35 = vpack.c.bf16 (!%p365_p3), %v783_v22, %v782_v21  ;;  %v1620_v36 = vpack.c.bf16 (!%p365_p3), %v2047_v25, %v2042_v24  ;;  %v1533_v52 = vld [vmem:[%s2652_s5 + $0x110] sm:$0xff] (!%p365_p3) }
  0x10   : > { %s2672_s28 = smov (!%p444_p5, %s1853_s28), 1  ;;  %1612 = vmatpush1.bf16.msra.mxu0 %v1611_v11  ;;  %v1656_v57 = vpack.c.bf16 %v785_v30, %v784_v29  ;;  %v1534_v58 = vld [vmem:[%s2652_s5 + $0x118] sm:$0xff]  ;;  %v786_v59 = vld [vmem:[%s2652_s5 + $0x50] sm:$0xff]  ;;  %v1535_v9 = vld [vmem:[%s2652_s5 + $0x120] sm:$0xff]  ;;  %vm1244_vm6 = vcmask (!%p1596_p12), 517120  }
  0x11   : > { %s443_s17 = scalar_select %p442_p7, %s1957_s15, 0  ;;  %1648 = vmatpush1.bf16.msra.mxu1 %v1647_v12  ;;  %1613 = vmatprep.subr.bf16.mxu0 %v1867_v1  ;;  %v787_v63 = vld [vmem:[%s2652_s5 + $0x58] sm:$0xff]  ;;  %v1623_v7 = vpack.c.bf16 %v1534_v58, %v1533_v52  ;;  %v1536_v12 = vld [vmem:[%s2652_s5 + $0x128] sm:$0xff]  ;;  %v788_v13 = vld [vmem:[%s2652_s5 + $0x60] sm:$0xff] }
  0x12   : > { %s1995_s20 = sshll.u32 %s2672_s28, 4  ;;  %s484_s23 = scalar_lea.vmem %s2657_s3, %s2672_s28  ;;  %1649 = vmatprep.subr.bf16.mxu1 %v1867_v1  ;;  %v1659_v8 = vpack.c.bf16 %v787_v63, %v786_v59  ;;  %v789_v14 = vld [vmem:[%s2652_s5 + $0x68] sm:$0xff]  ;;  %v1626_v16 = vpack.c.bf16 %v1536_v12, %v1535_v9  ;;  %v790_v20 = vld [vmem:[%s2652_s5 + $0x70] sm:$0xff]  ;;  %v791_v21 = vld [vmem:[%s2652_s5 + $0x78] sm:$0xff] }
  0x13   : > { %s2674_s17 = smov (!%p1491_p8, %s443_s17), 15  ;;  %s487_s3 = scalar_lea.vmem %s2651_s4, %s2672_s28  ;;  %v2035_v23 = vld [vmem:[%s484_s23] ss:$0 sm:$0xff]  ;;  %v1662_v17 = vpack.c.bf16 %v789_v14, %v788_v13  ;;  %v1546_v14 = vld [vmem:[%s2652_s5 + $0x178] sm:$0xff] }
  0x14   : > { %s460_s18 = scalar_select %p459_p6, %s1950_s12, 15  ;;  %v2061_v27 = vld [vmem:[%s487_s3] ss:$0 sm:$0xff]  ;;  %1615 = vmatpush1.bf16.msra.mxu0 %v1614_v18  ;;  %v1537_v18 = vld [vmem:[%s2652_s5 + $0x130] sm:$0xff] }
  0x15   : > { %s449_s22 = sadd.s32 %s2674_s17, %s1995_s20  ;;  %s1510_s24 = sshll.u32 %s2672_s28, 1  ;;  %1651 = vmatpush1.bf16.msra.mxu1 %v1650_v19  ;;  %1616 = vmatprep.subr.bf16.mxu0 %v1867_v1  ;;  %v1538_v19 = vld [vmem:[%s2652_s5 + $0x138] sm:$0xff] }
  0x16   : > { %s1497_s17 = sshll.u32 %s449_s22, 3  ;;  %s462_s21 = sadd.s32 %s1995_s20, %s460_s18  ;;  %1652 = vmatprep.subr.bf16.mxu1 %v1867_v1  ;;  %v1629_v25 = vpack.c.bf16 %v1538_v19, %v1537_v18 }
  0x17   : > { %s451_s18 = scalar_lea.vmem %s2647_s0, %s1497_s17  ;;  %s2052_s23 = sshll.u32 %s462_s21, 3 }
  0x18   : > { %s2058_s19 = scalar_lea.vmem %s2648_s1, %s2052_s23  ;;  %v502_v26 = vld [vmem:[%s451_s18] sm:$0xff]  ;;  %s2072_s28 = scalar_lea.vmem %s2655_s8, %s1510_s24  ;;  %1618 = vmatpush1.bf16.msra.mxu0 %v1617_v28 }
  0x19   : > { %v503_v31 = vld [vmem:[%s2058_s19] sm:$0xff]  ;;  %v520_v32 = vmul.f32 %v2035_v23, %v502_v26  ;;  %v504_v33 = vld [vmem:[%s2058_s19 + $0x8] sm:$0xff]  ;;  %v505_v34 = vld [vmem:[%s2058_s19 + $0x10] sm:$0xff]  ;;  %s1606_s3 = sadd.s32 8, %s1950_s12  ;;  %1654 = vmatpush1.bf16.msra.mxu1 %v1653_v35  ;;  %1619 = vmatprep.subr.bf16.mxu0 %v1867_v1  ;;  %v1665_v26 = vpack.c.bf16 %v791_v21, %v790_v20  ;;  %s2592_s15 = scalar_lea.vmem %s2654_s7, %s2052_s23 }
  0x1a   : > { %v535_v37 = vmul.f32 %v2035_v23, %v503_v31  ;;  %v536_v38 = vmul.f32 %v2035_v23, %v504_v33  ;;  %v537_v39 = vmul.f32 %v2035_v23, %v505_v34  ;;  %v506_v40 = vld [vmem:[%s2058_s19 + $0x18] sm:$0xff]  ;;  %v507_v41 = vld [vmem:[%s2058_s19 + $0x20] sm:$0xff]  ;;  %v508_v42 = vld [vmem:[%s2058_s19 + $0x28] sm:$0xff]  ;;  %p2106_p9 = scmp.lt.s32.totalorder %s1606_s3, 15  ;;  %1655 = vmatprep.subr.bf16.mxu1 %v1867_v1 }
  0x1b   : > { %v2090_v43 = vadd.f32 %v2061_v27, %v520_v32  ;;  %v538_v44 = vmul.f32 %v2035_v23, %v506_v40  ;;  %v539_v45 = vmul.f32 %v2035_v23, %v507_v41  ;;  %v540_v46 = vmul.f32 %v2035_v23, %v508_v42  ;;  %v509_v47 = vld [vmem:[%s2058_s19 + $0x30] sm:$0xff]  ;;  %v510_v56 = vld [vmem:[%s2058_s19 + $0x38] sm:$0xff]  ;;  %v1539_v28 = vld [vmem:[%s2652_s5 + $0x140] sm:$0xff]  ;;  %s2218_s22 = scalar_select %p616_p10, 1, 0 }
  0x1c   : > { %v2097_v48 = vadd.f32 %v2061_v27, %v535_v37  ;;  %v2100_v49 = vadd.f32 %v2061_v27, %v536_v38  ;;  %v2103_v50 = vadd.f32 %v2061_v27, %v537_v39  ;;  %v541_v51 = vmul.f32 %v2035_v23, %v509_v47  ;;  %s2676_s3 = smov (!%p2106_p9, %s1606_s3), 15  ;;  %1621 = vmatpush1.bf16.msra.mxu0 %v1620_v36  ;;  %v1540_v31 = vld [vmem:[%s2652_s5 + $0x148] sm:$0xff]  ;;  %v792_v32 = vld [vmem:[%s2652_s5 + $0x80] sm:$0xff]  ;;  %v794_v47 = vld [vmem:[%s2652_s5 + $0x90] sm:$0xff] }
  0x1d   : > { %v1513_v53 = vmul.f32 -1.442695, %v2090_v43  ;;  %v2115_v54 = vadd.f32 %v2061_v27, %v538_v44  ;;  %v2118_v55 = vadd.f32 %v2061_v27, %v539_v45  ;;  %v2130_v62 = vadd.f32 %v2061_v27, %v540_v46  ;;  %s2678_s3 = smov (!%p2106_p9, %s2676_s3), 15  ;;  %1657 = vmatpush1.bf16.msra.mxu1 %v1656_v57  ;;  %1622 = vmatprep.subr.bf16.mxu0 %v1867_v1  ;;  %v793_v33 = vld [vmem:[%s2652_s5 + $0x88] sm:$0xff]  ;;  %v1541_v44 = vld [vmem:[%s2652_s5 + $0x150] sm:$0xff] }
  0x1e   : > { %v1514_v60 = vmul.f32 -1.442695, %v2097_v48  ;;  %v1515_v61 = vmul.f32 -1.442695, %v2100_v49  ;;  %v1516_v0 = vmul.f32 -1.442695, %v2103_v50  ;;  %v2143_v4 = vadd.f32 %v2061_v27, %v541_v51  ;;  %s475_s13 = sadd.s32 %s1995_s20, %s2678_s3  ;;  %1658 = vmatprep.subr.bf16.mxu1 %v1867_v1 }
  0x1f   : > { %1787 = vpow2.f32 %v1513_v53  ;;  %v1517_v2 = vmul.f32 -1.442695, %v2115_v54  ;;  %v1518_v3 = vmul.f32 -1.442695, %v2118_v55  ;;  %v542_v5 = vmul.f32 %v2035_v23, %v510_v56  ;;  %s1506_s24 = sshll.u32 %s475_s13, 3  ;;  %v795_v51 = vld [vmem:[%s2652_s5 + $0x98] sm:$0xff] }
  0x20   : > { %1789 = vpow2.f32 %v1514_v60  ;;  %v1519_v6 = vmul.f32 -1.442695, %v2130_v62  ;;  %v1520_v10 = vmul.f32 -1.442695, %v2143_v4  ;;  %s477_s25 = scalar_lea.vmem %s2649_s2, %s1506_s24  ;;  %1624 = vmatpush1.bf16.msra.mxu0 %v1623_v7  ;;  %v1632_v41 = vpack.c.bf16 %v1540_v31, %v1539_v28  ;;  %s1868_s24 = smov 64  }
  0x21   : > { %1791 = vpow2.f32 %v1515_v61  ;;  %v2154_v11 = vadd.f32 %v2061_v27, %v542_v5  ;;  %1660 = vmatpush1.bf16.msra.mxu1 %v1659_v8  ;;  %1625 = vmatprep.subr.bf16.mxu0 %v1867_v1  ;;  %v511_v22 = vld [vmem:[%s477_s25] sm:$0xff]  ;;  %v1668_v42 = vpack.c.bf16 %v793_v33, %v792_v32  ;;  %v1671_v63 = vpack.c.bf16 %v795_v51, %v794_v47  ;;  %v797_v5 = vld [vmem:[%s2652_s5 + $0xa8] sm:$0xff]  ;;  %s622_s20 = scalar_select %p621_p11, 1, 0 }
  0x22   : > { %1793 = vpow2.f32 %v1516_v0  ;;  %1661 = vmatprep.subr.bf16.mxu1 %v1867_v1  ;;  %v607_v36 = vmul.f32 %v2035_v23, %v511_v22  ;;  %v1542_v23 = vld [vmem:[%s2652_s5 + $0x158] sm:$0xff]  ;;  %v1543_v0 = vld [vmem:[%s2652_s5 + $0x160] sm:$0xff] }
  0x23   : > { %1795 = vpow2.f32 %v1517_v2  ;;  %v1521_v15 = vmul.f32 -1.442695, %v2154_v11  ;;  %v1635_v61 = vpack.c.bf16 %v1542_v23, %v1541_v44 }
  0x24   : > { %1797 = vpow2.f32 %v1518_v3  ;;  %1627 = vmatpush1.bf16.msra.mxu0 %v1626_v16  ;;  %v2221_v56 = vadd.f32 %v2061_v27, %v607_v36  ;;  %v1544_v27 = vld [vmem:[%s2652_s5 + $0x168] sm:$0xff]  ;;  %v796_v3 = vld [vmem:[%s2652_s5 + $0xa0] sm:$0xff]  ;;  %v799_v16 = vld [vmem:[%s2652_s5 + $0xb8] sm:$0xff] }
  0x25   : > { %1799 = vpow2.f32 %v1519_v6  ;;  %1663 = vmatpush1.bf16.msra.mxu1 %v1662_v17  ;;  %1628 = vmatprep.subr.bf16.mxu0 %v1867_v1  ;;  %v618_v6 = vstv %s2218_s22  ;;  %v1638_v8 = vpack.c.bf16 %v1544_v27, %v1543_v0  ;;  %v1674_v9 = vpack.c.bf16 %v797_v5, %v796_v3 }
  0x26   : > { %1801 = vpow2.f32 %v1520_v10  ;;  %1664 = vmatprep.subr.bf16.mxu1 %v1867_v1  ;;  %v1522_v7 = vmul.f32 -1.442695, %v2221_v56  ;;  %v1545_v10 = vld [vmem:[%s2652_s5 + $0x170] sm:$0xff]  ;;  %vm2242_vm0 = vcmp.eq.s32.totalorder %v618_v6, 1 }
  0x27   : > { %1803 = vpow2.f32 %v1521_v15  ;;  %v798_v15 = vld [vmem:[%s2652_s5 + $0xb0] sm:$0xff] }
  0x28   : > { %1630 = vmatpush1.bf16.msra.mxu0 %v1629_v25  ;;  %v1641_v25 = vpack.c.bf16 %v1546_v14, %v1545_v10 }
  0x29   : > { %v1788_v24 = vpop.eup %1787  ;;  %1666 = vmatpush1.bf16.msra.mxu1 %v1665_v26  ;;  %1631 = vmatprep.subr.bf16.mxu0 %v1867_v1  ;;  %v1677_v26 = vpack.c.bf16 %v799_v16, %v798_v15 }
  0x2a   : > { %v1790_v29 = vpop.eup %1789  ;;  %v531_v30 = vadd.f32 1.0, %v1788_v24  ;;  %1667 = vmatprep.subr.bf16.mxu1 %v1867_v1 }
  0x2b   : > { %v1792_v34 = vpop.eup %1791  ;;  %v575_v35 = vadd.f32 1.0, %v1790_v29 }
  0x2c   : > { %v1794_v37 = vpop.eup %1793  ;;  %1805 = vrcp.f32 %v531_v30  ;;  %v576_v38 = vadd.f32 1.0, %v1792_v34  ;;  %1633 = vmatpush1.bf16.msra.mxu0 %v1632_v41 }
  0x2d   : > { %v1796_v39 = vpop.eup %1795  ;;  %1807 = vrcp.f32 %v575_v35  ;;  %v577_v40 = vadd.f32 1.0, %v1794_v37  ;;  %1669 = vmatpush1.bf16.msra.mxu1 %v1668_v42  ;;  %1634 = vmatprep.subr.bf16.mxu0 %v1867_v1 }
  0x2e   : > { %v1798_v45 = vpop.eup %1797  ;;  %1809 = vrcp.f32 %v576_v38  ;;  %v578_v46 = vadd.f32 1.0, %v1796_v39  ;;  %1670 = vmatprep.subr.bf16.mxu1 %v1867_v1 }
  0x2f   : > { %v1800_v52 = vpop.eup %1799  ;;  %1811 = vrcp.f32 %v577_v40  ;;  %v579_v53 = vadd.f32 1.0, %v1798_v45 }
  0x30   : > { %v1802_v57 = vpop.eup %1801  ;;  %1813 = vrcp.f32 %v578_v46  ;;  %v580_v58 = vadd.f32 1.0, %v1800_v52  ;;  %1636 = vmatpush1.bf16.msra.mxu0 %v1635_v61 }
  0x31   : > { %v1804_v59 = vpop.eup %1803  ;;  %v581_v60 = vadd.f32 1.0, %v1802_v57  ;;  %1815 = vrcp.f32 %v579_v53  ;;  %1672 = vmatpush1.bf16.msra.mxu1 %v1671_v63  ;;  %1637 = vmatprep.subr.bf16.mxu0 %v1867_v1 }
  0x32   : > { %v582_v2 = vadd.f32 1.0, %v1804_v59  ;;  %1817 = vrcp.f32 %v580_v58  ;;  %1673 = vmatprep.subr.bf16.mxu1 %v1867_v1 }
  0x33   : > { %1819 = vrcp.f32 %v581_v60 }
  0x34   : > { %1821 = vrcp.f32 %v582_v2  ;;  %1639 = vmatpush1.bf16.msra.mxu0 %v1638_v8 }
  0x35   : > { %1823 = vpow2.f32 %v1522_v7  ;;  %1675 = vmatpush1.bf16.msra.mxu1 %v1674_v9  ;;  %1640 = vmatprep.subr.bf16.mxu0 %v1867_v1 }
  0x36   : > { %v1806_v12 = vpop.eup %1805  ;;  %1676 = vmatprep.subr.bf16.mxu1 %v1867_v1 }
  0x37   : > { %v1808_v17 = vpop.eup %1807  ;;  %v534_v18 = vmul.f32 %v1806_v12, %v2090_v43 }
  0x38   : > { %v1810_v19 = vpop.eup %1809  ;;  %v599_v20 = vmul.f32 %v1808_v17, %v2097_v48  ;;  %1642 = vmatpush1.bf16.msra.mxu0 %v1641_v25 }
  0x39   : > { %v1812_v21 = vpop.eup %1811  ;;  %v620_v22 = vsel %vm2242_vm0, %v534_v18, 0.0  ;;  %v600_v24 = vmul.f32 %v1810_v19, %v2100_v49  ;;  %1678 = vmatpush1.bf16.msra.mxu1 %v1677_v26  ;;  %1679 = vmatprep.subr.bf16.mxu0 %v1867_v1 }
  0x3a   : > { %v1814_v28 = vpop.eup %1813  ;;  %v636_v29 = vrot.slane %v620_v22, 7  ;;  %v637_v30 = vrot.slane %v599_v20, 7  ;;  %v601_v43 = vmul.f32 %v1812_v21, %v2103_v50  ;;  %1715 = vmatprep.subr.bf16.mxu1 %v1867_v1 }
  0x3b   : > { %v638_v48 = vrot.slane %v600_v24, 7  ;;  %v602_v31 = vmul.f32 %v1814_v28, %v2115_v54  ;;  %v1816_v50 = vpop.eup %1815 }
  0x3c   : > { %v2267_v32 = vsel %vm656_vm1, 0.0, %v636_v29  ;;  %v2270_v49 = vsel %vm656_vm1, 0.0, %v637_v30  ;;  %v2273_v33 = vsel %vm656_vm1, %v636_v29, 0.0  ;;  %v2276_v34 = vsel %vm656_vm1, %v637_v30, 0.0  ;;  %v1818_v38 = vpop.eup %1817 }
  0x3d   : > { %v694_v35 = vrot.slane %v2267_v32, 1  ;;  %v695_v36 = vrot.slane %v2273_v33, 1  ;;  %v697_v37 = vrot.slane %v2270_v49, 1  ;;  %v698_v54 = vrot.slane %v2276_v34, 1  ;;  %v1820_v44 = vpop.eup %1819 }
  0x3e   : > { %v2283_v39 = vsel %vm656_vm1, 0.0, %v638_v48  ;;  %v2286_v40 = vsel %vm656_vm1, %v638_v48, 0.0  ;;  %v639_v41 = vrot.slane %v601_v43, 7  ;;  %v640_v42 = vrot.slane %v602_v31, 7  ;;  %v1822_v51 = vpop.eup %1821 }
  0x3f   : > { %v696_v45 = vsel %vm693_vm2, %v694_v35, %v695_v36  ;;  %v699_v46 = vsel %vm693_vm2, %v697_v37, %v698_v54  ;;  %v700_v23 = vrot.slane %v2283_v39, 1  ;;  %v701_v47 = vrot.slane %v2286_v40, 1  ;;  %v1824_v59 = vpop.eup %1823 }
  0x40   : > { %v1782_v52 = vpack.i.bf16 %v699_v46, %v696_v45  ;;  %v2295_v53 = vsel %vm656_vm1, 0.0, %v639_v41  ;;  %v2298_v57 = vsel %vm656_vm1, %v639_v41, 0.0  ;;  %v2301_v58 = vsel %vm656_vm1, 0.0, %v640_v42 }
  0x41   : > { %v702_v60 = vsel %vm693_vm2, %v700_v23, %v701_v47  ;;  %v703_v61 = vrot.slane %v2295_v53, 1  ;;  %v704_v63 = vrot.slane %v2298_v57, 1  ;;  %v753_v0 = vrot.slane %v2298_v57, 2 }
  0x42   : > { %1783 = vrot.lane.b32.xlu0 %v1782_v52, %s1868_s24  ;;  %v671_v2 = vsel %vm656_vm1, %v640_v42, 0.0  ;;  %v706_v27 = vrot.slane %v2301_v58, 1  ;;  %v603_v3 = vmul.f32 %v1816_v50, %v2118_v55  ;;  %v604_v5 = vmul.f32 %v1818_v38, %v2130_v62 }
  0x43   : > { %v705_v6 = vsel %vm693_vm2, %v703_v61, %v704_v63  ;;  %v707_v7 = vrot.slane %v671_v2, 1  ;;  %v605_v8 = vmul.f32 %v1820_v44, %v2143_v4  ;;  %v606_v9 = vmul.f32 %v1822_v51, %v2154_v11 }
  0x44   : > { %724 = vrot.lane.b32.xlu1 %v705_v6, %s1868_s24  ;;  %v641_v10 = vrot.slane %v603_v3, 7  ;;  %v642_v12 = vrot.slane %v604_v5, 7  ;;  %v612_v13 = vadd.f32 1.0, %v1824_v59  ;;  %v746_v14 = vrot.slane %v2270_v49, 2 }
  0x45   : > { %v708_v15 = vsel %vm693_vm2, %v706_v27, %v707_v7  ;;  %v643_v16 = vrot.slane %v605_v8, 7  ;;  %v644_v55 = vrot.slane %v606_v9, 7  ;;  %v747_v62 = vrot.slane %v2276_v34, 2 }
  0x46   : > { %722 = vrot.lane.b32.xlu0 %v702_v60, %s1868_s24  ;;  %v2321_v17 = vsel %vm656_vm1, 0.0, %v641_v10  ;;  %v672_v4 = vsel %vm656_vm1, %v641_v10, 0.0  ;;  %v2325_v11 = vsel %vm656_vm1, 0.0, %v642_v12  ;;  %v673_v18 = vsel %vm656_vm1, %v642_v12, 0.0 }
  0x47   : > { %v709_v19 = vrot.slane %v2321_v17, 1  ;;  %v710_v20 = vrot.slane %v672_v4, 1  ;;  %v712_v21 = vrot.slane %v2325_v11, 1  ;;  %v713_v22 = vrot.slane %v673_v18, 1 }
  0x48   : > { %726 = vrot.lane.b32.xlu1 %v708_v15, %s1868_s24  ;;  %v2332_v24 = vsel %vm656_vm1, 0.0, %v643_v16  ;;  %v674_v25 = vsel %vm656_vm1, %v643_v16, 0.0  ;;  %v2336_v26 = vsel %vm656_vm1, 0.0, %v644_v55  ;;  %v675_v28 = vsel %vm656_vm1, %v644_v55, 0.0 }
  0x49   : > { %v711_v29 = vsel %vm693_vm2, %v709_v19, %v710_v20  ;;  %v714_v30 = vsel %vm693_vm2, %v712_v21, %v713_v22  ;;  %v715_v43 = vrot.slane %v2332_v24, 1  ;;  %v716_v48 = vrot.slane %v674_v25, 1  ;;  %v1565_v22 = vld [vmem:[%s2652_s5 + $0x190] sm:$0xff] }
  0x4a   : > { %728 = vrot.lane.b32.xlu0 %v711_v29, %s1868_s24  ;;  %v802_v31 = vrot.slane %v2336_v26, 1  ;;  %v803_v34 = vrot.slane %v675_v28, 1  ;;  %1825 = vrcp.f32 %v612_v13  ;;  %v2346_v50 = vsel %vm742_vm3, %v746_v14, %v747_v62  ;;  %v1563_v62 = vld [vmem:[%s2652_s5 + $0x180] sm:$0xff] }
  0x4b   : > { %v717_v35 = vsel %vm693_vm2, %v715_v43, %v716_v48  ;;  %1547 = vmatprep.mubr.msk.f32.mxu0 %vm767_vm4, %v2346_v50  ;;  %v743_v36 = vrot.slane %v2267_v32, 2  ;;  %v744_v37 = vrot.slane %v2273_v33, 2  ;;  %v749_v54 = vrot.slane %v2283_v39, 2 }
  0x4c   : > { %730 = vrot.lane.b32.xlu1 %v714_v30, %s1868_s24  ;;  %v750_v38 = vrot.slane %v2286_v40, 2  ;;  %v804_v41 = vsel %vm693_vm2, %v802_v31, %v803_v34  ;;  %v752_v44 = vrot.slane %v2295_v53, 2  ;;  %v755_v45 = vrot.slane %v2301_v58, 2 }
  0x4d   : > { %v745_v42 = vsel %vm742_vm3, %v743_v36, %v744_v37  ;;  %v756_v46 = vrot.slane %v671_v2, 2  ;;  %v758_v47 = vrot.slane %v2321_v17, 2  ;;  %v759_v51 = vrot.slane %v672_v4, 2  ;;  %v1564_v4 = vld [vmem:[%s2652_s5 + $0x188] sm:$0xff] }
  0x4e   : > { %732 = vrot.lane.b32.xlu0 %v717_v35, %s1868_s24  ;;  %1555 = vmatprep.mubr.msk.f32.mxu1 %vm767_vm4, %v745_v42  ;;  %v2364_v33 = vsel %vm742_vm3, %v749_v54, %v750_v38  ;;  %v2368_v40 = vsel %vm742_vm3, %v752_v44, %v753_v0  ;;  %v623_v52 = vstv %s622_s20  ;;  %v761_v60 = vrot.slane %v2325_v11, 2  ;;  %v1570_v35 = vld [vmem:[%s2652_s5 + $0x1b8] sm:$0xff]  ;;  %v1571_v54 = vld [vmem:[%s2652_s5 + $0x1c0] sm:$0xff] }
  0x4f   : > { %v2372_v23 = vsel %vm742_vm3, %v755_v45, %v756_v46  ;;  %v2376_v57 = vsel %vm742_vm3, %v758_v47, %v759_v51  ;;  %vm624_vm5 = vcmp.eq.s32.totalorder %v623_v52, 1  ;;  %v762_v61 = vrot.slane %v673_v18, 2  ;;  %v1572_v38 = vld [vmem:[%s2652_s5 + $0x1c8] sm:$0xff]  ;;  %v1573_v44 = vld [vmem:[%s2652_s5 + $0x1d0] sm:$0xff]  ;;  %v1574_v45 = vld [vmem:[%s2652_s5 + $0x1d8] sm:$0xff] }
  0x50   : > { %805 = vrot.lane.b32.xlu1 %v804_v41, %s1868_s24  ;;  %v764_v3 = vrot.slane %v2332_v24, 2  ;;  %v765_v5 = vrot.slane %v674_v25, 2  ;;  %v809_v12 = vrot.slane %v675_v28, 2  ;;  %v1680_v21 = vpack.c.bf16 %v1564_v4, %v1563_v62  ;;  %v1566_v25 = vld [vmem:[%s2652_s5 + $0x198] sm:$0xff]  ;;  %v1575_v51 = vld [vmem:[%s2652_s5 + $0x1e0] sm:$0xff]  ;;  %v1576_v52 = vld [vmem:[%s2652_s5 + $0x1e8] sm:$0xff] }
  0x51   : > { %v2381_v0 = vsel %vm742_vm3, %v761_v60, %v762_v61  ;;  %v1683_v31 = vpack.c.bf16 %v1566_v25, %v1565_v22  ;;  %v1577_v61 = vld [vmem:[%s2652_s5 + $0x1f0] sm:$0xff] }
  0x52   : > { %v2389_v8 = vsel %vm742_vm3, %v764_v3, %v765_v5  ;;  %v1579_v3 = vld [vmem:[%s2652_s5 + $0x200] sm:$0xff]  ;;  %v1580_v5 = vld [vmem:[%s2652_s5 + $0x208] sm:$0xff] }
  0x54   : > { %v1826_v59 = vpop.eup %1825 }
  0x55   : > { %v615_v63 = vmul.f32 %v1826_v59, %v2221_v56  ;;  %v808_v56 = vrot.slane %v2336_v26, 2 }
  0x57   : > { %v625_v2 = vsel %vm624_vm5, %v615_v63, 0.0  ;;  %v2396_v14 = vsel %vm742_vm3, %v808_v56, %v809_v12  ;;  %v1578_v63 = vld [vmem:[%s2652_s5 + $0x1f8] sm:$0xff]  ;;  %v1583_v56 = vld [vmem:[%s2652_s5 + $0x220] sm:$0xff]  ;;  %v1584_v12 = vld [vmem:[%s2652_s5 + $0x228] sm:$0xff] }
  0x58   : > { %v645_v27 = vrot.slane %v625_v2, 7 }
  0x5a   : > { %v2385_v6 = vsel %vm656_vm1, 0.0, %v645_v27  ;;  %v676_v7 = vsel %vm656_vm1, %v645_v27, 0.0 }
  0x5b   : > { %v1067_v9 = vrot.slane %v2385_v6, 1  ;;  %v1068_v10 = vrot.slane %v676_v7, 1  ;;  %v1073_v15 = vrot.slane %v2385_v6, 2  ;;  %v1074_v16 = vrot.slane %v676_v7, 2  ;;  %v1581_v7 = vld [vmem:[%s2652_s5 + $0x210] sm:$0xff] }
  0x5d   : > { %v1069_v13 = vsel %vm693_vm2, %v1067_v9, %v1068_v10  ;;  %v2400_v55 = vsel %vm742_vm3, %v1073_v15, %v1074_v16  ;;  %v1582_v9 = vld [vmem:[%s2652_s5 + $0x218] sm:$0xff] }
  0x5e   : > { %1070 = vrot.lane.b32.xlu0 %v1069_v13, %s1868_s24  ;;  %v1707_v10 = vpack.c.bf16 %v1582_v9, %v1581_v7  ;;  %v1586_v13 = vld [vmem:[%s2652_s5 + $0x238] sm:$0xff] }
  0xb4   : > { %v1784_v18 = vpop.permute.xlu0 %1783 }
  0xb5   : > { %v1786_v19 = vunpack.i.h.bf16 %v1784_v18  ;;  %v1785_v20 = vunpack.i.l.bf16 %v1784_v18 }
  0xb6   : > { %v725_v43 = vpop.permute.xlu1 %724 }
  0xb7   : > { %v769_v28 = vsel %vm767_vm4, %v2270_v49, %v1786_v19  ;;  %v768_v29 = vsel %vm767_vm4, %v2267_v32, %v1785_v20  ;;  %v1567_v32 = vld [vmem:[%s2652_s5 + $0x1a0] sm:$0xff]  ;;  %v1568_v49 = vld [vmem:[%s2652_s5 + $0x1a8] sm:$0xff]  ;;  %v2437_v34 = vsel %vm767_vm4, %v2295_v53, %v725_v43 }
  0xb8   : > { %918 = vmatmul.mubr.f32.vlgmr.msra.gmra.mrb[0].mxu0 %v769_v28  ;;  %1025 = vmatmul.mubr.f32.vlgmr.msra.gmra.mrb[0].mxu1 %v768_v29  ;;  %v723_v30 = vpop.permute.xlu0 %722 }
  0xb9   : > { %1681 = vmatpush1.bf16.msra.mxu0 %v1680_v21  ;;  %1727 = vmatpush1.bf16.msra.mxu1 %v1680_v21  ;;  %v2420_v48 = vsel %vm767_vm4, %v2283_v39, %v723_v30  ;;  %v1686_v39 = vpack.c.bf16 %v1568_v49, %v1567_v32 }
  0xba   : > { %1548 = vmatprep.mubr.msk.f32.mxu0 %vm767_vm4, %v2364_v33  ;;  %1556 = vmatprep.mubr.msk.f32.mxu1 %vm767_vm4, %v2346_v50  ;;  %v1569_v50 = vld [vmem:[%s2652_s5 + $0x1b0] sm:$0xff]  ;;  %v727_v36 = vpop.permute.xlu1 %726 }
  0xbb   : > { %1682 = vmatprep.subr.bf16.mxu0 %v1867_v1  ;;  %1716 = vmatprep.subr.bf16.mxu1 %v1867_v1  ;;  %v1689_v53 = vpack.c.bf16 %v1570_v35, %v1569_v50  ;;  %v2455_v37 = vsel %vm767_vm4, %v2301_v58, %v727_v36  ;;  %v1692_v58 = vpack.c.bf16 %v1572_v38, %v1571_v54 }
  0xbc   : > { %923 = vmatmul.mubr.f32.gmra.mrb[2].mxu0 %v2420_v48  ;;  %1030 = vmatmul.mubr.f32.gmra.mrb[2].mxu1 %v769_v28  ;;  %v729_v41 = vpop.permute.xlu0 %728 }
  0xbd   : > { %1684 = vmatpush1.bf16.msra.mxu0 %v1683_v31  ;;  %1728 = vmatpush1.bf16.msra.mxu1 %v1683_v31  ;;  %v2473_v42 = vsel %vm767_vm4, %v2321_v17, %v729_v41  ;;  %v1695_v17 = vpack.c.bf16 %v1574_v45, %v1573_v44 }
  0xbe   : > { %1685 = vmatprep.subr.bf16.mxu0 %v1867_v1  ;;  %1717 = vmatprep.subr.bf16.mxu1 %v1867_v1  ;;  %v731_v46 = vpop.permute.xlu1 %730 }
  0xbf   : > { %1557 = vmatprep.mubr.msk.f32.mxu1 %vm767_vm4, %v2364_v33  ;;  %1549 = vmatprep.mubr.msk.f32.mxu0 %vm767_vm4, %v2368_v40  ;;  %v2491_v47 = vsel %vm767_vm4, %v2325_v11, %v731_v46  ;;  %v1698_v11 = vpack.c.bf16 %v1576_v52, %v1575_v51  ;;  %v1595_v52 = vld [vmem:[%s2653_s6] ss:$0 sm:$0xff] }
  0xc0   : > { %1035 = vmatmul.mubr.f32.gmra.mrb[4].mxu1 %v2420_v48  ;;  %928 = vmatmul.mubr.f32.gmra.mrb[4].mxu0 %v2437_v34  ;;  %v733_v59 = vpop.permute.xlu0 %732 }
  0xc1   : > { %1687 = vmatpush1.bf16.msra.mxu0 %v1686_v39  ;;  %1729 = vmatpush1.bf16.msra.mxu1 %v1686_v39  ;;  %v775_v60 = vsel %vm767_vm4, %v2332_v24, %v733_v59  ;;  %v1701_v24 = vpack.c.bf16 %v1578_v63, %v1577_v61 }
  0xc2   : > { %1688 = vmatprep.subr.bf16.mxu0 %v1867_v1  ;;  %1718 = vmatprep.subr.bf16.mxu1 %v1867_v1  ;;  %v806_v2 = vpop.permute.xlu1 %805 }
  0xc3   : > { %1558 = vmatprep.mubr.msk.f32.mxu1 %vm767_vm4, %v2368_v40  ;;  %1550 = vmatprep.mubr.msk.f32.mxu0 %vm767_vm4, %v2372_v23  ;;  %v811_v27 = vsel %vm767_vm4, %v2336_v26, %v806_v2  ;;  %v1704_v26 = vpack.c.bf16 %v1580_v5, %v1579_v3 }
  0xc4   : > { %1040 = vmatmul.mubr.f32.gmra.mrb[6].mxu1 %v2437_v34  ;;  %933 = vmatmul.mubr.f32.gmra.mrb[6].mxu0 %v2455_v37 }
  0xc5   : > { %1690 = vmatpush1.bf16.msra.mxu0 %v1689_v53  ;;  %1730 = vmatpush1.bf16.msra.mxu1 %v1689_v53 }
  0xc6   : > { %1691 = vmatprep.subr.bf16.mxu0 %v1867_v1  ;;  %1719 = vmatprep.subr.bf16.mxu1 %v1867_v1 }
  0xc7   : > { %1559 = vmatprep.mubr.msk.f32.mxu1 %vm767_vm4, %v2372_v23  ;;  %1551 = vmatprep.mubr.msk.f32.mxu0 %vm767_vm4, %v2376_v57 }
  0xc8   : > { %1045 = vmatmul.mubr.f32.gmra.mrb[8].mxu1 %v2455_v37  ;;  %938 = vmatmul.mubr.f32.gmra.mrb[8].mxu0 %v2473_v42 }
  0xc9   : > { %1693 = vmatpush1.bf16.msra.mxu0 %v1692_v58  ;;  %1731 = vmatpush1.bf16.msra.mxu1 %v1692_v58 }
  0xca   : > { %1694 = vmatprep.subr.bf16.mxu0 %v1867_v1  ;;  %1720 = vmatprep.subr.bf16.mxu1 %v1867_v1 }
  0xcb   : > { %1560 = vmatprep.mubr.msk.f32.mxu1 %vm767_vm4, %v2376_v57  ;;  %1552 = vmatprep.mubr.msk.f32.mxu0 %vm767_vm4, %v2381_v0 }
  0xcc   : > { %1050 = vmatmul.mubr.f32.gmra.mrb[10].mxu1 %v2473_v42  ;;  %943 = vmatmul.mubr.f32.gmra.mrb[10].mxu0 %v2491_v47 }
  0xcd   : > { %1696 = vmatpush1.bf16.msra.mxu0 %v1695_v17  ;;  %1732 = vmatpush1.bf16.msra.mxu1 %v1695_v17 }
  0xce   : > { %1697 = vmatprep.subr.bf16.mxu0 %v1867_v1  ;;  %1721 = vmatprep.subr.bf16.mxu1 %v1867_v1 }
  0xcf   : > { %1561 = vmatprep.mubr.msk.f32.mxu1 %vm767_vm4, %v2381_v0  ;;  %1553 = vmatprep.mubr.msk.f32.mxu0 %vm767_vm4, %v2389_v8 }
  0xd0   : > { %1055 = vmatmul.mubr.f32.gmra.mrb[12].mxu1 %v2491_v47  ;;  %948 = vmatmul.mubr.f32.gmra.mrb[12].mxu0 %v775_v60 }
  0xd1   : > { %1699 = vmatpush1.bf16.msra.mxu0 %v1698_v11  ;;  %1733 = vmatpush1.bf16.msra.mxu1 %v1698_v11 }
  0xd2   : > { %1700 = vmatprep.subr.bf16.mxu0 %v1867_v1  ;;  %1722 = vmatprep.subr.bf16.mxu1 %v1867_v1 }
  0xd3   : > { %1562 = vmatprep.mubr.msk.f32.mxu1 %vm767_vm4, %v2389_v8  ;;  %1554 = vmatprep.mubr.msk.f32.mxu0 %vm767_vm4, %v2396_v14 }
  0xd4   : > { %1060 = vmatmul.mubr.f32.gmra.mrb[14].mxu1 %v775_v60  ;;  %953 = vmatmul.mubr.f32.gmra.mrb[14].mxu0 %v811_v27 }
  0xd5   : > { %1702 = vmatpush1.bf16.msra.mxu0 %v1701_v24  ;;  %1734 = vmatpush1.bf16.msra.mxu1 %v1701_v24 }
  0xd6   : > { %1703 = vmatprep.subr.bf16.mxu0 %v1867_v1  ;;  %1723 = vmatprep.subr.bf16.mxu1 %v1867_v1 }
  0xd7   : > { %1587 = vmatprep.mubr.msk.f32.mxu0 %vm767_vm4, %v2364_v33  ;;  %1591 = vmatprep.mubr.msk.f32.mxu1 %vm767_vm4, %v2381_v0  ;;  %v1710_v33 = vpack.c.bf16 %v1584_v12, %v1583_v56  ;;  %v1585_v0 = vld [vmem:[%s2652_s5 + $0x230] sm:$0xff] }
  0xd8   : > { %v1713_v15 = vpack.c.bf16 %v1586_v13, %v1585_v0 }
  0xd9   : > { %1705 = vmatpush1.bf16.msra.mxu0 %v1704_v26  ;;  %1735 = vmatpush1.bf16.msra.mxu1 %v1704_v26 }
  0xda   : > { %1706 = vmatprep.subr.bf16.mxu0 %v1867_v1  ;;  %1724 = vmatprep.subr.bf16.mxu1 %v1867_v1 }
  0xdd   : > { %1708 = vmatpush1.bf16.msra.mxu0 %v1707_v10  ;;  %1736 = vmatpush1.bf16.msra.mxu1 %v1707_v10 }
  0xde   : > { %1709 = vmatprep.subr.bf16.mxu0 %v1867_v1  ;;  %1725 = vmatprep.subr.bf16.mxu1 %v1867_v1 }
  0xe1   : > { %1711 = vmatpush1.bf16.msra.mxu0 %v1710_v33  ;;  %1737 = vmatpush1.bf16.msra.mxu1 %v1710_v33 }
  0xe2   : > { %1712 = vmatprep.subr.bf16.mxu0 %v1867_v1  ;;  %1726 = vmatprep.subr.bf16.mxu1 %v1867_v1  ;;  %v1071_v1 = vpop.permute.xlu0 %1070 }
  0xe5   : > { %1714 = vmatpush1.bf16.msra.mxu0 %v1713_v15  ;;  %1738 = vmatpush1.bf16.msra.mxu1 %v1713_v15 }
  0xe8   : > { %1169 = vmatmul.mubr.f32.vlgmr.msra.gmra.mrb[16].mxu0 %v2420_v48  ;;  %1189 = vmatmul.mubr.f32.vlgmr.msra.gmra.mrb[16].mxu1 %v2491_v47 }
  0xe9   : > { %1588 = vmatprep.mubr.msk.f32.mxu0 %vm767_vm4, %v2368_v40  ;;  %1592 = vmatprep.mubr.msk.f32.mxu1 %vm767_vm4, %v2389_v8  ;;  %v1076_v40 = vsel %vm767_vm4, %v2385_v6, %v1071_v1 }
  0xec   : > { %1174 = vmatmul.mubr.f32.gmra.mrb[18].mxu0 %v2437_v34  ;;  %1194 = vmatmul.mubr.f32.gmra.mrb[18].mxu1 %v775_v60 }
  0xed   : > { %1589 = vmatprep.mubr.msk.f32.mxu0 %vm767_vm4, %v2372_v23  ;;  %1593 = vmatprep.mubr.msk.f32.mxu1 %vm767_vm4, %v2396_v14 }
  0xf0   : > { %1179 = vmatmul.mubr.f32.gmra.mrb[20].mxu0 %v2455_v37  ;;  %1199 = vmatmul.mubr.f32.gmra.mrb[20].mxu1 %v811_v27 }
  0xf1   : > { %1590 = vmatprep.mubr.msk.f32.mxu0 %vm767_vm4, %v2376_v57  ;;  %1594 = vmatprep.mubr.msk.f32.mxu1 %vm767_vm4, %v2400_v55 }
  0xf4   : > { %1184 = vmatmul.mubr.f32.gmra.mrb[22].mxu0 %v2473_v42  ;;  %1204 = vmatmul.mubr.f32.gmra.mrb[22].mxu1 %v1076_v40 }
 0x18b   : > { %v919_v23 = vpop.f32.mrb[0].mxu0  ;;  %v1026_v8 = vpop.f32.mrb[0].mxu1 }
 0x18c   : > { %v1027_v16 = vadd.f32 %v1026_v8, %v919_v23  ;;  %v921_v14 = vpop.f32.mrb[1].mxu0  ;;  %v1028_v62 = vpop.f32.mrb[1].mxu1 }
 0x18f   : > { %v924_v4 = vpop.f32.mrb[2].mxu0  ;;  %v1031_v18 = vpop.f32.mrb[2].mxu1 }
 0x190   : > { %v1032_v19 = vadd.f32 %v1031_v18, %v924_v4  ;;  %v1033_v20 = vpop.f32.mrb[3].mxu1  ;;  %v926_v21 = vpop.f32.mrb[3].mxu0 }
 0x191   : > { %v1869_v21 = vmov (!%p1596_p12), 0.0  }
 0x192   : > { %1245 = vst.msk [vmem:[%s2072_s28] sm:$0x3] (!%p1596_p12), %vm1244_vm6, %v1869_v21 }
 0x193   : > { %v1036_v57 = vpop.f32.mrb[4].mxu1  ;;  %v929_v22 = vpop.f32.mrb[4].mxu0 }
 0x194   : > { %v1037_v25 = vadd.f32 %v1036_v57, %v929_v22  ;;  %v1038_v55 = vpop.f32.mrb[5].mxu1  ;;  %v931_v28 = vpop.f32.mrb[5].mxu0 }
 0x197   : > { %v1041_v29 = vpop.f32.mrb[6].mxu1  ;;  %v934_v6 = vpop.f32.mrb[6].mxu0 }
 0x198   : > { %v1042_v30 = vadd.f32 %v1041_v29, %v934_v6  ;;  %v1043_v43 = vpop.f32.mrb[7].mxu1  ;;  %v936_v48 = vpop.f32.mrb[7].mxu0 }
 0x19b   : > { %v1046_v31 = vpop.f32.mrb[8].mxu1  ;;  %v939_v32 = vpop.f32.mrb[8].mxu0 }
 0x19c   : > { %v1047_v49 = vadd.f32 %v1046_v31, %v939_v32  ;;  %v1048_v39 = vpop.f32.mrb[9].mxu1  ;;  %v941_v34 = vpop.f32.mrb[9].mxu0 }
 0x19f   : > { %v1051_v50 = vpop.f32.mrb[10].mxu1  ;;  %v944_v35 = vpop.f32.mrb[10].mxu0 }
 0x1a0   : > { %v1052_v36 = vadd.f32 %v1051_v50, %v944_v35  ;;  %v1053_v53 = vpop.f32.mrb[11].mxu1  ;;  %v946_v37 = vpop.f32.mrb[11].mxu0 }
 0x1a3   : > { %v1056_v54 = vpop.f32.mrb[12].mxu1  ;;  %v949_v38 = vpop.f32.mrb[12].mxu0 }
 0x1a4   : > { %v1057_v41 = vadd.f32 %v1056_v54, %v949_v38  ;;  %v1058_v58 = vpop.f32.mrb[13].mxu1  ;;  %v951_v42 = vpop.f32.mrb[13].mxu0 }
 0x1a7   : > { %v1061_v44 = vpop.f32.mrb[14].mxu1  ;;  %v954_v45 = vpop.f32.mrb[14].mxu0 }
 0x1a8   : > { %v1062_v46 = vadd.f32 %v1061_v44, %v954_v45  ;;  %v1063_v17 = vpop.f32.mrb[15].mxu1  ;;  %v956_v47 = vpop.f32.mrb[15].mxu0 }
 0x1bb   : > { %v1170_v51 = vpop.f32.mrb[16].mxu0  ;;  %v1190_v59 = vpop.f32.mrb[16].mxu1 }
 0x1bc   : > { %v1209_v11 = vadd.f32 %v1170_v51, %v1027_v16  ;;  %v1213_v60 = vadd.f32 %v1190_v59, %v1047_v49  ;;  %v1172_v61 = vpop.f32.mrb[17].mxu0  ;;  %v1192_v63 = vpop.f32.mrb[17].mxu1 }
 0x1be   : > { %v1224_v2 = vadd.f32 %v1595_v52, %v1209_v11  ;;  %v1228_v24 = vadd.f32 %v1595_v52, %v1213_v60 }
 0x1bf   : > { %v1175_v27 = vpop.f32.mrb[18].mxu0  ;;  %v1195_v3 = vpop.f32.mrb[18].mxu1 }
 0x1c0   : > { %1232 = vst.msk [vmem:[%s2592_s15] sm:$0xff] %vm767_vm4, %v1224_v2  ;;  %1236 = vst.msk [vmem:[%s2592_s15 + $0x20] sm:$0xff] %vm767_vm4, %v1228_v24  ;;  %v1210_v5 = vadd.f32 %v1175_v27, %v1032_v19  ;;  %v1214_v26 = vadd.f32 %v1195_v3, %v1052_v36  ;;  %v1177_v7 = vpop.f32.mrb[19].mxu0  ;;  %v1197_v9 = vpop.f32.mrb[19].mxu1 }
 0x1c2   : > { %v1225_v10 = vadd.f32 %v1595_v52, %v1210_v5  ;;  %v1229_v56 = vadd.f32 %v1595_v52, %v1214_v26 }
 0x1c3   : > { %v1180_v12 = vpop.f32.mrb[20].mxu0  ;;  %v1200_v33 = vpop.f32.mrb[20].mxu1 }
 0x1c4   : > { %1233 = vst.msk [vmem:[%s2592_s15 + $0x8] sm:$0xff] %vm767_vm4, %v1225_v10  ;;  %1237 = vst.msk [vmem:[%s2592_s15 + $0x28] sm:$0xff] %vm767_vm4, %v1229_v56  ;;  %v1211_v0 = vadd.f32 %v1180_v12, %v1037_v25  ;;  %v1215_v13 = vadd.f32 %v1200_v33, %v1057_v41  ;;  %v1182_v15 = vpop.f32.mrb[21].mxu0  ;;  %v1202_v1 = vpop.f32.mrb[21].mxu1 }
 0x1c6   : > { %v1226_v40 = vadd.f32 %v1595_v52, %v1211_v0  ;;  %v1230_v23 = vadd.f32 %v1595_v52, %v1215_v13  ;;  %1243 = sbr.rel (%p1596_p12) target bundleno = 461 (0x1cd), region = 52 }
 0x1c7   : > { %v1185_v8 = vpop.f32.mrb[22].mxu0  ;;  %v1205_v16 = vpop.f32.mrb[22].mxu1 }
 0x1c8   : > { %1234 = vst.msk [vmem:[%s2592_s15 + $0x10] sm:$0xff] %vm767_vm4, %v1226_v40  ;;  %1238 = vst.msk [vmem:[%s2592_s15 + $0x30] sm:$0xff] %vm767_vm4, %v1230_v23  ;;  %v1212_v14 = vadd.f32 %v1185_v8, %v1042_v30  ;;  %v1216_v62 = vadd.f32 %v1205_v16, %v1062_v46  ;;  %v1187_v4 = vpop.f32.mrb[23].mxu0  ;;  %v1207_v18 = vpop.f32.mrb[23].mxu1 }
 0x1ca   : > { %v1227_v19 = vadd.f32 %v1595_v52, %v1212_v14  ;;  %v1231_v20 = vadd.f32 %v1595_v52, %v1216_v62 }
 0x1cc   : > { %1235 = vst.msk [vmem:[%s2592_s15 + $0x18] sm:$0xff] %vm767_vm4, %v1227_v19  ;;  %1239 = vst.msk [vmem:[%s2592_s15 + $0x38] sm:$0xff] %vm767_vm4, %v1231_v20 }
 0x1cd PF: > { %v1247_v57 = vsel %vm767_vm4, %v1224_v2, 0.0  ;;  %v1248_v22 = vsel %vm767_vm4, %v1225_v10, 0.0  ;;  %v1250_v25 = vsel %vm767_vm4, %v1226_v40, 0.0  ;;  %v1252_v28 = vsel %vm767_vm4, %v1227_v19, 0.0  ;;  %v1271_v15 = vld [vmem:[%s2072_s28 + $0x1] sm:$0x1] }
 0x1ce   : > { %v1249_v55 = vadd.f32 %v1248_v22, %v1247_v57  ;;  %v1272_v29 = vmul.f32 %v1224_v2, %v1224_v2  ;;  %v1273_v6 = vmul.f32 %v1225_v10, %v1225_v10  ;;  %v1274_v43 = vmul.f32 %v1226_v40, %v1226_v40  ;;  %v1246_v10 = vld [vmem:[%s2072_s28] sm:$0x1] }
 0x1cf   : > { %v1275_v48 = vmul.f32 %v1227_v19, %v1227_v19  ;;  %v1254_v31 = vsel %vm767_vm4, %v1228_v24, 0.0  ;;  %v1276_v39 = vmul.f32 %v1228_v24, %v1228_v24  ;;  %v1256_v35 = vsel %vm767_vm4, %v1229_v56, 0.0 }
 0x1d0   : > { %v1251_v30 = vadd.f32 %v1250_v25, %v1249_v55  ;;  %v1280_v32 = vsel %vm767_vm4, %v1272_v29, 0.0  ;;  %v1281_v34 = vsel %vm767_vm4, %v1273_v6, 0.0  ;;  %v1283_v50 = vsel %vm767_vm4, %v1274_v43, 0.0 }
 0x1d1   : > { %v1282_v36 = vadd.f32 %v1281_v34, %v1280_v32  ;;  %v1277_v37 = vmul.f32 %v1229_v56, %v1229_v56  ;;  %v1285_v54 = vsel %vm767_vm4, %v1275_v48, 0.0  ;;  %v1258_v38 = vsel %vm767_vm4, %v1230_v23, 0.0 }
 0x1d2   : > { %v1253_v49 = vadd.f32 %v1252_v28, %v1251_v30  ;;  %v1278_v42 = vmul.f32 %v1230_v23, %v1230_v23  ;;  %v1287_v44 = vsel %vm767_vm4, %v1276_v39, 0.0  ;;  %v1260_v45 = vsel %vm767_vm4, %v1231_v20, 0.0 }
 0x1d3   : > { %v1284_v41 = vadd.f32 %v1283_v50, %v1282_v36  ;;  %v1279_v47 = vmul.f32 %v1231_v20, %v1231_v20  ;;  %v1289_v51 = vsel %vm767_vm4, %v1277_v37, 0.0  ;;  %vm1269_vm7 = vcmask 516096  }
 0x1d4   : > { %v1255_v53 = vadd.f32 %v1254_v31, %v1253_v49  ;;  %v1291_v11 = vsel %vm767_vm4, %v1278_v42, 0.0 }
 0x1d5   : > { %v1286_v46 = vadd.f32 %v1285_v54, %v1284_v41  ;;  %v1293_v63 = vsel %vm767_vm4, %v1279_v47, 0.0 }
 0x1d6   : > { %v1257_v58 = vadd.f32 %v1256_v35, %v1255_v53 }
 0x1d7   : > { %v1288_v52 = vadd.f32 %v1287_v44, %v1286_v46 }
 0x1d8   : > { %v1259_v17 = vadd.f32 %v1258_v38, %v1257_v58 }
 0x1d9   : > { %v1290_v60 = vadd.f32 %v1289_v51, %v1288_v52 }
 0x1da   : > { %v1261_v59 = vadd.f32 %v1260_v45, %v1259_v17 }
 0x1db   : > { %v1292_v2 = vadd.f32 %v1291_v11, %v1290_v60 }
 0x1dc   : > { %v1262_v61 = vrot.slane %v1261_v59, 4 }
 0x1dd   : > { %v1294_v27 = vadd.f32 %v1293_v63, %v1292_v2 }
 0x1de   : > { %v1263_v24 = vadd.f32 %v1262_v61, %v1261_v59 }
 0x1df   : > { %v1295_v5 = vrot.slane %v1294_v27, 4 }
 0x1e0   : > { %v1264_v3 = vrot.slane %v1263_v24, 2 }
 0x1e1   : > { %v1296_v7 = vadd.f32 %v1295_v5, %v1294_v27 }
 0x1e2   : > { %v1265_v26 = vadd.f32 %v1264_v3, %v1263_v24 }
 0x1e3   : > { %v1297_v56 = vrot.slane %v1296_v7, 2 }
 0x1e4   : > { %v1266_v9 = vrot.slane %v1265_v26, 1 }
 0x1e5   : > { %v1298_v33 = vadd.f32 %v1297_v56, %v1296_v7 }
 0x1e6   : > { %v1267_v12 = vadd.f32 %v1266_v9, %v1265_v26 }
 0x1e7   : > { %v1299_v13 = vrot.slane %v1298_v33, 1 }
 0x1e8   : > { %v1268_v0 = vadd.f32 %v1267_v12, %v1246_v10 }
 0x1e9   : > { %v1300_v1 = vadd.f32 %v1299_v13, %v1298_v33 }
 0x1ea   : > { %1270 = vst.msk [vmem:[%s2072_s28] sm:$0x1] %vm1269_vm7, %v1268_v0 }
 0x1eb   : > { %v1301_v40 = vadd.f32 %v1300_v1, %v1271_v15 }
 0x1ed   : > { %1302 = vst.msk [vmem:[%s2072_s28 + $0x1] sm:$0x1] %vm1269_vm7, %v1301_v40 }
 0x1ee PF: > { %s19_s9 = sadd.s32 1, %s1865_s9   ;;  %s2661_s27 = smov %s1857_s29 }
 0x1ef   : > { %p16_p13 = scmp.ge.s32.totalorder %s19_s9, 6   ;;  %s2662_s28 = smov %s1861_s30 }
 0x1f0   : > { %s2663_s29 = smov %s2666_s10  ;;  %s2664_s30 = smov %s2670_s11 }
 0x1f1   :  { %18 = sbr.rel (!%p16_p13) target bundleno = 3 (0x3), region = 108 }

// kernel: up_block_fwd.10
= control target key start
LH: loop header
LB: loop body
LE: loop exit
PB: predicated region body
PF: predicated region fallthrough
CT: control target
= control target key end

     0   :  { %s2277_s17 = smov 0   ;;  %s2279_s18 = smov 0   ;;  %s3036_s0 = inlined_call_operand.vmem [shape: f32[2,16,8,64], index: 0, kind: input, shape index: {}, may-alias: {0,1,2}]   ;;  %s3037_s1 = inlined_call_operand.vmem [shape: f32[2,16,8,64], index: 1, kind: input, shape index: {}, may-alias: {0,1,2}]   ;;  %s3038_s2 = inlined_call_operand.vmem [shape: f32[2,16,8,64], index: 2, kind: input, shape index: {}, may-alias: {0,1,2}]   ;;  %s3039_s3 = inlined_call_operand.vmem [shape: f32[2,1,64], index: 3, kind: input, shape index: {}]   ;;  %s3040_s4 = inlined_call_operand.vmem [shape: f32[2,1,64], index: 4, kind: input, shape index: {}]   ;;  %s3041_s5 = inlined_call_operand.vmem [shape: f32[3,192,64], index: 5, kind: input, shape index: {}]   ;;  %s3042_s6 = inlined_call_operand.vmem [shape: f32[1,64], index: 6, kind: input, shape index: {}]   ;;  %s3043_s7 = inlined_call_operand.vmem [shape: f32[2,16,8,32], index: 7, kind: input, shape index: {}]   ;;  %s3044_s8 = inlined_call_operand.vmem [shape: f32[32,64], index: 8, kind: input, shape index: {}]   ;;  %s3045_s9 = inlined_call_operand.vmem [shape: f32[1,64], index: 9, kind: input, shape index: {}]   ;;  %s3046_s10 = inlined_call_operand.vmem [shape: f32[2,16,8,64], index: 10, kind: output, shape index: {0}]   ;;  %s3047_s11 = inlined_call_operand.vmem [shape: f32[2,2,64], index: 11, kind: output, shape index: {1}]  }
   0x1   :  { %3048 = sst [smem:[#allocation4_spill]] %s3039_s3  ;;  %s2281_s19 = smov 0  }
   0x2   :  { %s2283_s20 = smov 0   ;;  %s2285_s21 = smov 0  }
   0x3 LB: > { %s31_s22 = sadd.s32 1, %s2204_s19  ;;  %s34_s23 = sadd.s32 1, %s2208_s20  ;;  %s2212_s21 = sphi %s2285_s21, %s22_s21   ;;  %s2208_s20 = sphi %s2283_s20, %s3060_s20   ;;  %s2204_s19 = sphi %s2281_s19, %s3059_s19   ;;  %s2200_s18 = sphi %s2279_s18, %s3058_s18   ;;  %s2196_s17 = sphi %s2277_s17, %s3057_s17  }
   0x4   : > { %p32_p0 = scmp.ge.s32.totalorder %s31_s22, 2  ;;  %p1788_p1 = scmp.ge.s32.totalorder %s2212_s21, 1 }
   0x5   : > { %p456_p2 = scmp.lt.s32.totalorder %s2212_s21, 5 }
   0x6   : > { %s3062_s22 = smov (%p32_p0, %s31_s22), 0  ;;  %s3064_s23 = smov (!%p32_p0, %s34_s23), %s2208_s20 }
   0x7   : > { %3049 = sst [smem:[#allocation2_spill]] %s3062_s22  ;;  %p457_p3 = pnand %p1788_p1, %p456_p2 }
   0x8   : > { %p36_p4 = scmp.ge.s32.totalorder %s3064_s23, 2  ;;  %s2310_s24 = sshll.u32 (!%p457_p3), %s2196_s17, 3  ;;  %v1826_v0 = vld [vmem:[%s3041_s5 + $0xc0] sm:$0xff] (!%p457_p3)  ;;  %v2214_v1 = vmov (!%p457_p3), 0.0|0.0   ;;  %v1827_v2 = vld [vmem:[%s3041_s5 + $0xc8] sm:$0xff] (!%p457_p3)  ;;  %v1828_v3 = vld [vmem:[%s3041_s5 + $0xd0] sm:$0xff] (!%p457_p3) }
   0x9   : > { %460 = sbr.rel (%p457_p3) target bundleno = 506 (0x1fa), region = 60  ;;  %p551_p5 = scmp.lt.s32.totalorder (!%p457_p3), %s2200_s18, 1  ;;  %1951 = vmatprep.subr.bf16.mxu0 (!%p457_p3), %v2214_v1  ;;  %1987 = vmatprep.subr.bf16.mxu1 (!%p457_p3), %v2214_v1  ;;  %v1829_v4 = vld [vmem:[%s3041_s5 + $0xd8] sm:$0xff] (!%p457_p3)  ;;  %v1952_v5 = vpack.c.bf16 (!%p457_p3), %v1827_v2, %v1826_v0  ;;  %v893_v6 = vld [vmem:[%s3041_s5] sm:$0xff] (!%p457_p3)  ;;  %v894_v7 = vld [vmem:[%s3041_s5 + $0x8] sm:$0xff] (!%p457_p3)  ;;  %vm773_vm0 = vcmask (!%p457_p3), 1040384  }
   0xa   : > { %s3066_s23 = smov (%p36_p4, %s3064_s23), 0  ;;  %p566_p6 = scmp.lt.s32.totalorder (!%p457_p3), %s2310_s24, 15  ;;  %v1988_v8 = vpack.c.bf16 (!%p457_p3), %v894_v7, %v893_v6  ;;  %v895_v9 = vld [vmem:[%s3041_s5 + $0x10] sm:$0xff] (!%p457_p3)  ;;  %v896_v10 = vld [vmem:[%s3041_s5 + $0x18] sm:$0xff] (!%p457_p3)  ;;  %v1955_v11 = vpack.c.bf16 (!%p457_p3), %v1829_v4, %v1828_v3  ;;  %v1830_v12 = vld [vmem:[%s3041_s5 + $0xe0] sm:$0xff] (!%p457_p3)  ;;  %vm810_vm1 = vcmask (!%p457_p3), 1046528  }
   0xb   : > { %3050 = sst [smem:[#allocation3_spill]] %s3066_s23  ;;  %s3051_s3 = sld [smem:[#allocation4_spill]] (!%p457_p3)  ;;  %1953 = vmatpush1.bf16.msra.mxu0 (!%p457_p3), %v1952_v5  ;;  %v1831_v13 = vld [vmem:[%s3041_s5 + $0xe8] sm:$0xff] (!%p457_p3)  ;;  %v1991_v14 = vpack.c.bf16 (!%p457_p3), %v896_v10, %v895_v9  ;;  %v897_v15 = vld [vmem:[%s3041_s5 + $0x20] sm:$0xff] (!%p457_p3)  ;;  %v1832_v19 = vld [vmem:[%s3041_s5 + $0xf0] sm:$0xff] (!%p457_p3)  ;;  %vm859_vm3 = vcmask (!%p457_p3), 1045504  }
   0xc   : > { %1954 = vmatprep.subr.bf16.mxu0 (!%p457_p3), %v2214_v1  ;;  %1989 = vmatpush1.bf16.msra.mxu1 (!%p457_p3), %v1988_v8  ;;  %v898_v16 = vld [vmem:[%s3041_s5 + $0x28] sm:$0xff] (!%p457_p3)  ;;  %v1833_v20 = vld [vmem:[%s3041_s5 + $0xf8] sm:$0xff] (!%p457_p3)  ;;  %v1958_v24 = vpack.c.bf16 (!%p457_p3), %v1831_v13, %v1830_v12  ;;  %v899_v36 = vld [vmem:[%s3041_s5 + $0x30] sm:$0xff] (!%p457_p3)  ;;  %s1918_s23 = sadd.s32 (!%p457_p3), 8, %s2310_s24  ;;  %p733_p10 = scmp.gt.s32.totalorder (!%p457_p3), %s2196_s17, 0  ;;  %vm884_vm4 = vcmask (!%p457_p3), 523264  }
   0xd   : > { %1990 = vmatprep.subr.bf16.mxu1 (!%p457_p3), %v2214_v1  ;;  %v1994_v25 = vpack.c.bf16 (!%p457_p3), %v898_v16, %v897_v15  ;;  %v900_v37 = vld [vmem:[%s3041_s5 + $0x38] sm:$0xff] (!%p457_p3)  ;;  %v1961_v46 = vpack.c.bf16 (!%p457_p3), %v1833_v20, %v1832_v19  ;;  %v1834_v47 = vld [vmem:[%s3041_s5 + $0x100] sm:$0xff] (!%p457_p3)  ;;  %v1835_v51 = vld [vmem:[%s3041_s5 + $0x108] sm:$0xff] (!%p457_p3)  ;;  %p2464_p9 = scmp.lt.s32.totalorder (!%p457_p3), %s1918_s23, 15  ;;  %p738_p11 = scmp.lt.s32.totalorder (!%p457_p3), %s2196_s17, 1  ;;  %vm1361_vm6 = vcmask (!%p457_p3), 261120  }
   0xe   : > { %v1997_v52 = vpack.c.bf16 (!%p457_p3), %v900_v37, %v899_v36  ;;  %v901_v56 = vld [vmem:[%s3041_s5 + $0x40] sm:$0xff] (!%p457_p3)  ;;  %v902_v57 = vld [vmem:[%s3041_s5 + $0x48] sm:$0xff] (!%p457_p3)  ;;  %v1964_v61 = vpack.c.bf16 (!%p457_p3), %v1835_v51, %v1834_v47  ;;  %v1836_v63 = vld [vmem:[%s3041_s5 + $0x110] sm:$0xff] (!%p457_p3)  ;;  %p1908_p12 = scmp.ne.s32.totalorder (!%p457_p3), %s2196_s17, 0 }
   0xf   : > { %1956 = vmatpush1.bf16.msra.mxu0 (!%p457_p3), %v1955_v11  ;;  %v1837_v0 = vld [vmem:[%s3041_s5 + $0x118] sm:$0xff] (!%p457_p3)  ;;  %v2000_v2 = vpack.c.bf16 (!%p457_p3), %v902_v57, %v901_v56  ;;  %v903_v5 = vld [vmem:[%s3041_s5 + $0x50] sm:$0xff] (!%p457_p3)  ;;  %v1838_v10 = vld [vmem:[%s3041_s5 + $0x120] sm:$0xff] (!%p457_p3) }
  0x10   : > { %s3068_s18 = smov (!%p551_p5, %s2200_s18), 1  ;;  %1957 = vmatprep.subr.bf16.mxu0 %v2214_v1  ;;  %1992 = vmatpush1.bf16.msra.mxu1 %v1991_v14  ;;  %s3072_s23 = smov (!%p2464_p9, %s1918_s23), 15  ;;  %v904_v6 = vld [vmem:[%s3041_s5 + $0x58] sm:$0xff]  ;;  %v1967_v8 = vpack.c.bf16 %v1837_v0, %v1836_v63  ;;  %v1839_v11 = vld [vmem:[%s3041_s5 + $0x128] sm:$0xff]  ;;  %v905_v13 = vld [vmem:[%s3041_s5 + $0x60] sm:$0xff] }
  0x11   : > { %s567_s26 = scalar_select %p566_p6, %s2310_s24, 15  ;;  %1993 = vmatprep.subr.bf16.mxu1 %v2214_v1  ;;  %v2003_v12 = vpack.c.bf16 %v904_v6, %v903_v5  ;;  %v906_v14 = vld [vmem:[%s3041_s5 + $0x68] sm:$0xff]  ;;  %v1970_v16 = vpack.c.bf16 %v1839_v11, %v1838_v10  ;;  %v1840_v20 = vld [vmem:[%s3041_s5 + $0x130] sm:$0xff]  ;;  %v909_v47 = vld [vmem:[%s3041_s5 + $0x80] sm:$0xff] }
  0x12   : > { %s2340_s12 = sshll.u32 %s3068_s18, 4  ;;  %s591_s14 = scalar_lea.vmem %s3051_s3, %s3068_s18  ;;  %v1843_v36 = vld [vmem:[%s3041_s5 + $0x148] sm:$0xff]  ;;  %v1845_v56 = vld [vmem:[%s3041_s5 + $0x158] sm:$0xff]  ;;  %v913_v6 = vld [vmem:[%s3041_s5 + $0xa0] sm:$0xff]  ;;  %vm1526_vm7 = vcmask (!%p1908_p12), 517120  }
  0x13   : > { %s569_s25 = sadd.s32 %s2340_s12, %s567_s26  ;;  %s594_s22 = scalar_lea.vmem %s3040_s4, %s3068_s18  ;;  %v2364_v17 = vld [vmem:[%s591_s14] ss:$0 sm:$0xff]  ;;  %1959 = vmatpush1.bf16.msra.mxu0 %v1958_v24  ;;  %v1848_v11 = vld [vmem:[%s3041_s5 + $0x170] sm:$0xff] }
  0x14   : > { %s2362_s26 = sshll.u32 %s569_s25, 3  ;;  %s1813_s27 = sshll.u32 %s3068_s18, 1  ;;  %v2378_v18 = vld [vmem:[%s594_s22] ss:$0 sm:$0xff]  ;;  %1960 = vmatprep.subr.bf16.mxu0 %v2214_v1  ;;  %1995 = vmatpush1.bf16.msra.mxu1 %v1994_v25  ;;  %v907_v25 = vld [vmem:[%s3041_s5 + $0x70] sm:$0xff] }
  0x15   : > { %s2371_s30 = scalar_lea.vmem %s3037_s1, %s2362_s26  ;;  %s2376_s13 = scalar_lea.vmem %s3047_s11, %s1813_s27  ;;  %1996 = vmatprep.subr.bf16.mxu1 %v2214_v1 }
  0x16   : > { %v620_v21 = vld [vmem:[%s2371_s30] sm:$0xff]  ;;  %s2388_s3 = sadd.s32 4294967295, %s2310_s24  ;;  %v621_v22 = vld [vmem:[%s2371_s30 + $0x8] sm:$0xff]  ;;  %v622_v23 = vld [vmem:[%s2371_s30 + $0x10] sm:$0xff]  ;;  %s3074_s23 = smov (!%p2464_p9, %s3072_s23), 15 }
  0x17   : > { %v652_v26 = vmul.f32 %v2364_v17, %v620_v21  ;;  %p549_p7 = scmp.gt.s32.totalorder %s2388_s3, 0  ;;  %p1791_p8 = scmp.lt.s32.totalorder %s2388_s3, 15  ;;  %v653_v27 = vmul.f32 %v2364_v17, %v621_v22  ;;  %v654_v28 = vmul.f32 %v2364_v17, %v622_v23  ;;  %v623_v29 = vld [vmem:[%s2371_s30 + $0x18] sm:$0xff]  ;;  %v624_v30 = vld [vmem:[%s2371_s30 + $0x20] sm:$0xff]  ;;  %v625_v31 = vld [vmem:[%s2371_s30 + $0x28] sm:$0xff]  ;;  %1962 = vmatpush1.bf16.msra.mxu0 %v1961_v46  ;;  %v2006_v22 = vpack.c.bf16 %v906_v14, %v905_v13 }
  0x18   : > { %v655_v32 = vmul.f32 %v2364_v17, %v623_v29  ;;  %v656_v33 = vmul.f32 %v2364_v17, %v624_v30  ;;  %v657_v34 = vmul.f32 %v2364_v17, %v625_v31  ;;  %v626_v35 = vld [vmem:[%s2371_s30 + $0x30] sm:$0xff]  ;;  %v627_v42 = vld [vmem:[%s2371_s30 + $0x38] sm:$0xff]  ;;  %1963 = vmatprep.subr.bf16.mxu0 %v2214_v1  ;;  %1998 = vmatpush1.bf16.msra.mxu1 %v1997_v52  ;;  %s582_s28 = sadd.s32 %s2340_s12, %s3074_s23 }
  0x19   : > { %v2413_v38 = vadd.f32 %v2378_v18, %v652_v26  ;;  %s550_s29 = scalar_select %p549_p7, %s2388_s3, 0  ;;  %v2419_v39 = vadd.f32 %v2378_v18, %v653_v27  ;;  %v2422_v40 = vadd.f32 %v2378_v18, %v654_v28  ;;  %v658_v41 = vmul.f32 %v2364_v17, %v626_v35  ;;  %1999 = vmatprep.subr.bf16.mxu1 %v2214_v1  ;;  %v1841_v21 = vld [vmem:[%s3041_s5 + $0x138] sm:$0xff]  ;;  %v1842_v35 = vld [vmem:[%s3041_s5 + $0x140] sm:$0xff] }
  0x1a   : > { %v2427_v43 = vadd.f32 %v2378_v18, %v655_v32  ;;  %v2430_v44 = vadd.f32 %v2378_v18, %v656_v33  ;;  %v2433_v45 = vadd.f32 %v2378_v18, %v657_v34  ;;  %v659_v55 = vmul.f32 %v2364_v17, %v627_v42  ;;  %v908_v26 = vld [vmem:[%s3041_s5 + $0x78] sm:$0xff] }
  0x1b   : > { %v1817_v48 = vmul.f32 -1.442695, %v2413_v38  ;;  %s3070_s29 = smov (!%p1791_p8, %s550_s29), 15  ;;  %v1818_v49 = vmul.f32 -1.442695, %v2419_v39  ;;  %v2444_v50 = vadd.f32 %v2378_v18, %v658_v41  ;;  %1965 = vmatpush1.bf16.msra.mxu0 %v1964_v61  ;;  %v1973_v32 = vpack.c.bf16 %v1841_v21, %v1840_v20  ;;  %v912_v61 = vld [vmem:[%s3041_s5 + $0x98] sm:$0xff] }
  0x1c   : > { %v1819_v53 = vmul.f32 -1.442695, %v2422_v40  ;;  %v1820_v54 = vmul.f32 -1.442695, %v2427_v43  ;;  %s556_s27 = sadd.s32 %s3070_s29, %s2340_s12  ;;  %v1821_v58 = vmul.f32 -1.442695, %v2430_v44  ;;  %v2470_v60 = vadd.f32 %v2378_v18, %v659_v55  ;;  %1966 = vmatprep.subr.bf16.mxu0 %v2214_v1  ;;  %2001 = vmatpush1.bf16.msra.mxu1 %v2000_v2 }
  0x1d   : > { %2134 = vpow2.f32 %v1817_v48  ;;  %s1797_s18 = sshll.u32 %s556_s27, 3  ;;  %v1822_v59 = vmul.f32 -1.442695, %v2433_v45  ;;  %v1823_v62 = vmul.f32 -1.442695, %v2444_v50  ;;  %2002 = vmatprep.subr.bf16.mxu1 %v2214_v1  ;;  %s1806_s27 = sshll.u32 %s582_s28, 3  ;;  %v2009_v37 = vpack.c.bf16 %v908_v26, %v907_v25 }
  0x1e   : > { %2136 = vpow2.f32 %v1818_v49  ;;  %s558_s30 = scalar_lea.vmem %s3036_s0, %s1797_s18  ;;  %v1824_v4 = vmul.f32 -1.442695, %v2470_v60  ;;  %s584_s24 = scalar_lea.vmem %s3038_s2, %s1806_s27  ;;  %v910_v48 = vld [vmem:[%s3041_s5 + $0x88] sm:$0xff]  ;;  %v1844_v55 = vld [vmem:[%s3041_s5 + $0x150] sm:$0xff] }
  0x1f   : > { %2138 = vpow2.f32 %v1819_v53  ;;  %v619_v3 = vld [vmem:[%s558_s30] sm:$0xff]  ;;  %1968 = vmatpush1.bf16.msra.mxu0 %v1967_v8  ;;  %v2012_v57 = vpack.c.bf16 %v910_v48, %v909_v47  ;;  %v1979_v0 = vpack.c.bf16 %v1845_v56, %v1844_v55  ;;  %s2569_s27 = scalar_select %p733_p10, 1, 0  ;;  %v1847_v2 = vld [vmem:[%s3041_s5 + $0x168] sm:$0xff] }
  0x20   : > { %2140 = vpow2.f32 %v1820_v54  ;;  %v637_v7 = vmul.f32 %v2364_v17, %v619_v3  ;;  %1969 = vmatprep.subr.bf16.mxu0 %v2214_v1  ;;  %2004 = vmatpush1.bf16.msra.mxu1 %v2003_v12  ;;  %v628_v29 = vld [vmem:[%s584_s24] sm:$0xff]  ;;  %v1976_v54 = vpack.c.bf16 %v1843_v36, %v1842_v35  ;;  %v1849_v12 = vld [vmem:[%s3041_s5 + $0x178] sm:$0xff]  ;;  %s2215_s24 = smov 64   ;;  %s603_s30 = scalar_lea.vmem %s3043_s7, %s2362_s26 }
  0x21   : > { %2142 = vpow2.f32 %v1821_v58  ;;  %2005 = vmatprep.subr.bf16.mxu1 %v2214_v1  ;;  %v724_v46 = vmul.f32 %v2364_v17, %v628_v29  ;;  %v735_v20 = vstv %s2569_s27  ;;  %v1985_v25 = vpack.c.bf16 %v1849_v12, %v1848_v11  ;;  %s739_s12 = scalar_select %p738_p11, 1, 0 }
  0x22   : > { %2144 = vpow2.f32 %v1822_v59  ;;  %v2499_v9 = vadd.f32 %v2378_v18, %v637_v7  ;;  %v911_v59 = vld [vmem:[%s3041_s5 + $0x90] sm:$0xff]  ;;  %v914_v7 = vld [vmem:[%s3041_s5 + $0xa8] sm:$0xff]  ;;  %vm2636_vm2 = vcmp.eq.s32.totalorder %v735_v20, 1  ;;  %s2981_s18 = scalar_lea.vmem %s3046_s10, %s2362_s26 }
  0x23   : > { %2146 = vpow2.f32 %v1823_v62  ;;  %1971 = vmatpush1.bf16.msra.mxu0 %v1970_v16  ;;  %v2558_v58 = vadd.f32 %v2378_v18, %v724_v46  ;;  %v1846_v18 = vld [vmem:[%s3041_s5 + $0x160] sm:$0xff]  ;;  %v2015_v3 = vpack.c.bf16 %v912_v61, %v911_v59  ;;  %v2018_v21 = vpack.c.bf16 %v914_v7, %v913_v6 }
  0x24   : > { %2148 = vpow2.f32 %v1824_v4  ;;  %v1816_v15 = vmul.f32 -1.442695, %v2499_v9  ;;  %1972 = vmatprep.subr.bf16.mxu0 %v2214_v1  ;;  %2007 = vmatpush1.bf16.msra.mxu1 %v2006_v22 }
  0x25   : > { %2008 = vmatprep.subr.bf16.mxu1 %v2214_v1  ;;  %v1825_v5 = vmul.f32 -1.442695, %v2558_v58 }
  0x26   : > { %2150 = vpow2.f32 %v1816_v15  ;;  %v1982_v15 = vpack.c.bf16 %v1847_v2, %v1846_v18 }
  0x27   : > { %v2135_v19 = vpop.eup %2134  ;;  %1974 = vmatpush1.bf16.msra.mxu0 %v1973_v32 }
  0x28   : > { %v2137_v23 = vpop.eup %2136  ;;  %v692_v24 = vadd.f32 1.0, %v2135_v19  ;;  %1975 = vmatprep.subr.bf16.mxu0 %v2214_v1  ;;  %2010 = vmatpush1.bf16.msra.mxu1 %v2009_v37 }
  0x29   : > { %v2139_v27 = vpop.eup %2138  ;;  %v693_v28 = vadd.f32 1.0, %v2137_v23  ;;  %2011 = vmatprep.subr.bf16.mxu1 %v2214_v1 }
  0x2a   : > { %v2141_v30 = vpop.eup %2140  ;;  %2152 = vrcp.f32 %v692_v24  ;;  %v694_v31 = vadd.f32 1.0, %v2139_v27 }
  0x2b   : > { %v2143_v33 = vpop.eup %2142  ;;  %2154 = vrcp.f32 %v693_v28  ;;  %v695_v34 = vadd.f32 1.0, %v2141_v30  ;;  %1977 = vmatpush1.bf16.msra.mxu0 %v1976_v54 }
  0x2c   : > { %v2145_v41 = vpop.eup %2144  ;;  %2156 = vrcp.f32 %v694_v31  ;;  %v696_v42 = vadd.f32 1.0, %v2143_v33  ;;  %1978 = vmatprep.subr.bf16.mxu0 %v2214_v1  ;;  %2013 = vmatpush1.bf16.msra.mxu1 %v2012_v57 }
  0x2d   : > { %v2147_v49 = vpop.eup %2146  ;;  %2158 = vrcp.f32 %v695_v34  ;;  %v697_v51 = vadd.f32 1.0, %v2145_v41  ;;  %2014 = vmatprep.subr.bf16.mxu1 %v2214_v1 }
  0x2e   : > { %v2149_v52 = vpop.eup %2148  ;;  %2160 = vrcp.f32 %v696_v42  ;;  %v698_v53 = vadd.f32 1.0, %v2147_v49 }
  0x2f   : > { %v699_v17 = vadd.f32 1.0, %v2149_v52  ;;  %2162 = vrcp.f32 %v697_v51  ;;  %1980 = vmatpush1.bf16.msra.mxu0 %v1979_v0 }
  0x30   : > { %v2151_v62 = vpop.eup %2150  ;;  %2164 = vrcp.f32 %v698_v53  ;;  %1981 = vmatprep.subr.bf16.mxu0 %v2214_v1  ;;  %2016 = vmatpush1.bf16.msra.mxu1 %v2015_v3 }
  0x31   : > { %v648_v63 = vadd.f32 1.0, %v2151_v62  ;;  %2166 = vrcp.f32 %v699_v17  ;;  %2017 = vmatprep.subr.bf16.mxu1 %v2214_v1 }
  0x33   : > { %2168 = vrcp.f32 %v648_v63  ;;  %1983 = vmatpush1.bf16.msra.mxu0 %v1982_v15 }
  0x34   : > { %v2153_v4 = vpop.eup %2152  ;;  %2170 = vpow2.f32 %v1825_v5  ;;  %1984 = vmatprep.subr.bf16.mxu0 %v2214_v1  ;;  %2019 = vmatpush1.bf16.msra.mxu1 %v2018_v21 }
  0x35   : > { %v2155_v8 = vpop.eup %2154  ;;  %v716_v10 = vmul.f32 %v2153_v4, %v2413_v38  ;;  %2020 = vmatprep.subr.bf16.mxu1 %v2214_v1 }
  0x36   : > { %v2157_v13 = vpop.eup %2156  ;;  %v717_v14 = vmul.f32 %v2155_v8, %v2419_v39  ;;  %v915_v39 = vld [vmem:[%s3041_s5 + $0xb0] sm:$0xff] }
  0x37   : > { %v2159_v16 = vpop.eup %2158  ;;  %v754_v19 = vrot.slane %v716_v10, 7  ;;  %v718_v38 = vmul.f32 %v2157_v13, %v2422_v40  ;;  %v916_v40 = vld [vmem:[%s3041_s5 + $0xb8] sm:$0xff]  ;;  %1986 = vmatpush1.bf16.msra.mxu0 %v1985_v25 }
  0x38   : > { %v2161_v22 = vpop.eup %2160  ;;  %v755_v23 = vrot.slane %v717_v14, 7  ;;  %v719_v24 = vmul.f32 %v2159_v16, %v2427_v43  ;;  %2023 = vmatprep.subr.bf16.mxu0 %v2214_v1 }
  0x39   : > { %v2606_v26 = vsel %vm773_vm0, 0.0, %v754_v19  ;;  %v2609_v27 = vsel %vm773_vm0, %v754_v19, 0.0  ;;  %v756_v28 = vrot.slane %v718_v38, 7  ;;  %v720_v43 = vmul.f32 %v2161_v22, %v2430_v44  ;;  %v2163_v29 = vpop.eup %2162 }
  0x3a   : > { %v814_v30 = vrot.slane %v2606_v26, 1  ;;  %v815_v31 = vrot.slane %v2609_v27, 1  ;;  %v2615_v32 = vsel %vm773_vm0, 0.0, %v755_v23  ;;  %v2618_v33 = vsel %vm773_vm0, %v755_v23, 0.0  ;;  %v2165_v34 = vpop.eup %2164 }
  0x3b   : > { %v817_v35 = vrot.slane %v2615_v32, 1  ;;  %v818_v36 = vrot.slane %v2618_v33, 1  ;;  %v2623_v37 = vsel %vm773_vm0, 0.0, %v756_v28  ;;  %v2021_v44 = vpack.c.bf16 %v916_v40, %v915_v39  ;;  %v2167_v48 = vpop.eup %2166 }
  0x3c   : > { %v816_v41 = vsel %vm810_vm1, %v814_v30, %v815_v31  ;;  %v2628_v42 = vsel %vm773_vm0, %v756_v28, 0.0  ;;  %v820_v46 = vrot.slane %v2623_v37, 1  ;;  %v757_v47 = vrot.slane %v719_v24, 7 }
  0x3d   : > { %837 = vrot.lane.b32.xlu0 %v816_v41, %s2215_s24  ;;  %v819_v49 = vsel %vm810_vm1, %v817_v35, %v818_v36  ;;  %v821_v51 = vrot.slane %v2628_v42, 1  ;;  %v758_v52 = vrot.slane %v720_v43, 7  ;;  %v721_v53 = vmul.f32 %v2163_v29, %v2433_v45  ;;  %v2169_v54 = vpop.eup %2168  ;;  %2022 = vmatpush1.bf16.msra.mxu1 %v2021_v44 }
  0x3e   : > { %839 = vrot.lane.b32.xlu1 %v819_v49, %s2215_s24  ;;  %v722_v55 = vmul.f32 %v2165_v34, %v2444_v50  ;;  %v651_v56 = vmul.f32 %v2169_v54, %v2499_v9  ;;  %v2645_v59 = vsel %vm773_vm0, 0.0, %v757_v47  ;;  %v2648_v61 = vsel %vm773_vm0, %v757_v47, 0.0  ;;  %2067 = vmatprep.subr.bf16.mxu1 %v2214_v1  ;;  %v2171_v3 = vpop.eup %2170 }
  0x3f   : > { %v822_v57 = vsel %vm810_vm1, %v820_v46, %v821_v51  ;;  %v2652_v45 = vsel %vm773_vm0, 0.0, %v758_v52  ;;  %v2655_v62 = vsel %vm773_vm0, %v758_v52, 0.0  ;;  %v759_v50 = vrot.slane %v721_v53, 7 }
  0x40   : > { %v760_v63 = vrot.slane %v722_v55, 7  ;;  %v737_v9 = vsel %vm2636_vm2, %v651_v56, 0.0  ;;  %v826_v0 = vrot.slane %v2652_v45, 1  ;;  %v827_v18 = vrot.slane %v2655_v62, 1 }
  0x41   : > { %v723_v2 = vmul.f32 %v2167_v48, %v2470_v60  ;;  %v753_v4 = vrot.slane %v737_v9, 7  ;;  %v823_v5 = vrot.slane %v2645_v59, 1  ;;  %v824_v7 = vrot.slane %v2648_v61, 1 }
  0x42   : > { %841 = vrot.lane.b32.xlu1 %v822_v57, %s2215_s24  ;;  %v2666_v6 = vsel %vm773_vm0, 0.0, %v760_v63  ;;  %v828_v8 = vsel %vm810_vm1, %v826_v0, %v827_v18  ;;  %v2671_v10 = vsel %vm773_vm0, 0.0, %v759_v50  ;;  %v2674_v11 = vsel %vm773_vm0, %v760_v63, 0.0 }
  0x43   : > { %v2677_v60 = vsel %vm773_vm0, 0.0, %v753_v4  ;;  %v784_v12 = vsel %vm773_vm0, %v753_v4, 0.0  ;;  %v832_v13 = vrot.slane %v2666_v6, 1  ;;  %v833_v14 = vrot.slane %v2674_v11, 1 }
  0x44   : > { %v811_v15 = vrot.slane %v2677_v60, 1  ;;  %v812_v16 = vrot.slane %v784_v12, 1  ;;  %v790_v19 = vsel %vm773_vm0, %v759_v50, 0.0  ;;  %v761_v20 = vrot.slane %v723_v2, 7 }
  0x45   : > { %v729_v38 = vadd.f32 1.0, %v2171_v3  ;;  %v863_v21 = vrot.slane %v2606_v26, 2  ;;  %v864_v22 = vrot.slane %v2609_v27, 2  ;;  %v867_v24 = vrot.slane %v2618_v33, 2 }
  0x46   : > { %845 = vrot.lane.b32.xlu1 %v828_v8, %s2215_s24  ;;  %v813_v23 = vsel %vm810_vm1, %v811_v15, %v812_v16  ;;  %v834_v25 = vsel %vm810_vm1, %v832_v13, %v833_v14  ;;  %v860_v39 = vrot.slane %v2677_v60, 2  ;;  %v829_v40 = vrot.slane %v2671_v10, 1 }
  0x47   : > { %835 = vrot.lane.b32.xlu0 %v813_v23, %s2215_s24  ;;  %v830_v28 = vrot.slane %v790_v19, 1  ;;  %2172 = vrcp.f32 %v729_v38  ;;  %v2695_v43 = vsel %vm859_vm3, %v863_v21, %v864_v22  ;;  %v825_v27 = vsel %vm810_vm1, %v823_v5, %v824_v7  ;;  %v1868_v21 = vld [vmem:[%s3041_s5 + $0x190] sm:$0xff]  ;;  %v1869_v22 = vld [vmem:[%s3041_s5 + $0x198] sm:$0xff] }
  0x48   : > { %v2699_v29 = vsel %vm773_vm0, 0.0, %v761_v20  ;;  %1850 = vmatprep.mubr.msk.f32.mxu0 %vm884_vm4, %v2695_v43  ;;  %v861_v30 = vrot.slane %v784_v12, 2  ;;  %v866_v31 = vrot.slane %v2615_v32, 2  ;;  %v792_v33 = vsel %vm773_vm0, %v761_v20, 0.0 }
  0x49   : > { %v869_v34 = vrot.slane %v2623_v37, 2  ;;  %v870_v44 = vrot.slane %v2628_v42, 2  ;;  %v831_v41 = vsel %vm810_vm1, %v829_v40, %v830_v28  ;;  %v919_v46 = vrot.slane %v2699_v29, 1  ;;  %v1870_v40 = vld [vmem:[%s3041_s5 + $0x1a0] sm:$0xff] }
  0x4a   : > { %849 = vrot.lane.b32.xlu1 %v834_v25, %s2215_s24  ;;  %v862_v35 = vsel %vm859_vm3, %v860_v39, %v861_v30  ;;  %v2711_v36 = vsel %vm859_vm3, %v866_v31, %v867_v24  ;;  %v920_v47 = vrot.slane %v792_v33, 1  ;;  %v872_v49 = vrot.slane %v2645_v59, 2  ;;  %v1872_v30 = vld [vmem:[%s3041_s5 + $0x1b0] sm:$0xff]  ;;  %v1873_v31 = vld [vmem:[%s3041_s5 + $0x1b8] sm:$0xff] }
  0x4b   : > { %843 = vrot.lane.b32.xlu0 %v825_v27, %s2215_s24  ;;  %1858 = vmatprep.mubr.msk.f32.mxu1 %vm884_vm4, %v862_v35  ;;  %v2719_v48 = vsel %vm859_vm3, %v869_v34, %v870_v44  ;;  %v873_v51 = vrot.slane %v2648_v61, 2  ;;  %v740_v52 = vstv %s739_s12  ;;  %v875_v54 = vrot.slane %v2652_v45, 2  ;;  %v1874_v35 = vld [vmem:[%s3041_s5 + $0x1c0] sm:$0xff]  ;;  %v1875_v44 = vld [vmem:[%s3041_s5 + $0x1c8] sm:$0xff] }
  0x4c   : > { %v921_v42 = vsel %vm810_vm1, %v919_v46, %v920_v47  ;;  %v876_v17 = vrot.slane %v2655_v62, 2  ;;  %vm741_vm5 = vcmp.eq.s32.totalorder %v740_v52, 1  ;;  %v878_v50 = vrot.slane %v2671_v10, 2  ;;  %v1876_v47 = vld [vmem:[%s3041_s5 + $0x1d0] sm:$0xff] }
  0x4d   : > { %v2724_v53 = vsel %vm859_vm3, %v872_v49, %v873_v51  ;;  %v879_v63 = vrot.slane %v790_v19, 2  ;;  %v881_v3 = vrot.slane %v2666_v6, 2  ;;  %v882_v4 = vrot.slane %v2674_v11, 2  ;;  %v1866_v11 = vld [vmem:[%s3041_s5 + $0x180] sm:$0xff]  ;;  %v1867_v19 = vld [vmem:[%s3041_s5 + $0x188] sm:$0xff]  ;;  %v1877_v49 = vld [vmem:[%s3041_s5 + $0x1d8] sm:$0xff] }
  0x4e   : > { %v2732_v57 = vsel %vm859_vm3, %v875_v54, %v876_v17  ;;  %v925_v8 = vrot.slane %v2699_v29, 2  ;;  %v926_v12 = vrot.slane %v792_v33, 2  ;;  %v2024_v20 = vpack.c.bf16 %v1867_v19, %v1866_v11  ;;  %v1879_v54 = vld [vmem:[%s3041_s5 + $0x1e8] sm:$0xff]  ;;  %v1360_v19 = vld [vmem:[%s3044_s8 + $0x18] sm:$0xff] }
  0x4f   : > { %847 = vrot.lane.b32.xlu0 %v831_v41, %s2215_s24  ;;  %v2737_v0 = vsel %vm859_vm3, %v878_v50, %v879_v63  ;;  %v2748_v7 = vsel %vm859_vm3, %v881_v3, %v882_v4  ;;  %v2027_v25 = vpack.c.bf16 %v1869_v22, %v1868_v21  ;;  %v2033_v34 = vpack.c.bf16 %v1873_v31, %v1872_v30  ;;  %v1885_v3 = vld [vmem:[%s3041_s5 + $0x218] sm:$0xff]  ;;  %v1886_v4 = vld [vmem:[%s3041_s5 + $0x220] sm:$0xff]  ;;  %v1351_v21 = vld [vmem:[%s603_s30 + $0x10] sm:$0xff] }
  0x50   : > { %v2753_v13 = vsel %vm859_vm3, %v925_v8, %v926_v12  ;;  %v2036_v41 = vpack.c.bf16 %v1875_v44, %v1874_v35  ;;  %v2039_v52 = vpack.c.bf16 %v1877_v49, %v1876_v47  ;;  %v1888_v12 = vld [vmem:[%s3041_s5 + $0x230] sm:$0xff] }
  0x51   : > { %v2173_v55 = vpop.eup %2172  ;;  %v1355_v22 = vld [vmem:[%s603_s30 + $0x30] sm:$0xff] }
  0x52   : > { %v732_v56 = vmul.f32 %v2173_v55, %v2558_v58 }
  0x53   : > { %922 = vrot.lane.b32.xlu0 %v921_v42, %s2215_s24 }
  0x54   : > { %v742_v61 = vsel %vm741_vm5, %v732_v56, 0.0  ;;  %v1880_v56 = vld [vmem:[%s3041_s5 + $0x1f0] sm:$0xff] }
  0x55   : > { %v762_v9 = vrot.slane %v742_v61, 7  ;;  %v1881_v61 = vld [vmem:[%s3041_s5 + $0x1f8] sm:$0xff] }
  0x56   : > { %v2045_v50 = vpack.c.bf16 %v1881_v61, %v1880_v56 }
  0x57   : > { %v2740_v18 = vsel %vm773_vm0, 0.0, %v762_v9  ;;  %v793_v62 = vsel %vm773_vm0, %v762_v9, 0.0  ;;  %v1882_v9 = vld [vmem:[%s3041_s5 + $0x200] sm:$0xff] }
  0x58   : > { %v1184_v58 = vrot.slane %v2740_v18, 1  ;;  %v1185_v2 = vrot.slane %v793_v62, 1  ;;  %v1190_v14 = vrot.slane %v2740_v18, 2  ;;  %v1191_v15 = vrot.slane %v793_v62, 2  ;;  %v1883_v62 = vld [vmem:[%s3041_s5 + $0x208] sm:$0xff] }
  0x5a   : > { %v1186_v5 = vsel %vm810_vm1, %v1184_v58, %v1185_v2  ;;  %v2757_v16 = vsel %vm859_vm3, %v1190_v14, %v1191_v15  ;;  %v2048_v58 = vpack.c.bf16 %v1883_v62, %v1882_v9  ;;  %v1884_v2 = vld [vmem:[%s3041_s5 + $0x210] sm:$0xff]  ;;  %v1358_v15 = vld [vmem:[%s3044_s8 + $0x8] sm:$0xff] }
  0x5b   : > { %1187 = vrot.lane.b32.xlu1 %v1186_v5, %s2215_s24  ;;  %v1887_v5 = vld [vmem:[%s3041_s5 + $0x228] sm:$0xff] }
  0x5c   : > { %v2054_v8 = vpack.c.bf16 %v1887_v5, %v1886_v4 }
  0xaf   : > { %v838_v38 = vpop.permute.xlu0 %837 }
  0xb0   : > { %v886_v23 = vsel %vm884_vm4, %v2606_v26, %v838_v38  ;;  %v840_v24 = vpop.permute.xlu1 %839  ;;  %v1871_v26 = vld [vmem:[%s3041_s5 + $0x1a8] sm:$0xff] }
  0xb1   : > { %1035 = vmatmul.mubr.f32.vlgmr.msra.gmra.mrb[0].mxu0 %v886_v23  ;;  %v2777_v39 = vsel %vm884_vm4, %v2615_v32, %v840_v24  ;;  %v2030_v27 = vpack.c.bf16 %v1871_v26, %v1870_v40 }
  0xb2   : > { %2025 = vmatpush1.bf16.msra.mxu0 %v2024_v20  ;;  %1851 = vmatprep.mubr.msk.f32.mxu0 %vm884_vm4, %v2711_v36 }
  0xb3   : > { %2026 = vmatprep.subr.bf16.mxu0 %v2214_v1 }
  0xb4   : > { %v842_v28 = vpop.permute.xlu1 %841 }
  0xb5   : > { %1040 = vmatmul.mubr.f32.gmra.mrb[2].mxu0 %v2777_v39  ;;  %v2791_v32 = vsel %vm884_vm4, %v2623_v37, %v842_v28 }
  0xb6   : > { %2028 = vmatpush1.bf16.msra.mxu0 %v2027_v25  ;;  %1852 = vmatprep.mubr.msk.f32.mxu0 %vm884_vm4, %v2719_v48 }
  0xb7   : > { %2029 = vmatprep.subr.bf16.mxu0 %v2214_v1 }
  0xb8   : > { %v846_v46 = vpop.permute.xlu1 %845 }
  0xb9   : > { %1045 = vmatmul.mubr.f32.gmra.mrb[4].mxu0 %v2791_v32  ;;  %v836_v33 = vpop.permute.xlu0 %835 }
  0xba   : > { %2031 = vmatpush1.bf16.msra.mxu0 %v2030_v27  ;;  %1853 = vmatprep.mubr.msk.f32.mxu0 %vm884_vm4, %v2724_v53  ;;  %v885_v37 = vsel %vm884_vm4, %v2677_v60, %v836_v33 }
  0xbb   : > { %2032 = vmatprep.subr.bf16.mxu0 %v2214_v1  ;;  %1142 = vmatmul.mubr.f32.vlgmr.msra.gmra.mrb[0].mxu1 %v885_v37 }
  0xbc   : > { %2079 = vmatpush1.bf16.msra.mxu1 %v2024_v20  ;;  %1859 = vmatprep.mubr.msk.f32.mxu1 %vm884_vm4, %v2695_v43  ;;  %v2831_v43 = vsel %vm884_vm4, %v2652_v45, %v846_v46  ;;  %v850_v55 = vpop.permute.xlu1 %849 }
  0xbd   : > { %2068 = vmatprep.subr.bf16.mxu1 %v2214_v1  ;;  %v844_v60 = vpop.permute.xlu0 %843 }
  0xbe   : > { %2034 = vmatpush1.bf16.msra.mxu0 %v2033_v34  ;;  %v2824_v51 = vsel %vm884_vm4, %v2645_v59, %v844_v60  ;;  %v1878_v59 = vld [vmem:[%s3041_s5 + $0x1e0] sm:$0xff] }
  0xbf   : > { %2035 = vmatprep.subr.bf16.mxu0 %v2214_v1  ;;  %1147 = vmatmul.mubr.f32.gmra.mrb[2].mxu1 %v886_v23  ;;  %v2042_v17 = vpack.c.bf16 %v1879_v54, %v1878_v59  ;;  %v1356_v23 = vld [vmem:[%s603_s30 + $0x38] sm:$0xff] }
  0xc0   : > { %1050 = vmatmul.mubr.f32.gmra.mrb[6].mxu0 %v2824_v51  ;;  %2080 = vmatpush1.bf16.msra.mxu1 %v2027_v25 }
  0xc1   : > { %1860 = vmatprep.mubr.msk.f32.mxu1 %vm884_vm4, %v2711_v36  ;;  %2069 = vmatprep.subr.bf16.mxu1 %v2214_v1  ;;  %v848_v42 = vpop.permute.xlu0 %847 }
  0xc2   : > { %2037 = vmatpush1.bf16.msra.mxu0 %v2036_v41  ;;  %1854 = vmatprep.mubr.msk.f32.mxu0 %vm884_vm4, %v2732_v57  ;;  %v2849_v45 = vsel %vm884_vm4, %v2671_v10, %v848_v42  ;;  %v2867_v10 = vsel %vm884_vm4, %v2666_v6, %v850_v55 }
  0xc3   : > { %2038 = vmatprep.subr.bf16.mxu0 %v2214_v1  ;;  %1152 = vmatmul.mubr.f32.gmra.mrb[4].mxu1 %v2777_v39 }
  0xc4   : > { %1055 = vmatmul.mubr.f32.gmra.mrb[8].mxu0 %v2831_v43  ;;  %2081 = vmatpush1.bf16.msra.mxu1 %v2030_v27 }
  0xc5   : > { %1861 = vmatprep.mubr.msk.f32.mxu1 %vm884_vm4, %v2719_v48  ;;  %2070 = vmatprep.subr.bf16.mxu1 %v2214_v1  ;;  %v923_v63 = vpop.permute.xlu0 %922 }
  0xc6   : > { %2040 = vmatpush1.bf16.msra.mxu0 %v2039_v52  ;;  %1855 = vmatprep.mubr.msk.f32.mxu0 %vm884_vm4, %v2737_v0  ;;  %v928_v6 = vsel %vm884_vm4, %v2699_v29, %v923_v63  ;;  %v2051_v29 = vpack.c.bf16 %v1885_v3, %v1884_v2 }
  0xc7   : > { %2041 = vmatprep.subr.bf16.mxu0 %v2214_v1  ;;  %1157 = vmatmul.mubr.f32.gmra.mrb[6].mxu1 %v2791_v32 }
  0xc8   : > { %1060 = vmatmul.mubr.f32.gmra.mrb[10].mxu0 %v2849_v45  ;;  %2082 = vmatpush1.bf16.msra.mxu1 %v2033_v34 }
  0xc9   : > { %1862 = vmatprep.mubr.msk.f32.mxu1 %vm884_vm4, %v2724_v53  ;;  %2071 = vmatprep.subr.bf16.mxu1 %v2214_v1 }
  0xca   : > { %2043 = vmatpush1.bf16.msra.mxu0 %v2042_v17  ;;  %1856 = vmatprep.mubr.msk.f32.mxu0 %vm884_vm4, %v2748_v7 }
  0xcb   : > { %2044 = vmatprep.subr.bf16.mxu0 %v2214_v1  ;;  %1162 = vmatmul.mubr.f32.gmra.mrb[8].mxu1 %v2824_v51 }
  0xcc   : > { %1065 = vmatmul.mubr.f32.gmra.mrb[12].mxu0 %v2867_v10  ;;  %2083 = vmatpush1.bf16.msra.mxu1 %v2036_v41 }
  0xcd   : > { %1863 = vmatprep.mubr.msk.f32.mxu1 %vm884_vm4, %v2732_v57  ;;  %2072 = vmatprep.subr.bf16.mxu1 %v2214_v1  ;;  %v1188_v20 = vpop.permute.xlu1 %1187 }
  0xce   : > { %2046 = vmatpush1.bf16.msra.mxu0 %v2045_v50  ;;  %1857 = vmatprep.mubr.msk.f32.mxu0 %vm884_vm4, %v2753_v13 }
  0xcf   : > { %2047 = vmatprep.subr.bf16.mxu0 %v2214_v1  ;;  %1167 = vmatmul.mubr.f32.gmra.mrb[10].mxu1 %v2831_v43 }
  0xd0   : > { %1070 = vmatmul.mubr.f32.gmra.mrb[14].mxu0 %v928_v6  ;;  %2084 = vmatpush1.bf16.msra.mxu1 %v2039_v52 }
  0xd1   : > { %1864 = vmatprep.mubr.msk.f32.mxu1 %vm884_vm4, %v2737_v0  ;;  %2073 = vmatprep.subr.bf16.mxu1 %v2214_v1 }
  0xd2   : > { %2049 = vmatpush1.bf16.msra.mxu0 %v2048_v58  ;;  %1890 = vmatprep.mubr.msk.f32.mxu0 %vm884_vm4, %v2711_v36  ;;  %v1889_v36 = vld [vmem:[%s3041_s5 + $0x238] sm:$0xff] }
  0xd3   : > { %2050 = vmatprep.subr.bf16.mxu0 %v2214_v1  ;;  %1172 = vmatmul.mubr.f32.gmra.mrb[12].mxu1 %v2849_v45  ;;  %v2057_v14 = vpack.c.bf16 %v1889_v36, %v1888_v12 }
  0xd4   : > { %2085 = vmatpush1.bf16.msra.mxu1 %v2042_v17  ;;  %1865 = vmatprep.mubr.msk.f32.mxu1 %vm884_vm4, %v2748_v7 }
  0xd5   : > { %2074 = vmatprep.subr.bf16.mxu1 %v2214_v1 }
  0xd6   : > { %2052 = vmatpush1.bf16.msra.mxu0 %v2051_v29 }
  0xd7   : > { %2053 = vmatprep.subr.bf16.mxu0 %v2214_v1  ;;  %1177 = vmatmul.mubr.f32.gmra.mrb[14].mxu1 %v2867_v10 }
  0xd8   : > { %2086 = vmatpush1.bf16.msra.mxu1 %v2045_v50  ;;  %1896 = vmatprep.mubr.msk.f32.mxu1 %vm884_vm4, %v2753_v13  ;;  %v1357_v13 = vld [vmem:[%s3044_s8] sm:$0xff] }
  0xd9   : > { %2075 = vmatprep.subr.bf16.mxu1 %v2214_v1  ;;  %v2059_v11 = vpack.c.bf16 %v1358_v15, %v1357_v13 }
  0xda   : > { %2055 = vmatpush1.bf16.msra.mxu0 %v2054_v8 }
  0xdb   : > { %2056 = vmatprep.subr.bf16.mxu0 %v2214_v1 }
  0xdc   : > { %2087 = vmatpush1.bf16.msra.mxu1 %v2048_v58 }
  0xdd   : > { %2076 = vmatprep.subr.bf16.mxu1 %v2214_v1 }
  0xde   : > { %2058 = vmatpush1.bf16.msra.mxu0 %v2057_v14 }
  0xe0   : > { %2088 = vmatpush1.bf16.msra.mxu1 %v2051_v29 }
  0xe1   : > { %1286 = vmatmul.mubr.f32.vlgmr.msra.gmra.mrb[16].mxu0 %v2777_v39  ;;  %2077 = vmatprep.subr.bf16.mxu1 %v2214_v1 }
  0xe2   : > { %1891 = vmatprep.mubr.msk.f32.mxu0 %vm884_vm4, %v2719_v48  ;;  %v1359_v48 = vld [vmem:[%s3044_s8 + $0x10] sm:$0xff] }
  0xe3   : > { %v2063_v38 = vpack.c.bf16 %v1360_v19, %v1359_v48 }
  0xe4   : > { %2089 = vmatpush1.bf16.msra.mxu1 %v2054_v8 }
  0xe5   : > { %1291 = vmatmul.mubr.f32.gmra.mrb[18].mxu0 %v2791_v32  ;;  %2078 = vmatprep.subr.bf16.mxu1 %v2214_v1  ;;  %v1193_v1 = vsel %vm884_vm4, %v2740_v18, %v1188_v20  ;;  %v1352_v18 = vld [vmem:[%s603_s30 + $0x18] sm:$0xff] }
  0xe6   : > { %1892 = vmatprep.mubr.msk.f32.mxu0 %vm884_vm4, %v2724_v53  ;;  %v1349_v53 = vld [vmem:[%s603_s30] sm:$0xff] }
  0xe8   : > { %2090 = vmatpush1.bf16.msra.mxu1 %v2057_v14 }
  0xe9   : > { %1296 = vmatmul.mubr.f32.gmra.mrb[20].mxu0 %v2824_v51  ;;  %2060 = vmatprep.subr.bf16.mxu1 %v2059_v11 }
  0xea   : > { %1893 = vmatprep.mubr.msk.f32.mxu0 %vm884_vm4, %v2732_v57  ;;  %v1350_v57 = vld [vmem:[%s603_s30 + $0x8] sm:$0xff] }
  0xeb   : > { %1316 = vmatmul.mubr.f32.vlgmr.msra.gmra.mrb[16].mxu1 %v928_v6 }
  0xec   : > { %2062 = vmatpush3.bf16.msra.mxu1 %v2059_v11  ;;  %1897 = vmatprep.mubr.msk.f32.mxu1 %vm884_vm4, %v2757_v16  ;;  %v1353_v16 = vld [vmem:[%s603_s30 + $0x20] sm:$0xff] }
  0xed   : > { %2064 = vmatprep.subr.bf16.mxu1 %v2063_v38  ;;  %1301 = vmatmul.mubr.f32.gmra.mrb[22].mxu0 %v2831_v43 }
  0xee   : > { %1894 = vmatprep.mubr.msk.f32.mxu0 %vm884_vm4, %v2737_v0  ;;  %v1354_v0 = vld [vmem:[%s603_s30 + $0x28] sm:$0xff] }
  0xef   : > { %1321 = vmatmul.mubr.f32.gmra.mrb[18].mxu1 %v1193_v1 }
  0xf0   : > { %2066 = vmatpush3.bf16.msra.mxu1 %v2063_v38  ;;  %1939 = vmatprep.mubr.msk.f32.mxu1 %vm1361_vm6, %v1349_v53 }
  0xf1   : > { %1306 = vmatmul.mubr.f32.gmra.mrb[24].mxu0 %v2849_v45 }
  0xf2   : > { %1895 = vmatprep.mubr.msk.f32.mxu0 %vm884_vm4, %v2748_v7 }
  0xf3   : > { %1940 = vmatmul.mubr.msk.f32.vlgmr.msra.gmra.mrb[20].mxu1 %vm1361_vm6, %v1350_v57 }
  0xf4   : > { %1942 = vmatprep.mubr.msk.f32.mxu1 %vm1361_vm6, %v1351_v21  ;;  %v1898_v21 = vld [vmem:[%s3042_s6] ss:$0 sm:$0xff] }
  0xf5   : > { %1311 = vmatmul.mubr.f32.gmra.mrb[26].mxu0 %v2867_v10 }
  0xf7   : > { %1943 = vmatmul.mubr.msk.f32.gmra.mrb[22].mxu1 %vm1361_vm6, %v1352_v18 }
  0xf8   : > { %1945 = vmatprep.mubr.msk.f32.mxu1 %vm1361_vm6, %v1353_v16 }
  0xfb   : > { %1946 = vmatmul.mubr.msk.f32.gmra.mrb[24].mxu1 %vm1361_vm6, %v1354_v0 }
  0xfc   : > { %1948 = vmatprep.mubr.msk.f32.mxu1 %vm1361_vm6, %v1355_v22 }
  0xff   : > { %1949 = vmatmul.mubr.msk.f32.gmra.mrb[26].mxu1 %vm1361_vm6, %v1356_v23 }
 0x184   : > { %v1036_v7 = vpop.f32.mrb[0].mxu0 }
 0x185   : > { %v1038_v24 = vpop.f32.mrb[1].mxu0 }
 0x188   : > { %v1041_v25 = vpop.f32.mrb[2].mxu0 }
 0x189   : > { %v1043_v39 = vpop.f32.mrb[3].mxu0 }
 0x18c   : > { %v1046_v40 = vpop.f32.mrb[4].mxu0 }
 0x18d   : > { %v1048_v26 = vpop.f32.mrb[5].mxu0 }
 0x18e   : > { %v1143_v28 = vpop.f32.mrb[0].mxu1 }
 0x18f   : > { %v1144_v27 = vadd.f32 %v1143_v28, %v1036_v7  ;;  %v1145_v32 = vpop.f32.mrb[1].mxu1  ;;  %v1907_v7 = vld [vmem:[%s3045_s9] ss:$0 sm:$0xff] }
 0x192   : > { %v1148_v30 = vpop.f32.mrb[2].mxu1 }
 0x193   : > { %v1051_v31 = vpop.f32.mrb[6].mxu0  ;;  %v1149_v33 = vadd.f32 %v1148_v30, %v1041_v25  ;;  %v1150_v34 = vpop.f32.mrb[3].mxu1 }
 0x194   : > { %v1053_v37 = vpop.f32.mrb[7].mxu0 }
 0x196   : > { %v1153_v35 = vpop.f32.mrb[4].mxu1 }
 0x197   : > { %v1056_v44 = vpop.f32.mrb[8].mxu0  ;;  %v1154_v41 = vadd.f32 %v1153_v35, %v1046_v40  ;;  %v1155_v60 = vpop.f32.mrb[5].mxu1 }
 0x198   : > { %v1058_v46 = vpop.f32.mrb[9].mxu0 }
 0x19a   : > { %v1158_v47 = vpop.f32.mrb[6].mxu1 }
 0x19b   : > { %v1061_v49 = vpop.f32.mrb[10].mxu0  ;;  %v1159_v51 = vadd.f32 %v1158_v47, %v1051_v31  ;;  %v1160_v43 = vpop.f32.mrb[7].mxu1 }
 0x19c   : > { %v1063_v52 = vpop.f32.mrb[11].mxu0 }
 0x19e   : > { %v1163_v42 = vpop.f32.mrb[8].mxu1 }
 0x19f   : > { %v1066_v59 = vpop.f32.mrb[12].mxu0  ;;  %v1164_v54 = vadd.f32 %v1163_v42, %v1056_v44  ;;  %v1165_v45 = vpop.f32.mrb[9].mxu1 }
 0x1a0   : > { %v1068_v17 = vpop.f32.mrb[13].mxu0 }
 0x1a2   : > { %v1168_v55 = vpop.f32.mrb[10].mxu1 }
 0x1a3   : > { %v1071_v56 = vpop.f32.mrb[14].mxu0  ;;  %v1169_v61 = vadd.f32 %v1168_v55, %v1061_v49  ;;  %v1170_v10 = vpop.f32.mrb[11].mxu1 }
 0x1a4   : > { %v1073_v50 = vpop.f32.mrb[15].mxu0 }
 0x1a6   : > { %v1173_v63 = vpop.f32.mrb[12].mxu1 }
 0x1a7   : > { %v1174_v9 = vadd.f32 %v1173_v63, %v1066_v59  ;;  %v1175_v62 = vpop.f32.mrb[13].mxu1  ;;  %v2216_v63 = vmov (!%p1908_p12), 0.0  }
 0x1a8   : > { %1527 = vst.msk [vmem:[%s2376_s13] sm:$0x3] (!%p1908_p12), %vm1526_vm7, %v2216_v63 }
 0x1aa   : > { %v1178_v6 = vpop.f32.mrb[14].mxu1 }
 0x1ab   : > { %v1179_v58 = vadd.f32 %v1178_v6, %v1071_v56  ;;  %v1180_v2 = vpop.f32.mrb[15].mxu1 }
 0x1b4   : > { %v1287_v3 = vpop.f32.mrb[16].mxu0 }
 0x1b5   : > { %v1326_v29 = vadd.f32 %v1287_v3, %v1144_v27  ;;  %v1289_v4 = vpop.f32.mrb[17].mxu0 }
 0x1b7   : > { %v1341_v24 = vadd.f32 %v1898_v21, %v1326_v29 }
 0x1b8   : > { %v1292_v5 = vpop.f32.mrb[18].mxu0 }
 0x1b9   : > { %v1327_v8 = vadd.f32 %v1292_v5, %v1149_v33  ;;  %v1294_v12 = vpop.f32.mrb[19].mxu0 }
 0x1bb   : > { %v1342_v16 = vadd.f32 %v1898_v21, %v1327_v8 }
 0x1bc   : > { %v1297_v36 = vpop.f32.mrb[20].mxu0 }
 0x1bd   : > { %v1328_v14 = vadd.f32 %v1297_v36, %v1154_v41  ;;  %v1299_v13 = vpop.f32.mrb[21].mxu0 }
 0x1be   : > { %v1317_v15 = vpop.f32.mrb[16].mxu1 }
 0x1bf   : > { %v1332_v11 = vadd.f32 %v1317_v15, %v1174_v9  ;;  %v1319_v48 = vpop.f32.mrb[17].mxu1  ;;  %v1343_v34 = vadd.f32 %v1898_v21, %v1328_v14 }
 0x1c0   : > { %v1302_v19 = vpop.f32.mrb[22].mxu0 }
 0x1c1   : > { %v1329_v20 = vadd.f32 %v1302_v19, %v1159_v51  ;;  %v1304_v38 = vpop.f32.mrb[23].mxu0  ;;  %v1347_v17 = vadd.f32 %v1898_v21, %v1332_v11 }
 0x1c2   : > { %v1322_v1 = vpop.f32.mrb[18].mxu1 }
 0x1c3   : > { %v1333_v53 = vadd.f32 %v1322_v1, %v1179_v58  ;;  %v1324_v57 = vpop.f32.mrb[19].mxu1  ;;  %v1344_v40 = vadd.f32 %v1898_v21, %v1329_v20 }
 0x1c4   : > { %v1307_v18 = vpop.f32.mrb[24].mxu0 }
 0x1c5   : > { %v1330_v0 = vadd.f32 %v1307_v18, %v1164_v54  ;;  %v1309_v22 = vpop.f32.mrb[25].mxu0  ;;  %v1348_v59 = vadd.f32 %v1898_v21, %v1333_v53 }
 0x1c6   : > { %v1941_v23 = vpop.f32.mrb[20].mxu1 }
 0x1c7   : > { %v1492_v25 = vadd.f32 %v1941_v23, %v1342_v16  ;;  %v1452_v39 = vpop.f32.mrb[21].mxu1  ;;  %v1345_v60 = vadd.f32 %v1898_v21, %v1330_v0 }
 0x1c8   : > { %v1491_v26 = vadd.f32 %v1452_v39, %v1341_v24  ;;  %v1312_v28 = vpop.f32.mrb[26].mxu0 }
 0x1c9   : > { %v1507_v27 = vadd.f32 %v1907_v7, %v1492_v25  ;;  %v1331_v32 = vadd.f32 %v1312_v28, %v1169_v61  ;;  %v1314_v30 = vpop.f32.mrb[27].mxu0 }
 0x1ca   : > { %v1506_v31 = vadd.f32 %v1907_v7, %v1491_v26  ;;  %v1944_v33 = vpop.f32.mrb[22].mxu1 }
 0x1cb   : > { %1515 = vst.msk [vmem:[%s2981_s18 + $0x8] sm:$0xff] %vm884_vm4, %v1507_v27  ;;  %v1494_v37 = vadd.f32 %v1944_v33, %v1344_v40  ;;  %v1462_v35 = vpop.f32.mrb[23].mxu1  ;;  %v1346_v44 = vadd.f32 %v1898_v21, %v1331_v32 }
 0x1cc   : > { %1514 = vst.msk [vmem:[%s2981_s18] sm:$0xff] %vm884_vm4, %v1506_v31  ;;  %v1493_v41 = vadd.f32 %v1462_v35, %v1343_v34 }
 0x1cd   : > { %v1509_v46 = vadd.f32 %v1907_v7, %v1494_v37 }
 0x1ce   : > { %v1508_v47 = vadd.f32 %v1907_v7, %v1493_v41  ;;  %v1947_v49 = vpop.f32.mrb[24].mxu1 }
 0x1cf   : > { %1517 = vst.msk [vmem:[%s2981_s18 + $0x18] sm:$0xff] %vm884_vm4, %v1509_v46  ;;  %v1496_v51 = vadd.f32 %v1947_v49, %v1346_v44  ;;  %v1472_v43 = vpop.f32.mrb[25].mxu1 }
 0x1d0   : > { %1516 = vst.msk [vmem:[%s2981_s18 + $0x10] sm:$0xff] %vm884_vm4, %v1508_v47  ;;  %v1495_v52 = vadd.f32 %v1472_v43, %v1345_v60 }
 0x1d1   : > { %v1511_v42 = vadd.f32 %v1907_v7, %v1496_v51 }
 0x1d2   : > { %v1510_v54 = vadd.f32 %v1907_v7, %v1495_v52  ;;  %v1950_v45 = vpop.f32.mrb[26].mxu1  ;;  %1525 = sbr.rel (%p1908_p12) target bundleno = 473 (0x1d9), region = 64 }
 0x1d3   : > { %1519 = vst.msk [vmem:[%s2981_s18 + $0x28] sm:$0xff] %vm884_vm4, %v1511_v42  ;;  %v1498_v55 = vadd.f32 %v1950_v45, %v1348_v59  ;;  %v1482_v56 = vpop.f32.mrb[27].mxu1 }
 0x1d4   : > { %1518 = vst.msk [vmem:[%s2981_s18 + $0x20] sm:$0xff] %vm884_vm4, %v1510_v54  ;;  %v1497_v61 = vadd.f32 %v1482_v56, %v1347_v17 }
 0x1d5   : > { %v1513_v10 = vadd.f32 %v1907_v7, %v1498_v55 }
 0x1d6   : > { %v1512_v50 = vadd.f32 %v1907_v7, %v1497_v61 }
 0x1d7   : > { %1521 = vst.msk [vmem:[%s2981_s18 + $0x38] sm:$0xff] %vm884_vm4, %v1513_v10 }
 0x1d8   : > { %1520 = vst.msk [vmem:[%s2981_s18 + $0x30] sm:$0xff] %vm884_vm4, %v1512_v50 }
 0x1d9 PF: > { %v1529_v9 = vsel %vm884_vm4, %v1506_v31, 0.0  ;;  %v1530_v62 = vsel %vm884_vm4, %v1507_v27, 0.0  ;;  %v1532_v6 = vsel %vm884_vm4, %v1508_v47, 0.0  ;;  %v1534_v2 = vsel %vm884_vm4, %v1509_v46, 0.0  ;;  %v1528_v41 = vld [vmem:[%s2376_s13] sm:$0x1] }
 0x1da   : > { %v1531_v58 = vadd.f32 %v1530_v62, %v1529_v9  ;;  %v1554_v3 = vmul.f32 %v1506_v31, %v1506_v31  ;;  %v1555_v29 = vmul.f32 %v1507_v27, %v1507_v27  ;;  %v1556_v5 = vmul.f32 %v1508_v47, %v1508_v47  ;;  %v1553_v43 = vld [vmem:[%s2376_s13 + $0x1] sm:$0x1] }
 0x1db   : > { %v1557_v8 = vmul.f32 %v1509_v46, %v1509_v46  ;;  %v1536_v12 = vsel %vm884_vm4, %v1510_v54, 0.0  ;;  %v1558_v13 = vmul.f32 %v1510_v54, %v1510_v54  ;;  %v1538_v48 = vsel %vm884_vm4, %v1511_v42, 0.0 }
 0x1dc   : > { %v1533_v4 = vadd.f32 %v1532_v6, %v1531_v58  ;;  %v1562_v36 = vsel %vm884_vm4, %v1554_v3, 0.0  ;;  %v1563_v15 = vsel %vm884_vm4, %v1555_v29, 0.0  ;;  %v1565_v11 = vsel %vm884_vm4, %v1556_v5, 0.0 }
 0x1dd   : > { %v1564_v19 = vadd.f32 %v1563_v15, %v1562_v36  ;;  %v1559_v38 = vmul.f32 %v1511_v42, %v1511_v42  ;;  %v1567_v1 = vsel %vm884_vm4, %v1557_v8, 0.0  ;;  %v1540_v53 = vsel %vm884_vm4, %v1512_v50, 0.0 }
 0x1de   : > { %v1535_v14 = vadd.f32 %v1534_v2, %v1533_v4  ;;  %v1560_v18 = vmul.f32 %v1512_v50, %v1512_v50  ;;  %v1569_v16 = vsel %vm884_vm4, %v1558_v13, 0.0  ;;  %v1542_v0 = vsel %vm884_vm4, %v1513_v10, 0.0 }
 0x1df   : > { %v1566_v57 = vadd.f32 %v1565_v11, %v1564_v19  ;;  %v1561_v7 = vmul.f32 %v1513_v10, %v1513_v10  ;;  %v1571_v24 = vsel %vm884_vm4, %v1559_v38, 0.0  ;;  %vm1551_vm8 = vcmask 516096  }
 0x1e0   : > { %v1537_v20 = vadd.f32 %v1536_v12, %v1535_v14  ;;  %v1573_v40 = vsel %vm884_vm4, %v1560_v18, 0.0 }
 0x1e1   : > { %v1568_v22 = vadd.f32 %v1567_v1, %v1566_v57  ;;  %v1575_v27 = vsel %vm884_vm4, %v1561_v7, 0.0 }
 0x1e2   : > { %v1539_v21 = vadd.f32 %v1538_v48, %v1537_v20 }
 0x1e3   : > { %v1570_v25 = vadd.f32 %v1569_v16, %v1568_v22 }
 0x1e4   : > { %v1541_v23 = vadd.f32 %v1540_v53, %v1539_v21 }
 0x1e5   : > { %v1572_v26 = vadd.f32 %v1571_v24, %v1570_v25 }
 0x1e6   : > { %v1543_v39 = vadd.f32 %v1542_v0, %v1541_v23 }
 0x1e7   : > { %v1574_v32 = vadd.f32 %v1573_v40, %v1572_v26 }
 0x1e8   : > { %v1544_v28 = vrot.slane %v1543_v39, 4 }
 0x1e9   : > { %v1576_v31 = vadd.f32 %v1575_v27, %v1574_v32 }
 0x1ea   : > { %v1545_v30 = vadd.f32 %v1544_v28, %v1543_v39 }
 0x1eb   : > { %v1577_v34 = vrot.slane %v1576_v31, 4 }
 0x1ec   : > { %v1546_v33 = vrot.slane %v1545_v30, 2 }
 0x1ed   : > { %v1578_v35 = vadd.f32 %v1577_v34, %v1576_v31 }
 0x1ee   : > { %v1547_v37 = vadd.f32 %v1546_v33, %v1545_v30 }
 0x1ef   : > { %v1579_v60 = vrot.slane %v1578_v35, 2 }
 0x1f0   : > { %v1548_v44 = vrot.slane %v1547_v37, 1 }
 0x1f1   : > { %v1580_v47 = vadd.f32 %v1579_v60, %v1578_v35 }
 0x1f2   : > { %v1549_v46 = vadd.f32 %v1548_v44, %v1547_v37 }
 0x1f3   : > { %v1581_v51 = vrot.slane %v1580_v47, 1 }
 0x1f4   : > { %v1550_v49 = vadd.f32 %v1549_v46, %v1528_v41 }
 0x1f5   : > { %v1582_v52 = vadd.f32 %v1581_v51, %v1580_v47 }
 0x1f6   : > { %1552 = vst.msk [vmem:[%s2376_s13] sm:$0x1] %vm1551_vm8, %v1550_v49 }
 0x1f7   : > { %v1583_v42 = vadd.f32 %v1582_v52, %v1553_v43 }
 0x1f9   : > { %1584 = vst.msk [vmem:[%s2376_s13 + $0x1] sm:$0x1] %vm1551_vm8, %v1583_v42 }
 0x1fa PF: > { %s22_s21 = sadd.s32 1, %s2212_s21   ;;  %s3055_s26 = sld [smem:[#allocation2_spill]] }
 0x1fb   : > { %p19_p13 = scmp.ge.s32.totalorder %s22_s21, 6   ;;  %s3056_s14 = sld [smem:[#allocation3_spill]] }
 0x1fc   : > { %s3057_s17 = smov %s2204_s19  ;;  %s3058_s18 = smov %s2208_s20 }
 0x1fd   :  { %21 = sbr.rel (!%p19_p13) target bundleno = 3 (0x3), region = 123 }
 0x200   : > { %s3059_s19 = smov %s3055_s26 }
 0x201   : > { %s3060_s20 = smov %s3056_s14 }

// kernel: up_block_fwd.12
= control target key start
LH: loop header
LB: loop body
LE: loop exit
PB: predicated region body
PF: predicated region fallthrough
CT: control target
= control target key end

     0   :  { %s2020_s30 = smov 0   ;;  %s2022_s10 = smov 0   ;;  %s2769_s0 = inlined_call_operand.vmem [shape: f32[2,16,8,64], index: 0, kind: input, shape index: {}, may-alias: {0,1,2}]   ;;  %s2770_s1 = inlined_call_operand.vmem [shape: f32[2,16,8,64], index: 1, kind: input, shape index: {}, may-alias: {0,1,2}]   ;;  %s2771_s2 = inlined_call_operand.vmem [shape: f32[2,16,8,64], index: 2, kind: input, shape index: {}, may-alias: {0,1,2}]   ;;  %s2772_s3 = inlined_call_operand.vmem [shape: f32[2,1,64], index: 3, kind: input, shape index: {}]   ;;  %s2773_s4 = inlined_call_operand.vmem [shape: f32[2,1,64], index: 4, kind: input, shape index: {}]   ;;  %s2774_s5 = inlined_call_operand.vmem [shape: f32[3,192,64], index: 5, kind: input, shape index: {}]   ;;  %s2775_s6 = inlined_call_operand.vmem [shape: f32[1,64], index: 6, kind: input, shape index: {}]   ;;  %s2776_s7 = inlined_call_operand.vmem [shape: f32[2,16,8,64], index: 7, kind: input, shape index: {}]   ;;  %s2777_s8 = inlined_call_operand.vmem [shape: f32[2,16,8,64], index: 8, kind: output, shape index: {0}]   ;;  %s2778_s9 = inlined_call_operand.vmem [shape: f32[2,2,64], index: 9, kind: output, shape index: {1}]  }
   0x1   :  { %2779 = sst [smem:[#allocation3_spill]] %s2772_s3  ;;  %s2024_s11 = smov 0  }
   0x2   :  { %s2026_s12 = smov 0   ;;  %s2028_s13 = smov 0  }
   0x3 LB: > { %s29_s14 = sadd.s32 1, %s1957_s11  ;;  %s32_s15 = sadd.s32 1, %s1961_s12  ;;  %s1965_s13 = sphi %s2028_s13, %s20_s13   ;;  %s1961_s12 = sphi %s2026_s12, %s2789_s12   ;;  %s1957_s11 = sphi %s2024_s11, %s2788_s11   ;;  %s1953_s10 = sphi %s2022_s10, %s2787_s10   ;;  %s1949_s30 = sphi %s2020_s30, %s2786_s30  }
   0x4   : > { %p30_p0 = scmp.ge.s32.totalorder %s29_s14, 2  ;;  %p1585_p1 = scmp.ge.s32.totalorder %s1965_s13, 1 }
   0x5   : > { %p406_p2 = scmp.lt.s32.totalorder %s1965_s13, 5 }
   0x6   : > { %s2791_s14 = smov (%p30_p0, %s29_s14), 0  ;;  %s2793_s15 = smov (!%p30_p0, %s32_s15), %s1961_s12 }
   0x7   : > { %p407_p3 = pnand %p1585_p1, %p406_p2  ;;  %p34_p4 = scmp.ge.s32.totalorder %s2793_s15, 2 }
   0x8   : > { %s2055_s16 = sshll.u32 (!%p407_p3), %s1949_s30, 3  ;;  %p497_p5 = scmp.lt.s32.totalorder (!%p407_p3), %s1953_s10, 1  ;;  %v1623_v0 = vld [vmem:[%s2774_s5 + $0xc0] sm:$0xff] (!%p407_p3)  ;;  %v1967_v1 = vmov (!%p407_p3), 0.0|0.0   ;;  %v1624_v2 = vld [vmem:[%s2774_s5 + $0xc8] sm:$0xff] (!%p407_p3)  ;;  %v1625_v7 = vld [vmem:[%s2774_s5 + $0xd0] sm:$0xff] (!%p407_p3) }
   0x9   : > { %s2795_s15 = smov (%p34_p4, %s2793_s15), 0  ;;  %410 = sbr.rel (%p407_p3) target bundleno = 496 (0x1f0), region = 52 }
   0xa   : > { %2780 = sst [smem:[#allocation2_spill]] %s2795_s15  ;;  %s2062_s19 = sadd.s32 (!%p407_p3), 4294967295, %s2055_s16  ;;  %1707 = vmatprep.subr.bf16.mxu0 (!%p407_p3), %v1967_v1  ;;  %1743 = vmatprep.subr.bf16.mxu1 (!%p407_p3), %v1967_v1  ;;  %v839_v3 = vld [vmem:[%s2774_s5] sm:$0xff] (!%p407_p3)  ;;  %v840_v4 = vld [vmem:[%s2774_s5 + $0x8] sm:$0xff] (!%p407_p3)  ;;  %v1708_v5 = vpack.c.bf16 (!%p407_p3), %v1624_v2, %v1623_v0  ;;  %v1626_v8 = vld [vmem:[%s2774_s5 + $0xd8] sm:$0xff] (!%p407_p3)  ;;  %vm719_vm1 = vcmask (!%p407_p3), 1040384  }
   0xb   : > { %p512_p6 = scmp.lt.s32.totalorder (!%p407_p3), %s2055_s16, 15  ;;  %p495_p7 = scmp.gt.s32.totalorder (!%p407_p3), %s2062_s19, 0  ;;  %v1744_v6 = vpack.c.bf16 (!%p407_p3), %v840_v4, %v839_v3  ;;  %v841_v9 = vld [vmem:[%s2774_s5 + $0x10] sm:$0xff] (!%p407_p3)  ;;  %v842_v10 = vld [vmem:[%s2774_s5 + $0x18] sm:$0xff] (!%p407_p3)  ;;  %v1711_v11 = vpack.c.bf16 (!%p407_p3), %v1626_v8, %v1625_v7  ;;  %v1627_v13 = vld [vmem:[%s2774_s5 + $0xe0] sm:$0xff] (!%p407_p3)  ;;  %vm756_vm2 = vcmask (!%p407_p3), 1046528  }
   0xc   : > { %p1588_p8 = scmp.lt.s32.totalorder (!%p407_p3), %s2062_s19, 15  ;;  %1709 = vmatpush1.bf16.msra.mxu0 (!%p407_p3), %v1708_v5  ;;  %v1747_v12 = vpack.c.bf16 (!%p407_p3), %v842_v10, %v841_v9  ;;  %s2781_s3 = sld [smem:[#allocation3_spill]] (!%p407_p3)  ;;  %v1628_v14 = vld [vmem:[%s2774_s5 + $0xe8] sm:$0xff] (!%p407_p3)  ;;  %v843_v15 = vld [vmem:[%s2774_s5 + $0x20] sm:$0xff] (!%p407_p3)  ;;  %v1629_v17 = vld [vmem:[%s2774_s5 + $0xf0] sm:$0xff] (!%p407_p3)  ;;  %vm805_vm3 = vcmask (!%p407_p3), 1045504  }
   0xd   : > { %1745 = vmatpush1.bf16.msra.mxu1 (!%p407_p3), %v1744_v6  ;;  %1710 = vmatprep.subr.bf16.mxu0 (!%p407_p3), %v1967_v1  ;;  %v844_v16 = vld [vmem:[%s2774_s5 + $0x28] sm:$0xff] (!%p407_p3)  ;;  %v1714_v18 = vpack.c.bf16 (!%p407_p3), %v1628_v14, %v1627_v13  ;;  %v1630_v20 = vld [vmem:[%s2774_s5 + $0xf8] sm:$0xff] (!%p407_p3)  ;;  %v845_v21 = vld [vmem:[%s2774_s5 + $0x30] sm:$0xff] (!%p407_p3)  ;;  %p679_p10 = scmp.gt.s32.totalorder (!%p407_p3), %s1949_s30, 0  ;;  %vm830_vm4 = vcmask (!%p407_p3), 523264   ;;  %p684_p11 = scmp.lt.s32.totalorder (!%p407_p3), %s1949_s30, 1 }
   0xe   : > { %1746 = vmatprep.subr.bf16.mxu1 (!%p407_p3), %v1967_v1  ;;  %v1750_v19 = vpack.c.bf16 (!%p407_p3), %v844_v16, %v843_v15  ;;  %v846_v22 = vld [vmem:[%s2774_s5 + $0x38] sm:$0xff] (!%p407_p3)  ;;  %v2147_v24 = vld [vmem:[%s2774_s5 + $0x100] sm:$0xff] (!%p407_p3)  ;;  %v2152_v25 = vld [vmem:[%s2774_s5 + $0x108] sm:$0xff] (!%p407_p3)  ;;  %v1717_v28 = vpack.c.bf16 (!%p407_p3), %v1630_v20, %v1629_v17  ;;  %p1696_p12 = scmp.ne.s32.totalorder (!%p407_p3), %s1949_s30, 0 }
   0xf   : > { %v847_v29 = vld [vmem:[%s2774_s5 + $0x40] sm:$0xff] (!%p407_p3)  ;;  %v848_v30 = vld [vmem:[%s2774_s5 + $0x48] sm:$0xff] (!%p407_p3)  ;;  %v1753_v35 = vpack.c.bf16 (!%p407_p3), %v846_v22, %v845_v21  ;;  %v1720_v36 = vpack.c.bf16 (!%p407_p3), %v2152_v25, %v2147_v24  ;;  %v1633_v52 = vld [vmem:[%s2774_s5 + $0x110] sm:$0xff] (!%p407_p3) }
  0x10   : > { %s2797_s10 = smov (!%p497_p5, %s1953_s10), 1  ;;  %1712 = vmatpush1.bf16.msra.mxu0 %v1711_v11  ;;  %v1756_v57 = vpack.c.bf16 %v848_v30, %v847_v29  ;;  %v1634_v58 = vld [vmem:[%s2774_s5 + $0x118] sm:$0xff]  ;;  %v849_v59 = vld [vmem:[%s2774_s5 + $0x50] sm:$0xff]  ;;  %v1635_v9 = vld [vmem:[%s2774_s5 + $0x120] sm:$0xff]  ;;  %vm1323_vm6 = vcmask (!%p1696_p12), 517120  }
  0x11   : > { %s496_s22 = scalar_select %p495_p7, %s2062_s19, 0  ;;  %1748 = vmatpush1.bf16.msra.mxu1 %v1747_v12  ;;  %1713 = vmatprep.subr.bf16.mxu0 %v1967_v1  ;;  %v850_v63 = vld [vmem:[%s2774_s5 + $0x58] sm:$0xff]  ;;  %v1723_v7 = vpack.c.bf16 %v1634_v58, %v1633_v52  ;;  %v1636_v12 = vld [vmem:[%s2774_s5 + $0x128] sm:$0xff]  ;;  %v851_v13 = vld [vmem:[%s2774_s5 + $0x60] sm:$0xff] }
  0x12   : > { %s2100_s25 = sshll.u32 %s2797_s10, 4  ;;  %s537_s28 = scalar_lea.vmem %s2781_s3, %s2797_s10  ;;  %1749 = vmatprep.subr.bf16.mxu1 %v1967_v1  ;;  %v1759_v8 = vpack.c.bf16 %v850_v63, %v849_v59  ;;  %v852_v14 = vld [vmem:[%s2774_s5 + $0x68] sm:$0xff]  ;;  %v1726_v16 = vpack.c.bf16 %v1636_v12, %v1635_v9  ;;  %v853_v20 = vld [vmem:[%s2774_s5 + $0x70] sm:$0xff]  ;;  %v854_v21 = vld [vmem:[%s2774_s5 + $0x78] sm:$0xff] }
  0x13   : > { %s2799_s22 = smov (!%p1588_p8, %s496_s22), 15  ;;  %s540_s15 = scalar_lea.vmem %s2773_s4, %s2797_s10  ;;  %v2140_v23 = vld [vmem:[%s537_s28] ss:$0 sm:$0xff]  ;;  %v1762_v17 = vpack.c.bf16 %v852_v14, %v851_v13  ;;  %v1646_v14 = vld [vmem:[%s2774_s5 + $0x178] sm:$0xff] }
  0x14   : > { %s513_s24 = scalar_select %p512_p6, %s2055_s16, 15  ;;  %v2166_v27 = vld [vmem:[%s540_s15] ss:$0 sm:$0xff]  ;;  %1715 = vmatpush1.bf16.msra.mxu0 %v1714_v18  ;;  %v1637_v18 = vld [vmem:[%s2774_s5 + $0x130] sm:$0xff] }
  0x15   : > { %s502_s3 = sadd.s32 %s2799_s22, %s2100_s25  ;;  %s1610_s29 = sshll.u32 %s2797_s10, 1  ;;  %1751 = vmatpush1.bf16.msra.mxu1 %v1750_v19  ;;  %1716 = vmatprep.subr.bf16.mxu0 %v1967_v1  ;;  %v1638_v19 = vld [vmem:[%s2774_s5 + $0x138] sm:$0xff] }
  0x16   : > { %s1594_s22 = sshll.u32 %s502_s3, 3  ;;  %s515_s27 = sadd.s32 %s2100_s25, %s513_s24  ;;  %1752 = vmatprep.subr.bf16.mxu1 %v1967_v1  ;;  %v1729_v25 = vpack.c.bf16 %v1638_v19, %v1637_v18 }
  0x17   : > { %s504_s3 = scalar_lea.vmem %s2769_s0, %s1594_s22  ;;  %s2157_s28 = sshll.u32 %s515_s27, 3 }
  0x18   : > { %s2163_s26 = scalar_lea.vmem %s2770_s1, %s2157_s28  ;;  %v565_v26 = vld [vmem:[%s504_s3] sm:$0xff]  ;;  %s2177_s10 = scalar_lea.vmem %s2778_s9, %s1610_s29  ;;  %1718 = vmatpush1.bf16.msra.mxu0 %v1717_v28 }
  0x19   : > { %v566_v31 = vld [vmem:[%s2163_s26] sm:$0xff]  ;;  %v583_v32 = vmul.f32 %v2140_v23, %v565_v26  ;;  %v567_v33 = vld [vmem:[%s2163_s26 + $0x8] sm:$0xff]  ;;  %v568_v34 = vld [vmem:[%s2163_s26 + $0x10] sm:$0xff]  ;;  %s1706_s15 = sadd.s32 8, %s2055_s16  ;;  %1754 = vmatpush1.bf16.msra.mxu1 %v1753_v35  ;;  %1719 = vmatprep.subr.bf16.mxu0 %v1967_v1  ;;  %v1765_v26 = vpack.c.bf16 %v854_v21, %v853_v20  ;;  %s2696_s27 = scalar_lea.vmem %s2776_s7, %s2157_s28 }
  0x1a   : > { %v598_v37 = vmul.f32 %v2140_v23, %v566_v31  ;;  %v599_v38 = vmul.f32 %v2140_v23, %v567_v33  ;;  %v600_v39 = vmul.f32 %v2140_v23, %v568_v34  ;;  %v569_v40 = vld [vmem:[%s2163_s26 + $0x18] sm:$0xff]  ;;  %v570_v41 = vld [vmem:[%s2163_s26 + $0x20] sm:$0xff]  ;;  %v571_v42 = vld [vmem:[%s2163_s26 + $0x28] sm:$0xff]  ;;  %p2211_p9 = scmp.lt.s32.totalorder %s1706_s15, 15  ;;  %1755 = vmatprep.subr.bf16.mxu1 %v1967_v1  ;;  %s2707_s3 = scalar_lea.vmem %s2777_s8, %s2157_s28 }
  0x1b   : > { %v2195_v43 = vadd.f32 %v2166_v27, %v583_v32  ;;  %v601_v44 = vmul.f32 %v2140_v23, %v569_v40  ;;  %v602_v45 = vmul.f32 %v2140_v23, %v570_v41  ;;  %v603_v46 = vmul.f32 %v2140_v23, %v571_v42  ;;  %v572_v47 = vld [vmem:[%s2163_s26 + $0x30] sm:$0xff]  ;;  %v573_v56 = vld [vmem:[%s2163_s26 + $0x38] sm:$0xff]  ;;  %v1639_v28 = vld [vmem:[%s2774_s5 + $0x140] sm:$0xff]  ;;  %s2323_s24 = scalar_select %p679_p10, 1, 0 }
  0x1c   : > { %v2202_v48 = vadd.f32 %v2166_v27, %v598_v37  ;;  %v2205_v49 = vadd.f32 %v2166_v27, %v599_v38  ;;  %v2208_v50 = vadd.f32 %v2166_v27, %v600_v39  ;;  %v604_v51 = vmul.f32 %v2140_v23, %v572_v47  ;;  %s2801_s15 = smov (!%p2211_p9, %s1706_s15), 15  ;;  %1721 = vmatpush1.bf16.msra.mxu0 %v1720_v36  ;;  %v1640_v31 = vld [vmem:[%s2774_s5 + $0x148] sm:$0xff]  ;;  %v855_v32 = vld [vmem:[%s2774_s5 + $0x80] sm:$0xff]  ;;  %v857_v47 = vld [vmem:[%s2774_s5 + $0x90] sm:$0xff] }
  0x1d   : > { %v1613_v53 = vmul.f32 -1.442695, %v2195_v43  ;;  %v2220_v54 = vadd.f32 %v2166_v27, %v601_v44  ;;  %v2223_v55 = vadd.f32 %v2166_v27, %v602_v45  ;;  %v2235_v62 = vadd.f32 %v2166_v27, %v603_v46  ;;  %s2803_s15 = smov (!%p2211_p9, %s2801_s15), 15  ;;  %1757 = vmatpush1.bf16.msra.mxu1 %v1756_v57  ;;  %1722 = vmatprep.subr.bf16.mxu0 %v1967_v1  ;;  %v856_v33 = vld [vmem:[%s2774_s5 + $0x88] sm:$0xff]  ;;  %v1641_v44 = vld [vmem:[%s2774_s5 + $0x150] sm:$0xff] }
  0x1e   : > { %v1614_v60 = vmul.f32 -1.442695, %v2202_v48  ;;  %v1615_v61 = vmul.f32 -1.442695, %v2205_v49  ;;  %v1616_v0 = vmul.f32 -1.442695, %v2208_v50  ;;  %v2248_v4 = vadd.f32 %v2166_v27, %v604_v51  ;;  %s528_s20 = sadd.s32 %s2100_s25, %s2803_s15  ;;  %1758 = vmatprep.subr.bf16.mxu1 %v1967_v1 }
  0x1f   : > { %1887 = vpow2.f32 %v1613_v53  ;;  %v1617_v2 = vmul.f32 -1.442695, %v2220_v54  ;;  %v1618_v3 = vmul.f32 -1.442695, %v2223_v55  ;;  %v605_v5 = vmul.f32 %v2140_v23, %v573_v56  ;;  %s1603_s29 = sshll.u32 %s528_s20, 3  ;;  %v858_v51 = vld [vmem:[%s2774_s5 + $0x98] sm:$0xff] }
  0x20   : > { %1889 = vpow2.f32 %v1614_v60  ;;  %v1619_v6 = vmul.f32 -1.442695, %v2235_v62  ;;  %v1620_v10 = vmul.f32 -1.442695, %v2248_v4  ;;  %s530_s17 = scalar_lea.vmem %s2771_s2, %s1603_s29  ;;  %1724 = vmatpush1.bf16.msra.mxu0 %v1723_v7  ;;  %v1732_v41 = vpack.c.bf16 %v1640_v31, %v1639_v28  ;;  %s1968_s29 = smov 64  }
  0x21   : > { %1891 = vpow2.f32 %v1615_v61  ;;  %v2259_v11 = vadd.f32 %v2166_v27, %v605_v5  ;;  %1760 = vmatpush1.bf16.msra.mxu1 %v1759_v8  ;;  %1725 = vmatprep.subr.bf16.mxu0 %v1967_v1  ;;  %v574_v22 = vld [vmem:[%s530_s17] sm:$0xff]  ;;  %v1768_v42 = vpack.c.bf16 %v856_v33, %v855_v32  ;;  %v1771_v63 = vpack.c.bf16 %v858_v51, %v857_v47  ;;  %v860_v5 = vld [vmem:[%s2774_s5 + $0xa8] sm:$0xff]  ;;  %s685_s25 = scalar_select %p684_p11, 1, 0 }
  0x22   : > { %1893 = vpow2.f32 %v1616_v0  ;;  %1761 = vmatprep.subr.bf16.mxu1 %v1967_v1  ;;  %v670_v36 = vmul.f32 %v2140_v23, %v574_v22  ;;  %v1642_v23 = vld [vmem:[%s2774_s5 + $0x158] sm:$0xff]  ;;  %v1643_v0 = vld [vmem:[%s2774_s5 + $0x160] sm:$0xff] }
  0x23   : > { %1895 = vpow2.f32 %v1617_v2  ;;  %v1621_v15 = vmul.f32 -1.442695, %v2259_v11  ;;  %v1735_v61 = vpack.c.bf16 %v1642_v23, %v1641_v44 }
  0x24   : > { %1897 = vpow2.f32 %v1618_v3  ;;  %1727 = vmatpush1.bf16.msra.mxu0 %v1726_v16  ;;  %v2326_v56 = vadd.f32 %v2166_v27, %v670_v36  ;;  %v1644_v27 = vld [vmem:[%s2774_s5 + $0x168] sm:$0xff]  ;;  %v859_v3 = vld [vmem:[%s2774_s5 + $0xa0] sm:$0xff]  ;;  %v862_v16 = vld [vmem:[%s2774_s5 + $0xb8] sm:$0xff] }
  0x25   : > { %1899 = vpow2.f32 %v1619_v6  ;;  %1763 = vmatpush1.bf16.msra.mxu1 %v1762_v17  ;;  %1728 = vmatprep.subr.bf16.mxu0 %v1967_v1  ;;  %v681_v6 = vstv %s2323_s24  ;;  %v1738_v8 = vpack.c.bf16 %v1644_v27, %v1643_v0  ;;  %v1774_v9 = vpack.c.bf16 %v860_v5, %v859_v3 }
  0x26   : > { %1901 = vpow2.f32 %v1620_v10  ;;  %1764 = vmatprep.subr.bf16.mxu1 %v1967_v1  ;;  %v1622_v7 = vmul.f32 -1.442695, %v2326_v56  ;;  %v1645_v10 = vld [vmem:[%s2774_s5 + $0x170] sm:$0xff]  ;;  %vm2347_vm0 = vcmp.eq.s32.totalorder %v681_v6, 1 }
  0x27   : > { %1903 = vpow2.f32 %v1621_v15  ;;  %v861_v15 = vld [vmem:[%s2774_s5 + $0xb0] sm:$0xff] }
  0x28   : > { %1730 = vmatpush1.bf16.msra.mxu0 %v1729_v25  ;;  %v1741_v25 = vpack.c.bf16 %v1646_v14, %v1645_v10 }
  0x29   : > { %v1888_v24 = vpop.eup %1887  ;;  %1766 = vmatpush1.bf16.msra.mxu1 %v1765_v26  ;;  %1731 = vmatprep.subr.bf16.mxu0 %v1967_v1  ;;  %v1777_v26 = vpack.c.bf16 %v862_v16, %v861_v15 }
  0x2a   : > { %v1890_v29 = vpop.eup %1889  ;;  %v594_v30 = vadd.f32 1.0, %v1888_v24  ;;  %1767 = vmatprep.subr.bf16.mxu1 %v1967_v1 }
  0x2b   : > { %v1892_v34 = vpop.eup %1891  ;;  %v638_v35 = vadd.f32 1.0, %v1890_v29 }
  0x2c   : > { %v1894_v37 = vpop.eup %1893  ;;  %1905 = vrcp.f32 %v594_v30  ;;  %v639_v38 = vadd.f32 1.0, %v1892_v34  ;;  %1733 = vmatpush1.bf16.msra.mxu0 %v1732_v41 }
  0x2d   : > { %v1896_v39 = vpop.eup %1895  ;;  %1907 = vrcp.f32 %v638_v35  ;;  %v640_v40 = vadd.f32 1.0, %v1894_v37  ;;  %1769 = vmatpush1.bf16.msra.mxu1 %v1768_v42  ;;  %1734 = vmatprep.subr.bf16.mxu0 %v1967_v1 }
  0x2e   : > { %v1898_v45 = vpop.eup %1897  ;;  %1909 = vrcp.f32 %v639_v38  ;;  %v641_v46 = vadd.f32 1.0, %v1896_v39  ;;  %1770 = vmatprep.subr.bf16.mxu1 %v1967_v1 }
  0x2f   : > { %v1900_v52 = vpop.eup %1899  ;;  %1911 = vrcp.f32 %v640_v40  ;;  %v642_v53 = vadd.f32 1.0, %v1898_v45 }
  0x30   : > { %v1902_v57 = vpop.eup %1901  ;;  %1913 = vrcp.f32 %v641_v46  ;;  %v643_v58 = vadd.f32 1.0, %v1900_v52  ;;  %1736 = vmatpush1.bf16.msra.mxu0 %v1735_v61 }
  0x31   : > { %v1904_v59 = vpop.eup %1903  ;;  %v644_v60 = vadd.f32 1.0, %v1902_v57  ;;  %1915 = vrcp.f32 %v642_v53  ;;  %1772 = vmatpush1.bf16.msra.mxu1 %v1771_v63  ;;  %1737 = vmatprep.subr.bf16.mxu0 %v1967_v1 }
  0x32   : > { %v645_v2 = vadd.f32 1.0, %v1904_v59  ;;  %1917 = vrcp.f32 %v643_v58  ;;  %1773 = vmatprep.subr.bf16.mxu1 %v1967_v1 }
  0x33   : > { %1919 = vrcp.f32 %v644_v60 }
  0x34   : > { %1921 = vrcp.f32 %v645_v2  ;;  %1739 = vmatpush1.bf16.msra.mxu0 %v1738_v8 }
  0x35   : > { %1923 = vpow2.f32 %v1622_v7  ;;  %1775 = vmatpush1.bf16.msra.mxu1 %v1774_v9  ;;  %1740 = vmatprep.subr.bf16.mxu0 %v1967_v1 }
  0x36   : > { %v1906_v12 = vpop.eup %1905  ;;  %1776 = vmatprep.subr.bf16.mxu1 %v1967_v1 }
  0x37   : > { %v1908_v17 = vpop.eup %1907  ;;  %v597_v18 = vmul.f32 %v1906_v12, %v2195_v43 }
  0x38   : > { %v1910_v19 = vpop.eup %1909  ;;  %v662_v20 = vmul.f32 %v1908_v17, %v2202_v48  ;;  %1742 = vmatpush1.bf16.msra.mxu0 %v1741_v25 }
  0x39   : > { %v1912_v21 = vpop.eup %1911  ;;  %v683_v22 = vsel %vm2347_vm0, %v597_v18, 0.0  ;;  %v663_v24 = vmul.f32 %v1910_v19, %v2205_v49  ;;  %1778 = vmatpush1.bf16.msra.mxu1 %v1777_v26  ;;  %1779 = vmatprep.subr.bf16.mxu0 %v1967_v1 }
  0x3a   : > { %v1914_v28 = vpop.eup %1913  ;;  %v699_v29 = vrot.slane %v683_v22, 7  ;;  %v700_v30 = vrot.slane %v662_v20, 7  ;;  %v664_v43 = vmul.f32 %v1912_v21, %v2208_v50  ;;  %1815 = vmatprep.subr.bf16.mxu1 %v1967_v1 }
  0x3b   : > { %v701_v48 = vrot.slane %v663_v24, 7  ;;  %v665_v31 = vmul.f32 %v1914_v28, %v2220_v54  ;;  %v1916_v50 = vpop.eup %1915 }
  0x3c   : > { %v2372_v32 = vsel %vm719_vm1, 0.0, %v699_v29  ;;  %v2375_v49 = vsel %vm719_vm1, 0.0, %v700_v30  ;;  %v2378_v33 = vsel %vm719_vm1, %v699_v29, 0.0  ;;  %v2381_v34 = vsel %vm719_vm1, %v700_v30, 0.0  ;;  %v1918_v38 = vpop.eup %1917 }
  0x3d   : > { %v757_v35 = vrot.slane %v2372_v32, 1  ;;  %v758_v36 = vrot.slane %v2378_v33, 1  ;;  %v760_v37 = vrot.slane %v2375_v49, 1  ;;  %v761_v54 = vrot.slane %v2381_v34, 1  ;;  %v1920_v44 = vpop.eup %1919 }
  0x3e   : > { %v2388_v39 = vsel %vm719_vm1, 0.0, %v701_v48  ;;  %v2391_v40 = vsel %vm719_vm1, %v701_v48, 0.0  ;;  %v702_v41 = vrot.slane %v664_v43, 7  ;;  %v703_v42 = vrot.slane %v665_v31, 7  ;;  %v1922_v51 = vpop.eup %1921 }
  0x3f   : > { %v759_v45 = vsel %vm756_vm2, %v757_v35, %v758_v36  ;;  %v762_v46 = vsel %vm756_vm2, %v760_v37, %v761_v54  ;;  %v763_v23 = vrot.slane %v2388_v39, 1  ;;  %v764_v47 = vrot.slane %v2391_v40, 1  ;;  %v1924_v59 = vpop.eup %1923 }
  0x40   : > { %v1882_v52 = vpack.i.bf16 %v762_v46, %v759_v45  ;;  %v2400_v53 = vsel %vm719_vm1, 0.0, %v702_v41  ;;  %v2403_v57 = vsel %vm719_vm1, %v702_v41, 0.0  ;;  %v2406_v58 = vsel %vm719_vm1, 0.0, %v703_v42 }
  0x41   : > { %v765_v60 = vsel %vm756_vm2, %v763_v23, %v764_v47  ;;  %v766_v61 = vrot.slane %v2400_v53, 1  ;;  %v767_v63 = vrot.slane %v2403_v57, 1  ;;  %v816_v0 = vrot.slane %v2403_v57, 2 }
  0x42   : > { %1883 = vrot.lane.b32.xlu0 %v1882_v52, %s1968_s29  ;;  %v734_v2 = vsel %vm719_vm1, %v703_v42, 0.0  ;;  %v769_v27 = vrot.slane %v2406_v58, 1  ;;  %v666_v3 = vmul.f32 %v1916_v50, %v2223_v55  ;;  %v667_v5 = vmul.f32 %v1918_v38, %v2235_v62 }
  0x43   : > { %v768_v6 = vsel %vm756_vm2, %v766_v61, %v767_v63  ;;  %v770_v7 = vrot.slane %v734_v2, 1  ;;  %v668_v8 = vmul.f32 %v1920_v44, %v2248_v4  ;;  %v669_v9 = vmul.f32 %v1922_v51, %v2259_v11 }
  0x44   : > { %787 = vrot.lane.b32.xlu1 %v768_v6, %s1968_s29  ;;  %v704_v10 = vrot.slane %v666_v3, 7  ;;  %v705_v12 = vrot.slane %v667_v5, 7  ;;  %v675_v13 = vadd.f32 1.0, %v1924_v59  ;;  %v809_v14 = vrot.slane %v2375_v49, 2 }
  0x45   : > { %v771_v15 = vsel %vm756_vm2, %v769_v27, %v770_v7  ;;  %v706_v16 = vrot.slane %v668_v8, 7  ;;  %v707_v55 = vrot.slane %v669_v9, 7  ;;  %v810_v62 = vrot.slane %v2381_v34, 2 }
  0x46   : > { %785 = vrot.lane.b32.xlu0 %v765_v60, %s1968_s29  ;;  %v2426_v17 = vsel %vm719_vm1, 0.0, %v704_v10  ;;  %v735_v4 = vsel %vm719_vm1, %v704_v10, 0.0  ;;  %v2430_v11 = vsel %vm719_vm1, 0.0, %v705_v12  ;;  %v736_v18 = vsel %vm719_vm1, %v705_v12, 0.0 }
  0x47   : > { %v772_v19 = vrot.slane %v2426_v17, 1  ;;  %v773_v20 = vrot.slane %v735_v4, 1  ;;  %v775_v21 = vrot.slane %v2430_v11, 1  ;;  %v776_v22 = vrot.slane %v736_v18, 1 }
  0x48   : > { %789 = vrot.lane.b32.xlu1 %v771_v15, %s1968_s29  ;;  %v2437_v24 = vsel %vm719_vm1, 0.0, %v706_v16  ;;  %v737_v25 = vsel %vm719_vm1, %v706_v16, 0.0  ;;  %v2441_v26 = vsel %vm719_vm1, 0.0, %v707_v55  ;;  %v738_v28 = vsel %vm719_vm1, %v707_v55, 0.0 }
  0x49   : > { %v774_v29 = vsel %vm756_vm2, %v772_v19, %v773_v20  ;;  %v777_v30 = vsel %vm756_vm2, %v775_v21, %v776_v22  ;;  %v778_v43 = vrot.slane %v2437_v24, 1  ;;  %v779_v48 = vrot.slane %v737_v25, 1  ;;  %v1665_v22 = vld [vmem:[%s2774_s5 + $0x190] sm:$0xff] }
  0x4a   : > { %791 = vrot.lane.b32.xlu0 %v774_v29, %s1968_s29  ;;  %v865_v31 = vrot.slane %v2441_v26, 1  ;;  %v866_v34 = vrot.slane %v738_v28, 1  ;;  %1925 = vrcp.f32 %v675_v13  ;;  %v2451_v50 = vsel %vm805_vm3, %v809_v14, %v810_v62  ;;  %v1663_v62 = vld [vmem:[%s2774_s5 + $0x180] sm:$0xff] }
  0x4b   : > { %v780_v35 = vsel %vm756_vm2, %v778_v43, %v779_v48  ;;  %1647 = vmatprep.mubr.msk.f32.mxu0 %vm830_vm4, %v2451_v50  ;;  %v806_v36 = vrot.slane %v2372_v32, 2  ;;  %v807_v37 = vrot.slane %v2378_v33, 2  ;;  %v812_v54 = vrot.slane %v2388_v39, 2 }
  0x4c   : > { %793 = vrot.lane.b32.xlu1 %v777_v30, %s1968_s29  ;;  %v813_v38 = vrot.slane %v2391_v40, 2  ;;  %v867_v41 = vsel %vm756_vm2, %v865_v31, %v866_v34  ;;  %v815_v44 = vrot.slane %v2400_v53, 2  ;;  %v818_v45 = vrot.slane %v2406_v58, 2 }
  0x4d   : > { %v808_v42 = vsel %vm805_vm3, %v806_v36, %v807_v37  ;;  %v819_v46 = vrot.slane %v734_v2, 2  ;;  %v821_v47 = vrot.slane %v2426_v17, 2  ;;  %v822_v51 = vrot.slane %v735_v4, 2  ;;  %v1664_v4 = vld [vmem:[%s2774_s5 + $0x188] sm:$0xff] }
  0x4e   : > { %795 = vrot.lane.b32.xlu0 %v780_v35, %s1968_s29  ;;  %1655 = vmatprep.mubr.msk.f32.mxu1 %vm830_vm4, %v808_v42  ;;  %v2469_v33 = vsel %vm805_vm3, %v812_v54, %v813_v38  ;;  %v2473_v40 = vsel %vm805_vm3, %v815_v44, %v816_v0  ;;  %v686_v52 = vstv %s685_s25  ;;  %v824_v60 = vrot.slane %v2430_v11, 2  ;;  %v1670_v35 = vld [vmem:[%s2774_s5 + $0x1b8] sm:$0xff]  ;;  %v1671_v54 = vld [vmem:[%s2774_s5 + $0x1c0] sm:$0xff] }
  0x4f   : > { %v2477_v23 = vsel %vm805_vm3, %v818_v45, %v819_v46  ;;  %v2481_v57 = vsel %vm805_vm3, %v821_v47, %v822_v51  ;;  %vm687_vm5 = vcmp.eq.s32.totalorder %v686_v52, 1  ;;  %v825_v61 = vrot.slane %v736_v18, 2  ;;  %v1672_v38 = vld [vmem:[%s2774_s5 + $0x1c8] sm:$0xff]  ;;  %v1673_v44 = vld [vmem:[%s2774_s5 + $0x1d0] sm:$0xff]  ;;  %v1674_v45 = vld [vmem:[%s2774_s5 + $0x1d8] sm:$0xff] }
  0x50   : > { %868 = vrot.lane.b32.xlu1 %v867_v41, %s1968_s29  ;;  %v827_v3 = vrot.slane %v2437_v24, 2  ;;  %v828_v5 = vrot.slane %v737_v25, 2  ;;  %v872_v12 = vrot.slane %v738_v28, 2  ;;  %v1780_v21 = vpack.c.bf16 %v1664_v4, %v1663_v62  ;;  %v1666_v25 = vld [vmem:[%s2774_s5 + $0x198] sm:$0xff]  ;;  %v1675_v51 = vld [vmem:[%s2774_s5 + $0x1e0] sm:$0xff]  ;;  %v1676_v52 = vld [vmem:[%s2774_s5 + $0x1e8] sm:$0xff] }
  0x51   : > { %v2486_v0 = vsel %vm805_vm3, %v824_v60, %v825_v61  ;;  %v1783_v31 = vpack.c.bf16 %v1666_v25, %v1665_v22  ;;  %v1677_v61 = vld [vmem:[%s2774_s5 + $0x1f0] sm:$0xff] }
  0x52   : > { %v2494_v8 = vsel %vm805_vm3, %v827_v3, %v828_v5  ;;  %v1679_v3 = vld [vmem:[%s2774_s5 + $0x200] sm:$0xff]  ;;  %v1680_v5 = vld [vmem:[%s2774_s5 + $0x208] sm:$0xff] }
  0x54   : > { %v1926_v59 = vpop.eup %1925 }
  0x55   : > { %v678_v63 = vmul.f32 %v1926_v59, %v2326_v56  ;;  %v871_v56 = vrot.slane %v2441_v26, 2 }
  0x57   : > { %v688_v2 = vsel %vm687_vm5, %v678_v63, 0.0  ;;  %v2501_v14 = vsel %vm805_vm3, %v871_v56, %v872_v12  ;;  %v1678_v63 = vld [vmem:[%s2774_s5 + $0x1f8] sm:$0xff]  ;;  %v1683_v56 = vld [vmem:[%s2774_s5 + $0x220] sm:$0xff]  ;;  %v1684_v12 = vld [vmem:[%s2774_s5 + $0x228] sm:$0xff] }
  0x58   : > { %v708_v27 = vrot.slane %v688_v2, 7 }
  0x5a   : > { %v2490_v6 = vsel %vm719_vm1, 0.0, %v708_v27  ;;  %v739_v7 = vsel %vm719_vm1, %v708_v27, 0.0 }
  0x5b   : > { %v1130_v9 = vrot.slane %v2490_v6, 1  ;;  %v1131_v10 = vrot.slane %v739_v7, 1  ;;  %v1136_v15 = vrot.slane %v2490_v6, 2  ;;  %v1137_v16 = vrot.slane %v739_v7, 2  ;;  %v1681_v7 = vld [vmem:[%s2774_s5 + $0x210] sm:$0xff] }
  0x5d   : > { %v1132_v13 = vsel %vm756_vm2, %v1130_v9, %v1131_v10  ;;  %v2505_v55 = vsel %vm805_vm3, %v1136_v15, %v1137_v16  ;;  %v1682_v9 = vld [vmem:[%s2774_s5 + $0x218] sm:$0xff] }
  0x5e   : > { %1133 = vrot.lane.b32.xlu0 %v1132_v13, %s1968_s29  ;;  %v1807_v10 = vpack.c.bf16 %v1682_v9, %v1681_v7  ;;  %v1686_v13 = vld [vmem:[%s2774_s5 + $0x238] sm:$0xff] }
  0xb4   : > { %v1884_v18 = vpop.permute.xlu0 %1883 }
  0xb5   : > { %v1886_v19 = vunpack.i.h.bf16 %v1884_v18  ;;  %v1885_v20 = vunpack.i.l.bf16 %v1884_v18 }
  0xb6   : > { %v788_v43 = vpop.permute.xlu1 %787 }
  0xb7   : > { %v832_v28 = vsel %vm830_vm4, %v2375_v49, %v1886_v19  ;;  %v831_v29 = vsel %vm830_vm4, %v2372_v32, %v1885_v20  ;;  %v1667_v32 = vld [vmem:[%s2774_s5 + $0x1a0] sm:$0xff]  ;;  %v1668_v49 = vld [vmem:[%s2774_s5 + $0x1a8] sm:$0xff]  ;;  %v2542_v34 = vsel %vm830_vm4, %v2400_v53, %v788_v43 }
  0xb8   : > { %981 = vmatmul.mubr.f32.vlgmr.msra.gmra.mrb[0].mxu0 %v832_v28  ;;  %1088 = vmatmul.mubr.f32.vlgmr.msra.gmra.mrb[0].mxu1 %v831_v29  ;;  %v786_v30 = vpop.permute.xlu0 %785 }
  0xb9   : > { %1781 = vmatpush1.bf16.msra.mxu0 %v1780_v21  ;;  %1827 = vmatpush1.bf16.msra.mxu1 %v1780_v21  ;;  %v2525_v48 = vsel %vm830_vm4, %v2388_v39, %v786_v30  ;;  %v1786_v39 = vpack.c.bf16 %v1668_v49, %v1667_v32 }
  0xba   : > { %1648 = vmatprep.mubr.msk.f32.mxu0 %vm830_vm4, %v2469_v33  ;;  %1656 = vmatprep.mubr.msk.f32.mxu1 %vm830_vm4, %v2451_v50  ;;  %v1669_v50 = vld [vmem:[%s2774_s5 + $0x1b0] sm:$0xff]  ;;  %v790_v36 = vpop.permute.xlu1 %789 }
  0xbb   : > { %1782 = vmatprep.subr.bf16.mxu0 %v1967_v1  ;;  %1816 = vmatprep.subr.bf16.mxu1 %v1967_v1  ;;  %v1789_v53 = vpack.c.bf16 %v1670_v35, %v1669_v50  ;;  %v2560_v37 = vsel %vm830_vm4, %v2406_v58, %v790_v36  ;;  %v1792_v58 = vpack.c.bf16 %v1672_v38, %v1671_v54 }
  0xbc   : > { %986 = vmatmul.mubr.f32.gmra.mrb[2].mxu0 %v2525_v48  ;;  %1093 = vmatmul.mubr.f32.gmra.mrb[2].mxu1 %v832_v28  ;;  %v792_v41 = vpop.permute.xlu0 %791 }
  0xbd   : > { %1784 = vmatpush1.bf16.msra.mxu0 %v1783_v31  ;;  %1828 = vmatpush1.bf16.msra.mxu1 %v1783_v31  ;;  %v2578_v42 = vsel %vm830_vm4, %v2426_v17, %v792_v41  ;;  %v1795_v17 = vpack.c.bf16 %v1674_v45, %v1673_v44 }
  0xbe   : > { %1785 = vmatprep.subr.bf16.mxu0 %v1967_v1  ;;  %1817 = vmatprep.subr.bf16.mxu1 %v1967_v1  ;;  %v794_v46 = vpop.permute.xlu1 %793 }
  0xbf   : > { %1657 = vmatprep.mubr.msk.f32.mxu1 %vm830_vm4, %v2469_v33  ;;  %1649 = vmatprep.mubr.msk.f32.mxu0 %vm830_vm4, %v2473_v40  ;;  %v2596_v47 = vsel %vm830_vm4, %v2430_v11, %v794_v46  ;;  %v1798_v11 = vpack.c.bf16 %v1676_v52, %v1675_v51  ;;  %v1695_v52 = vld [vmem:[%s2775_s6] ss:$0 sm:$0xff] }
  0xc0   : > { %1098 = vmatmul.mubr.f32.gmra.mrb[4].mxu1 %v2525_v48  ;;  %991 = vmatmul.mubr.f32.gmra.mrb[4].mxu0 %v2542_v34  ;;  %v796_v59 = vpop.permute.xlu0 %795 }
  0xc1   : > { %1787 = vmatpush1.bf16.msra.mxu0 %v1786_v39  ;;  %1829 = vmatpush1.bf16.msra.mxu1 %v1786_v39  ;;  %v838_v60 = vsel %vm830_vm4, %v2437_v24, %v796_v59  ;;  %v1801_v24 = vpack.c.bf16 %v1678_v63, %v1677_v61 }
  0xc2   : > { %1788 = vmatprep.subr.bf16.mxu0 %v1967_v1  ;;  %1818 = vmatprep.subr.bf16.mxu1 %v1967_v1  ;;  %v869_v2 = vpop.permute.xlu1 %868 }
  0xc3   : > { %1658 = vmatprep.mubr.msk.f32.mxu1 %vm830_vm4, %v2473_v40  ;;  %1650 = vmatprep.mubr.msk.f32.mxu0 %vm830_vm4, %v2477_v23  ;;  %v874_v27 = vsel %vm830_vm4, %v2441_v26, %v869_v2  ;;  %v1804_v26 = vpack.c.bf16 %v1680_v5, %v1679_v3  ;;  %v1295_v2 = vld [vmem:[%s2696_s27] sm:$0xff] }
  0xc4   : > { %1103 = vmatmul.mubr.f32.gmra.mrb[6].mxu1 %v2542_v34  ;;  %996 = vmatmul.mubr.f32.gmra.mrb[6].mxu0 %v2560_v37 }
  0xc5   : > { %1790 = vmatpush1.bf16.msra.mxu0 %v1789_v53  ;;  %1830 = vmatpush1.bf16.msra.mxu1 %v1789_v53 }
  0xc6   : > { %1791 = vmatprep.subr.bf16.mxu0 %v1967_v1  ;;  %1819 = vmatprep.subr.bf16.mxu1 %v1967_v1 }
  0xc7   : > { %1659 = vmatprep.mubr.msk.f32.mxu1 %vm830_vm4, %v2477_v23  ;;  %1651 = vmatprep.mubr.msk.f32.mxu0 %vm830_vm4, %v2481_v57 }
  0xc8   : > { %1108 = vmatmul.mubr.f32.gmra.mrb[8].mxu1 %v2560_v37  ;;  %1001 = vmatmul.mubr.f32.gmra.mrb[8].mxu0 %v2578_v42 }
  0xc9   : > { %1793 = vmatpush1.bf16.msra.mxu0 %v1792_v58  ;;  %1831 = vmatpush1.bf16.msra.mxu1 %v1792_v58 }
  0xca   : > { %1794 = vmatprep.subr.bf16.mxu0 %v1967_v1  ;;  %1820 = vmatprep.subr.bf16.mxu1 %v1967_v1 }
  0xcb   : > { %1660 = vmatprep.mubr.msk.f32.mxu1 %vm830_vm4, %v2481_v57  ;;  %1652 = vmatprep.mubr.msk.f32.mxu0 %vm830_vm4, %v2486_v0 }
  0xcc   : > { %1113 = vmatmul.mubr.f32.gmra.mrb[10].mxu1 %v2578_v42  ;;  %1006 = vmatmul.mubr.f32.gmra.mrb[10].mxu0 %v2596_v47 }
  0xcd   : > { %1796 = vmatpush1.bf16.msra.mxu0 %v1795_v17  ;;  %1832 = vmatpush1.bf16.msra.mxu1 %v1795_v17 }
  0xce   : > { %1797 = vmatprep.subr.bf16.mxu0 %v1967_v1  ;;  %1821 = vmatprep.subr.bf16.mxu1 %v1967_v1 }
  0xcf   : > { %1661 = vmatprep.mubr.msk.f32.mxu1 %vm830_vm4, %v2486_v0  ;;  %1653 = vmatprep.mubr.msk.f32.mxu0 %vm830_vm4, %v2494_v8 }
  0xd0   : > { %1118 = vmatmul.mubr.f32.gmra.mrb[12].mxu1 %v2596_v47  ;;  %1011 = vmatmul.mubr.f32.gmra.mrb[12].mxu0 %v838_v60 }
  0xd1   : > { %1799 = vmatpush1.bf16.msra.mxu0 %v1798_v11  ;;  %1833 = vmatpush1.bf16.msra.mxu1 %v1798_v11 }
  0xd2   : > { %1800 = vmatprep.subr.bf16.mxu0 %v1967_v1  ;;  %1822 = vmatprep.subr.bf16.mxu1 %v1967_v1 }
  0xd3   : > { %1662 = vmatprep.mubr.msk.f32.mxu1 %vm830_vm4, %v2494_v8  ;;  %1654 = vmatprep.mubr.msk.f32.mxu0 %vm830_vm4, %v2501_v14 }
  0xd4   : > { %1123 = vmatmul.mubr.f32.gmra.mrb[14].mxu1 %v838_v60  ;;  %1016 = vmatmul.mubr.f32.gmra.mrb[14].mxu0 %v874_v27 }
  0xd5   : > { %1802 = vmatpush1.bf16.msra.mxu0 %v1801_v24  ;;  %1834 = vmatpush1.bf16.msra.mxu1 %v1801_v24  ;;  %v1299_v24 = vld [vmem:[%s2696_s27 + $0x20] sm:$0xff] }
  0xd6   : > { %1803 = vmatprep.subr.bf16.mxu0 %v1967_v1  ;;  %1823 = vmatprep.subr.bf16.mxu1 %v1967_v1 }
  0xd7   : > { %1687 = vmatprep.mubr.msk.f32.mxu0 %vm830_vm4, %v2469_v33  ;;  %1691 = vmatprep.mubr.msk.f32.mxu1 %vm830_vm4, %v2486_v0  ;;  %v1810_v33 = vpack.c.bf16 %v1684_v12, %v1683_v56  ;;  %v1685_v0 = vld [vmem:[%s2774_s5 + $0x230] sm:$0xff] }
  0xd8   : > { %v1813_v15 = vpack.c.bf16 %v1686_v13, %v1685_v0  ;;  %v1296_v0 = vld [vmem:[%s2696_s27 + $0x8] sm:$0xff] }
  0xd9   : > { %1805 = vmatpush1.bf16.msra.mxu0 %v1804_v26  ;;  %1835 = vmatpush1.bf16.msra.mxu1 %v1804_v26  ;;  %v1300_v13 = vld [vmem:[%s2696_s27 + $0x28] sm:$0xff] }
  0xda   : > { %1806 = vmatprep.subr.bf16.mxu0 %v1967_v1  ;;  %1824 = vmatprep.subr.bf16.mxu1 %v1967_v1 }
  0xdd   : > { %1808 = vmatpush1.bf16.msra.mxu0 %v1807_v10  ;;  %1836 = vmatpush1.bf16.msra.mxu1 %v1807_v10 }
  0xde   : > { %1809 = vmatprep.subr.bf16.mxu0 %v1967_v1  ;;  %1825 = vmatprep.subr.bf16.mxu1 %v1967_v1 }
  0xe1   : > { %1811 = vmatpush1.bf16.msra.mxu0 %v1810_v33  ;;  %1837 = vmatpush1.bf16.msra.mxu1 %v1810_v33 }
  0xe2   : > { %1812 = vmatprep.subr.bf16.mxu0 %v1967_v1  ;;  %1826 = vmatprep.subr.bf16.mxu1 %v1967_v1  ;;  %v1134_v1 = vpop.permute.xlu0 %1133 }
  0xe5   : > { %1814 = vmatpush1.bf16.msra.mxu0 %v1813_v15  ;;  %1838 = vmatpush1.bf16.msra.mxu1 %v1813_v15 }
  0xe8   : > { %1232 = vmatmul.mubr.f32.vlgmr.msra.gmra.mrb[16].mxu0 %v2525_v48  ;;  %1252 = vmatmul.mubr.f32.vlgmr.msra.gmra.mrb[16].mxu1 %v2596_v47 }
  0xe9   : > { %1688 = vmatprep.mubr.msk.f32.mxu0 %vm830_vm4, %v2473_v40  ;;  %1692 = vmatprep.mubr.msk.f32.mxu1 %vm830_vm4, %v2494_v8  ;;  %v1139_v40 = vsel %vm830_vm4, %v2490_v6, %v1134_v1 }
  0xec   : > { %1237 = vmatmul.mubr.f32.gmra.mrb[18].mxu0 %v2542_v34  ;;  %1257 = vmatmul.mubr.f32.gmra.mrb[18].mxu1 %v838_v60 }
  0xed   : > { %1689 = vmatprep.mubr.msk.f32.mxu0 %vm830_vm4, %v2477_v23  ;;  %1693 = vmatprep.mubr.msk.f32.mxu1 %vm830_vm4, %v2501_v14 }
  0xf0   : > { %1242 = vmatmul.mubr.f32.gmra.mrb[20].mxu0 %v2560_v37  ;;  %1262 = vmatmul.mubr.f32.gmra.mrb[20].mxu1 %v874_v27 }
  0xf1   : > { %1690 = vmatprep.mubr.msk.f32.mxu0 %vm830_vm4, %v2481_v57  ;;  %1694 = vmatprep.mubr.msk.f32.mxu1 %vm830_vm4, %v2505_v55 }
  0xf4   : > { %1247 = vmatmul.mubr.f32.gmra.mrb[22].mxu0 %v2578_v42  ;;  %1267 = vmatmul.mubr.f32.gmra.mrb[22].mxu1 %v1139_v40 }
 0x18b   : > { %v982_v23 = vpop.f32.mrb[0].mxu0  ;;  %v1089_v8 = vpop.f32.mrb[0].mxu1 }
 0x18c   : > { %v1090_v16 = vadd.f32 %v1089_v8, %v982_v23  ;;  %v984_v14 = vpop.f32.mrb[1].mxu0  ;;  %v1091_v62 = vpop.f32.mrb[1].mxu1 }
 0x18f   : > { %v987_v4 = vpop.f32.mrb[2].mxu0  ;;  %v1094_v18 = vpop.f32.mrb[2].mxu1 }
 0x190   : > { %v1095_v19 = vadd.f32 %v1094_v18, %v987_v4  ;;  %v1096_v20 = vpop.f32.mrb[3].mxu1  ;;  %v989_v21 = vpop.f32.mrb[3].mxu0 }
 0x191   : > { %v1301_v20 = vld [vmem:[%s2696_s27 + $0x30] sm:$0xff] }
 0x193   : > { %v1099_v57 = vpop.f32.mrb[4].mxu1  ;;  %v992_v22 = vpop.f32.mrb[4].mxu0 }
 0x194   : > { %v1100_v25 = vadd.f32 %v1099_v57, %v992_v22  ;;  %v1101_v55 = vpop.f32.mrb[5].mxu1  ;;  %v994_v28 = vpop.f32.mrb[5].mxu0 }
 0x197   : > { %v1104_v29 = vpop.f32.mrb[6].mxu1  ;;  %v997_v6 = vpop.f32.mrb[6].mxu0 }
 0x198   : > { %v2690_v30 = vadd.f32 %v1104_v29, %v997_v6  ;;  %v1106_v43 = vpop.f32.mrb[7].mxu1  ;;  %v999_v48 = vpop.f32.mrb[7].mxu0 }
 0x19b   : > { %v1109_v31 = vpop.f32.mrb[8].mxu1  ;;  %v1002_v32 = vpop.f32.mrb[8].mxu0 }
 0x19c   : > { %v1110_v49 = vadd.f32 %v1109_v31, %v1002_v32  ;;  %v1111_v39 = vpop.f32.mrb[9].mxu1  ;;  %v1004_v34 = vpop.f32.mrb[9].mxu0  ;;  %v1298_v31 = vld [vmem:[%s2696_s27 + $0x18] sm:$0xff] }
 0x19d   : > { %v1302_v32 = vld [vmem:[%s2696_s27 + $0x38] sm:$0xff] }
 0x19f   : > { %v1114_v50 = vpop.f32.mrb[10].mxu1  ;;  %v1007_v35 = vpop.f32.mrb[10].mxu0 }
 0x1a0   : > { %v1115_v36 = vadd.f32 %v1114_v50, %v1007_v35  ;;  %v1116_v53 = vpop.f32.mrb[11].mxu1  ;;  %v1009_v37 = vpop.f32.mrb[11].mxu0 }
 0x1a3   : > { %v1119_v54 = vpop.f32.mrb[12].mxu1  ;;  %v1012_v38 = vpop.f32.mrb[12].mxu0 }
 0x1a4   : > { %v1120_v41 = vadd.f32 %v1119_v54, %v1012_v38  ;;  %v1121_v58 = vpop.f32.mrb[13].mxu1  ;;  %v1014_v42 = vpop.f32.mrb[13].mxu0 }
 0x1a7   : > { %v1124_v44 = vpop.f32.mrb[14].mxu1  ;;  %v1017_v45 = vpop.f32.mrb[14].mxu0 }
 0x1a8   : > { %v1125_v46 = vadd.f32 %v1124_v44, %v1017_v45  ;;  %v1126_v17 = vpop.f32.mrb[15].mxu1  ;;  %v1019_v47 = vpop.f32.mrb[15].mxu0 }
 0x1bb   : > { %v1233_v51 = vpop.f32.mrb[16].mxu0  ;;  %v1253_v59 = vpop.f32.mrb[16].mxu1 }
 0x1bc   : > { %v1272_v11 = vadd.f32 %v1233_v51, %v1090_v16  ;;  %v1276_v60 = vadd.f32 %v1253_v59, %v1110_v49  ;;  %v1235_v61 = vpop.f32.mrb[17].mxu0  ;;  %v1255_v63 = vpop.f32.mrb[17].mxu1 }
 0x1be   : > { %v1287_v27 = vadd.f32 %v1695_v52, %v1272_v11  ;;  %v1291_v3 = vadd.f32 %v1695_v52, %v1276_v60 }
 0x1bf   : > { %v1238_v5 = vpop.f32.mrb[18].mxu0  ;;  %v1258_v26 = vpop.f32.mrb[18].mxu1 }
 0x1c0   : > { %v1303_v7 = vadd.f32 %v1295_v2, %v1287_v27  ;;  %v1307_v9 = vadd.f32 %v1299_v24, %v1291_v3  ;;  %v1273_v10 = vadd.f32 %v1238_v5, %v1095_v19  ;;  %v1277_v56 = vadd.f32 %v1258_v26, %v1115_v36  ;;  %v1240_v12 = vpop.f32.mrb[19].mxu0  ;;  %v1260_v33 = vpop.f32.mrb[19].mxu1  ;;  %v1297_v19 = vld [vmem:[%s2696_s27 + $0x10] sm:$0xff] }
 0x1c2   : > { %1311 = vst.msk [vmem:[%s2707_s3] sm:$0xff] %vm830_vm4, %v1303_v7  ;;  %1315 = vst.msk [vmem:[%s2707_s3 + $0x20] sm:$0xff] %vm830_vm4, %v1307_v9  ;;  %v1288_v15 = vadd.f32 %v1695_v52, %v1273_v10  ;;  %v1292_v1 = vadd.f32 %v1695_v52, %v1277_v56 }
 0x1c3   : > { %v1243_v40 = vpop.f32.mrb[20].mxu0  ;;  %v1263_v23 = vpop.f32.mrb[20].mxu1 }
 0x1c4   : > { %v1304_v8 = vadd.f32 %v1296_v0, %v1288_v15  ;;  %v1308_v16 = vadd.f32 %v1300_v13, %v1292_v1  ;;  %v1274_v14 = vadd.f32 %v1243_v40, %v1100_v25  ;;  %v1278_v62 = vadd.f32 %v1263_v23, %v1120_v41  ;;  %v1245_v4 = vpop.f32.mrb[21].mxu0  ;;  %v1265_v18 = vpop.f32.mrb[21].mxu1 }
 0x1c6   : > { %1312 = vst.msk [vmem:[%s2707_s3 + $0x8] sm:$0xff] %vm830_vm4, %v1304_v8  ;;  %1316 = vst.msk [vmem:[%s2707_s3 + $0x28] sm:$0xff] %vm830_vm4, %v1308_v16  ;;  %v1289_v21 = vadd.f32 %v1695_v52, %v1274_v14  ;;  %v1293_v57 = vadd.f32 %v1695_v52, %v1278_v62 }
 0x1c7   : > { %v1248_v22 = vpop.f32.mrb[22].mxu0  ;;  %v1268_v55 = vpop.f32.mrb[22].mxu1 }
 0x1c8   : > { %v1305_v25 = vadd.f32 %v1297_v19, %v1289_v21  ;;  %v1309_v28 = vadd.f32 %v1301_v20, %v1293_v57  ;;  %v1275_v29 = vadd.f32 %v1248_v22, %v2690_v30  ;;  %v1279_v6 = vadd.f32 %v1268_v55, %v1125_v46  ;;  %v1250_v43 = vpop.f32.mrb[23].mxu0  ;;  %v1270_v48 = vpop.f32.mrb[23].mxu1  ;;  %1322 = sbr.rel (%p1696_p12) target bundleno = 463 (0x1cf), region = 56 }
 0x1c9   : > { %v1969_v30 = vmov (!%p1696_p12), 0.0  }
 0x1ca   : > { %1313 = vst.msk [vmem:[%s2707_s3 + $0x10] sm:$0xff] %vm830_vm4, %v1305_v25  ;;  %1317 = vst.msk [vmem:[%s2707_s3 + $0x30] sm:$0xff] %vm830_vm4, %v1309_v28  ;;  %v1290_v49 = vadd.f32 %v1695_v52, %v1275_v29  ;;  %v1294_v39 = vadd.f32 %v1695_v52, %v1279_v6 }
 0x1cb   : > { %1324 = vst.msk [vmem:[%s2177_s10] sm:$0x3] (!%p1696_p12), %vm1323_vm6, %v1969_v30 }
 0x1cc   : > { %v1306_v34 = vadd.f32 %v1298_v31, %v1290_v49  ;;  %v1310_v50 = vadd.f32 %v1302_v32, %v1294_v39 }
 0x1ce   : > { %1314 = vst.msk [vmem:[%s2707_s3 + $0x18] sm:$0xff] %vm830_vm4, %v1306_v34  ;;  %1318 = vst.msk [vmem:[%s2707_s3 + $0x38] sm:$0xff] %vm830_vm4, %v1310_v50 }
 0x1cf PF: > { %v1326_v35 = vsel %vm830_vm4, %v1303_v7, 0.0  ;;  %v1327_v36 = vsel %vm830_vm4, %v1304_v8, 0.0  ;;  %v1329_v53 = vsel %vm830_vm4, %v1305_v25, 0.0  ;;  %v1331_v54 = vsel %vm830_vm4, %v1306_v34, 0.0 }
 0x1d0   : > { %v1328_v37 = vadd.f32 %v1327_v36, %v1326_v35  ;;  %v1351_v38 = vmul.f32 %v1303_v7, %v1303_v7  ;;  %v1352_v41 = vmul.f32 %v1304_v8, %v1304_v8  ;;  %v1353_v42 = vmul.f32 %v1305_v25, %v1305_v25 }
 0x1d1   : > { %v1354_v44 = vmul.f32 %v1306_v34, %v1306_v34  ;;  %v1333_v45 = vsel %vm830_vm4, %v1307_v9, 0.0  ;;  %v1355_v47 = vmul.f32 %v1307_v9, %v1307_v9  ;;  %v1335_v59 = vsel %vm830_vm4, %v1308_v16, 0.0 }
 0x1d2   : > { %v1330_v58 = vadd.f32 %v1329_v53, %v1328_v37  ;;  %v1359_v46 = vsel %vm830_vm4, %v1351_v38, 0.0  ;;  %v1360_v51 = vsel %vm830_vm4, %v1352_v41, 0.0  ;;  %v1362_v52 = vsel %vm830_vm4, %v1353_v42, 0.0  ;;  %v1325_v19 = vld [vmem:[%s2177_s10] sm:$0x1] }
 0x1d3   : > { %v1361_v11 = vadd.f32 %v1360_v51, %v1359_v46  ;;  %v1356_v61 = vmul.f32 %v1308_v16, %v1308_v16  ;;  %v1364_v63 = vsel %vm830_vm4, %v1354_v44, 0.0  ;;  %v1337_v2 = vsel %vm830_vm4, %v1309_v28, 0.0  ;;  %v1350_v25 = vld [vmem:[%s2177_s10 + $0x1] sm:$0x1] }
 0x1d4   : > { %v1332_v17 = vadd.f32 %v1331_v54, %v1330_v58  ;;  %v1357_v3 = vmul.f32 %v1309_v28, %v1309_v28  ;;  %v1366_v5 = vsel %vm830_vm4, %v1355_v47, 0.0  ;;  %v1339_v26 = vsel %vm830_vm4, %v1310_v50, 0.0 }
 0x1d5   : > { %v1363_v24 = vadd.f32 %v1362_v52, %v1361_v11  ;;  %v1358_v10 = vmul.f32 %v1310_v50, %v1310_v50  ;;  %v1368_v56 = vsel %vm830_vm4, %v1356_v61, 0.0  ;;  %vm1348_vm7 = vcmask 516096  }
 0x1d6   : > { %v1334_v60 = vadd.f32 %v1333_v45, %v1332_v17  ;;  %v1370_v0 = vsel %vm830_vm4, %v1357_v3, 0.0 }
 0x1d7   : > { %v1365_v7 = vadd.f32 %v1364_v63, %v1363_v24  ;;  %v1372_v1 = vsel %vm830_vm4, %v1358_v10, 0.0 }
 0x1d8   : > { %v1336_v27 = vadd.f32 %v1335_v59, %v1334_v60 }
 0x1d9   : > { %v1367_v12 = vadd.f32 %v1366_v5, %v1365_v7 }
 0x1da   : > { %v1338_v9 = vadd.f32 %v1337_v2, %v1336_v27 }
 0x1db   : > { %v1369_v13 = vadd.f32 %v1368_v56, %v1367_v12 }
 0x1dc   : > { %v1340_v33 = vadd.f32 %v1339_v26, %v1338_v9 }
 0x1dd   : > { %v1371_v40 = vadd.f32 %v1370_v0, %v1369_v13 }
 0x1de   : > { %v1341_v15 = vrot.slane %v1340_v33, 4 }
 0x1df   : > { %v1373_v8 = vadd.f32 %v1372_v1, %v1371_v40 }
 0x1e0   : > { %v1342_v23 = vadd.f32 %v1341_v15, %v1340_v33 }
 0x1e1   : > { %v1374_v14 = vrot.slane %v1373_v8, 4 }
 0x1e2   : > { %v1343_v16 = vrot.slane %v1342_v23, 2 }
 0x1e3   : > { %v1375_v4 = vadd.f32 %v1374_v14, %v1373_v8 }
 0x1e4   : > { %v1344_v62 = vadd.f32 %v1343_v16, %v1342_v23 }
 0x1e5   : > { %v1376_v20 = vrot.slane %v1375_v4, 2 }
 0x1e6   : > { %v1345_v18 = vrot.slane %v1344_v62, 1 }
 0x1e7   : > { %v1377_v57 = vadd.f32 %v1376_v20, %v1375_v4 }
 0x1e8   : > { %v1346_v21 = vadd.f32 %v1345_v18, %v1344_v62 }
 0x1e9   : > { %v1378_v55 = vrot.slane %v1377_v57, 1 }
 0x1ea   : > { %v1347_v22 = vadd.f32 %v1346_v21, %v1325_v19 }
 0x1eb   : > { %v1379_v28 = vadd.f32 %v1378_v55, %v1377_v57 }
 0x1ec   : > { %1349 = vst.msk [vmem:[%s2177_s10] sm:$0x1] %vm1348_vm7, %v1347_v22 }
 0x1ed   : > { %v1380_v29 = vadd.f32 %v1379_v28, %v1350_v25 }
 0x1ef   : > { %1381 = vst.msk [vmem:[%s2177_s10 + $0x1] sm:$0x1] %vm1348_vm7, %v1380_v29 }
 0x1f0 PF: > { %s20_s13 = sadd.s32 1, %s1965_s13   ;;  %s2785_s28 = sld [smem:[#allocation2_spill]] }
 0x1f1   : > { %p17_p13 = scmp.ge.s32.totalorder %s20_s13, 6   ;;  %s2786_s30 = smov %s1957_s11 }
 0x1f2   : > { %s2787_s10 = smov %s1961_s12  ;;  %s2788_s11 = smov %s2791_s14 }
 0x1f3   :  { %19 = sbr.rel (!%p17_p13) target bundleno = 3 (0x3), region = 115 }
 0x1f6   : > { %s2789_s12 = smov %s2785_s28 }

// kernel: up_block_fwd.14
= control target key start
LH: loop header
LB: loop body
LE: loop exit
PB: predicated region body
PF: predicated region fallthrough
CT: control target
= control target key end

     0   :  { %s1879_s27 = smov 0   ;;  %s1881_s28 = smov 0   ;;  %s2609_s0 = inlined_call_operand.vmem [shape: f32[2,16,8,64], index: 0, kind: input, shape index: {}, may-alias: {0,1,2}]   ;;  %s2610_s1 = inlined_call_operand.vmem [shape: f32[2,16,8,64], index: 1, kind: input, shape index: {}, may-alias: {0,1,2}]   ;;  %s2611_s2 = inlined_call_operand.vmem [shape: f32[2,16,8,64], index: 2, kind: input, shape index: {}, may-alias: {0,1,2}]   ;;  %s2612_s3 = inlined_call_operand.vmem [shape: f32[2,1,64], index: 3, kind: input, shape index: {}]   ;;  %s2613_s4 = inlined_call_operand.vmem [shape: f32[2,1,64], index: 4, kind: input, shape index: {}]   ;;  %s2614_s5 = inlined_call_operand.vmem [shape: f32[3,192,64], index: 5, kind: input, shape index: {}]   ;;  %s2615_s6 = inlined_call_operand.vmem [shape: f32[1,64], index: 6, kind: input, shape index: {}]   ;;  %s2616_s7 = inlined_call_operand.vmem [shape: f32[2,16,8,64], index: 7, kind: input, shape index: {}]   ;;  %s2617_s8 = inlined_call_operand.vmem [shape: f32[2,16,8,64], index: 8, kind: output, shape index: {}]  }
   0x1   :  { %2618 = sst [smem:[#allocation2_spill]] %s2612_s3  ;;  %s1883_s29 = smov 0  }
   0x2   :  { %s1885_s30 = smov 0   ;;  %s1887_s9 = smov 0  }
   0x3 LB: > { %s27_s10 = sadd.s32 1, %s1822_s29  ;;  %s30_s11 = sadd.s32 1, %s1826_s30  ;;  %s1830_s9 = sphi %s1887_s9, %s18_s9   ;;  %s1826_s30 = sphi %s1885_s30, %s2628_s30   ;;  %s1822_s29 = sphi %s1883_s29, %s2627_s29   ;;  %s1818_s28 = sphi %s1881_s28, %s2626_s28   ;;  %s1814_s27 = sphi %s1879_s27, %s2625_s27  }
   0x4   : > { %p28_p0 = scmp.ge.s32.totalorder %s27_s10, 2  ;;  %p1453_p1 = scmp.ge.s32.totalorder %s1830_s9, 1 }
   0x5   : > { %p378_p2 = scmp.lt.s32.totalorder %s1830_s9, 5 }
   0x6   : > { %s2630_s10 = smov (%p28_p0, %s27_s10), 0  ;;  %s2632_s11 = smov (!%p28_p0, %s30_s11), %s1826_s30 }
   0x7   : > { %p379_p3 = pnand %p1453_p1, %p378_p2  ;;  %p32_p4 = scmp.ge.s32.totalorder %s2632_s11, 2 }
   0x8   : > { %s1914_s12 = sshll.u32 (!%p379_p3), %s1814_s27, 3  ;;  %p463_p5 = scmp.lt.s32.totalorder (!%p379_p3), %s1818_s28, 1  ;;  %v1490_v0 = vld [vmem:[%s2614_s5 + $0xc0] sm:$0xff] (!%p379_p3)  ;;  %v1832_v1 = vmov (!%p379_p3), 0.0|0.0   ;;  %v1491_v2 = vld [vmem:[%s2614_s5 + $0xc8] sm:$0xff] (!%p379_p3)  ;;  %v1492_v7 = vld [vmem:[%s2614_s5 + $0xd0] sm:$0xff] (!%p379_p3) }
   0x9   : > { %s2634_s11 = smov (%p32_p4, %s2632_s11), 0  ;;  %382 = sbr.rel (%p379_p3) target bundleno = 463 (0x1cf), region = 52 }
   0xa   : > { %s1921_s15 = sadd.s32 (!%p379_p3), 4294967295, %s1914_s12  ;;  %p478_p6 = scmp.lt.s32.totalorder (!%p379_p3), %s1914_s12, 15  ;;  %1573 = vmatprep.subr.bf16.mxu0 (!%p379_p3), %v1832_v1  ;;  %1609 = vmatprep.subr.bf16.mxu1 (!%p379_p3), %v1832_v1  ;;  %v801_v3 = vld [vmem:[%s2614_s5] sm:$0xff] (!%p379_p3)  ;;  %v802_v4 = vld [vmem:[%s2614_s5 + $0x8] sm:$0xff] (!%p379_p3)  ;;  %v1574_v5 = vpack.c.bf16 (!%p379_p3), %v1491_v2, %v1490_v0  ;;  %v1493_v8 = vld [vmem:[%s2614_s5 + $0xd8] sm:$0xff] (!%p379_p3)  ;;  %vm681_vm1 = vcmask (!%p379_p3), 1040384  }
   0xb   : > { %p461_p7 = scmp.gt.s32.totalorder (!%p379_p3), %s1921_s15, 0  ;;  %p1456_p8 = scmp.lt.s32.totalorder (!%p379_p3), %s1921_s15, 15  ;;  %v1610_v6 = vpack.c.bf16 (!%p379_p3), %v802_v4, %v801_v3  ;;  %v803_v9 = vld [vmem:[%s2614_s5 + $0x10] sm:$0xff] (!%p379_p3)  ;;  %v804_v10 = vld [vmem:[%s2614_s5 + $0x18] sm:$0xff] (!%p379_p3)  ;;  %v1577_v11 = vpack.c.bf16 (!%p379_p3), %v1493_v8, %v1492_v7  ;;  %v1494_v13 = vld [vmem:[%s2614_s5 + $0xe0] sm:$0xff] (!%p379_p3)  ;;  %vm718_vm2 = vcmask (!%p379_p3), 1046528  }
   0xc   : > { %1575 = vmatpush1.bf16.msra.mxu0 (!%p379_p3), %v1574_v5  ;;  %v1613_v12 = vpack.c.bf16 (!%p379_p3), %v804_v10, %v803_v9  ;;  %s2619_s3 = sld [smem:[#allocation2_spill]] (!%p379_p3)  ;;  %v1495_v14 = vld [vmem:[%s2614_s5 + $0xe8] sm:$0xff] (!%p379_p3)  ;;  %v805_v15 = vld [vmem:[%s2614_s5 + $0x20] sm:$0xff] (!%p379_p3)  ;;  %v1496_v19 = vld [vmem:[%s2614_s5 + $0xf0] sm:$0xff] (!%p379_p3)  ;;  %s1572_s24 = sadd.s32 (!%p379_p3), 8, %s1914_s12  ;;  %vm767_vm4 = vcmask (!%p379_p3), 1045504  }
   0xd   : > { %1611 = vmatpush1.bf16.msra.mxu1 (!%p379_p3), %v1610_v6  ;;  %1576 = vmatprep.subr.bf16.mxu0 (!%p379_p3), %v1832_v1  ;;  %v806_v16 = vld [vmem:[%s2614_s5 + $0x28] sm:$0xff] (!%p379_p3)  ;;  %v1580_v17 = vpack.c.bf16 (!%p379_p3), %v1495_v14, %v1494_v13  ;;  %v1497_v20 = vld [vmem:[%s2614_s5 + $0xf8] sm:$0xff] (!%p379_p3)  ;;  %v807_v22 = vld [vmem:[%s2614_s5 + $0x30] sm:$0xff] (!%p379_p3)  ;;  %p2051_p9 = scmp.lt.s32.totalorder (!%p379_p3), %s1572_s24, 15  ;;  %p641_p10 = scmp.gt.s32.totalorder (!%p379_p3), %s1814_s27, 0  ;;  %vm792_vm5 = vcmask (!%p379_p3), 523264  }
   0xe   : > { %1612 = vmatprep.subr.bf16.mxu1 (!%p379_p3), %v1832_v1  ;;  %v1616_v18 = vpack.c.bf16 (!%p379_p3), %v806_v16, %v805_v15  ;;  %v808_v23 = vld [vmem:[%s2614_s5 + $0x38] sm:$0xff] (!%p379_p3)  ;;  %v2011_v24 = vld [vmem:[%s2614_s5 + $0x100] sm:$0xff] (!%p379_p3)  ;;  %v2016_v25 = vld [vmem:[%s2614_s5 + $0x108] sm:$0xff] (!%p379_p3)  ;;  %v1583_v34 = vpack.c.bf16 (!%p379_p3), %v1497_v20, %v1496_v19  ;;  %p646_p11 = scmp.lt.s32.totalorder (!%p379_p3), %s1814_s27, 1  ;;  %s1833_s27 = smov (!%p379_p3), 64  }
   0xf   : > { %v809_v28 = vld [vmem:[%s2614_s5 + $0x40] sm:$0xff] (!%p379_p3)  ;;  %v810_v29 = vld [vmem:[%s2614_s5 + $0x48] sm:$0xff] (!%p379_p3)  ;;  %v1619_v35 = vpack.c.bf16 (!%p379_p3), %v808_v23, %v807_v22  ;;  %v1586_v50 = vpack.c.bf16 (!%p379_p3), %v2016_v25, %v2011_v24  ;;  %v1500_v51 = vld [vmem:[%s2614_s5 + $0x110] sm:$0xff] (!%p379_p3) }
  0x10   : > { %s2636_s28 = smov (!%p463_p5, %s1818_s28), 1  ;;  %1578 = vmatpush1.bf16.msra.mxu0 %v1577_v11  ;;  %v1501_v52 = vld [vmem:[%s2614_s5 + $0x118] sm:$0xff]  ;;  %s2640_s24 = smov (!%p2051_p9, %s1572_s24), 15  ;;  %v1622_v57 = vpack.c.bf16 %v810_v29, %v809_v28  ;;  %v811_v58 = vld [vmem:[%s2614_s5 + $0x50] sm:$0xff]  ;;  %v1502_v9 = vld [vmem:[%s2614_s5 + $0x120] sm:$0xff] }
  0x11   : > { %s462_s17 = scalar_select %p461_p7, %s1921_s15, 0  ;;  %1614 = vmatpush1.bf16.msra.mxu1 %v1613_v12  ;;  %1579 = vmatprep.subr.bf16.mxu0 %v1832_v1  ;;  %v812_v59 = vld [vmem:[%s2614_s5 + $0x58] sm:$0xff]  ;;  %v1589_v5 = vpack.c.bf16 %v1501_v52, %v1500_v51  ;;  %v1503_v11 = vld [vmem:[%s2614_s5 + $0x128] sm:$0xff]  ;;  %v813_v12 = vld [vmem:[%s2614_s5 + $0x60] sm:$0xff] }
  0x12   : > { %s1959_s20 = sshll.u32 %s2636_s28, 4  ;;  %s503_s23 = scalar_lea.vmem %s2619_s3, %s2636_s28  ;;  %1615 = vmatprep.subr.bf16.mxu1 %v1832_v1  ;;  %v1625_v8 = vpack.c.bf16 %v812_v59, %v811_v58  ;;  %v814_v13 = vld [vmem:[%s2614_s5 + $0x68] sm:$0xff]  ;;  %v1504_v20 = vld [vmem:[%s2614_s5 + $0x130] sm:$0xff]  ;;  %v1505_v22 = vld [vmem:[%s2614_s5 + $0x138] sm:$0xff] }
  0x13   : > { %s2638_s17 = smov (!%p1456_p8, %s462_s17), 15  ;;  %s506_s3 = scalar_lea.vmem %s2613_s4, %s2636_s28  ;;  %v1993_v21 = vld [vmem:[%s503_s23] ss:$0 sm:$0xff]  ;;  %v1628_v19 = vpack.c.bf16 %v814_v13, %v813_v12  ;;  %v816_v23 = vld [vmem:[%s2614_s5 + $0x78] sm:$0xff]  ;;  %v1595_v28 = vpack.c.bf16 %v1505_v22, %v1504_v20  ;;  %v819_v51 = vld [vmem:[%s2614_s5 + $0x90] sm:$0xff] }
  0x14   : > { %s479_s18 = scalar_select %p478_p6, %s1914_s12, 15  ;;  %v2024_v27 = vld [vmem:[%s506_s3] ss:$0 sm:$0xff]  ;;  %1581 = vmatpush1.bf16.msra.mxu0 %v1580_v17  ;;  %v820_v52 = vld [vmem:[%s2614_s5 + $0x98] sm:$0xff]  ;;  %v1512_v12 = vld [vmem:[%s2614_s5 + $0x170] sm:$0xff] }
  0x15   : > { %s468_s19 = sadd.s32 %s2638_s17, %s1959_s20  ;;  %1617 = vmatpush1.bf16.msra.mxu1 %v1616_v18  ;;  %1582 = vmatprep.subr.bf16.mxu0 %v1832_v1  ;;  %s2642_s24 = smov (!%p2051_p9, %s2640_s24), 15  ;;  %v1592_v18 = vpack.c.bf16 %v1503_v11, %v1502_v9 }
  0x16   : > { %s1462_s15 = sshll.u32 %s468_s19, 3  ;;  %s481_s14 = sadd.s32 %s1959_s20, %s479_s18  ;;  %1618 = vmatprep.subr.bf16.mxu1 %v1832_v1 }
  0x17   : > { %s470_s19 = scalar_lea.vmem %s2609_s0, %s1462_s15  ;;  %s2006_s18 = sshll.u32 %s481_s14, 3 }
  0x18   : > { %s2022_s16 = scalar_lea.vmem %s2610_s1, %s2006_s18  ;;  %v527_v26 = vld [vmem:[%s470_s19] sm:$0xff]  ;;  %1584 = vmatpush1.bf16.msra.mxu0 %v1583_v34  ;;  %v818_v34 = vld [vmem:[%s2614_s5 + $0x88] sm:$0xff]  ;;  %s2569_s25 = scalar_lea.vmem %s2617_s8, %s2006_s18 }
  0x19   : > { %v528_v30 = vld [vmem:[%s2022_s16] sm:$0xff]  ;;  %v545_v31 = vmul.f32 %v1993_v21, %v527_v26  ;;  %v529_v32 = vld [vmem:[%s2022_s16 + $0x8] sm:$0xff]  ;;  %v530_v33 = vld [vmem:[%s2022_s16 + $0x10] sm:$0xff]  ;;  %1620 = vmatpush1.bf16.msra.mxu1 %v1619_v35  ;;  %1585 = vmatprep.subr.bf16.mxu0 %v1832_v1  ;;  %s2180_s3 = scalar_select %p641_p10, 1, 0 }
  0x1a   : > { %v560_v36 = vmul.f32 %v1993_v21, %v528_v30  ;;  %v561_v37 = vmul.f32 %v1993_v21, %v529_v32  ;;  %v562_v38 = vmul.f32 %v1993_v21, %v530_v33  ;;  %v531_v39 = vld [vmem:[%s2022_s16 + $0x18] sm:$0xff]  ;;  %v532_v40 = vld [vmem:[%s2022_s16 + $0x20] sm:$0xff]  ;;  %v533_v41 = vld [vmem:[%s2022_s16 + $0x28] sm:$0xff]  ;;  %1621 = vmatprep.subr.bf16.mxu1 %v1832_v1 }
  0x1b   : > { %v2046_v42 = vadd.f32 %v2024_v27, %v545_v31  ;;  %v563_v43 = vmul.f32 %v1993_v21, %v531_v39  ;;  %v564_v44 = vmul.f32 %v1993_v21, %v532_v40  ;;  %v565_v45 = vmul.f32 %v1993_v21, %v533_v41  ;;  %v534_v49 = vld [vmem:[%s2022_s16 + $0x30] sm:$0xff]  ;;  %v535_v56 = vld [vmem:[%s2022_s16 + $0x38] sm:$0xff]  ;;  %s494_s16 = sadd.s32 %s1959_s20, %s2642_s24  ;;  %v1506_v30 = vld [vmem:[%s2614_s5 + $0x140] sm:$0xff] }
  0x1c   : > { %v2056_v46 = vadd.f32 %v2024_v27, %v560_v36  ;;  %v2059_v47 = vadd.f32 %v2024_v27, %v561_v37  ;;  %v2062_v48 = vadd.f32 %v2024_v27, %v562_v38  ;;  %v566_v2 = vmul.f32 %v1993_v21, %v534_v49  ;;  %1587 = vmatpush1.bf16.msra.mxu0 %v1586_v50  ;;  %s1471_s21 = sshll.u32 %s494_s16, 3  ;;  %v817_v33 = vld [vmem:[%s2614_s5 + $0x80] sm:$0xff]  ;;  %v1509_v50 = vld [vmem:[%s2614_s5 + $0x158] sm:$0xff] }
  0x1d   : > { %v1480_v53 = vmul.f32 -1.442695, %v2046_v42  ;;  %v2075_v54 = vadd.f32 %v2024_v27, %v563_v43  ;;  %v2078_v55 = vadd.f32 %v2024_v27, %v564_v44  ;;  %v2093_v63 = vadd.f32 %v2024_v27, %v565_v45  ;;  %1623 = vmatpush1.bf16.msra.mxu1 %v1622_v57  ;;  %1588 = vmatprep.subr.bf16.mxu0 %v1832_v1  ;;  %s496_s26 = scalar_lea.vmem %s2611_s2, %s1471_s21  ;;  %v1508_v44 = vld [vmem:[%s2614_s5 + $0x150] sm:$0xff] }
  0x1e   : > { %v1481_v60 = vmul.f32 -1.442695, %v2056_v46  ;;  %v1482_v61 = vmul.f32 -1.442695, %v2059_v47  ;;  %v1483_v62 = vmul.f32 -1.442695, %v2062_v48  ;;  %v567_v4 = vmul.f32 %v1993_v21, %v535_v56  ;;  %1624 = vmatprep.subr.bf16.mxu1 %v1832_v1 }
  0x1f   : > { %1752 = vpow2.f32 %v1480_v53  ;;  %v1484_v0 = vmul.f32 -1.442695, %v2075_v54  ;;  %v1485_v3 = vmul.f32 -1.442695, %v2078_v55  ;;  %v1486_v6 = vmul.f32 -1.442695, %v2093_v63 }
  0x20   : > { %1754 = vpow2.f32 %v1481_v60  ;;  %v2105_v7 = vadd.f32 %v2024_v27, %v566_v2  ;;  %v2112_v10 = vadd.f32 %v2024_v27, %v567_v4  ;;  %v536_v16 = vld [vmem:[%s496_s26] sm:$0xff]  ;;  %1590 = vmatpush1.bf16.msra.mxu0 %v1589_v5  ;;  %v1634_v43 = vpack.c.bf16 %v818_v34, %v817_v33  ;;  %v822_v5 = vld [vmem:[%s2614_s5 + $0xa8] sm:$0xff]  ;;  %s2219_s20 = scalar_select %p646_p11, 1, 0 }
  0x21   : > { %1756 = vpow2.f32 %v1482_v61  ;;  %v632_v17 = vmul.f32 %v1993_v21, %v536_v16  ;;  %1626 = vmatpush1.bf16.msra.mxu1 %v1625_v8  ;;  %1591 = vmatprep.subr.bf16.mxu0 %v1832_v1  ;;  %v815_v21 = vld [vmem:[%s2614_s5 + $0x70] sm:$0xff]  ;;  %v1601_v61 = vpack.c.bf16 %v1509_v50, %v1508_v44  ;;  %v821_v4 = vld [vmem:[%s2614_s5 + $0xa0] sm:$0xff]  ;;  %v1513_v16 = vld [vmem:[%s2614_s5 + $0x178] sm:$0xff] }
  0x22   : > { %1758 = vpow2.f32 %v1483_v62  ;;  %v1487_v14 = vmul.f32 -1.442695, %v2105_v7  ;;  %v1488_v15 = vmul.f32 -1.442695, %v2112_v10  ;;  %1627 = vmatprep.subr.bf16.mxu1 %v1832_v1  ;;  %v1631_v29 = vpack.c.bf16 %v816_v23, %v815_v21 }
  0x23   : > { %1760 = vpow2.f32 %v1484_v0  ;;  %v2146_v24 = vadd.f32 %v2024_v27, %v632_v17  ;;  %v1507_v27 = vld [vmem:[%s2614_s5 + $0x148] sm:$0xff]  ;;  %v1637_v62 = vpack.c.bf16 %v820_v52, %v819_v51  ;;  %v1510_v0 = vld [vmem:[%s2614_s5 + $0x160] sm:$0xff]  ;;  %v1640_v11 = vpack.c.bf16 %v822_v5, %v821_v4  ;;  %v823_v17 = vld [vmem:[%s2614_s5 + $0xb0] sm:$0xff] }
  0x24   : > { %1762 = vpow2.f32 %v1485_v3  ;;  %1593 = vmatpush1.bf16.msra.mxu0 %v1592_v18  ;;  %v1598_v41 = vpack.c.bf16 %v1507_v27, %v1506_v30  ;;  %v1511_v3 = vld [vmem:[%s2614_s5 + $0x168] sm:$0xff]  ;;  %v824_v18 = vld [vmem:[%s2614_s5 + $0xb8] sm:$0xff]  ;;  %v648_v33 = vstv %s2219_s20 }
  0x25   : > { %1764 = vpow2.f32 %v1486_v6  ;;  %v1489_v26 = vmul.f32 -1.442695, %v2146_v24  ;;  %1629 = vmatpush1.bf16.msra.mxu1 %v1628_v19  ;;  %1594 = vmatprep.subr.bf16.mxu0 %v1832_v1  ;;  %v643_v6 = vstv %s2180_s3  ;;  %v1604_v9 = vpack.c.bf16 %v1511_v3, %v1510_v0 }
  0x26   : > { %1766 = vpow2.f32 %v1487_v14  ;;  %1630 = vmatprep.subr.bf16.mxu1 %v1832_v1  ;;  %vm2201_vm0 = vcmp.eq.s32.totalorder %v643_v6, 1  ;;  %vm2258_vm3 = vcmp.eq.s32.totalorder %v648_v33, 1 }
  0x27   : > { %1768 = vpow2.f32 %v1488_v15 }
  0x28   : > { %1770 = vpow2.f32 %v1489_v26  ;;  %1596 = vmatpush1.bf16.msra.mxu0 %v1595_v28  ;;  %v1607_v28 = vpack.c.bf16 %v1513_v16, %v1512_v12 }
  0x29   : > { %v1753_v25 = vpop.eup %1752  ;;  %1632 = vmatpush1.bf16.msra.mxu1 %v1631_v29  ;;  %1597 = vmatprep.subr.bf16.mxu0 %v1832_v1  ;;  %v1643_v29 = vpack.c.bf16 %v824_v18, %v823_v17 }
  0x2a   : > { %v1755_v31 = vpop.eup %1754  ;;  %v556_v32 = vadd.f32 1.0, %v1753_v25  ;;  %1633 = vmatprep.subr.bf16.mxu1 %v1832_v1 }
  0x2b   : > { %v1757_v35 = vpop.eup %1756  ;;  %v600_v36 = vadd.f32 1.0, %v1755_v31 }
  0x2c   : > { %v1759_v37 = vpop.eup %1758  ;;  %1772 = vrcp.f32 %v556_v32  ;;  %v601_v38 = vadd.f32 1.0, %v1757_v35  ;;  %1599 = vmatpush1.bf16.msra.mxu0 %v1598_v41 }
  0x2d   : > { %v1761_v39 = vpop.eup %1760  ;;  %1774 = vrcp.f32 %v600_v36  ;;  %v602_v40 = vadd.f32 1.0, %v1759_v37  ;;  %1635 = vmatpush1.bf16.msra.mxu1 %v1634_v43  ;;  %1600 = vmatprep.subr.bf16.mxu0 %v1832_v1 }
  0x2e   : > { %v1763_v45 = vpop.eup %1762  ;;  %1776 = vrcp.f32 %v601_v38  ;;  %v603_v49 = vadd.f32 1.0, %v1761_v39  ;;  %1636 = vmatprep.subr.bf16.mxu1 %v1832_v1 }
  0x2f   : > { %v1765_v53 = vpop.eup %1764  ;;  %1778 = vrcp.f32 %v602_v40  ;;  %v604_v56 = vadd.f32 1.0, %v1763_v45 }
  0x30   : > { %v1767_v57 = vpop.eup %1766  ;;  %1780 = vrcp.f32 %v603_v49  ;;  %v605_v58 = vadd.f32 1.0, %v1765_v53  ;;  %1602 = vmatpush1.bf16.msra.mxu0 %v1601_v61 }
  0x31   : > { %v1769_v59 = vpop.eup %1768  ;;  %v606_v60 = vadd.f32 1.0, %v1767_v57  ;;  %1782 = vrcp.f32 %v604_v56  ;;  %1638 = vmatpush1.bf16.msra.mxu1 %v1637_v62  ;;  %1603 = vmatprep.subr.bf16.mxu0 %v1832_v1 }
  0x32   : > { %v607_v2 = vadd.f32 1.0, %v1769_v59  ;;  %1784 = vrcp.f32 %v605_v58  ;;  %v1771_v8 = vpop.eup %1770  ;;  %1639 = vmatprep.subr.bf16.mxu1 %v1832_v1 }
  0x33   : > { %1786 = vrcp.f32 %v606_v60  ;;  %v637_v15 = vadd.f32 1.0, %v1771_v8 }
  0x34   : > { %1788 = vrcp.f32 %v607_v2  ;;  %1605 = vmatpush1.bf16.msra.mxu0 %v1604_v9 }
  0x35   : > { %1790 = vrcp.f32 %v637_v15  ;;  %1641 = vmatpush1.bf16.msra.mxu1 %v1640_v11  ;;  %1606 = vmatprep.subr.bf16.mxu0 %v1832_v1 }
  0x36   : > { %v1773_v13 = vpop.eup %1772  ;;  %1642 = vmatprep.subr.bf16.mxu1 %v1832_v1 }
  0x37   : > { %v1775_v19 = vpop.eup %1774  ;;  %v559_v20 = vmul.f32 %v1773_v13, %v2046_v42 }
  0x38   : > { %v1777_v22 = vpop.eup %1776  ;;  %v624_v21 = vmul.f32 %v1775_v19, %v2056_v46  ;;  %1608 = vmatpush1.bf16.msra.mxu0 %v1607_v28 }
  0x39   : > { %v1779_v23 = vpop.eup %1778  ;;  %v645_v25 = vsel %vm2201_vm0, %v559_v20, 0.0  ;;  %v625_v26 = vmul.f32 %v1777_v22, %v2059_v47  ;;  %1644 = vmatpush1.bf16.msra.mxu1 %v1643_v29  ;;  %1645 = vmatprep.subr.bf16.mxu0 %v1832_v1 }
  0x3a   : > { %v1781_v42 = vpop.eup %1780  ;;  %v661_v30 = vrot.slane %v645_v25, 7  ;;  %v662_v31 = vrot.slane %v624_v21, 7  ;;  %v626_v32 = vmul.f32 %v1779_v23, %v2062_v48  ;;  %1681 = vmatprep.subr.bf16.mxu1 %v1832_v1 }
  0x3b   : > { %v663_v46 = vrot.slane %v625_v26, 7  ;;  %v627_v27 = vmul.f32 %v1781_v42, %v2075_v54  ;;  %v1783_v36 = vpop.eup %1782 }
  0x3c   : > { %v2231_v47 = vsel %vm681_vm1, 0.0, %v661_v30  ;;  %v2234_v34 = vsel %vm681_vm1, 0.0, %v662_v31  ;;  %v2237_v35 = vsel %vm681_vm1, %v661_v30, 0.0  ;;  %v2240_v48 = vsel %vm681_vm1, %v662_v31, 0.0  ;;  %v1785_v40 = vpop.eup %1784 }
  0x3d   : > { %v719_v37 = vrot.slane %v2231_v47, 1  ;;  %v720_v38 = vrot.slane %v2237_v35, 1  ;;  %v722_v54 = vrot.slane %v2234_v34, 1  ;;  %v723_v39 = vrot.slane %v2240_v48, 1  ;;  %v1787_v49 = vpop.eup %1786 }
  0x3e   : > { %v2247_v41 = vsel %vm681_vm1, 0.0, %v663_v46  ;;  %v2250_v43 = vsel %vm681_vm1, %v663_v46, 0.0  ;;  %v664_v44 = vrot.slane %v626_v32, 7  ;;  %v665_v45 = vrot.slane %v627_v27, 7  ;;  %v1789_v57 = vpop.eup %1788 }
  0x3f   : > { %v721_v50 = vsel %vm718_vm2, %v719_v37, %v720_v38  ;;  %v724_v51 = vsel %vm718_vm2, %v722_v54, %v723_v39  ;;  %v725_v52 = vrot.slane %v2247_v41, 1  ;;  %v726_v53 = vrot.slane %v2250_v43, 1  ;;  %v1791_v3 = vpop.eup %1790 }
  0x40   : > { %v1747_v58 = vpack.i.bf16 %v724_v51, %v721_v50  ;;  %v2263_v59 = vsel %vm681_vm1, 0.0, %v664_v44  ;;  %v2266_v60 = vsel %vm681_vm1, %v664_v44, 0.0  ;;  %v2269_v61 = vsel %vm681_vm1, 0.0, %v665_v45 }
  0x41   : > { %v727_v62 = vsel %vm718_vm2, %v725_v52, %v726_v53  ;;  %v728_v0 = vrot.slane %v2263_v59, 1  ;;  %v729_v2 = vrot.slane %v2266_v60, 1  ;;  %v2276_v4 = vsel %vm681_vm1, %v665_v45, 0.0 }
  0x42   : > { %1748 = vrot.lane.b32.xlu0 %v1747_v58, %s1833_s27  ;;  %v731_v5 = vrot.slane %v2269_v61, 1  ;;  %v628_v6 = vmul.f32 %v1783_v36, %v2078_v55  ;;  %v629_v8 = vmul.f32 %v1785_v40, %v2093_v63  ;;  %v732_v11 = vrot.slane %v2276_v4, 1 }
  0x43   : > { %v730_v9 = vsel %vm718_vm2, %v728_v0, %v729_v2  ;;  %v630_v12 = vmul.f32 %v1787_v49, %v2105_v7  ;;  %v631_v13 = vmul.f32 %v1789_v57, %v2112_v10  ;;  %v640_v16 = vmul.f32 %v1791_v3, %v2146_v24 }
  0x44   : > { %749 = vrot.lane.b32.xlu1 %v730_v9, %s1833_s27  ;;  %v666_v14 = vrot.slane %v628_v6, 7  ;;  %v667_v15 = vrot.slane %v629_v8, 7  ;;  %v771_v17 = vrot.slane %v2234_v34, 2  ;;  %v733_v55 = vsel %vm718_vm2, %v731_v5, %v732_v11 }
  0x45   : > { %v668_v18 = vrot.slane %v630_v12, 7  ;;  %v669_v63 = vrot.slane %v631_v13, 7  ;;  %v772_v19 = vrot.slane %v2240_v48, 2  ;;  %v650_v48 = vsel %vm2258_vm3, %v640_v16, 0.0 }
  0x46   : > { %747 = vrot.lane.b32.xlu0 %v727_v62, %s1833_s27  ;;  %v2292_v7 = vsel %vm681_vm1, 0.0, %v666_v14  ;;  %v697_v10 = vsel %vm681_vm1, %v666_v14, 0.0  ;;  %v2296_v20 = vsel %vm681_vm1, 0.0, %v667_v15  ;;  %v698_v24 = vsel %vm681_vm1, %v667_v15, 0.0 }
  0x47   : > { %v734_v22 = vrot.slane %v2292_v7, 1  ;;  %v735_v21 = vrot.slane %v697_v10, 1  ;;  %v737_v23 = vrot.slane %v2296_v20, 1  ;;  %v738_v25 = vrot.slane %v698_v24, 1 }
  0x48   : > { %751 = vrot.lane.b32.xlu1 %v733_v55, %s1833_s27  ;;  %v2303_v26 = vsel %vm681_vm1, 0.0, %v668_v18  ;;  %v699_v28 = vsel %vm681_vm1, %v668_v18, 0.0  ;;  %v2307_v29 = vsel %vm681_vm1, 0.0, %v669_v63  ;;  %v700_v42 = vsel %vm681_vm1, %v669_v63, 0.0  ;;  %v1530_v18 = vld [vmem:[%s2614_s5 + $0x180] sm:$0xff]  ;;  %v1531_v63 = vld [vmem:[%s2614_s5 + $0x188] sm:$0xff] }
  0x49   : > { %v736_v30 = vsel %vm718_vm2, %v734_v22, %v735_v21  ;;  %v739_v31 = vsel %vm718_vm2, %v737_v23, %v738_v25  ;;  %v740_v32 = vrot.slane %v2303_v26, 1  ;;  %v741_v46 = vrot.slane %v699_v28, 1  ;;  %v1532_v21 = vld [vmem:[%s2614_s5 + $0x190] sm:$0xff]  ;;  %v1533_v23 = vld [vmem:[%s2614_s5 + $0x198] sm:$0xff] }
  0x4a   : > { %753 = vrot.lane.b32.xlu0 %v736_v30, %s1833_s27  ;;  %v827_v27 = vrot.slane %v2307_v29, 1  ;;  %v828_v33 = vrot.slane %v700_v42, 1  ;;  %v773_v36 = vsel %vm767_vm4, %v771_v17, %v772_v19  ;;  %v670_v38 = vrot.slane %v650_v48, 7 }
  0x4b   : > { %v742_v37 = vsel %vm718_vm2, %v740_v32, %v741_v46  ;;  %1514 = vmatprep.mubr.msk.f32.mxu0 %vm792_vm5, %v773_v36  ;;  %v768_v54 = vrot.slane %v2231_v47, 2  ;;  %v769_v39 = vrot.slane %v2237_v35, 2  ;;  %v778_v40 = vrot.slane %v2266_v60, 2 }
  0x4c   : > { %755 = vrot.lane.b32.xlu1 %v739_v31, %s1833_s27  ;;  %v774_v44 = vrot.slane %v2247_v41, 2  ;;  %v775_v45 = vrot.slane %v2250_v43, 2  ;;  %v829_v49 = vsel %vm718_vm2, %v827_v27, %v828_v33  ;;  %v2328_v50 = vsel %vm681_vm1, 0.0, %v670_v38  ;;  %v1536_v27 = vld [vmem:[%s2614_s5 + $0x1b0] sm:$0xff]  ;;  %v1537_v33 = vld [vmem:[%s2614_s5 + $0x1b8] sm:$0xff] }
  0x4d   : > { %v701_v51 = vsel %vm681_vm1, %v670_v38, 0.0  ;;  %v770_v52 = vsel %vm767_vm4, %v768_v54, %v769_v39  ;;  %v1092_v35 = vrot.slane %v2328_v50, 1  ;;  %v777_v43 = vrot.slane %v2263_v59, 2  ;;  %v1539_v38 = vld [vmem:[%s2614_s5 + $0x1c8] sm:$0xff] }
  0x4e   : > { %757 = vrot.lane.b32.xlu0 %v742_v37, %s1833_s27  ;;  %v1093_v53 = vrot.slane %v701_v51, 1  ;;  %1522 = vmatprep.mubr.msk.f32.mxu1 %vm792_vm5, %v770_v52  ;;  %v2336_v56 = vsel %vm767_vm4, %v774_v44, %v775_v45  ;;  %v780_v57 = vrot.slane %v2269_v61, 2  ;;  %v781_v58 = vrot.slane %v2276_v4, 2  ;;  %v1538_v37 = vld [vmem:[%s2614_s5 + $0x1c0] sm:$0xff]  ;;  %v1541_v44 = vld [vmem:[%s2614_s5 + $0x1d8] sm:$0xff]  ;;  %v1543_v52 = vld [vmem:[%s2614_s5 + $0x1e8] sm:$0xff] }
  0x4f   : > { %v783_v62 = vrot.slane %v2292_v7, 2  ;;  %v784_v0 = vrot.slane %v697_v10, 2  ;;  %v2345_v2 = vsel %vm767_vm4, %v777_v43, %v778_v40  ;;  %v786_v4 = vrot.slane %v2296_v20, 2  ;;  %v1540_v40 = vld [vmem:[%s2614_s5 + $0x1d0] sm:$0xff] }
  0x50   : > { %830 = vrot.lane.b32.xlu1 %v829_v49, %s1833_s27  ;;  %v1094_v60 = vsel %vm718_vm2, %v1092_v35, %v1093_v53  ;;  %v2348_v3 = vsel %vm767_vm4, %v780_v57, %v781_v58  ;;  %v787_v6 = vrot.slane %v698_v24, 2  ;;  %v789_v9 = vrot.slane %v2303_v26, 2  ;;  %v1544_v43 = vld [vmem:[%s2614_s5 + $0x1f0] sm:$0xff]  ;;  %v1545_v57 = vld [vmem:[%s2614_s5 + $0x1f8] sm:$0xff] }
  0x51   : > { %v2352_v5 = vsel %vm767_vm4, %v783_v62, %v784_v0  ;;  %v790_v11 = vrot.slane %v699_v28, 2  ;;  %v833_v13 = vrot.slane %v2307_v29, 2  ;;  %v834_v14 = vrot.slane %v700_v42, 2  ;;  %v1546_v62 = vld [vmem:[%s2614_s5 + $0x200] sm:$0xff]  ;;  %v1547_v0 = vld [vmem:[%s2614_s5 + $0x208] sm:$0xff] }
  0x52   : > { %1095 = vrot.lane.b32.xlu0 %v1094_v60, %s1833_s27  ;;  %v2356_v8 = vsel %vm767_vm4, %v786_v4, %v787_v6  ;;  %v1098_v16 = vrot.slane %v2328_v50, 2  ;;  %v1099_v17 = vrot.slane %v701_v51, 2  ;;  %v1646_v22 = vpack.c.bf16 %v1531_v63, %v1530_v18  ;;  %v1542_v51 = vld [vmem:[%s2614_s5 + $0x1e0] sm:$0xff]  ;;  %v1548_v4 = vld [vmem:[%s2614_s5 + $0x210] sm:$0xff]  ;;  %v1549_v6 = vld [vmem:[%s2614_s5 + $0x218] sm:$0xff]  ;;  %s2558_s27 = scalar_lea.vmem %s2616_s7, %s2006_s18 }
  0x53   : > { %v2360_v12 = vsel %vm767_vm4, %v789_v9, %v790_v11  ;;  %v2364_v15 = vsel %vm767_vm4, %v833_v13, %v834_v14  ;;  %v1649_v32 = vpack.c.bf16 %v1533_v23, %v1532_v21  ;;  %v1673_v9 = vpack.c.bf16 %v1549_v6, %v1548_v4  ;;  %v1550_v11 = vld [vmem:[%s2614_s5 + $0x220] sm:$0xff]  ;;  %v1551_v13 = vld [vmem:[%s2614_s5 + $0x228] sm:$0xff]  ;;  %v1553_v14 = vld [vmem:[%s2614_s5 + $0x238] sm:$0xff] }
  0x54   : > { %v2368_v55 = vsel %vm767_vm4, %v1098_v16, %v1099_v17 }
  0xb4   : > { %v1749_v19 = vpop.permute.xlu0 %1748 }
  0xb5   : > { %v1751_v10 = vunpack.i.h.bf16 %v1749_v19  ;;  %v1750_v24 = vunpack.i.l.bf16 %v1749_v19 }
  0xb6   : > { %v750_v30 = vpop.permute.xlu1 %749 }
  0xb7   : > { %v794_v25 = vsel %vm792_vm5, %v2234_v34, %v1751_v10  ;;  %v793_v28 = vsel %vm792_vm5, %v2231_v47, %v1750_v24  ;;  %v1534_v47 = vld [vmem:[%s2614_s5 + $0x1a0] sm:$0xff]  ;;  %v1535_v34 = vld [vmem:[%s2614_s5 + $0x1a8] sm:$0xff]  ;;  %v2404_v46 = vsel %vm792_vm5, %v2263_v59, %v750_v30  ;;  %v1655_v59 = vpack.c.bf16 %v1537_v33, %v1536_v27 }
  0xb8   : > { %943 = vmatmul.mubr.f32.vlgmr.msra.gmra.mrb[0].mxu0 %v794_v25  ;;  %1050 = vmatmul.mubr.f32.vlgmr.msra.gmra.mrb[0].mxu1 %v793_v28  ;;  %v748_v42 = vpop.permute.xlu0 %747 }
  0xb9   : > { %1647 = vmatpush1.bf16.msra.mxu0 %v1646_v22  ;;  %1693 = vmatpush1.bf16.msra.mxu1 %v1646_v22  ;;  %v2388_v31 = vsel %vm792_vm5, %v2247_v41, %v748_v42  ;;  %v1652_v41 = vpack.c.bf16 %v1535_v34, %v1534_v47 }
  0xba   : > { %1515 = vmatprep.mubr.msk.f32.mxu0 %vm792_vm5, %v2336_v56  ;;  %1523 = vmatprep.mubr.msk.f32.mxu1 %vm792_vm5, %v773_v36  ;;  %v752_v48 = vpop.permute.xlu1 %751 }
  0xbb   : > { %1648 = vmatprep.subr.bf16.mxu0 %v1832_v1  ;;  %1682 = vmatprep.subr.bf16.mxu1 %v1832_v1  ;;  %v2422_v36 = vsel %vm792_vm5, %v2269_v61, %v752_v48  ;;  %v1658_v61 = vpack.c.bf16 %v1539_v38, %v1538_v37 }
  0xbc   : > { %948 = vmatmul.mubr.f32.gmra.mrb[2].mxu0 %v2388_v31  ;;  %1055 = vmatmul.mubr.f32.gmra.mrb[2].mxu1 %v794_v25  ;;  %v754_v54 = vpop.permute.xlu0 %753 }
  0xbd   : > { %1650 = vmatpush1.bf16.msra.mxu0 %v1649_v32  ;;  %1694 = vmatpush1.bf16.msra.mxu1 %v1649_v32  ;;  %v2440_v39 = vsel %vm792_vm5, %v2292_v7, %v754_v54  ;;  %v1661_v7 = vpack.c.bf16 %v1541_v44, %v1540_v40 }
  0xbe   : > { %1651 = vmatprep.subr.bf16.mxu0 %v1832_v1  ;;  %1683 = vmatprep.subr.bf16.mxu1 %v1832_v1  ;;  %v756_v45 = vpop.permute.xlu1 %755 }
  0xbf   : > { %1524 = vmatprep.mubr.msk.f32.mxu1 %vm792_vm5, %v2336_v56  ;;  %1516 = vmatprep.mubr.msk.f32.mxu0 %vm792_vm5, %v2345_v2  ;;  %v2458_v49 = vsel %vm792_vm5, %v2296_v20, %v756_v45  ;;  %v1664_v20 = vpack.c.bf16 %v1543_v52, %v1542_v51  ;;  %v1562_v52 = vld [vmem:[%s2615_s6] ss:$0 sm:$0xff] }
  0xc0   : > { %1060 = vmatmul.mubr.f32.gmra.mrb[4].mxu1 %v2388_v31  ;;  %953 = vmatmul.mubr.f32.gmra.mrb[4].mxu0 %v2404_v46  ;;  %v758_v35 = vpop.permute.xlu0 %757 }
  0xc1   : > { %1653 = vmatpush1.bf16.msra.mxu0 %v1652_v41  ;;  %1695 = vmatpush1.bf16.msra.mxu1 %v1652_v41  ;;  %v800_v53 = vsel %vm792_vm5, %v2303_v26, %v758_v35  ;;  %v1667_v26 = vpack.c.bf16 %v1545_v57, %v1544_v43 }
  0xc2   : > { %1654 = vmatprep.subr.bf16.mxu0 %v1832_v1  ;;  %1684 = vmatprep.subr.bf16.mxu1 %v1832_v1  ;;  %v831_v58 = vpop.permute.xlu1 %830 }
  0xc3   : > { %1525 = vmatprep.mubr.msk.f32.mxu1 %vm792_vm5, %v2345_v2  ;;  %1517 = vmatprep.mubr.msk.f32.mxu0 %vm792_vm5, %v2348_v3  ;;  %v836_v60 = vsel %vm792_vm5, %v2307_v29, %v831_v58  ;;  %v1670_v29 = vpack.c.bf16 %v1547_v0, %v1546_v62  ;;  %v1257_v58 = vld [vmem:[%s2558_s27] sm:$0xff] }
  0xc4   : > { %1065 = vmatmul.mubr.f32.gmra.mrb[6].mxu1 %v2404_v46  ;;  %958 = vmatmul.mubr.f32.gmra.mrb[6].mxu0 %v2422_v36 }
  0xc5   : > { %1656 = vmatpush1.bf16.msra.mxu0 %v1655_v59  ;;  %1696 = vmatpush1.bf16.msra.mxu1 %v1655_v59 }
  0xc6   : > { %1657 = vmatprep.subr.bf16.mxu0 %v1832_v1  ;;  %1685 = vmatprep.subr.bf16.mxu1 %v1832_v1 }
  0xc7   : > { %1526 = vmatprep.mubr.msk.f32.mxu1 %vm792_vm5, %v2348_v3  ;;  %1518 = vmatprep.mubr.msk.f32.mxu0 %vm792_vm5, %v2352_v5 }
  0xc8   : > { %1070 = vmatmul.mubr.f32.gmra.mrb[8].mxu1 %v2422_v36  ;;  %963 = vmatmul.mubr.f32.gmra.mrb[8].mxu0 %v2440_v39 }
  0xc9   : > { %1659 = vmatpush1.bf16.msra.mxu0 %v1658_v61  ;;  %1697 = vmatpush1.bf16.msra.mxu1 %v1658_v61 }
  0xca   : > { %1660 = vmatprep.subr.bf16.mxu0 %v1832_v1  ;;  %1686 = vmatprep.subr.bf16.mxu1 %v1832_v1 }
  0xcb   : > { %1527 = vmatprep.mubr.msk.f32.mxu1 %vm792_vm5, %v2352_v5  ;;  %1519 = vmatprep.mubr.msk.f32.mxu0 %vm792_vm5, %v2356_v8 }
  0xcc   : > { %1075 = vmatmul.mubr.f32.gmra.mrb[10].mxu1 %v2440_v39  ;;  %968 = vmatmul.mubr.f32.gmra.mrb[10].mxu0 %v2458_v49 }
  0xcd   : > { %1662 = vmatpush1.bf16.msra.mxu0 %v1661_v7  ;;  %1698 = vmatpush1.bf16.msra.mxu1 %v1661_v7 }
  0xce   : > { %1663 = vmatprep.subr.bf16.mxu0 %v1832_v1  ;;  %1687 = vmatprep.subr.bf16.mxu1 %v1832_v1 }
  0xcf   : > { %1528 = vmatprep.mubr.msk.f32.mxu1 %vm792_vm5, %v2356_v8  ;;  %1520 = vmatprep.mubr.msk.f32.mxu0 %vm792_vm5, %v2360_v12 }
  0xd0   : > { %1080 = vmatmul.mubr.f32.gmra.mrb[12].mxu1 %v2458_v49  ;;  %973 = vmatmul.mubr.f32.gmra.mrb[12].mxu0 %v800_v53 }
  0xd1   : > { %1665 = vmatpush1.bf16.msra.mxu0 %v1664_v20  ;;  %1699 = vmatpush1.bf16.msra.mxu1 %v1664_v20 }
  0xd2   : > { %1666 = vmatprep.subr.bf16.mxu0 %v1832_v1  ;;  %1688 = vmatprep.subr.bf16.mxu1 %v1832_v1 }
  0xd3   : > { %1529 = vmatprep.mubr.msk.f32.mxu1 %vm792_vm5, %v2360_v12  ;;  %1521 = vmatprep.mubr.msk.f32.mxu0 %vm792_vm5, %v2364_v15 }
  0xd4   : > { %1085 = vmatmul.mubr.f32.gmra.mrb[14].mxu1 %v800_v53  ;;  %978 = vmatmul.mubr.f32.gmra.mrb[14].mxu0 %v836_v60 }
  0xd5   : > { %1668 = vmatpush1.bf16.msra.mxu0 %v1667_v26  ;;  %1700 = vmatpush1.bf16.msra.mxu1 %v1667_v26  ;;  %v1261_v26 = vld [vmem:[%s2558_s27 + $0x20] sm:$0xff] }
  0xd6   : > { %1669 = vmatprep.subr.bf16.mxu0 %v1832_v1  ;;  %1689 = vmatprep.subr.bf16.mxu1 %v1832_v1 }
  0xd7   : > { %1554 = vmatprep.mubr.msk.f32.mxu0 %vm792_vm5, %v2336_v56  ;;  %1558 = vmatprep.mubr.msk.f32.mxu1 %vm792_vm5, %v2356_v8  ;;  %v1676_v56 = vpack.c.bf16 %v1551_v13, %v1550_v11  ;;  %v1552_v8 = vld [vmem:[%s2614_s5 + $0x230] sm:$0xff] }
  0xd8   : > { %v1679_v16 = vpack.c.bf16 %v1553_v14, %v1552_v8  ;;  %v1258_v8 = vld [vmem:[%s2558_s27 + $0x8] sm:$0xff] }
  0xd9   : > { %1671 = vmatpush1.bf16.msra.mxu0 %v1670_v29  ;;  %1701 = vmatpush1.bf16.msra.mxu1 %v1670_v29  ;;  %v1262_v14 = vld [vmem:[%s2558_s27 + $0x28] sm:$0xff] }
  0xda   : > { %1672 = vmatprep.subr.bf16.mxu0 %v1832_v1  ;;  %1690 = vmatprep.subr.bf16.mxu1 %v1832_v1 }
  0xdd   : > { %1674 = vmatpush1.bf16.msra.mxu0 %v1673_v9  ;;  %1702 = vmatpush1.bf16.msra.mxu1 %v1673_v9 }
  0xde   : > { %1675 = vmatprep.subr.bf16.mxu0 %v1832_v1  ;;  %1691 = vmatprep.subr.bf16.mxu1 %v1832_v1 }
  0xe1   : > { %1677 = vmatpush1.bf16.msra.mxu0 %v1676_v56  ;;  %1703 = vmatpush1.bf16.msra.mxu1 %v1676_v56 }
  0xe2   : > { %1678 = vmatprep.subr.bf16.mxu0 %v1832_v1  ;;  %1692 = vmatprep.subr.bf16.mxu1 %v1832_v1  ;;  %v1096_v1 = vpop.permute.xlu0 %1095 }
  0xe5   : > { %1680 = vmatpush1.bf16.msra.mxu0 %v1679_v16  ;;  %1704 = vmatpush1.bf16.msra.mxu1 %v1679_v16 }
  0xe8   : > { %1194 = vmatmul.mubr.f32.vlgmr.msra.gmra.mrb[16].mxu0 %v2388_v31  ;;  %1214 = vmatmul.mubr.f32.vlgmr.msra.gmra.mrb[16].mxu1 %v2458_v49 }
  0xe9   : > { %1555 = vmatprep.mubr.msk.f32.mxu0 %vm792_vm5, %v2345_v2  ;;  %1559 = vmatprep.mubr.msk.f32.mxu1 %vm792_vm5, %v2360_v12  ;;  %v1101_v2 = vsel %vm792_vm5, %v2328_v50, %v1096_v1 }
  0xec   : > { %1199 = vmatmul.mubr.f32.gmra.mrb[18].mxu0 %v2404_v46  ;;  %1219 = vmatmul.mubr.f32.gmra.mrb[18].mxu1 %v800_v53 }
  0xed   : > { %1556 = vmatprep.mubr.msk.f32.mxu0 %vm792_vm5, %v2348_v3  ;;  %1560 = vmatprep.mubr.msk.f32.mxu1 %vm792_vm5, %v2364_v15 }
  0xf0   : > { %1204 = vmatmul.mubr.f32.gmra.mrb[20].mxu0 %v2422_v36  ;;  %1224 = vmatmul.mubr.f32.gmra.mrb[20].mxu1 %v836_v60 }
  0xf1   : > { %1557 = vmatprep.mubr.msk.f32.mxu0 %vm792_vm5, %v2352_v5  ;;  %1561 = vmatprep.mubr.msk.f32.mxu1 %vm792_vm5, %v2368_v55 }
  0xf4   : > { %1209 = vmatmul.mubr.f32.gmra.mrb[22].mxu0 %v2440_v39  ;;  %1229 = vmatmul.mubr.f32.gmra.mrb[22].mxu1 %v1101_v2 }
 0x18b   : > { %v944_v3 = vpop.f32.mrb[0].mxu0  ;;  %v1051_v12 = vpop.f32.mrb[0].mxu1 }
 0x18c   : > { %v1052_v17 = vadd.f32 %v1051_v12, %v944_v3  ;;  %v946_v15 = vpop.f32.mrb[1].mxu0  ;;  %v1053_v18 = vpop.f32.mrb[1].mxu1 }
 0x18f   : > { %v949_v63 = vpop.f32.mrb[2].mxu0  ;;  %v1056_v19 = vpop.f32.mrb[2].mxu1 }
 0x190   : > { %v1057_v10 = vadd.f32 %v1056_v19, %v949_v63  ;;  %v1058_v24 = vpop.f32.mrb[3].mxu1  ;;  %v951_v22 = vpop.f32.mrb[3].mxu0 }
 0x191   : > { %v1263_v24 = vld [vmem:[%s2558_s27 + $0x30] sm:$0xff] }
 0x193   : > { %v1061_v5 = vpop.f32.mrb[4].mxu1  ;;  %v954_v21 = vpop.f32.mrb[4].mxu0 }
 0x194   : > { %v1062_v23 = vadd.f32 %v1061_v5, %v954_v21  ;;  %v1063_v55 = vpop.f32.mrb[5].mxu1  ;;  %v956_v25 = vpop.f32.mrb[5].mxu0 }
 0x197   : > { %v1066_v28 = vpop.f32.mrb[6].mxu1  ;;  %v959_v50 = vpop.f32.mrb[6].mxu0 }
 0x198   : > { %v2552_v42 = vadd.f32 %v1066_v28, %v959_v50  ;;  %v1068_v30 = vpop.f32.mrb[7].mxu1  ;;  %v961_v31 = vpop.f32.mrb[7].mxu0 }
 0x19b   : > { %v1071_v32 = vpop.f32.mrb[8].mxu1  ;;  %v964_v47 = vpop.f32.mrb[8].mxu0 }
 0x19c   : > { %v1072_v34 = vadd.f32 %v1071_v32, %v964_v47  ;;  %v1073_v41 = vpop.f32.mrb[9].mxu1  ;;  %v966_v46 = vpop.f32.mrb[9].mxu0  ;;  %v1260_v32 = vld [vmem:[%s2558_s27 + $0x18] sm:$0xff] }
 0x19d   : > { %v1264_v47 = vld [vmem:[%s2558_s27 + $0x38] sm:$0xff] }
 0x19f   : > { %v1076_v27 = vpop.f32.mrb[10].mxu1  ;;  %v969_v33 = vpop.f32.mrb[10].mxu0 }
 0x1a0   : > { %v1077_v48 = vadd.f32 %v1076_v27, %v969_v33  ;;  %v1078_v59 = vpop.f32.mrb[11].mxu1  ;;  %v971_v36 = vpop.f32.mrb[11].mxu0 }
 0x1a3   : > { %v1081_v37 = vpop.f32.mrb[12].mxu1  ;;  %v974_v38 = vpop.f32.mrb[12].mxu0 }
 0x1a4   : > { %v1082_v54 = vadd.f32 %v1081_v37, %v974_v38  ;;  %v1083_v61 = vpop.f32.mrb[13].mxu1  ;;  %v976_v39 = vpop.f32.mrb[13].mxu0 }
 0x1a7   : > { %v1086_v40 = vpop.f32.mrb[14].mxu1  ;;  %v979_v44 = vpop.f32.mrb[14].mxu0 }
 0x1a8   : > { %v1087_v45 = vadd.f32 %v1086_v40, %v979_v44  ;;  %v1088_v7 = vpop.f32.mrb[15].mxu1  ;;  %v981_v49 = vpop.f32.mrb[15].mxu0 }
 0x1bb   : > { %v1195_v51 = vpop.f32.mrb[16].mxu0  ;;  %v1215_v35 = vpop.f32.mrb[16].mxu1 }
 0x1bc   : > { %v1234_v20 = vadd.f32 %v1195_v51, %v1052_v17  ;;  %v1238_v53 = vadd.f32 %v1215_v35, %v1072_v34  ;;  %v1197_v43 = vpop.f32.mrb[17].mxu0  ;;  %v1217_v57 = vpop.f32.mrb[17].mxu1 }
 0x1be   : > { %v1249_v60 = vadd.f32 %v1562_v52, %v1234_v20  ;;  %v1253_v62 = vadd.f32 %v1562_v52, %v1238_v53 }
 0x1bf   : > { %v1200_v0 = vpop.f32.mrb[18].mxu0  ;;  %v1220_v29 = vpop.f32.mrb[18].mxu1 }
 0x1c0   : > { %v1265_v4 = vadd.f32 %v1257_v58, %v1249_v60  ;;  %v1269_v6 = vadd.f32 %v1261_v26, %v1253_v62  ;;  %v1235_v9 = vadd.f32 %v1200_v0, %v1057_v10  ;;  %v1239_v11 = vadd.f32 %v1220_v29, %v1077_v48  ;;  %v1202_v13 = vpop.f32.mrb[19].mxu0  ;;  %v1222_v56 = vpop.f32.mrb[19].mxu1  ;;  %v1259_v10 = vld [vmem:[%s2558_s27 + $0x10] sm:$0xff] }
 0x1c2   : > { %1273 = vst.msk [vmem:[%s2569_s25] sm:$0xff] %vm792_vm5, %v1265_v4  ;;  %1277 = vst.msk [vmem:[%s2569_s25 + $0x20] sm:$0xff] %vm792_vm5, %v1269_v6  ;;  %v1250_v16 = vadd.f32 %v1562_v52, %v1235_v9  ;;  %v1254_v1 = vadd.f32 %v1562_v52, %v1239_v11 }
 0x1c3   : > { %v1205_v2 = vpop.f32.mrb[20].mxu0  ;;  %v1225_v3 = vpop.f32.mrb[20].mxu1 }
 0x1c4   : > { %v1266_v12 = vadd.f32 %v1258_v8, %v1250_v16  ;;  %v1270_v17 = vadd.f32 %v1262_v14, %v1254_v1  ;;  %v1236_v15 = vadd.f32 %v1205_v2, %v1062_v23  ;;  %v1240_v18 = vadd.f32 %v1225_v3, %v1082_v54  ;;  %v1207_v63 = vpop.f32.mrb[21].mxu0  ;;  %v1227_v19 = vpop.f32.mrb[21].mxu1 }
 0x1c6   : > { %1274 = vst.msk [vmem:[%s2569_s25 + $0x8] sm:$0xff] %vm792_vm5, %v1266_v12  ;;  %1278 = vst.msk [vmem:[%s2569_s25 + $0x28] sm:$0xff] %vm792_vm5, %v1270_v17  ;;  %v1251_v22 = vadd.f32 %v1562_v52, %v1236_v15  ;;  %v1255_v5 = vadd.f32 %v1562_v52, %v1240_v18 }
 0x1c7   : > { %v1210_v21 = vpop.f32.mrb[22].mxu0  ;;  %v1230_v55 = vpop.f32.mrb[22].mxu1 }
 0x1c8   : > { %v1267_v23 = vadd.f32 %v1259_v10, %v1251_v22  ;;  %v1271_v25 = vadd.f32 %v1263_v24, %v1255_v5  ;;  %v1237_v28 = vadd.f32 %v1210_v21, %v2552_v42  ;;  %v1241_v50 = vadd.f32 %v1230_v55, %v1087_v45  ;;  %v1212_v30 = vpop.f32.mrb[23].mxu0  ;;  %v1232_v31 = vpop.f32.mrb[23].mxu1 }
 0x1ca   : > { %1275 = vst.msk [vmem:[%s2569_s25 + $0x10] sm:$0xff] %vm792_vm5, %v1267_v23  ;;  %1279 = vst.msk [vmem:[%s2569_s25 + $0x30] sm:$0xff] %vm792_vm5, %v1271_v25  ;;  %v1252_v34 = vadd.f32 %v1562_v52, %v1237_v28  ;;  %v1256_v41 = vadd.f32 %v1562_v52, %v1241_v50 }
 0x1cc   : > { %v1268_v46 = vadd.f32 %v1260_v32, %v1252_v34  ;;  %v1272_v27 = vadd.f32 %v1264_v47, %v1256_v41 }
 0x1ce   : > { %1276 = vst.msk [vmem:[%s2569_s25 + $0x18] sm:$0xff] %vm792_vm5, %v1268_v46  ;;  %1280 = vst.msk [vmem:[%s2569_s25 + $0x38] sm:$0xff] %vm792_vm5, %v1272_v27 }
 0x1cf PF: > { %s18_s9 = sadd.s32 1, %s1830_s9   ;;  %s2625_s27 = smov %s1822_s29 }
 0x1d0   : > { %p15_p12 = scmp.ge.s32.totalorder %s18_s9, 6   ;;  %s2626_s28 = smov %s1826_s30 }
 0x1d1   : > { %s2627_s29 = smov %s2630_s10  ;;  %s2628_s30 = smov %s2634_s11 }
 0x1d2   :  { %17 = sbr.rel (!%p15_p12) target bundleno = 3 (0x3), region = 99 }

// kernel: up_block_fwd.15
= control target key start
LH: loop header
LB: loop body
LE: loop exit
PB: predicated region body
PF: predicated region fallthrough
CT: control target
= control target key end

     0   :  { %10 = vsyncpa [#allocation3], 0  ;;  %s3188_s0 = inlined_call_operand.vmem [shape: f32[2,16,8,64], index: 0, kind: input, shape index: {}, may-alias: {0,1,2}]   ;;  %s3189_s1 = inlined_call_operand.vmem [shape: f32[2,16,8,64], index: 1, kind: input, shape index: {}, may-alias: {0,1,2}]   ;;  %s3190_s2 = inlined_call_operand.vmem [shape: f32[2,16,8,64], index: 2, kind: input, shape index: {}, may-alias: {0,1,2}]   ;;  %s3191_s3 = inlined_call_operand.vmem [shape: f32[3,192,64], index: 3, kind: input, shape index: {}]   ;;  %s3192_s4 = inlined_call_operand.vmem [shape: f32[1,64], index: 4, kind: input, shape index: {}]   ;;  %s3193_s5 = inlined_call_operand.hbm [shape: f32[2,32,16,64], index: 5, kind: output, shape index: {}]  }
   0x1   :  { %12 = vsyncpa [#allocation3 + $0x1], 0  ;;  %s2222_s18 = smov 0   ;;  %s2224_s19 = smov 0  }
   0x2   :  { %s2226_s20 = smov 0   ;;  %s2228_s21 = smov 0  }
   0x3   :  { %s2230_s22 = smov 0   ;;  %s2232_s23 = smov 0  }
   0x4   :  { %s2234_s24 = smov 0   ;;  %s2236_s25 = smov 0  }
   0x5 LB: > { %s1745_s26 = sadd.s32 4294967295, %s2183_s25   ;;  %s1746_s27 = sadd.s32 4294967294, %s2183_s25   ;;  %s2183_s25 = sphi %s2236_s25, %s18_s25   ;;  %s2179_s24 = sphi %s2234_s24, %s3209_s24   ;;  %s2175_s23 = sphi %s2232_s23, %s3208_s23   ;;  %s2171_s22 = sphi %s2230_s22, %s3207_s22   ;;  %s2167_s21 = sphi %s2228_s21, %s3206_s21   ;;  %s2163_s20 = sphi %s2226_s20, %s3205_s20   ;;  %s2159_s19 = sphi %s2224_s19, %s3204_s19   ;;  %s2155_s18 = sphi %s2222_s18, %s3203_s18  }
   0x6   : > { %s27_s28 = sadd.s32 1, %s2175_s23  ;;  %s30_s29 = sadd.s32 1, %s2179_s24 }
   0x7   : > { %p28_p0 = scmp.ge.s32.totalorder %s27_s28, 8  ;;  %p191_p1 = scmp.ne.s32.totalorder %s2163_s20, %s2159_s19 }
   0x8   : > { %p192_p2 = scmp.eq.s32.totalorder %s1745_s26, 15  ;;  %p197_p5 = scmp.ne.s32.totalorder %s2159_s19, %s2155_s18 }
   0x9   : > { %s3211_s28 = smov (%p28_p0, %s27_s28), 0  ;;  %s3213_s29 = smov (!%p28_p0, %s30_s29), %s2179_s24 }
   0xa   : > { %3196 = sst [smem:[#allocation5_spill]] %s3211_s28  ;;  %s177_s30 = ssub.s32 %s2175_s23, %s3211_s28 }
   0xb   : > { %p2273_p3 = por %p192_p2, %p191_p1  ;;  %p32_p4 = scmp.ge.s32.totalorder %s3213_s29, 2 }
   0xc   : > { %p198_p6 = scmp.eq.s32.totalorder %s1746_s27, 15  ;;  %p1755_p7 = scmp.ge.s32.totalorder %s2183_s25, 1 }
   0xd   : > { %s3215_s29 = smov (%p32_p4, %s3213_s29), 0  ;;  %p273_p9 = scmp.lt.s32.totalorder %s2183_s25, 17 }
   0xe   : > { %3198 = sst [smem:[#allocation6_spill]] %s3215_s29  ;;  %p2282_p8 = por %p198_p6, %p197_p5 }
   0xf   : > { %s176_s8 = ssub.s32 %s2179_s24, %s3215_s29  ;;  %s181_s9 = sadd.s32 1, %s2163_s20 }
  0x10   : > { %s178_s10 = sor.u32 %s177_s30, %s176_s8  ;;  %p274_p10 = pnand %p1755_p7, %p273_p9 }
  0x11   : > { %p179_p11 = scmp.eq.s32.totalorder %s178_s10, 0  ;;  %s2294_s12 = sshll.u32 (!%p274_p10), %s2167_s21, 1  ;;  %v1775_v0 = vld [vmem:[%s3191_s3 + $0xc0] sm:$0xff] (!%p274_p10)  ;;  %v419_v1 = vlaneseq (!%p274_p10)  ;;  %v2185_v2 = vmov (!%p274_p10), 0.0|0.0   ;;  %v1776_v3 = vld [vmem:[%s3191_s3 + $0xc8] sm:$0xff] (!%p274_p10)  ;;  %v1777_v12 = vld [vmem:[%s3191_s3 + $0xd0] sm:$0xff] (!%p274_p10) }
  0x12   : > { %277 = sbr.rel (%p274_p10) target bundleno = 481 (0x1e1), region = 40  ;;  %p333_p12 = scmp.lt.s32.totalorder (!%p274_p10), %s2171_s22, 1  ;;  %1864 = vmatprep.subr.bf16.mxu0 (!%p274_p10), %v2185_v2  ;;  %1900 = vmatprep.subr.bf16.mxu1 (!%p274_p10), %v2185_v2  ;;  %v1154_v4 = vld [vmem:[%s3191_s3] sm:$0xff] (!%p274_p10)  ;;  %v1155_v5 = vld [vmem:[%s3191_s3 + $0x8] sm:$0xff] (!%p274_p10)  ;;  %v2186_v6 = vmov (!%p274_p10), 1966171168   ;;  %v1865_v10 = vpack.c.bf16 (!%p274_p10), %v1776_v3, %v1775_v0 }
  0x13   : > { %s2291_s11 = scalar_select %p179_p11, %s2163_s20, %s181_s9  }
  0x14   : > { %s2298_s13 = sadd.s32 (!%p274_p10), 4294967295, %s2294_s12  ;;  %p348_p13 = scmp.lt.s32.totalorder (!%p274_p10), %s2294_s12, 15  ;;  %v417_v7 = vunpack.c.l.s4 (!%p274_p10), %v2186_v6  ;;  %v2187_v8 = vmov (!%p274_p10), 1983009808   ;;  %v1901_v11 = vpack.c.bf16 (!%p274_p10), %v1155_v5, %v1154_v4  ;;  %v1778_v13 = vld [vmem:[%s3191_s3 + $0xd8] sm:$0xff] (!%p274_p10)  ;;  %v1156_v14 = vld [vmem:[%s3191_s3 + $0x10] sm:$0xff] (!%p274_p10)  ;;  %1866 = vmatpush1.bf16.msra.mxu0 (!%p274_p10), %v1865_v10 }
  0x15   : > { %p331_p0 = scmp.gt.s32.totalorder (!%p274_p10), %s2298_s13, 0  ;;  %p1759_p1 = scmp.lt.s32.totalorder (!%p274_p10), %s2298_s13, 15  ;;  %v926_v9 = vunpack.c.l.s4 (!%p274_p10), %v2187_v8  ;;  %v1157_v15 = vld [vmem:[%s3191_s3 + $0x18] sm:$0xff] (!%p274_p10)  ;;  %v1779_v16 = vld [vmem:[%s3191_s3 + $0xe0] sm:$0xff] (!%p274_p10)  ;;  %v1868_v17 = vpack.c.bf16 (!%p274_p10), %v1778_v13, %v1777_v12  ;;  %v1780_v19 = vld [vmem:[%s3191_s3 + $0xe8] sm:$0xff] (!%p274_p10)  ;;  %1867 = vmatprep.subr.bf16.mxu0 (!%p274_p10), %v2185_v2  ;;  %v2376_v27 = vshrl.u32 (!%p274_p10), %v419_v1, 7 }
  0x16   : > { %1902 = vmatpush1.bf16.msra.mxu1 (!%p274_p10), %v1901_v11  ;;  %v1904_v18 = vpack.c.bf16 (!%p274_p10), %v1157_v15, %v1156_v14  ;;  %v1158_v20 = vld [vmem:[%s3191_s3 + $0x20] sm:$0xff] (!%p274_p10)  ;;  %v1159_v21 = vld [vmem:[%s3191_s3 + $0x28] sm:$0xff] (!%p274_p10)  ;;  %v2356_v22 = vld [vmem:[%s3191_s3 + $0xf0] sm:$0xff] (!%p274_p10)  ;;  %v418_v26 = vunpack.c.0.s8 (!%p274_p10), %v417_v7  ;;  %p376_p2 = scmp.gt.s32.totalorder (!%p274_p10), %s2167_s21, 0  ;;  %v1871_v35 = vpack.c.bf16 (!%p274_p10), %v1780_v19, %v1779_v16  ;;  %vm398_vm0 = vcmask (!%p274_p10), 1040384   ;;  %p381_p5 = scmp.lt.s32.totalorder (!%p274_p10), %s2167_s21, 7 }
  0x17   : > { %1903 = vmatprep.subr.bf16.mxu1 (!%p274_p10), %v2185_v2  ;;  %v2361_v23 = vld [vmem:[%s3191_s3 + $0xf8] sm:$0xff] (!%p274_p10)  ;;  %v2366_v24 = vld [vmem:[%s3191_s3 + $0x30] sm:$0xff] (!%p274_p10)  ;;  %v927_v28 = vunpack.c.0.s8 (!%p274_p10), %v926_v9  ;;  %v2381_v29 = vld [vmem:[%s3191_s3 + $0x100] sm:$0xff] (!%p274_p10)  ;;  %v1907_v36 = vpack.c.bf16 (!%p274_p10), %v1159_v21, %v1158_v20  ;;  %v2534_v10 = vsub.s32 (!%p274_p10), 0, %v2376_v27  ;;  %vm1097_vm1 = vcmask (!%p274_p10), 1046528  }
  0x18   : > { %v2371_v25 = vld [vmem:[%s3191_s3 + $0x38] sm:$0xff] (!%p274_p10)  ;;  %v2386_v30 = vld [vmem:[%s3191_s3 + $0x108] sm:$0xff] (!%p274_p10)  ;;  %v2391_v31 = vld [vmem:[%s3191_s3 + $0x40] sm:$0xff] (!%p274_p10)  ;;  %1869 = vmatpush1.bf16.msra.mxu0 (!%p274_p10), %v1868_v17  ;;  %v2450_v43 = vsub.s32 (!%p274_p10), %v418_v26, %v2376_v27  ;;  %v1874_v45 = vpack.c.bf16 (!%p274_p10), %v2361_v23, %v2356_v22  ;;  %vm1131_vm2 = vcmask (!%p274_p10), 1045504   ;;  %vm1147_vm3 = vcmask (!%p274_p10), 523264  }
  0x19   : > { %s334_s9 = scalar_select %p333_p12, %s2171_s22, 1  ;;  %v2399_v32 = vld [vmem:[%s3191_s3 + $0x48] sm:$0xff]  ;;  %v2404_v33 = vld [vmem:[%s3191_s3 + $0x110] sm:$0xff]  ;;  %v2409_v34 = vld [vmem:[%s3191_s3 + $0x118] sm:$0xff]  ;;  %1870 = vmatprep.subr.bf16.mxu0 %v2185_v2  ;;  %v2453_v44 = vsub.s32 %v927_v28, %v2376_v27  ;;  %v1910_v46 = vpack.c.bf16 %v2371_v25, %v2366_v24  ;;  %v1877_v52 = vpack.c.bf16 %v2386_v30, %v2381_v29 }
  0x1a   : > { %s332_s27 = scalar_select %p331_p0, %s2298_s13, 0  ;;  %1905 = vmatpush1.bf16.msra.mxu1 %v1904_v18  ;;  %v2415_v37 = vld [vmem:[%s3191_s3 + $0x50] sm:$0xff]  ;;  %v2420_v38 = vld [vmem:[%s3191_s3 + $0x58] sm:$0xff]  ;;  %v2425_v39 = vld [vmem:[%s3191_s3 + $0x120] sm:$0xff]  ;;  %v1913_v53 = vpack.c.bf16 %v2399_v32, %v2391_v31  ;;  %v1880_v54 = vpack.c.bf16 %v2409_v34, %v2404_v33 }
  0x1b   : > { %s2336_s10 = sshll.u32 %s334_s9, 4  ;;  %1906 = vmatprep.subr.bf16.mxu1 %v2185_v2  ;;  %v2432_v40 = vld [vmem:[%s3191_s3 + $0x128] sm:$0xff]  ;;  %v2437_v41 = vld [vmem:[%s3191_s3 + $0x60] sm:$0xff]  ;;  %v2462_v47 = vld [vmem:[%s3191_s3 + $0x130] sm:$0xff]  ;;  %v1916_v55 = vpack.c.bf16 %v2420_v38, %v2415_v37 }
  0x1c   : > { %s3217_s27 = smov (!%p1759_p1, %s332_s27), 15  ;;  %v2442_v42 = vld [vmem:[%s3191_s3 + $0x68] sm:$0xff]  ;;  %v2467_v48 = vld [vmem:[%s3191_s3 + $0x138] sm:$0xff]  ;;  %v2472_v49 = vld [vmem:[%s3191_s3 + $0x70] sm:$0xff]  ;;  %1872 = vmatpush1.bf16.msra.mxu0 %v1871_v35  ;;  %v1883_v59 = vpack.c.bf16 %v2432_v40, %v2425_v39 }
  0x1d   : > { %s349_s17 = scalar_select %p348_p13, %s2294_s12, 15  ;;  %v2485_v56 = vld [vmem:[%s3191_s3 + $0x78] sm:$0xff]  ;;  %v1919_v60 = vpack.c.bf16 %v2442_v42, %v2437_v41  ;;  %v2494_v61 = vld [vmem:[%s3191_s3 + $0x140] sm:$0xff]  ;;  %v2499_v62 = vld [vmem:[%s3191_s3 + $0x148] sm:$0xff]  ;;  %1873 = vmatprep.subr.bf16.mxu0 %v2185_v2  ;;  %v1886_v63 = vpack.c.bf16 %v2467_v48, %v2462_v47 }
  0x1e   : > { %s338_s13 = sadd.s32 %s3217_s27, %s2336_s10  ;;  %1908 = vmatpush1.bf16.msra.mxu1 %v1907_v36  ;;  %v1922_v0 = vpack.c.bf16 %v2485_v56, %v2472_v49  ;;  %v1889_v1 = vpack.c.bf16 %v2499_v62, %v2494_v61  ;;  %s326_s27 = sand.u32 1, %s2159_s19  }
  0x1f   : > { %s351_s29 = sadd.s32 %s2336_s10, %s349_s17  ;;  %1909 = vmatprep.subr.bf16.mxu1 %v2185_v2 }
  0x20   : > { %s1768_s17 = sshll.u32 %s351_s29, 3  ;;  %s2444_s29 = sshll.u32 %s338_s13, 3  ;;  %1875 = vmatpush1.bf16.msra.mxu0 %v1874_v45 }
  0x21   : > { %s353_s16 = scalar_lea.vmem %s3189_s1, %s1768_s17  ;;  %s340_s28 = scalar_lea.vmem %s3188_s0, %s2444_s29  ;;  %1876 = vmatprep.subr.bf16.mxu0 %v2185_v2 }
  0x22   : > { %v373_v50 = vld [vmem:[%s353_s16] sm:$0xff]  ;;  %v374_v51 = vld [vmem:[%s353_s16 + $0x8] sm:$0xff]  ;;  %s2084_s17 = scalar_select %p376_p2, 255, 0  ;;  %1911 = vmatpush1.bf16.msra.mxu1 %v1910_v46 }
  0x23   : > { %v391_v57 = vrot.slane %v373_v50, 7  ;;  %v392_v58 = vrot.slane %v374_v51, 7  ;;  %1912 = vmatprep.subr.bf16.mxu1 %v2185_v2  ;;  %s1862_s29 = sadd.s32 2, %s2294_s12  ;;  %s1851_s16 = sshll.u32 %s2171_s22, 6 }
  0x24   : > { %v2085_v14 = vld [vmem:[%s340_s28] sm:%s2084_s17]  ;;  %1878 = vmatpush1.bf16.msra.mxu0 %v1877_v52  ;;  %p2612_p4 = scmp.lt.s32.totalorder %s1862_s29, 15  ;;  %s3136_s17 = scalar_lea.sflag [#allocation3], %s326_s27 }
  0x25   : > { %v2514_v3 = vsel %vm398_vm0, 0.0, %v391_v57  ;;  %v2517_v4 = vsel %vm398_vm0, %v391_v57, 0.0  ;;  %v2520_v5 = vsel %vm398_vm0, 0.0, %v392_v58  ;;  %v2531_v9 = vsel %vm398_vm0, %v392_v58, 0.0  ;;  %1879 = vmatprep.subr.bf16.mxu0 %v2185_v2  ;;  %s2087_s9 = scalar_select %p381_p5, 255, 0 }
  0x26   : > { %v478_v6 = vcombine.high %v2514_v3, %v2514_v3  ;;  %v485_v7 = vrot.slane %v2514_v3, %v2450_v43  ;;  %v533_v8 = vrot.slane %v2517_v4, %v2450_v43  ;;  %v541_v11 = vcombine.high %v2520_v5, %v2520_v5  ;;  %1914 = vmatpush1.bf16.msra.mxu1 %v1913_v53  ;;  %s3219_s29 = smov (!%p2612_p4, %s1862_s29), 15 }
  0x27   : > { %v2540_v12 = vrot.slane %v2520_v5, %v2450_v43  ;;  %v596_v13 = vrot.slane %v2531_v9, %v2450_v43  ;;  %v390_v19 = vrot.slane %v2085_v14, 7  ;;  %1915 = vmatprep.subr.bf16.mxu1 %v2185_v2  ;;  %s3221_s29 = smov (!%p2612_p4, %s3219_s29), 15 }
  0x28   : > { %v492_v15 = vrot.slane %v478_v6, %v2450_v43  ;;  %v493_v16 = vcombine.high %v485_v7, %v485_v7  ;;  %v501_v17 = vrot.slane %v485_v7, %v2450_v43  ;;  %v2547_v18 = vrot.slane %v533_v8, %v2450_v43  ;;  %1881 = vmatpush1.bf16.msra.mxu0 %v1880_v54  ;;  %s364_s12 = sadd.s32 %s2336_s10, %s3221_s29  ;;  %s2189_s29 = smov [#allocation2]  }
  0x29   : > { %v2551_v20 = vrot.slane %v541_v11, %v2450_v43  ;;  %v556_v21 = vcombine.high %v2540_v12, %v2540_v12  ;;  %v2557_v22 = vrot.slane %v2540_v12, %v2450_v43  ;;  %v2565_v27 = vsel %vm398_vm0, 0.0, %v390_v19  ;;  %1882 = vmatprep.subr.bf16.mxu0 %v2185_v2  ;;  %s1774_s10 = sshll.u32 %s364_s12, 3  ;;  %s2188_s12 = smov 64  }
  0x2a   : > { %v494_v23 = vcombine.high %v492_v15, %v492_v15  ;;  %v2561_v24 = vrot.slane %v492_v15, %v2450_v43  ;;  %v515_v25 = vrot.slane %v493_v16, %v2450_v43  ;;  %v523_v26 = vcombine.high %v501_v17, %v501_v17  ;;  %1917 = vmatpush1.bf16.msra.mxu1 %v1916_v55  ;;  %s366_s15 = scalar_lea.vmem %s3190_s2, %s1774_s10  ;;  %s1756_s10 = sshll.u32 %s326_s27, 6 }
  0x2b   : > { %v2568_v28 = vsel %vm398_vm0, %v390_v19, 0.0  ;;  %v762_v29 = vrot.slane %v2547_v18, %v2534_v10  ;;  %v557_v30 = vcombine.high %v2551_v20, %v2551_v20  ;;  %v415_v31 = vcombine.high %v2565_v27, %v2565_v27  ;;  %1918 = vmatprep.subr.bf16.mxu1 %v2185_v2  ;;  %s3105_s14 = scalar_lea.vmem [#allocation2], %s1756_s10  ;;  %s2093_s10 = sshll.u32 %s2189_s29, 4  ;;  %s2094_s10 = int_to_ptr.vmem [resolvable:$false] %s2093_s10 }
  0x2c   : > { %v422_v32 = vrot.slane %v2565_v27, %v2450_v43  ;;  %v470_v35 = vrot.slane %v2568_v28, %v2450_v43  ;;  %v522_v36 = vrot.slane %v494_v23, %v2450_v43  ;;  %v524_v45 = vcombine.high %v2561_v24, %v2561_v24  ;;  %1884 = vmatpush1.bf16.msra.mxu0 %v1883_v59  ;;  %s1627_s22 = sshll.u32 %s3105_s14, 4  ;;  %s3128_s22 = int_to_ptr.vmem [resolvable:$true] %s1627_s22 }
  0x2d   : > { %v525_v46 = vcombine.high %v515_v25, %v515_v25  ;;  %v734_v50 = vrot.slane %v515_v25, %v2534_v10  ;;  %v738_v51 = vrot.slane %v523_v26, %v2534_v10  ;;  %v429_v52 = vrot.slane %v415_v31, %v2450_v43  ;;  %1885 = vmatprep.subr.bf16.mxu0 %v2185_v2  ;;  %p2096_p10 = scmp.lt.s32.totalorder %s3128_s22, %s2094_s10 }
  0x2e   : > { %v430_v53 = vcombine.high %v422_v32, %v422_v32  ;;  %v438_v57 = vrot.slane %v422_v32, %v2450_v43  ;;  %v477_v58 = vrot.slane %v470_v35, %v2450_v43  ;;  %v526_v6 = vcombine.high %v522_v36, %v522_v36  ;;  %1920 = vmatpush1.bf16.msra.mxu1 %v1919_v60 }
  0x2f   : > { %v742_v7 = vrot.slane %v525_v46, %v2534_v10  ;;  %v746_v8 = vrot.slane %v2561_v24, %v2534_v10  ;;  %v750_v11 = vrot.slane %v522_v36, %v2534_v10  ;;  %v431_v14 = vcombine.high %v429_v52, %v429_v52  ;;  %1921 = vmatprep.subr.bf16.mxu1 %v2185_v2 }
  0x30   : > { %v445_v15 = vrot.slane %v429_v52, %v2450_v43  ;;  %v452_v16 = vrot.slane %v430_v53, %v2450_v43  ;;  %v460_v17 = vcombine.high %v438_v57, %v438_v57  ;;  %v730_v19 = vrot.slane %v477_v58, %v2534_v10  ;;  %1887 = vmatpush1.bf16.msra.mxu0 %v1886_v63 }
  0x31   : > { %v754_v23 = vrot.slane %v524_v45, %v2534_v10  ;;  %v758_v31 = vrot.slane %v526_v6, %v2534_v10  ;;  %v867_v33 = vsel %vm398_vm0, %v515_v25, %v734_v50  ;;  %v459_v34 = vrot.slane %v431_v14, %v2450_v43  ;;  %1888 = vmatprep.subr.bf16.mxu0 %v2185_v2 }
  0x32   : > { %v461_v54 = vcombine.high %v445_v15, %v445_v15  ;;  %v462_v32 = vcombine.high %v452_v16, %v452_v16  ;;  %v702_v35 = vrot.slane %v452_v16, %v2534_v10  ;;  %v706_v37 = vrot.slane %v460_v17, %v2534_v10  ;;  %1923 = vmatpush1.bf16.msra.mxu1 %v1922_v0 }
  0x33   : > { %v714_v38 = vrot.slane %v445_v15, %v2534_v10  ;;  %v866_v55 = vsel %vm398_vm0, %v477_v58, %v730_v19  ;;  %v868_v25 = vsel %vm398_vm0, %v523_v26, %v738_v51  ;;  %v463_v50 = vcombine.high %v459_v34, %v459_v34  ;;  %1924 = vmatprep.subr.bf16.mxu1 %v2185_v2 }
  0x34   : > { %v710_v52 = vrot.slane %v462_v32, %v2534_v10  ;;  %v718_v53 = vrot.slane %v459_v34, %v2534_v10  ;;  %v722_v57 = vrot.slane %v461_v54, %v2534_v10  ;;  %v859_v26 = vsel %vm398_vm0, %v452_v16, %v702_v35  ;;  %1890 = vmatpush1.bf16.msra.mxu0 %v1889_v1 }
  0x35   : > { %v860_v51 = vsel %vm398_vm0, %v460_v17, %v706_v37  ;;  %v862_v39 = vsel %vm398_vm0, %v445_v15, %v714_v38  ;;  %v869_v40 = vsel %vm398_vm0, %v525_v46, %v742_v7  ;;  %v726_v59 = vrot.slane %v463_v50, %v2534_v10  ;;  %1891 = vmatprep.subr.bf16.mxu0 %v2185_v2 }
  0x36   : > { %v861_v58 = vsel %vm398_vm0, %v462_v32, %v710_v52  ;;  %v863_v14 = vsel %vm398_vm0, %v459_v34, %v718_v53  ;;  %v864_v41 = vsel %vm398_vm0, %v461_v54, %v722_v57  ;;  %v870_v42 = vsel %vm398_vm0, %v2561_v24, %v746_v8 }
  0x37   : > { %v871_v60 = vsel %vm398_vm0, %v522_v36, %v750_v11  ;;  %v872_v46 = vsel %vm398_vm0, %v524_v45, %v754_v23  ;;  %v873_v7 = vsel %vm398_vm0, %v526_v6, %v758_v31  ;;  %v865_v15 = vsel %vm398_vm0, %v463_v50, %v726_v59 }
  0x38   : > { %v874_v24 = vsel %vm398_vm0, %v2547_v18, %v762_v29  ;;  %v923_v36 = vcombine.low %v859_v26, %v860_v51  ;;  %v924_v8 = vcombine.low %v861_v58, %v862_v39  ;;  %v940_v45 = vcombine.low %v863_v14, %v864_v41 }
  0x39   : > { %v941_v6 = vcombine.low %v865_v15, %v866_v55  ;;  %v957_v47 = vcombine.low %v867_v33, %v868_v25  ;;  %v958_v48 = vcombine.low %v869_v40, %v870_v42  ;;  %v974_v16 = vcombine.low %v871_v60, %v872_v46 }
  0x3a   : > { %v931_v63 = vrot.slane %v923_v36, %v2453_v44  ;;  %v938_v11 = vrot.slane %v924_v8, %v2453_v44  ;;  %v975_v17 = vcombine.low %v873_v7, %v874_v24  ;;  %v948_v49 = vrot.slane %v940_v45, %v2453_v44  ;;  %v1170_v36 = vld [vmem:[%s3191_s3 + $0x80] sm:$0xff]  ;;  %v1171_v8 = vld [vmem:[%s3191_s3 + $0x88] sm:$0xff] }
  0x3b   : > { %v955_v56 = vrot.slane %v941_v6, %v2453_v44  ;;  %v965_v0 = vrot.slane %v957_v47, %v2453_v44  ;;  %v972_v18 = vrot.slane %v958_v48, %v2453_v44  ;;  %v982_v19 = vrot.slane %v974_v16, %v2453_v44  ;;  %v1794_v16 = vld [vmem:[%s3191_s3 + $0x158] sm:$0xff] }
  0x3c   : > { %v939_v29 = vcombine.low %v931_v63, %v938_v11  ;;  %v989_v23 = vrot.slane %v975_v17, %v2453_v44  ;;  %v571_v31 = vrot.slane %v2551_v20, %v2450_v43  ;;  %v578_v54 = vrot.slane %v556_v21, %v2450_v43  ;;  %v2088_v63 = vld [vmem:[%s366_s15] sm:%s2087_s9]  ;;  %v1793_v11 = vld [vmem:[%s3191_s3 + $0x150] sm:$0xff]  ;;  %s1863_s15 = sshll.u32 %s2167_s21, 3  ;;  %s2095_s9 = scalar_lea.vmem %s2094_s10, 2048 }
  0x3d   : > { %v956_v33 = vcombine.low %v948_v49, %v955_v56  ;;  %v973_v34 = vcombine.low %v965_v0, %v972_v18  ;;  %v585_v61 = vrot.slane %v557_v30, %v2450_v43  ;;  %v586_v32 = vcombine.high %v2557_v22, %v2557_v22  ;;  %s1624_s26 = sadd.s32 %s1863_s15, %s1851_s16 }
  0x3e   : > { %v990_v62 = vcombine.low %v982_v19, %v989_v23  ;;  %v1059_v1 = vrot.slane %v939_v29, 7  ;;  %v587_v35 = vcombine.high %v571_v31, %v571_v31  ;;  %v588_v55 = vcombine.high %v578_v54, %v578_v54  ;;  %s1852_s21 = sshll.u32 %s1624_s26, 7 }
  0x3f   : > { %v1060_v37 = vrot.slane %v956_v33, 7  ;;  %v1062_v38 = vrot.slane %v973_v34, 7  ;;  %v589_v25 = vcombine.high %v585_v61, %v585_v61  ;;  %v603_v20 = vrot.slane %v596_v13, %v2450_v43  ;;  %v1173_v33 = vld [vmem:[%s3191_s3 + $0x98] sm:$0xff]  ;;  %s3126_s28 = scalar_lea.hbm %s3193_s5, %s1852_s21 }
  0x40   : > { %v1063_v50 = vrot.slane %v990_v62, 7  ;;  %v2696_v12 = vsel %vm398_vm0, %v2565_v27, %v1059_v1  ;;  %v766_v21 = vrot.slane %v578_v54, %v2534_v10  ;;  %v774_v59 = vrot.slane %v588_v55, %v2534_v10 }
  0x41   : > { %v2704_v22 = vsel %vm398_vm0, %v1059_v1, %v1060_v37  ;;  %v2708_v30 = vsel %vm398_vm0, %v2514_v3, %v1062_v38  ;;  %v1098_v52 = vrot.slane %v2696_v12, 1  ;;  %v2713_v27 = vsel %vm398_vm0, %v1060_v37, %v2568_v28  ;;  %v1795_v37 = vld [vmem:[%s3191_s3 + $0x160] sm:$0xff] }
  0x42   : > { %v2716_v53 = vsel %vm398_vm0, %v1062_v38, %v1063_v50  ;;  %v1099_v13 = vrot.slane %v2704_v22, 1  ;;  %v1103_v57 = vrot.slane %v2708_v30, 1  ;;  %v2722_v26 = vsel %vm398_vm0, %v1063_v50, %v2517_v4  ;;  %v1796_v38 = vld [vmem:[%s3191_s3 + $0x168] sm:$0xff] }
  0x43   : > { %v1104_v3 = vrot.slane %v2716_v53, 1  ;;  %v1101_v51 = vrot.slane %v2713_v27, 1  ;;  %v1106_v39 = vrot.slane %v2722_v26, 1  ;;  %v770_v28 = vrot.slane %v586_v32, %v2534_v10 }
  0x44   : > { %v1100_v40 = vsel %vm1097_vm1, %v1098_v52, %v1099_v13  ;;  %v778_v58 = vrot.slane %v571_v31, %v2534_v10  ;;  %v782_v14 = vrot.slane %v585_v61, %v2534_v10  ;;  %v786_v60 = vrot.slane %v587_v35, %v2534_v10 }
  0x45   : > { %v1105_v4 = vsel %vm1097_vm1, %v1103_v57, %v1104_v3  ;;  %v1102_v41 = vsel %vm1097_vm1, %v1099_v13, %v1101_v51  ;;  %v1107_v42 = vsel %vm1097_vm1, %v1104_v3, %v1106_v39  ;;  %v790_v15 = vrot.slane %v589_v25, %v2534_v10  ;;  %v1175_v3 = vld [vmem:[%s3191_s3 + $0xa8] sm:$0xff]  ;;  %v1797_v51 = vld [vmem:[%s3191_s3 + $0x170] sm:$0xff]  ;;  %v1798_v39 = vld [vmem:[%s3191_s3 + $0x178] sm:$0xff] }
  0x46   : > { %v2073_v46 = vpack.i.bf16 %v1105_v4, %v1100_v40  ;;  %v2078_v7 = vpack.i.bf16 %v1107_v42, %v1102_v41  ;;  %v794_v24 = vrot.slane %v603_v20, %v2534_v10  ;;  %v875_v45 = vsel %vm398_vm0, %v578_v54, %v766_v21  ;;  %v1176_v41 = vld [vmem:[%s3191_s3 + $0xb0] sm:$0xff]  ;;  %v1177_v42 = vld [vmem:[%s3191_s3 + $0xb8] sm:$0xff] }
  0x47   : > { %v876_v6 = vsel %vm398_vm0, %v586_v32, %v770_v28  ;;  %v877_v47 = vsel %vm398_vm0, %v588_v55, %v774_v59  ;;  %v878_v48 = vsel %vm398_vm0, %v571_v31, %v778_v58  ;;  %v879_v17 = vsel %vm398_vm0, %v585_v61, %v782_v14  ;;  %v1172_v31 = vld [vmem:[%s3191_s3 + $0x90] sm:$0xff] }
  0x48   : > { %2074 = vrot.lane.b32.xlu0 %v2073_v46, %s2188_s12  ;;  %v880_v49 = vsel %vm398_vm0, %v587_v35, %v786_v60  ;;  %v881_v56 = vsel %vm398_vm0, %v589_v25, %v790_v15  ;;  %v882_v0 = vsel %vm398_vm0, %v603_v20, %v794_v24  ;;  %v991_v18 = vcombine.low %v875_v45, %v876_v6  ;;  %v1174_v20 = vld [vmem:[%s3191_s3 + $0xa0] sm:$0xff] }
  0x49   : > { %v992_v29 = vcombine.low %v877_v47, %v878_v48  ;;  %v1008_v19 = vcombine.low %v879_v17, %v880_v49  ;;  %v1009_v23 = vcombine.low %v881_v56, %v882_v0  ;;  %v393_v34 = vrot.slane %v2088_v63, 7 }
  0x4a   : > { %v1925_v54 = vpack.c.bf16 %v1171_v8, %v1170_v36  ;;  %v1892_v61 = vpack.c.bf16 %v1794_v16, %v1793_v11  ;;  %v999_v62 = vrot.slane %v991_v18, %v2453_v44  ;;  %v1928_v50 = vpack.c.bf16 %v1173_v33, %v1172_v31 }
  0x4b   : > { %v1006_v1 = vrot.slane %v992_v29, %v2453_v44  ;;  %v1016_v32 = vrot.slane %v1008_v19, %v2453_v44  ;;  %v1023_v35 = vrot.slane %v1009_v23, %v2453_v44  ;;  %v2782_v55 = vsel %vm398_vm0, 0.0, %v393_v34 }
  0x4c   : > { %2079 = vrot.lane.b32.xlu0 %v2078_v7, %s2188_s12  ;;  %v2785_v25 = vsel %vm398_vm0, %v393_v34, 0.0  ;;  %1926 = vmatpush1.bf16.msra.mxu1 %v1925_v54  ;;  %v604_v13 = vcombine.high %v2782_v55, %v2782_v55  ;;  %v611_v57 = vrot.slane %v2782_v55, %v2450_v43  ;;  %v1895_v40 = vpack.c.bf16 %v1796_v38, %v1795_v37 }
  0x4d   : > { %v1007_v21 = vcombine.low %v999_v62, %v1006_v1  ;;  %v1024_v52 = vcombine.low %v1016_v32, %v1023_v35  ;;  %1927 = vmatprep.subr.bf16.mxu1 %v2185_v2  ;;  %v659_v28 = vrot.slane %v2785_v25, %v2450_v43  ;;  %1893 = vmatpush1.bf16.msra.mxu0 %v1892_v61 }
  0x4e   : > { %v618_v14 = vrot.slane %v604_v13, %v2450_v43  ;;  %v619_v4 = vcombine.high %v611_v57, %v611_v57  ;;  %1894 = vmatprep.subr.bf16.mxu0 %v2185_v2  ;;  %v627_v60 = vrot.slane %v611_v57, %v2450_v43  ;;  %v1931_v7 = vpack.c.bf16 %v1175_v3, %v1174_v20 }
  0x4f   : > { %v1065_v59 = vrot.slane %v1007_v21, 7  ;;  %v1066_v58 = vrot.slane %v1024_v52, 7  ;;  %v666_v46 = vrot.slane %v659_v28, %v2450_v43  ;;  %v1898_v15 = vpack.c.bf16 %v1798_v39, %v1797_v51 }
  0x50   : > { %1929 = vmatpush1.bf16.msra.mxu1 %v1928_v50  ;;  %v620_v45 = vcombine.high %v618_v14, %v618_v14  ;;  %v1934_v48 = vpack.c.bf16 %v1177_v42, %v1176_v41  ;;  %v641_v16 = vrot.slane %v619_v4, %v2450_v43  ;;  %v649_v49 = vcombine.high %v627_v60, %v627_v60 }
  0x51   : > { %v2817_v24 = vsel %vm398_vm0, %v1065_v59, %v1066_v58  ;;  %v2821_v36 = vsel %vm398_vm0, %v2520_v5, %v1065_v59  ;;  %v2825_v8 = vsel %vm398_vm0, %v1066_v58, %v2531_v9  ;;  %1930 = vmatprep.subr.bf16.mxu1 %v2185_v2  ;;  %1896 = vmatpush1.bf16.msra.mxu0 %v1895_v40  ;;  %v1137_v21 = vrot.slane %v2708_v30, 2 }
  0x52   : > { %v1108_v6 = vrot.slane %v2821_v36, 1  ;;  %v1109_v47 = vrot.slane %v2817_v24, 1  ;;  %v1111_v63 = vrot.slane %v2825_v8, 1  ;;  %v1145_v11 = vrot.slane %v2825_v8, 2  ;;  %1897 = vmatprep.subr.bf16.mxu0 %v2185_v2 }
  0x53   : > { %v634_v5 = vrot.slane %v618_v14, %v2450_v43  ;;  %v648_v17 = vrot.slane %v620_v45, %v2450_v43  ;;  %v826_v56 = vrot.slane %v666_v46, %v2534_v10  ;;  %v651_v29 = vcombine.high %v641_v16, %v641_v16 }
  0x54   : > { %v1110_v9 = vsel %vm1097_vm1, %v1108_v6, %v1109_v47  ;;  %1932 = vmatpush1.bf16.msra.mxu1 %v1931_v7  ;;  %v1112_v0 = vsel %vm1097_vm1, %v1109_v47, %v1111_v63  ;;  %v798_v19 = vrot.slane %v641_v16, %v2534_v10  ;;  %v802_v31 = vrot.slane %v649_v49, %v2534_v10 }
  0x55   : > { %1121 = vrot.lane.b32.xlu1 %v1110_v9, %s2188_s12  ;;  %v650_v18 = vcombine.high %v634_v5, %v634_v5  ;;  %v652_v23 = vcombine.high %v648_v17, %v648_v17  ;;  %v810_v33 = vrot.slane %v634_v5, %v2534_v10  ;;  %v814_v34 = vrot.slane %v648_v17, %v2534_v10 }
  0x56   : > { %1933 = vmatprep.subr.bf16.mxu1 %v2185_v2  ;;  %v806_v43 = vrot.slane %v651_v29, %v2534_v10  ;;  %v883_v61 = vsel %vm398_vm0, %v641_v16, %v798_v19  ;;  %v890_v62 = vsel %vm398_vm0, %v666_v46, %v826_v56  ;;  %1899 = vmatpush1.bf16.msra.mxu0 %v1898_v15  ;;  %v1138_v57 = vrot.slane %v2716_v53, 2  ;;  %v1817_v19 = vld [vmem:[%s3191_s3 + $0x190] sm:$0xff] }
  0x57   : > { %v818_v54 = vrot.slane %v650_v18, %v2534_v10  ;;  %v822_v1 = vrot.slane %v652_v23, %v2534_v10  ;;  %v884_v32 = vsel %vm398_vm0, %v649_v49, %v802_v31  ;;  %v886_v35 = vsel %vm398_vm0, %v634_v5, %v810_v33  ;;  %1936 = vmatprep.subr.bf16.mxu0 %v2185_v2  ;;  %v1816_v49 = vld [vmem:[%s3191_s3 + $0x188] sm:$0xff] }
  0x58   : > { %v887_v37 = vsel %vm398_vm0, %v648_v17, %v814_v34  ;;  %1935 = vmatpush1.bf16.msra.mxu1 %v1934_v48  ;;  %v885_v38 = vsel %vm398_vm0, %v651_v29, %v806_v43  ;;  %v1025_v20 = vcombine.low %v883_v61, %v884_v32  ;;  %v1132_v39 = vrot.slane %v2696_v12, 2 }
  0x59   : > { %1123 = vrot.lane.b32.xlu1 %v1112_v0, %s2188_s12  ;;  %v888_v50 = vsel %vm398_vm0, %v650_v18, %v818_v54  ;;  %v889_v10 = vsel %vm398_vm0, %v652_v23, %v822_v1  ;;  %v1026_v52 = vcombine.low %v885_v38, %v886_v35  ;;  %1972 = vmatprep.subr.bf16.mxu1 %v2185_v2  ;;  %v1133_v58 = vrot.slane %v2704_v22, 2  ;;  %v1818_v23 = vld [vmem:[%s3191_s3 + $0x198] sm:$0xff] }
  0x5a   : > { %v1042_v13 = vcombine.low %v887_v37, %v888_v50  ;;  %v1033_v3 = vrot.slane %v1025_v20, %v2453_v44  ;;  %v1043_v51 = vcombine.low %v889_v10, %v890_v62  ;;  %v2866_v59 = vsel %vm1131_vm2, %v1137_v21, %v1138_v57  ;;  %v1823_v50 = vld [vmem:[%s3191_s3 + $0x1c0] sm:$0xff]  ;;  %v1824_v20 = vld [vmem:[%s3191_s3 + $0x1c8] sm:$0xff] }
  0x5b   : > { %v1040_v28 = vrot.slane %v1026_v52, %v2453_v44  ;;  %1799 = vmatprep.mubr.msk.f32.mxu0 %vm1147_vm3, %v2866_v59  ;;  %v1140_v4 = vrot.slane %v2722_v26, 2  ;;  %v1135_v41 = vrot.slane %v2713_v27, 2  ;;  %v1143_v42 = vrot.slane %v2817_v24, 2 }
  0x5c   : > { %v1050_v40 = vrot.slane %v1042_v13, %v2453_v44  ;;  %v1057_v14 = vrot.slane %v1043_v51, %v2453_v44  ;;  %v1134_v46 = vsel %vm1131_vm2, %v1132_v39, %v1133_v58  ;;  %v1940_v61 = vpack.c.bf16 %v1818_v23, %v1817_v19  ;;  %v1827_v39 = vld [vmem:[%s3191_s3 + $0x1e0] sm:$0xff] }
  0x5d   : > { %v1041_v60 = vcombine.low %v1033_v3, %v1040_v28  ;;  %1807 = vmatprep.mubr.msk.f32.mxu1 %vm1147_vm3, %v1134_v46  ;;  %v2878_v15 = vsel %vm1131_vm2, %v1138_v57, %v1140_v4  ;;  %v1136_v44 = vsel %vm1131_vm2, %v1133_v58, %v1135_v41  ;;  %v2884_v26 = vsel %vm1131_vm2, %v1143_v42, %v1145_v11  ;;  %v1825_v57 = vld [vmem:[%s3191_s3 + $0x1d0] sm:$0xff]  ;;  %v1826_v3 = vld [vmem:[%s3191_s3 + $0x1d8] sm:$0xff]  ;;  %v1828_v28 = vld [vmem:[%s3191_s3 + $0x1e8] sm:$0xff] }
  0x5e   : > { %v1058_v7 = vcombine.low %v1050_v40, %v1057_v14  ;;  %v1142_v35 = vrot.slane %v2821_v36, 2  ;;  %v1949_v52 = vpack.c.bf16 %v1824_v20, %v1823_v50  ;;  %v1952_v51 = vpack.c.bf16 %v1826_v3, %v1825_v57  ;;  %v1829_v40 = vld [vmem:[%s3191_s3 + $0x1f0] sm:$0xff]  ;;  %v1830_v58 = vld [vmem:[%s3191_s3 + $0x1f8] sm:$0xff]  ;;  %v1831_v4 = vld [vmem:[%s3191_s3 + $0x200] sm:$0xff] }
  0x5f   : > { %v1068_v8 = vrot.slane %v1041_v60, 7  ;;  %v1958_v14 = vpack.c.bf16 %v1830_v58, %v1829_v40  ;;  %v1832_v41 = vld [vmem:[%s3191_s3 + $0x208] sm:$0xff]  ;;  %v1833_v60 = vld [vmem:[%s3191_s3 + $0x210] sm:$0xff]  ;;  %v1834_v46 = vld [vmem:[%s3191_s3 + $0x218] sm:$0xff] }
  0x60   : > { %v1069_v27 = vrot.slane %v1058_v7, 7  ;;  %v2974_v21 = vsel %vm1131_vm2, %v1142_v35, %v1143_v42  ;;  %v1961_v42 = vpack.c.bf16 %v1832_v41, %v1831_v4  ;;  %v1964_v7 = vpack.c.bf16 %v1834_v46, %v1833_v60 }
  0x61   : > { %v2888_v45 = vsel %vm398_vm0, %v2782_v55, %v1068_v8 }
  0x62   : > { %v2891_v6 = vsel %vm398_vm0, %v1068_v8, %v1069_v27  ;;  %v1427_v47 = vrot.slane %v2888_v45, 1  ;;  %v1090_v48 = vsel %vm398_vm0, %v1069_v27, %v2785_v25  ;;  %v1815_v25 = vld [vmem:[%s3191_s3 + $0x180] sm:$0xff]  ;;  %v1836_v8 = vld [vmem:[%s3191_s3 + $0x228] sm:$0xff]  ;;  %v1837_v27 = vld [vmem:[%s3191_s3 + $0x230] sm:$0xff] }
  0x63   : > { %v1428_v63 = vrot.slane %v2891_v6, 1  ;;  %v1430_v5 = vrot.slane %v1090_v48, 1  ;;  %v1439_v55 = vrot.slane %v2891_v6, 2  ;;  %v1441_v9 = vrot.slane %v1090_v48, 2 }
  0x64   : > { %v1937_v29 = vpack.c.bf16 %v1816_v49, %v1815_v25 }
  0x65   : > { %v1429_v16 = vsel %vm1097_vm1, %v1427_v47, %v1428_v63  ;;  %v1431_v11 = vsel %vm1097_vm1, %v1428_v63, %v1430_v5  ;;  %v2905_v17 = vsel %vm1131_vm2, %v1439_v55, %v1441_v9  ;;  %v1838_v47 = vld [vmem:[%s3191_s3 + $0x238] sm:$0xff]  ;;  %v1438_v63 = vrot.slane %v2888_v45, 2 }
  0x66   : > { %1432 = vrot.lane.b32.xlu0 %v1429_v16, %s2188_s12  ;;  %1434 = vrot.lane.b32.xlu1 %v1431_v11, %s2188_s12  ;;  %v1970_v48 = vpack.c.bf16 %v1838_v47, %v1837_v27  ;;  %s2089_s12 = scalar_lea.vmem %s3128_s22, 1024 }
  0x67   : > { %v1440_v16 = vsel %vm1131_vm2, %v1438_v63, %v1439_v55  ;;  %p2090_p6 = scmp.ne.s32.totalorder %s3128_s22, %s2089_s12  ;;  %p2097_p11 = scmp.lt.s32.totalorder %s2095_s9, %s2089_s12 }
  0x69   : > { %p2091_p7 = pnand %p2090_p6, %p2273_p3  ;;  %p2098_p12 = por %p2097_p11, %p2096_p10 }
  0x6b   : > { %p2092_p9 = pneg %p2091_p7 }
  0x6d   : > { %p2099_p13 = pnand %p2098_p12, %p2092_p9 }
  0xba   : > { %v2075_v56 = vpop.permute.xlu0 %2074 }
  0xbb   : > { %v2077_v0 = vunpack.i.h.bf16 %v2075_v56  ;;  %v2076_v18 = vunpack.i.l.bf16 %v2075_v56 }
  0xbd   : > { %v2921_v31 = vsel %vm1147_vm3, %v2708_v30, %v2077_v0  ;;  %v1148_v33 = vsel %vm1147_vm3, %v2696_v12, %v2076_v18  ;;  %v1819_v30 = vld [vmem:[%s3191_s3 + $0x1a0] sm:$0xff]  ;;  %v1820_v12 = vld [vmem:[%s3191_s3 + $0x1a8] sm:$0xff] }
  0xbe   : > { %v2080_v34 = vpop.permute.xlu0 %2079  ;;  %1276 = vmatmul.mubr.f32.vlgmr.msra.gmra.mrb[0].mxu0 %v2921_v31  ;;  %1385 = vmatmul.mubr.f32.vlgmr.msra.gmra.mrb[0].mxu1 %v1148_v33  ;;  %v1943_v32 = vpack.c.bf16 %v1820_v12, %v1819_v30 }
  0xbf   : > { %v2082_v43 = vunpack.i.h.bf16 %v2080_v34  ;;  %v2081_v54 = vunpack.i.l.bf16 %v2080_v34  ;;  %1938 = vmatpush1.bf16.msra.mxu0 %v1937_v29  ;;  %1984 = vmatpush1.bf16.msra.mxu1 %v1937_v29 }
  0xc0   : > { %1800 = vmatprep.mubr.msk.f32.mxu0 %vm1147_vm3, %v2878_v15  ;;  %1808 = vmatprep.mubr.msk.f32.mxu1 %vm1147_vm3, %v1136_v44  ;;  %v1835_v44 = vld [vmem:[%s3191_s3 + $0x220] sm:$0xff] }
  0xc1   : > { %1939 = vmatprep.subr.bf16.mxu0 %v2185_v2  ;;  %1973 = vmatprep.subr.bf16.mxu1 %v2185_v2  ;;  %v2939_v62 = vsel %vm1147_vm3, %v2716_v53, %v2082_v43  ;;  %v1149_v1 = vsel %vm1147_vm3, %v2704_v22, %v2081_v54  ;;  %v1821_v53 = vld [vmem:[%s3191_s3 + $0x1b0] sm:$0xff]  ;;  %v1822_v22 = vld [vmem:[%s3191_s3 + $0x1b8] sm:$0xff] }
  0xc2   : > { %1281 = vmatmul.mubr.f32.gmra.mrb[2].mxu0 %v2939_v62  ;;  %1390 = vmatmul.mubr.f32.gmra.mrb[2].mxu1 %v1149_v1  ;;  %v1946_v37 = vpack.c.bf16 %v1822_v22, %v1821_v53 }
  0xc3   : > { %1941 = vmatpush1.bf16.msra.mxu0 %v1940_v61  ;;  %1985 = vmatpush1.bf16.msra.mxu1 %v1940_v61 }
  0xc4   : > { %1801 = vmatprep.mubr.msk.f32.mxu0 %vm1147_vm3, %v2866_v59  ;;  %1809 = vmatprep.mubr.msk.f32.mxu1 %vm1147_vm3, %v2866_v59 }
  0xc5   : > { %1942 = vmatprep.subr.bf16.mxu0 %v2185_v2  ;;  %1974 = vmatprep.subr.bf16.mxu1 %v2185_v2 }
  0xc6   : > { %1286 = vmatmul.mubr.f32.gmra.mrb[4].mxu0 %v2921_v31  ;;  %1395 = vmatmul.mubr.f32.gmra.mrb[4].mxu1 %v2921_v31 }
  0xc7   : > { %1944 = vmatpush1.bf16.msra.mxu0 %v1943_v32  ;;  %1986 = vmatpush1.bf16.msra.mxu1 %v1943_v32  ;;  %v1122_v38 = vpop.permute.xlu1 %1121 }
  0xc8   : > { %1802 = vmatprep.mubr.msk.f32.mxu0 %vm1147_vm3, %v2878_v15  ;;  %1810 = vmatprep.mubr.msk.f32.mxu1 %vm1147_vm3, %v2878_v15  ;;  %v2980_v10 = vsel %vm1147_vm3, %v2821_v36, %v1122_v38 }
  0xc9   : > { %1945 = vmatprep.subr.bf16.mxu0 %v2185_v2  ;;  %1975 = vmatprep.subr.bf16.mxu1 %v2185_v2 }
  0xca   : > { %1291 = vmatmul.mubr.f32.gmra.mrb[6].mxu0 %v2939_v62  ;;  %1400 = vmatmul.mubr.f32.gmra.mrb[6].mxu1 %v2939_v62 }
  0xcb   : > { %1947 = vmatpush1.bf16.msra.mxu0 %v1946_v37  ;;  %1987 = vmatpush1.bf16.msra.mxu1 %v1946_v37  ;;  %v1124_v13 = vpop.permute.xlu1 %1123 }
  0xcc   : > { %1803 = vmatprep.mubr.msk.f32.mxu0 %vm1147_vm3, %v2974_v21  ;;  %1811 = vmatprep.mubr.msk.f32.mxu1 %vm1147_vm3, %v2866_v59  ;;  %v2998_v36 = vsel %vm1147_vm3, %v2817_v24, %v1124_v13  ;;  %v1955_v24 = vpack.c.bf16 %v1828_v28, %v1827_v39  ;;  %v1847_v28 = vld [vmem:[%s3192_s4] ss:$0 sm:$0xff] }
  0xcd   : > { %1948 = vmatprep.subr.bf16.mxu0 %v2185_v2  ;;  %1976 = vmatprep.subr.bf16.mxu1 %v2185_v2 }
  0xce   : > { %1296 = vmatmul.mubr.f32.gmra.mrb[8].mxu0 %v2980_v10  ;;  %1405 = vmatmul.mubr.f32.gmra.mrb[8].mxu1 %v2921_v31 }
  0xcf   : > { %1950 = vmatpush1.bf16.msra.mxu0 %v1949_v52  ;;  %1988 = vmatpush1.bf16.msra.mxu1 %v1949_v52 }
  0xd0   : > { %1804 = vmatprep.mubr.msk.f32.mxu0 %vm1147_vm3, %v2884_v26  ;;  %1812 = vmatprep.mubr.msk.f32.mxu1 %vm1147_vm3, %v2878_v15 }
  0xd1   : > { %1951 = vmatprep.subr.bf16.mxu0 %v2185_v2  ;;  %1977 = vmatprep.subr.bf16.mxu1 %v2185_v2 }
  0xd2   : > { %1301 = vmatmul.mubr.f32.gmra.mrb[10].mxu0 %v2998_v36  ;;  %1410 = vmatmul.mubr.f32.gmra.mrb[10].mxu1 %v2939_v62 }
  0xd3   : > { %1953 = vmatpush1.bf16.msra.mxu0 %v1952_v51  ;;  %1989 = vmatpush1.bf16.msra.mxu1 %v1952_v51 }
  0xd4   : > { %1954 = vmatprep.subr.bf16.mxu0 %v2185_v2  ;;  %1978 = vmatprep.subr.bf16.mxu1 %v2185_v2 }
  0xd5   : > { %1805 = vmatprep.mubr.msk.f32.mxu0 %vm1147_vm3, %v2974_v21  ;;  %1813 = vmatprep.mubr.msk.f32.mxu1 %vm1147_vm3, %v2974_v21 }
  0xd6   : > { %1306 = vmatmul.mubr.f32.gmra.mrb[12].mxu0 %v2980_v10  ;;  %1415 = vmatmul.mubr.f32.gmra.mrb[12].mxu1 %v2980_v10 }
  0xd7   : > { %1956 = vmatpush1.bf16.msra.mxu0 %v1955_v24  ;;  %1990 = vmatpush1.bf16.msra.mxu1 %v1955_v24 }
  0xd8   : > { %1957 = vmatprep.subr.bf16.mxu0 %v2185_v2  ;;  %1979 = vmatprep.subr.bf16.mxu1 %v2185_v2  ;;  %v1433_v5 = vpop.permute.xlu0 %1432 }
  0xd9   : > { %1806 = vmatprep.mubr.msk.f32.mxu0 %vm1147_vm3, %v2884_v26  ;;  %1814 = vmatprep.mubr.msk.f32.mxu1 %vm1147_vm3, %v2884_v26 }
  0xda   : > { %1311 = vmatmul.mubr.f32.gmra.mrb[14].mxu0 %v2998_v36  ;;  %1420 = vmatmul.mubr.f32.gmra.mrb[14].mxu1 %v2998_v36 }
  0xdb   : > { %1959 = vmatpush1.bf16.msra.mxu0 %v1958_v14  ;;  %1991 = vmatpush1.bf16.msra.mxu1 %v1958_v14 }
  0xdc   : > { %1960 = vmatprep.subr.bf16.mxu0 %v2185_v2  ;;  %1980 = vmatprep.subr.bf16.mxu1 %v2185_v2 }
  0xdd   : > { %1839 = vmatprep.mubr.msk.f32.mxu0 %vm1147_vm3, %v2866_v59  ;;  %1843 = vmatprep.mubr.msk.f32.mxu1 %vm1147_vm3, %v2974_v21  ;;  %v1967_v59 = vpack.c.bf16 %v1836_v8, %v1835_v44 }
  0xdf   : > { %1962 = vmatpush1.bf16.msra.mxu0 %v1961_v42  ;;  %1992 = vmatpush1.bf16.msra.mxu1 %v1961_v42 }
  0xe0   : > { %1963 = vmatprep.subr.bf16.mxu0 %v2185_v2  ;;  %1981 = vmatprep.subr.bf16.mxu1 %v2185_v2 }
  0xe3   : > { %1965 = vmatpush1.bf16.msra.mxu0 %v1964_v7  ;;  %1993 = vmatpush1.bf16.msra.mxu1 %v1964_v7 }
  0xe4   : > { %1966 = vmatprep.subr.bf16.mxu0 %v2185_v2  ;;  %1982 = vmatprep.subr.bf16.mxu1 %v2185_v2 }
  0xe7   : > { %1968 = vmatpush1.bf16.msra.mxu0 %v1967_v59  ;;  %1994 = vmatpush1.bf16.msra.mxu1 %v1967_v59 }
  0xe8   : > { %1969 = vmatprep.subr.bf16.mxu0 %v2185_v2  ;;  %1983 = vmatprep.subr.bf16.mxu1 %v2185_v2  ;;  %v1443_v2 = vsel %vm1147_vm3, %v2888_v45, %v1433_v5 }
  0xeb   : > { %1971 = vmatpush1.bf16.msra.mxu0 %v1970_v48  ;;  %1995 = vmatpush1.bf16.msra.mxu1 %v1970_v48 }
  0xee   : > { %1539 = vmatmul.mubr.f32.vlgmr.msra.gmra.mrb[16].mxu0 %v2921_v31  ;;  %1559 = vmatmul.mubr.f32.vlgmr.msra.gmra.mrb[16].mxu1 %v2980_v10 }
  0xef   : > { %1840 = vmatprep.mubr.msk.f32.mxu0 %vm1147_vm3, %v2878_v15  ;;  %1844 = vmatprep.mubr.msk.f32.mxu1 %vm1147_vm3, %v2884_v26  ;;  %v1435_v15 = vpop.permute.xlu1 %1434 }
  0xf0   : > { %v1444_v11 = vsel %vm1147_vm3, %v2891_v6, %v1435_v15 }
  0xf2   : > { %1544 = vmatmul.mubr.f32.gmra.mrb[18].mxu0 %v2939_v62  ;;  %1564 = vmatmul.mubr.f32.gmra.mrb[18].mxu1 %v2998_v36 }
  0xf3   : > { %1841 = vmatprep.mubr.msk.f32.mxu0 %vm1147_vm3, %v2974_v21  ;;  %1845 = vmatprep.mubr.msk.f32.mxu1 %vm1147_vm3, %v1440_v16 }
  0xf6   : > { %1549 = vmatmul.mubr.f32.gmra.mrb[20].mxu0 %v2980_v10  ;;  %1569 = vmatmul.mubr.f32.gmra.mrb[20].mxu1 %v1443_v2 }
  0xf7   : > { %1842 = vmatprep.mubr.msk.f32.mxu0 %vm1147_vm3, %v2884_v26  ;;  %1846 = vmatprep.mubr.msk.f32.mxu1 %vm1147_vm3, %v2905_v17 }
  0xfa   : > { %1554 = vmatmul.mubr.f32.gmra.mrb[22].mxu0 %v2998_v36  ;;  %1574 = vmatmul.mubr.f32.gmra.mrb[22].mxu1 %v1444_v11 }
 0x191   : > { %v1277_v55 = vpop.f32.mrb[0].mxu0  ;;  %v1386_v9 = vpop.f32.mrb[0].mxu1 }
 0x192   : > { %v1387_v25 = vadd.f32 %v1386_v9, %v1277_v55  ;;  %v1279_v45 = vpop.f32.mrb[1].mxu0  ;;  %v1388_v49 = vpop.f32.mrb[1].mxu1 }
 0x195   : > { %v1282_v56 = vpop.f32.mrb[2].mxu0  ;;  %v1391_v0 = vpop.f32.mrb[2].mxu1 }
 0x196   : > { %v1392_v18 = vadd.f32 %v1391_v0, %v1282_v56  ;;  %v1284_v29 = vpop.f32.mrb[3].mxu0  ;;  %v1393_v19 = vpop.f32.mrb[3].mxu1 }
 0x199   : > { %v1287_v26 = vpop.f32.mrb[4].mxu0  ;;  %v1396_v23 = vpop.f32.mrb[4].mxu1 }
 0x19a   : > { %v1397_v31 = vadd.f32 %v1396_v23, %v1287_v26  ;;  %v1289_v17 = vpop.f32.mrb[5].mxu0  ;;  %v1398_v33 = vpop.f32.mrb[5].mxu1 }
 0x19d   : > { %v1292_v34 = vpop.f32.mrb[6].mxu0  ;;  %v1401_v6 = vpop.f32.mrb[6].mxu1 }
 0x19e   : > { %v3097_v43 = vadd.f32 %v1401_v6, %v1292_v34  ;;  %v1294_v54 = vpop.f32.mrb[7].mxu0  ;;  %v1403_v61 = vpop.f32.mrb[7].mxu1 }
 0x1a1   : > { %v1297_v30 = vpop.f32.mrb[8].mxu0  ;;  %v1406_v12 = vpop.f32.mrb[8].mxu1 }
 0x1a2   : > { %v1407_v62 = vadd.f32 %v1406_v12, %v1297_v30  ;;  %v1408_v1 = vpop.f32.mrb[9].mxu1  ;;  %v1299_v32 = vpop.f32.mrb[9].mxu0 }
 0x1a5   : > { %v1302_v53 = vpop.f32.mrb[10].mxu0  ;;  %v1411_v22 = vpop.f32.mrb[10].mxu1 }
 0x1a6   : > { %v1412_v35 = vadd.f32 %v1411_v22, %v1302_v53  ;;  %v1413_v37 = vpop.f32.mrb[11].mxu1  ;;  %v1304_v38 = vpop.f32.mrb[11].mxu0 }
 0x1a9   : > { %v1307_v50 = vpop.f32.mrb[12].mxu0  ;;  %v1416_v20 = vpop.f32.mrb[12].mxu1 }
 0x1aa   : > { %v1417_v21 = vadd.f32 %v1416_v20, %v1307_v50  ;;  %v1309_v10 = vpop.f32.mrb[13].mxu0  ;;  %v1418_v52 = vpop.f32.mrb[13].mxu1 }
 0x1ad   : > { %v1312_v13 = vpop.f32.mrb[14].mxu0  ;;  %v1421_v57 = vpop.f32.mrb[14].mxu1 }
 0x1ae   : > { %v1422_v3 = vadd.f32 %v1421_v57, %v1312_v13  ;;  %v1314_v36 = vpop.f32.mrb[15].mxu0  ;;  %v1423_v51 = vpop.f32.mrb[15].mxu1 }
 0x1c1   : > { %v1540_v39 = vpop.f32.mrb[16].mxu0  ;;  %v1560_v24 = vpop.f32.mrb[16].mxu1 }
 0x1c2   : > { %v1579_v40 = vadd.f32 %v1540_v39, %v1387_v25  ;;  %v1583_v58 = vadd.f32 %v1560_v24, %v1407_v62  ;;  %v1542_v14 = vpop.f32.mrb[17].mxu0  ;;  %v1562_v4 = vpop.f32.mrb[17].mxu1 }
 0x1c4   : > { %v1594_v41 = vadd.f32 %v1847_v28, %v1579_v40  ;;  %v1598_v42 = vadd.f32 %v1847_v28, %v1583_v58 }
 0x1c5   : > { %v1545_v60 = vpop.f32.mrb[18].mxu0  ;;  %v1565_v46 = vpop.f32.mrb[18].mxu1 }
 0x1c6   : > { %1602 = vst.msk [vmem:[%s3105_s14] sm:$0xff] %vm1147_vm3, %v1594_v41  ;;  %1606 = vst.msk [vmem:[%s3105_s14 + $0x20] sm:$0xff] %vm1147_vm3, %v1598_v42  ;;  %v1580_v7 = vadd.f32 %v1545_v60, %v1392_v18  ;;  %v1584_v44 = vadd.f32 %v1565_v46, %v1412_v35  ;;  %v1547_v8 = vpop.f32.mrb[19].mxu0  ;;  %v1567_v59 = vpop.f32.mrb[19].mxu1 }
 0x1c8   : > { %v1595_v27 = vadd.f32 %v1847_v28, %v1580_v7  ;;  %v1599_v47 = vadd.f32 %v1847_v28, %v1584_v44 }
 0x1c9   : > { %v1550_v48 = vpop.f32.mrb[20].mxu0  ;;  %v1570_v63 = vpop.f32.mrb[20].mxu1 }
 0x1ca   : > { %1603 = vst.msk [vmem:[%s3105_s14 + $0x8] sm:$0xff] %vm1147_vm3, %v1595_v27  ;;  %1607 = vst.msk [vmem:[%s3105_s14 + $0x28] sm:$0xff] %vm1147_vm3, %v1599_v47  ;;  %v1581_v5 = vadd.f32 %v1550_v48, %v1397_v31  ;;  %v1585_v16 = vadd.f32 %v1570_v63, %v1417_v21  ;;  %v1552_v2 = vpop.f32.mrb[21].mxu0  ;;  %v1572_v15 = vpop.f32.mrb[21].mxu1 }
 0x1cc   : > { %v1596_v11 = vadd.f32 %v1847_v28, %v1581_v5  ;;  %v1600_v55 = vadd.f32 %v1847_v28, %v1585_v16 }
 0x1cd   : > { %v1555_v9 = vpop.f32.mrb[22].mxu0  ;;  %v1575_v25 = vpop.f32.mrb[22].mxu1 }
 0x1ce   : > { %1604 = vst.msk [vmem:[%s3105_s14 + $0x10] sm:$0xff] %vm1147_vm3, %v1596_v11  ;;  %1608 = vst.msk [vmem:[%s3105_s14 + $0x30] sm:$0xff] %vm1147_vm3, %v1600_v55  ;;  %v1582_v45 = vadd.f32 %v1555_v9, %v3097_v43  ;;  %v1586_v49 = vadd.f32 %v1575_v25, %v1422_v3  ;;  %v1557_v56 = vpop.f32.mrb[23].mxu0  ;;  %v1577_v0 = vpop.f32.mrb[23].mxu1 }
 0x1d0   : > { %v1597_v18 = vadd.f32 %v1847_v28, %v1582_v45  ;;  %v1601_v29 = vadd.f32 %v1847_v28, %v1586_v49 }
 0x1d2   : > { %1605 = vst.msk [vmem:[%s3105_s14 + $0x18] sm:$0xff] %vm1147_vm3, %v1597_v18  ;;  %1609 = vst.msk [vmem:[%s3105_s14 + $0x38] sm:$0xff] %vm1147_vm3, %v1601_v29 }
 0x1d3   : > { %2102 = shalt.err (!%p2099_p13)
}
 0x1d4   : > { %s2103_s27 = scalar_lea.hbm %s3126_s28, 1024  ;;  %s2107_s15 = scalar_lea.hbm %s3193_s5, 16384 }
 0x1d5   : > { %p2104_p0 = scmp.ne.s32.totalorder %s3126_s28, %s2103_s27  ;;  %p2108_p4 = scmp.lt.u32.totalorder %s3126_s28, %s3193_s5 }
 0x1d6   : > { %p2109_p5 = scmp.lt.u32.totalorder %s2107_s15, %s2103_s27  ;;  %p2111_p7 = scmp.lt.u32.totalorder %s2103_s27, %s3126_s28 }
 0x1d7   : > { %p2105_p1 = pnand %p2104_p0, %p2273_p3 }
 0x1d8   : > { %p2110_p6 = por %p2109_p5, %p2108_p4 }
 0x1d9   : > { %p2106_p2 = pneg %p2105_p1 }
 0x1da   : > { %p2112_p9 = por %p2111_p7, %p2110_p6 }
 0x1dc   : > { %p2113_p10 = pnand %p2112_p9, %p2106_p2 }
 0x1de   : > { %2116 = shalt.err (!%p2113_p10)
}
 0x1df   : > { %s2190_s21 = smov 128   ;;  %s2191_s30 = smov 8  }
 0x1e0   : > { %1996 = dma.vmem_to_hbm [thread:$0]  (%p2273_p3), %s3128_s22, 1024, %s3126_s28, %s3136_s17, %s2190_s21, %s2190_s21, %s2191_s30  }
 0x1e1 PF: > { %p2002_p11 = scmp.ge.s32.totalorder %s2183_s25, 2  ;;  %s1642_s13 = sand.u32 1, %s2155_s18  }
 0x1e2   : > { %s1643_s12 = scalar_lea.sflag [#allocation3], %s1642_s13 }
 0x1e3   : > { %p1999_p12 = pnand %p2002_p11, %p2282_p8 }
 0x1e5   : > { %2150 = dma.done.wait (!%p1999_p12), %s1643_s12, 1024  }
 0x1e6   : > { %2152 = vsyncadd (!%p1999_p12), %s1643_s12, 4294966272  ;;  %s18_s25 = sadd.s32 1, %s2183_s25   ;;  %s3201_s6 = sld [smem:[#allocation5_spill]] }
 0x1e7   : > { %p15_p13 = scmp.ge.s32.totalorder %s18_s25, 18   ;;  %s3202_s28 = sld [smem:[#allocation6_spill]] }
 0x1e8   : > { %s3203_s18 = smov %s2159_s19  ;;  %s3204_s19 = smov %s2163_s20 }
 0x1e9   : > { %s3205_s20 = smov %s2291_s11  ;;  %s3206_s21 = smov %s2175_s23 }
 0x1ea   : > { %s3207_s22 = smov %s2179_s24  ;;  %17 = sbr.rel (!%p15_p13) target bundleno = 5 (0x5), region = 83 }
 0x1ec   : > { %s3208_s23 = smov %s3201_s6 }
 0x1ed   : > { %s3209_s24 = smov %s3202_s28 }
 0x1f1   :  { %1648 = vsyncpa [#allocation3], 1 }
 0x1f2   :  { %1650 = vsyncpa [#allocation3 + $0x1], 1 }

</bundles_post_ra>
